<compile_context>
chip_gen: v7x
topology: tpu7x:2x2x1
jax: 0.10.0
libtpu: 0.0.40
codegen_flags: <defaults>
</compile_context>

<pallas_src>
import functools

import jax
import jax.numpy as jnp
from jax.experimental import pallas as pl
from jax.experimental.pallas import tpu as pltpu


def _dual_block_kernel(x_ref, w1_ref, b1_ref, w2_ref, b2_ref, w3_ref, b3_ref,
                       alpha_ref, o_ref, pad1_ref, pad2_ref, *, nb, h):
    """Fused Conv3x3+PReLU -> Conv3x3+PReLU -> Conv3x3 for NB images.

    x_ref   : (nb, h+2, W*Cin)   lane-dense input row slab, zero halo rows
    w*_ref  : (3, W*Cin, W*Cout) banded weight matrix per vertical tap dy
    b*_ref  : (1, W*Cout)        bias, already tiled along W
    alpha_ref: (2,) in SMEM      shared PReLU slopes for layers 1 and 2
    o_ref   : (nb, h, W*c_out)   lane-dense output row slab
    pad*_ref: (nb, h+2, W*n_hidden) VMEM slab scratch for hidden activations
    """
    m = nb * h

    def conv_rows(src_ref, w_ref, b_ref):
        # One dense MXU matmul per vertical tap (dy); the banded weight matrix
        # encodes the horizontal taps (dx) and the horizontal zero padding, so
        # there is no lane-axis tap packing and no masked stores anywhere.
        k = src_ref.shape[-1]
        acc = jnp.dot(src_ref[:, 0:h, :].reshape(m, k), w_ref[0],
                      preferred_element_type=jnp.float32)
        acc = acc + jnp.dot(src_ref[:, 1:h + 1, :].reshape(m, k), w_ref[1],
                            preferred_element_type=jnp.float32)
        acc = acc + jnp.dot(src_ref[:, 2:h + 2, :].reshape(m, k), w_ref[2],
                            preferred_element_type=jnp.float32)
        return acc + b_ref[...]                          # (m, W*Cout) f32

    def prelu(y, a):
        return jnp.where(y >= 0.0, y, a * y)

    def to_slab(pad_ref, y):
        cols = pad_ref.shape[-1]
        zero_row = jnp.zeros((nb, 1, cols), jnp.float32)
        # Zero ONLY the two halo rows; the interior is fully overwritten below.
        # (Done every step: with "parallel" semantics each core has its own
        #  private scratch, so a program_id==0 one-shot would be wrong.)
        pad_ref[:, 0:1, :] = zero_row
        pad_ref[:, h + 1:h + 2, :] = zero_row
        pad_ref[:, 1:h + 1, :] = y.reshape(nb, h, cols)

    y1 = prelu(conv_rows(x_ref, w1_ref, b1_ref), alpha_ref[0])
    to_slab(pad1_ref, y1)
    y2 = prelu(conv_rows(pad1_ref, w2_ref, b2_ref), alpha_ref[1])
    to_slab(pad2_ref, y2)
    y3 = conv_rows(pad2_ref, w3_ref, b3_ref)
    o_ref[...] = y3.reshape(o_ref.shape).astype(o_ref.dtype)


def _banded_weights(w_hwio, width):
    """Pack (3, 3, Cin, Cout) HWIO conv weights into 3 banded matrices.

    mats[dy] has shape (width*Cin, width*Cout) and maps one input row slab
    (lane = w_in*Cin + ci) to one output row slab (lane = w_out*Cout + c),
    with mats[dy][w_in*Cin+ci, w_out*Cout+c] = w[dy, w_out-w_in+1, ci, c]
    when |w_out - w_in| <= 1 and 0 otherwise.  The missing off-edge rows
    implement the horizontal SAME zero padding for free.
    """
    _, _, cin, cout = w_hwio.shape
    mats = []
    for dy in range(3):
        acc = jnp.zeros((width, cin, width, cout), jnp.float32)
        for dx in range(3):
            shift = jnp.eye(width, width, k=1 - dx, dtype=jnp.float32)
            acc = acc + jnp.einsum("io,kc->ikoc", shift,
                                   w_hwio[dy, dx].astype(jnp.float32))
        mats.append(acc.reshape(width * cin, width * cout))
    return jnp.stack(mats)            # (3, width*Cin, width*Cout)


def dual_block_pallas(x, params, *, nb_target=8):
    """Runs the fused dual_block on a folded (B*coil, H, W, Cin) NHWC input."""
    n, h, w, c_in = x.shape
    n_hidden = params["w1"].shape[-1]
    c_out = params["w3"].shape[-1]
    assert h % 8 == 0, "image height must be a multiple of the 8-row sublane tile"

    # Host-side weight packing (tiny, done once per call site under jit).
    w1b = _banded_weights(params["w1"], w)
    w2b = _banded_weights(params["w2"], w)
    w3b = _banded_weights(params["w3"], w)
    b1s = jnp.tile(params["b1"].astype(jnp.float32), w).reshape(1, w * n_hidden)
    b2s = jnp.tile(params["b2"].astype(jnp.float32), w).reshape(1, w * n_hidden)
    b3s = jnp.tile(params["b3"].astype(jnp.float32), w).reshape(1, w * c_out)
    alphas = jnp.stack([params["a1"], params["a2"]]).astype(jnp.float32)

    # Lane-dense row-slab input: (n, h+2, w*c_in), zero halo rows at top/bottom.
    x_slab = jnp.pad(x.reshape(n, h, w * c_in), ((0, 0), (1, 1), (0, 0)))

    # Batch nb images per grid step (amortizes per-step pipeline overhead),
    # keeping the grid length >= 2 so both v7x TensorCores get work.
    nb = max(1, min(nb_target, pl.cdiv(n, 2)))
    steps = pl.cdiv(n, nb)
    n_pad = steps * nb
    if n_pad != n:
        x_slab = jnp.pad(x_slab, ((0, n_pad - n), (0, 0), (0, 0)))

    kernel = functools.partial(_dual_block_kernel, nb=nb, h=h)

    # Weights/biases: untiled, single-copy VMEM residents (no double buffer).
    vmem = pl.BlockSpec(memory_space=pltpu.MemorySpace.VMEM)
    smem = pl.BlockSpec(memory_space=pltpu.MemorySpace.SMEM)

    flops = 6 * n_pad * h * w * w * (c_in * n_hidden
                                     + n_hidden * n_hidden
                                     + n_hidden * c_out)
    bytes_accessed = 4 * int(x_slab.size + w1b.size + w2b.size + w3b.size
                             + b1s.size + b2s.size + b3s.size + alphas.size
                             + n_pad * h * w * c_out)

    out = pl.pallas_call(
        kernel,
        out_shape=jax.ShapeDtypeStruct((n_pad, h, w * c_out), x.dtype),
        grid=(steps,),
        in_specs=[
            pl.BlockSpec((nb, h + 2, w * c_in), lambda i: (i, 0, 0)),
            vmem, vmem, vmem, vmem, vmem, vmem,   # banded weights + biases
            smem,                                 # PReLU slopes
        ],
        out_specs=pl.BlockSpec((nb, h, w * c_out), lambda i: (i, 0, 0)),
        scratch_shapes=[
            pltpu.VMEM((nb, h + 2, w * n_hidden), jnp.float32),
            pltpu.VMEM((nb, h + 2, w * n_hidden), jnp.float32),
        ],
        compiler_params=pltpu.CompilerParams(
            dimension_semantics=("parallel",),
            vmem_limit_bytes=32 * 1024 * 1024),
        cost_estimate=pl.CostEstimate(flops=flops, transcendentals=0,
                                      bytes_accessed=bytes_accessed),
    )(x_slab, w1b, b1s, w2b, b2s, w3b, b3s, alphas)

    return out[:n].reshape(n, h, w, c_out)


def dual_net_forward(params, h, forward_f, g):
    """DualNet.forward: inputs (B, coil, H, W, C) channels-last."""
    B, n_coil = h.shape[:2]
    flat = lambda t: t.reshape((B * n_coil,) + t.shape[2:])
    # Channel concat of (h, forward_f, g); applying the shared block per coil
    # is equivalent to folding (B, coil) into one batch axis.
    x = jnp.concatenate([flat(h), flat(forward_f), flat(g)], axis=-1)
    out = dual_block_pallas(x, params)
    return out.reshape((B, n_coil) + out.shape[1:])


def init_dual_net_params(key, num_dual, n_hidden):
    """Deterministic synthetic parameters (shapes match the PyTorch module)."""
    c_in = 2 * (num_dual + 2)
    c_out = 2 * num_dual
    ks = jax.random.split(key, 6)

    def conv_init(kw, kb, cin, cout):
        fan_in = cin * 9
        scale = 1.0 / jnp.sqrt(jnp.asarray(fan_in, jnp.float32))
        wgt = jax.random.uniform(kw, (3, 3, cin, cout), jnp.float32,
                                 minval=-scale, maxval=scale)
        b = jax.random.uniform(kb, (cout,), jnp.float32,
                               minval=-scale, maxval=scale)
        return wgt, b

    w1, b1 = conv_init(ks[0], ks[1], c_in, n_hidden)
    w2, b2 = conv_init(ks[2], ks[3], n_hidden, n_hidden)
    w3, b3 = conv_init(ks[4], ks[5], n_hidden, c_out)
    # nn.PReLU() default: single shared slope initialized to 0.25
    return dict(w1=w1, b1=b1, a1=jnp.float32(0.25),
                w2=w2, b2=b2, a2=jnp.float32(0.25),
                w3=w3, b3=b3)


def _reference_forward(params, h, forward_f, g):
    """Pure-JAX reference (lax conv) for correctness checking."""
    def conv(x, wgt, b):
        y = jax.lax.conv_general_dilated(
            x, wgt, window_strides=(1, 1), padding="SAME",
            dimension_numbers=("NHWC", "HWIO", "NHWC"))
        return y + b

    def prelu(x, a):
        return jnp.where(x >= 0.0, x, a * x)

    B, n_coil = h.shape[:2]
    flat = lambda t: t.reshape((B * n_coil,) + t.shape[2:])
    x = jnp.concatenate([flat(h), flat(forward_f), flat(g)], axis=-1)
    y = prelu(conv(x, params["w1"], params["b1"]), params["a1"])
    y = prelu(conv(y, params["w2"], params["b2"]), params["a2"])
    y = conv(y, params["w3"], params["b3"])
    return y.reshape((B, n_coil) + y.shape[1:])


if __name__ == "__main__":
    num_dual = 2
    n_hidden = 32
    B, n_coil, H, W = 2, 3, 16, 16

    key = jax.random.PRNGKey(0)
    k_h, k_f, k_g, k_p = jax.random.split(key, 4)

    # Channels-last inputs (complex-as-2ch): h has 2*num_dual, f and g have 2.
    h = jax.random.normal(k_h, (B, n_coil, H, W, 2 * num_dual), jnp.float32)
    forward_f = jax.random.normal(k_f, (B, n_coil, H, W, 2), jnp.float32)
    g = jax.random.normal(k_g, (B, n_coil, H, W, 2), jnp.float32)

    params = init_dual_net_params(k_p, num_dual, n_hidden)

    out = jax.block_until_ready(dual_net_forward(params, h, forward_f, g))
    ref = jax.block_until_ready(_reference_forward(params, h, forward_f, g))

    assert out.shape == (B, n_coil, H, W, 2 * num_dual), out.shape
    assert jnp.allclose(out, ref, atol=1e-4, rtol=1e-4), (
        float(jnp.max(jnp.abs(out - ref))))

    print("KERNEL_OK")
</pallas_src>

<mosaic_0001>
module attributes {stable_mosaic.version = 11 : i64} {
  func.func @_dual_block_kernel(%arg0: i32, %arg1: memref<3x18x128xf32, #tpu.memory_space<vmem>>, %arg2: memref<3x128x512xf32, #tpu.memory_space<vmem>>, %arg3: memref<1x512xf32, #tpu.memory_space<vmem>>, %arg4: memref<3x512x512xf32, #tpu.memory_space<vmem>>, %arg5: memref<1x512xf32, #tpu.memory_space<vmem>>, %arg6: memref<3x512x64xf32, #tpu.memory_space<vmem>>, %arg7: memref<1x64xf32, #tpu.memory_space<vmem>>, %arg8: memref<2xf32, #tpu.memory_space<smem>>, %arg9: memref<3x16x64xf32, #tpu.memory_space<vmem>>, %arg10: memref<3x18x512xf32, #tpu.memory_space<vmem>>, %arg11: memref<3x18x512xf32, #tpu.memory_space<vmem>>) attributes {dimension_semantics = [#tpu.dimension_semantics<parallel>], iteration_bounds = array<i64: 2>, scalar_prefetch = 0 : i64, scratch_operands = 2 : i64, tpu.core_type = #tpu.core_type<tc>, window_params = [{transform_indices = @transform_0, window_bounds = array<i64: 3, 18, 128>}, {pipeline_mode = #tpu.pipeline_mode<synchronous>, transform_indices = @transform_1, window_bounds = array<i64: 3, 128, 512>}, {pipeline_mode = #tpu.pipeline_mode<synchronous>, transform_indices = @transform_2, window_bounds = array<i64: 1, 512>}, {pipeline_mode = #tpu.pipeline_mode<synchronous>, transform_indices = @transform_3, window_bounds = array<i64: 3, 512, 512>}, {pipeline_mode = #tpu.pipeline_mode<synchronous>, transform_indices = @transform_4, window_bounds = array<i64: 1, 512>}, {pipeline_mode = #tpu.pipeline_mode<synchronous>, transform_indices = @transform_5, window_bounds = array<i64: 3, 512, 64>}, {pipeline_mode = #tpu.pipeline_mode<synchronous>, transform_indices = @transform_6, window_bounds = array<i64: 1, 64>}, {transform_indices = @transform_7, window_bounds = array<i64: 2>}, {transform_indices = @transform_8, window_bounds = array<i64: 3, 16, 64>}]} {
    %c0 = arith.constant 0 : index
    %c0_0 = arith.constant 0 : index
    %c0_1 = arith.constant 0 : index
    %0 = vector.load %arg1[%c0, %c0_0, %c0_1] : memref<3x18x128xf32, #tpu.memory_space<vmem>>, vector<3x16x128xf32>
    %1 = vector.shape_cast %0 : vector<3x16x128xf32> to vector<48x128xf32>
    %c0_2 = arith.constant 0 : index
    %c0_3 = arith.constant 0 : index
    %c0_4 = arith.constant 0 : index
    %2 = vector.load %arg2[%c0_2, %c0_3, %c0_4] : memref<3x128x512xf32, #tpu.memory_space<vmem>>, vector<1x128x512xf32>
    %3 = vector.shape_cast %2 : vector<1x128x512xf32> to vector<128x512xf32>
    %cst = arith.constant dense<0.000000e+00> : vector<48x512xf32>
    %4 = tpu.matmul %1, %3, %cst {dimension_numbers = #tpu.dot_dimension_numbers<[1], [0], [0], [1], [0, 0, 1, 1], [], []>} : vector<48x128xf32>, vector<128x512xf32>, vector<48x512xf32> -> vector<48x512xf32>
    %c0_5 = arith.constant 0 : index
    %c1 = arith.constant 1 : index
    %c0_6 = arith.constant 0 : index
    %5 = vector.load %arg1[%c0_5, %c1, %c0_6] : memref<3x18x128xf32, #tpu.memory_space<vmem>>, vector<3x16x128xf32>
    %6 = vector.shape_cast %5 : vector<3x16x128xf32> to vector<48x128xf32>
    %c1_7 = arith.constant 1 : index
    %c0_8 = arith.constant 0 : index
    %c0_9 = arith.constant 0 : index
    %7 = vector.load %arg2[%c1_7, %c0_8, %c0_9] : memref<3x128x512xf32, #tpu.memory_space<vmem>>, vector<1x128x512xf32>
    %8 = vector.shape_cast %7 : vector<1x128x512xf32> to vector<128x512xf32>
    %cst_10 = arith.constant dense<0.000000e+00> : vector<48x512xf32>
    %9 = tpu.matmul %6, %8, %cst_10 {dimension_numbers = #tpu.dot_dimension_numbers<[1], [0], [0], [1], [0, 0, 1, 1], [], []>} : vector<48x128xf32>, vector<128x512xf32>, vector<48x512xf32> -> vector<48x512xf32>
    %10 = arith.addf %4, %9 : vector<48x512xf32>
    %c0_11 = arith.constant 0 : index
    %c2 = arith.constant 2 : index
    %c0_12 = arith.constant 0 : index
    %11 = vector.load %arg1[%c0_11, %c2, %c0_12] : memref<3x18x128xf32, #tpu.memory_space<vmem>>, vector<3x16x128xf32>
    %12 = vector.shape_cast %11 : vector<3x16x128xf32> to vector<48x128xf32>
    %c2_13 = arith.constant 2 : index
    %c0_14 = arith.constant 0 : index
    %c0_15 = arith.constant 0 : index
    %13 = vector.load %arg2[%c2_13, %c0_14, %c0_15] : memref<3x128x512xf32, #tpu.memory_space<vmem>>, vector<1x128x512xf32>
    %14 = vector.shape_cast %13 : vector<1x128x512xf32> to vector<128x512xf32>
    %cst_16 = arith.constant dense<0.000000e+00> : vector<48x512xf32>
    %15 = tpu.matmul %12, %14, %cst_16 {dimension_numbers = #tpu.dot_dimension_numbers<[1], [0], [0], [1], [0, 0, 1, 1], [], []>} : vector<48x128xf32>, vector<128x512xf32>, vector<48x512xf32> -> vector<48x512xf32>
    %16 = arith.addf %10, %15 : vector<48x512xf32>
    %c0_17 = arith.constant 0 : index
    %c0_18 = arith.constant 0 : index
    %17 = vector.load %arg3[%c0_17, %c0_18] : memref<1x512xf32, #tpu.memory_space<vmem>>, vector<1x512xf32>
    %18 = vector.broadcast %17 : vector<1x512xf32> to vector<48x512xf32>
    %19 = arith.addf %16, %18 : vector<48x512xf32>
    %c0_19 = arith.constant 0 : index
    %20 = memref.load %arg8[%c0_19] : memref<2xf32, #tpu.memory_space<smem>>
    %cst_20 = arith.constant 0.000000e+00 : f32
    %21 = vector.broadcast %cst_20 : f32 to vector<48x512xf32>
    %22 = arith.cmpf oge, %19, %21 : vector<48x512xf32>
    %23 = vector.broadcast %20 : f32 to vector<48x512xf32>
    %24 = arith.mulf %23, %19 : vector<48x512xf32>
    %25 = arith.select %22, %19, %24 : vector<48x512xi1>, vector<48x512xf32>
    %cst_21 = arith.constant 0.000000e+00 : f32
    %26 = vector.broadcast %cst_21 : f32 to vector<3x1x512xf32>
    %c0_22 = arith.constant 0 : index
    %c0_23 = arith.constant 0 : index
    %c0_24 = arith.constant 0 : index
    %27 = vector.load %arg10[%c0_22, %c0_23, %c0_24] : memref<3x18x512xf32, #tpu.memory_space<vmem>>, vector<3x1x512xf32>
    tpu.vector_store %arg10[%c0_22, %c0_23, %c0_24], %26 {strides = array<i32>} : memref<3x18x512xf32, #tpu.memory_space<vmem>>, vector<3x1x512xf32>,
    %c0_25 = arith.constant 0 : index
    %c17 = arith.constant 17 : index
    %c0_26 = arith.constant 0 : index
    %28 = vector.load %arg10[%c0_25, %c17, %c0_26] : memref<3x18x512xf32, #tpu.memory_space<vmem>>, vector<3x1x512xf32>
    tpu.vector_store %arg10[%c0_25, %c17, %c0_26], %26 {strides = array<i32>} : memref<3x18x512xf32, #tpu.memory_space<vmem>>, vector<3x1x512xf32>,
    %29 = vector.shape_cast %25 : vector<48x512xf32> to vector<3x16x512xf32>
    %c0_27 = arith.constant 0 : index
    %c1_28 = arith.constant 1 : index
    %c0_29 = arith.constant 0 : index
    %30 = vector.load %arg10[%c0_27, %c1_28, %c0_29] : memref<3x18x512xf32, #tpu.memory_space<vmem>>, vector<3x16x512xf32>
    tpu.vector_store %arg10[%c0_27, %c1_28, %c0_29], %29 {strides = array<i32>} : memref<3x18x512xf32, #tpu.memory_space<vmem>>, vector<3x16x512xf32>,
    %c0_30 = arith.constant 0 : index
    %c0_31 = arith.constant 0 : index
    %c0_32 = arith.constant 0 : index
    %31 = vector.load %arg10[%c0_30, %c0_31, %c0_32] : memref<3x18x512xf32, #tpu.memory_space<vmem>>, vector<3x16x512xf32>
    %32 = vector.shape_cast %31 : vector<3x16x512xf32> to vector<48x512xf32>
    %c0_33 = arith.constant 0 : index
    %c0_34 = arith.constant 0 : index
    %c0_35 = arith.constant 0 : index
    %33 = vector.load %arg4[%c0_33, %c0_34, %c0_35] : memref<3x512x512xf32, #tpu.memory_space<vmem>>, vector<1x512x512xf32>
    %34 = vector.shape_cast %33 : vector<1x512x512xf32> to vector<512x512xf32>
    %cst_36 = arith.constant dense<0.000000e+00> : vector<48x512xf32>
    %35 = tpu.matmul %32, %34, %cst_36 {dimension_numbers = #tpu.dot_dimension_numbers<[1], [0], [0], [1], [0, 0, 1, 1], [], []>} : vector<48x512xf32>, vector<512x512xf32>, vector<48x512xf32> -> vector<48x512xf32>
    %c0_37 = arith.constant 0 : index
    %c1_38 = arith.constant 1 : index
    %c0_39 = arith.constant 0 : index
    %36 = vector.load %arg10[%c0_37, %c1_38, %c0_39] : memref<3x18x512xf32, #tpu.memory_space<vmem>>, vector<3x16x512xf32>
    %37 = vector.shape_cast %36 : vector<3x16x512xf32> to vector<48x512xf32>
    %c1_40 = arith.constant 1 : index
    %c0_41 = arith.constant 0 : index
    %c0_42 = arith.constant 0 : index
    %38 = vector.load %arg4[%c1_40, %c0_41, %c0_42] : memref<3x512x512xf32, #tpu.memory_space<vmem>>, vector<1x512x512xf32>
    %39 = vector.shape_cast %38 : vector<1x512x512xf32> to vector<512x512xf32>
    %cst_43 = arith.constant dense<0.000000e+00> : vector<48x512xf32>
    %40 = tpu.matmul %37, %39, %cst_43 {dimension_numbers = #tpu.dot_dimension_numbers<[1], [0], [0], [1], [0, 0, 1, 1], [], []>} : vector<48x512xf32>, vector<512x512xf32>, vector<48x512xf32> -> vector<48x512xf32>
    %41 = arith.addf %35, %40 : vector<48x512xf32>
    %c0_44 = arith.constant 0 : index
    %c2_45 = arith.constant 2 : index
    %c0_46 = arith.constant 0 : index
    %42 = vector.load %arg10[%c0_44, %c2_45, %c0_46] : memref<3x18x512xf32, #tpu.memory_space<vmem>>, vector<3x16x512xf32>
    %43 = vector.shape_cast %42 : vector<3x16x512xf32> to vector<48x512xf32>
    %c2_47 = arith.constant 2 : index
    %c0_48 = arith.constant 0 : index
    %c0_49 = arith.constant 0 : index
    %44 = vector.load %arg4[%c2_47, %c0_48, %c0_49] : memref<3x512x512xf32, #tpu.memory_space<vmem>>, vector<1x512x512xf32>
    %45 = vector.shape_cast %44 : vector<1x512x512xf32> to vector<512x512xf32>
    %cst_50 = arith.constant dense<0.000000e+00> : vector<48x512xf32>
    %46 = tpu.matmul %43, %45, %cst_50 {dimension_numbers = #tpu.dot_dimension_numbers<[1], [0], [0], [1], [0, 0, 1, 1], [], []>} : vector<48x512xf32>, vector<512x512xf32>, vector<48x512xf32> -> vector<48x512xf32>
    %47 = arith.addf %41, %46 : vector<48x512xf32>
    %c0_51 = arith.constant 0 : index
    %c0_52 = arith.constant 0 : index
    %48 = vector.load %arg5[%c0_51, %c0_52] : memref<1x512xf32, #tpu.memory_space<vmem>>, vector<1x512xf32>
    %49 = vector.broadcast %48 : vector<1x512xf32> to vector<48x512xf32>
    %50 = arith.addf %47, %49 : vector<48x512xf32>
    %c1_53 = arith.constant 1 : index
    %51 = memref.load %arg8[%c1_53] : memref<2xf32, #tpu.memory_space<smem>>
    %cst_54 = arith.constant 0.000000e+00 : f32
    %52 = vector.broadcast %cst_54 : f32 to vector<48x512xf32>
    %53 = arith.cmpf oge, %50, %52 : vector<48x512xf32>
    %54 = vector.broadcast %51 : f32 to vector<48x512xf32>
    %55 = arith.mulf %54, %50 : vector<48x512xf32>
    %56 = arith.select %53, %50, %55 : vector<48x512xi1>, vector<48x512xf32>
    %cst_55 = arith.constant 0.000000e+00 : f32
    %57 = vector.broadcast %cst_55 : f32 to vector<3x1x512xf32>
    %c0_56 = arith.constant 0 : index
    %c0_57 = arith.constant 0 : index
    %c0_58 = arith.constant 0 : index
    %58 = vector.load %arg11[%c0_56, %c0_57, %c0_58] : memref<3x18x512xf32, #tpu.memory_space<vmem>>, vector<3x1x512xf32>
    tpu.vector_store %arg11[%c0_56, %c0_57, %c0_58], %57 {strides = array<i32>} : memref<3x18x512xf32, #tpu.memory_space<vmem>>, vector<3x1x512xf32>,
    %c0_59 = arith.constant 0 : index
    %c17_60 = arith.constant 17 : index
    %c0_61 = arith.constant 0 : index
    %59 = vector.load %arg11[%c0_59, %c17_60, %c0_61] : memref<3x18x512xf32, #tpu.memory_space<vmem>>, vector<3x1x512xf32>
    tpu.vector_store %arg11[%c0_59, %c17_60, %c0_61], %57 {strides = array<i32>} : memref<3x18x512xf32, #tpu.memory_space<vmem>>, vector<3x1x512xf32>,
    %60 = vector.shape_cast %56 : vector<48x512xf32> to vector<3x16x512xf32>
    %c0_62 = arith.constant 0 : index
    %c1_63 = arith.constant 1 : index
    %c0_64 = arith.constant 0 : index
    %61 = vector.load %arg11[%c0_62, %c1_63, %c0_64] : memref<3x18x512xf32, #tpu.memory_space<vmem>>, vector<3x16x512xf32>
    tpu.vector_store %arg11[%c0_62, %c1_63, %c0_64], %60 {strides = array<i32>} : memref<3x18x512xf32, #tpu.memory_space<vmem>>, vector<3x16x512xf32>,
    %c0_65 = arith.constant 0 : index
    %c0_66 = arith.constant 0 : index
    %c0_67 = arith.constant 0 : index
    %62 = vector.load %arg11[%c0_65, %c0_66, %c0_67] : memref<3x18x512xf32, #tpu.memory_space<vmem>>, vector<3x16x512xf32>
    %63 = vector.shape_cast %62 : vector<3x16x512xf32> to vector<48x512xf32>
    %c0_68 = arith.constant 0 : index
    %c0_69 = arith.constant 0 : index
    %c0_70 = arith.constant 0 : index
    %64 = vector.load %arg6[%c0_68, %c0_69, %c0_70] : memref<3x512x64xf32, #tpu.memory_space<vmem>>, vector<1x512x64xf32>
    %65 = vector.shape_cast %64 : vector<1x512x64xf32> to vector<512x64xf32>
    %cst_71 = arith.constant dense<0.000000e+00> : vector<48x64xf32>
    %66 = tpu.matmul %63, %65, %cst_71 {dimension_numbers = #tpu.dot_dimension_numbers<[1], [0], [0], [1], [0, 0, 1, 1], [], []>} : vector<48x512xf32>, vector<512x64xf32>, vector<48x64xf32> -> vector<48x64xf32>
    %c0_72 = arith.constant 0 : index
    %c1_73 = arith.constant 1 : index
    %c0_74 = arith.constant 0 : index
    %67 = vector.load %arg11[%c0_72, %c1_73, %c0_74] : memref<3x18x512xf32, #tpu.memory_space<vmem>>, vector<3x16x512xf32>
    %68 = vector.shape_cast %67 : vector<3x16x512xf32> to vector<48x512xf32>
    %c1_75 = arith.constant 1 : index
    %c0_76 = arith.constant 0 : index
    %c0_77 = arith.constant 0 : index
    %69 = vector.load %arg6[%c1_75, %c0_76, %c0_77] : memref<3x512x64xf32, #tpu.memory_space<vmem>>, vector<1x512x64xf32>
    %70 = vector.shape_cast %69 : vector<1x512x64xf32> to vector<512x64xf32>
    %cst_78 = arith.constant dense<0.000000e+00> : vector<48x64xf32>
    %71 = tpu.matmul %68, %70, %cst_78 {dimension_numbers = #tpu.dot_dimension_numbers<[1], [0], [0], [1], [0, 0, 1, 1], [], []>} : vector<48x512xf32>, vector<512x64xf32>, vector<48x64xf32> -> vector<48x64xf32>
    %72 = arith.addf %66, %71 : vector<48x64xf32>
    %c0_79 = arith.constant 0 : index
    %c2_80 = arith.constant 2 : index
    %c0_81 = arith.constant 0 : index
    %73 = vector.load %arg11[%c0_79, %c2_80, %c0_81] : memref<3x18x512xf32, #tpu.memory_space<vmem>>, vector<3x16x512xf32>
    %74 = vector.shape_cast %73 : vector<3x16x512xf32> to vector<48x512xf32>
    %c2_82 = arith.constant 2 : index
    %c0_83 = arith.constant 0 : index
    %c0_84 = arith.constant 0 : index
    %75 = vector.load %arg6[%c2_82, %c0_83, %c0_84] : memref<3x512x64xf32, #tpu.memory_space<vmem>>, vector<1x512x64xf32>
    %76 = vector.shape_cast %75 : vector<1x512x64xf32> to vector<512x64xf32>
    %cst_85 = arith.constant dense<0.000000e+00> : vector<48x64xf32>
    %77 = tpu.matmul %74, %76, %cst_85 {dimension_numbers = #tpu.dot_dimension_numbers<[1], [0], [0], [1], [0, 0, 1, 1], [], []>} : vector<48x512xf32>, vector<512x64xf32>, vector<48x64xf32> -> vector<48x64xf32>
    %78 = arith.addf %72, %77 : vector<48x64xf32>
    %c0_86 = arith.constant 0 : index
    %c0_87 = arith.constant 0 : index
    %79 = vector.load %arg7[%c0_86, %c0_87] : memref<1x64xf32, #tpu.memory_space<vmem>>, vector<1x64xf32>
    %80 = vector.broadcast %79 : vector<1x64xf32> to vector<48x64xf32>
    %81 = arith.addf %78, %80 : vector<48x64xf32>
    %82 = vector.shape_cast %81 : vector<48x64xf32> to vector<3x16x64xf32>
    %c0_88 = arith.constant 0 : index
    %c0_89 = arith.constant 0 : index
    %c0_90 = arith.constant 0 : index
    %83 = vector.load %arg9[%c0_88, %c0_89, %c0_90] : memref<3x16x64xf32, #tpu.memory_space<vmem>>, vector<3x16x64xf32>
    tpu.vector_store %arg9[%c0_88, %c0_89, %c0_90], %82 {strides = array<i32>} : memref<3x16x64xf32, #tpu.memory_space<vmem>>, vector<3x16x64xf32>,
    return
  }
  func.func @transform_0(%arg0: i32) -> (i32, i32, i32) {
    %c0_i32 = arith.constant 0 : i32
    %c0_i32_0 = arith.constant 0 : i32
    %c0_i32_1 = arith.constant 0 : i32
    return %arg0, %c0_i32, %c0_i32_0 : i32, i32, i32
  }
  func.func @transform_1(%arg0: i32) -> (i32, i32, i32) {
    %c0_i32 = arith.constant 0 : i32
    %c0_i32_0 = arith.constant 0 : i32
    %c0_i32_1 = arith.constant 0 : i32
    %c0_i32_2 = arith.constant 0 : i32
    return %c0_i32, %c0_i32_0, %c0_i32_1 : i32, i32, i32
  }
  func.func @transform_2(%arg0: i32) -> (i32, i32) {
    %c0_i32 = arith.constant 0 : i32
    %c0_i32_0 = arith.constant 0 : i32
    %c0_i32_1 = arith.constant 0 : i32
    return %c0_i32, %c0_i32_0 : i32, i32
  }
  func.func @transform_3(%arg0: i32) -> (i32, i32, i32) {
    %c0_i32 = arith.constant 0 : i32
    %c0_i32_0 = arith.constant 0 : i32
    %c0_i32_1 = arith.constant 0 : i32
    %c0_i32_2 = arith.constant 0 : i32
    return %c0_i32, %c0_i32_0, %c0_i32_1 : i32, i32, i32
  }
  func.func @transform_4(%arg0: i32) -> (i32, i32) {
    %c0_i32 = arith.constant 0 : i32
    %c0_i32_0 = arith.constant 0 : i32
    %c0_i32_1 = arith.constant 0 : i32
    return %c0_i32, %c0_i32_0 : i32, i32
  }
  func.func @transform_5(%arg0: i32) -> (i32, i32, i32) {
    %c0_i32 = arith.constant 0 : i32
    %c0_i32_0 = arith.constant 0 : i32
    %c0_i32_1 = arith.constant 0 : i32
    %c0_i32_2 = arith.constant 0 : i32
    return %c0_i32, %c0_i32_0, %c0_i32_1 : i32, i32, i32
  }
  func.func @transform_6(%arg0: i32) -> (i32, i32) {
    %c0_i32 = arith.constant 0 : i32
    %c0_i32_0 = arith.constant 0 : i32
    %c0_i32_1 = arith.constant 0 : i32
    return %c0_i32, %c0_i32_0 : i32, i32
  }
  func.func @transform_7(%arg0: i32) -> i32 {
    %c0_i32 = arith.constant 0 : i32
    %c0_i32_0 = arith.constant 0 : i32
    return %c0_i32 : i32
  }
  func.func @transform_8(%arg0: i32) -> (i32, i32, i32) {
    %c0_i32 = arith.constant 0 : i32
    %c0_i32_0 = arith.constant 0 : i32
    %c0_i32_1 = arith.constant 0 : i32
    return %arg0, %c0_i32, %c0_i32_0 : i32, i32, i32
  }
}

</mosaic_0001>

<bundles_post_ra>
// kernel: tpu_custom_call.1
= control target key start
LH: loop header
LB: loop body
LE: loop exit
PB: predicated region body
PF: predicated region fallthrough
CT: control target
= control target key end

     0   :  { %s9142_s0 = inlined_call_operand.hbm [shape: f32[6,18,128], index: 0, kind: input, shape index: {}]   ;;  %s9143_s1 = inlined_call_operand.hbm [shape: f32[3,128,512], index: 1, kind: input, shape index: {}]   ;;  %s9144_s2 = inlined_call_operand.hbm [shape: f32[1,512], index: 2, kind: input, shape index: {}]   ;;  %s9145_s3 = inlined_call_operand.hbm [shape: f32[3,512,512], index: 3, kind: input, shape index: {}]   ;;  %s9146_s4 = inlined_call_operand.hbm [shape: f32[1,512], index: 4, kind: input, shape index: {}]   ;;  %s9147_s5 = inlined_call_operand.vmem [shape: f32[3,512,64], index: 5, kind: input, shape index: {}]   ;;  %s9148_s6 = inlined_call_operand.hbm [shape: f32[1,64], index: 6, kind: input, shape index: {}]   ;;  %s9149_s7 = inlined_call_operand.hbm [shape: f32[2], index: 7, kind: input, shape index: {}]   ;;  %s9150_s8 = inlined_call_operand.hbm [shape: f32[6,16,64], index: 8, kind: output, shape index: {}]  }
   0x1   :  { %9154 = sst [smem:[#allocation24_spill]] %s9143_s1 }
   0x2   :  { %9155 = sst [smem:[#allocation25_spill]] %s9144_s2 }
   0x3   :  { %13 = vsyncpa [#allocation5], 0 }
   0x4   :  { %15 = vsyncpa [#allocation5 + $0x1], 0 }
   0x5   :  { %16 = vsyncpa [#allocation9], 0 }
   0x6   :  { %17 = vsyncpa [#allocation12], 0 }
   0x7   :  { %18 = vsyncpa [#allocation15], 0 }
   0x8   :  { %19 = vsyncpa [#allocation7], 0 }
   0x9   :  { %20 = vsyncpa [#allocation6], 0 }
   0xa   :  { %22 = vsyncpa [#allocation6 + $0x1], 0  ;;  %s7581_s27 = smov 0   ;;  %s7583_s28 = smov 0  }
   0xb   :  { %s7585_s29 = smov 0   ;;  %s7587_s30 = smov 0  }
   0xc LB: > { %s7521_s9 = smov [#allocation8]   ;;  %s7602_s11 = sadd.s32 4294967295, %s7519_s30   ;;  %s7519_s30 = sphi %s7587_s30, %s9183_s30   ;;  %s7515_s29 = sphi %s7585_s29, %s9182_s29   ;;  %s7511_s28 = sphi %s7583_s28, %s9181_s28   ;;  %s7507_s27 = sphi %s7581_s27, %s9180_s27  }
   0xd   : > { %s244_s10 = sshll.u32 %s7521_s9, 4  ;;  %p5338_p0 = scmp.ge.s32.totalorder %s7519_s30, 1  ;;  %s7607_s10 = int_to_ptr.vmem [resolvable:$true] %s244_s10 }
   0xe   : > { %p9151_p1 = scmp.eq.s32.totalorder %s7602_s11, 0  ;;  %p232_p2 = scmp.lt.s32.totalorder %s7519_s30, 3 }
   0xf   : > { %s7522_s14 = smov [#allocation11]   ;;  %s7523_s16 = smov [#allocation10]  }
  0x10   : > { %p7609_p3 = pnand %p5338_p0, %p232_p2  ;;  %s268_s15 = sshll.u32 %s7522_s14, 4  ;;  %s7622_s15 = int_to_ptr.vmem [resolvable:$true] %s268_s15 }
  0x11   : > { %s258_s17 = sshll.u32 %s7523_s16, 4  ;;  %s9158_s1 = sld [smem:[#allocation24_spill]]  ;;  %s7624_s17 = int_to_ptr.vmem [resolvable:$true] %s258_s17 }
  0x12   : > { %s9156_s12 = scalar_select %p7609_p3, 1, 0 }
  0x13   : > { %p7143_p5 = pneg %p7609_p3 }
  0x15   : > { %p7618_p6 = pnand %p7143_p5, %p9151_p1 }
  0x17   : > { %s7254_s20 = scalar_lea.hbm %s9158_s1, 24576  ;;  %p7634_p8 = pneg %p7618_p6 }
  0x18   : > { %p7255_p7 = scmp.ne.s32.totalorder %s9158_s1, %s7254_s20  ;;  %p7261_p11 = scmp.lt.u32.totalorder %s7254_s20, %s9158_s1 }
  0x1a   : > { %p7257_p9 = pnand %p7634_p8, %p7255_p7 }
  0x1c   : > { %p7258_p10 = pneg %p7257_p9 }
  0x1e   : > { %p7263_p12 = pnand %p7261_p11, %p7258_p10 }
  0x20   : > { %7266 = shalt.err (!%p7263_p12)
}
  0x21   : > { %s7267_s26 = scalar_lea.vmem %s7607_s10, 24576  ;;  %p7275_p5 = scmp.lt.s32.totalorder %s7607_s10, %s7607_s10 }
  0x22   : > { %p7268_p13 = scmp.ne.s32.totalorder %s7607_s10, %s7267_s26  ;;  %p7276_p4 = scmp.lt.s32.totalorder %s7267_s26, %s7267_s26 }
  0x24   : > { %p7270_p0 = pnand %p7268_p13, %p7634_p8  ;;  %p7277_p7 = por %p7276_p4, %p7275_p5 }
  0x26   : > { %p7271_p2 = pneg %p7270_p0 }
  0x28   : > { %p7278_p9 = pnand %p7277_p7, %p7271_p2 }
  0x2a   : > { %7281 = shalt.err (!%p7278_p9)
}
  0x2b   : > { %s7524_s9 = smov 512   ;;  %s7525_s14 = smov 32  }
  0x2c   : > { %7146 = dma.hbm_to_vmem [thread:$0]  (!%p7618_p6), %s9158_s1, 24576, %s7607_s10, [#allocation9], %s7524_s9, %s7524_s9, %s7525_s14  }
  0x2d   : > { %s7282_s21 = scalar_lea.hbm %s9145_s3, 98304 }
  0x2e   : > { %p7283_p4 = scmp.ne.s32.totalorder %s9145_s3, %s7282_s21  ;;  %p7289_p12 = scmp.lt.u32.totalorder %s7282_s21, %s9145_s3 }
  0x30   : > { %p7285_p10 = pnand %p7283_p4, %p7634_p8 }
  0x32   : > { %p7286_p11 = pneg %p7285_p10 }
  0x34   : > { %p7291_p13 = pnand %p7289_p12, %p7286_p11 }
  0x36   : > { %7294 = shalt.err (!%p7291_p13)
}
  0x37   : > { %s7295_s10 = scalar_lea.vmem %s7622_s15, 98304  ;;  %p7303_p7 = scmp.lt.s32.totalorder %s7622_s15, %s7622_s15 }
  0x38   : > { %p7296_p0 = scmp.ne.s32.totalorder %s7622_s15, %s7295_s10  ;;  %p7304_p9 = scmp.lt.s32.totalorder %s7295_s10, %s7295_s10 }
  0x3a   : > { %p7298_p2 = pnand %p7296_p0, %p7634_p8  ;;  %p7305_p4 = por %p7304_p9, %p7303_p7 }
  0x3c   : > { %p7299_p5 = pneg %p7298_p2 }
  0x3e   : > { %p7306_p10 = pnand %p7305_p4, %p7299_p5 }
  0x40   : > { %7309 = shalt.err (!%p7306_p10)
}
  0x41   : > { %7152 = dma.hbm_to_vmem [thread:$0]  (!%p7618_p6), %s9145_s3, 98304, %s7622_s15, [#allocation12], %s7524_s9, %s7524_s9, %s7525_s14  }
  0x42   : > { %s9160_s2 = sld [smem:[#allocation25_spill]] }
  0x48   : > { %s7310_s21 = scalar_lea.hbm %s9160_s2, 64 }
  0x49   : > { %p7311_p11 = scmp.ne.s32.totalorder %s9160_s2, %s7310_s21  ;;  %p7317_p0 = scmp.lt.u32.totalorder %s7310_s21, %s9160_s2 }
  0x4b   : > { %p7313_p12 = pnand %p7311_p11, %p7634_p8 }
  0x4d   : > { %p7314_p13 = pneg %p7313_p12 }
  0x4f   : > { %p7319_p2 = pnand %p7317_p0, %p7314_p13 }
  0x51   : > { %7322 = shalt.err (!%p7319_p2)
}
  0x52   : > { %s7323_s15 = scalar_lea.vmem %s7624_s17, 64  ;;  %p7331_p4 = scmp.lt.s32.totalorder %s7624_s17, %s7624_s17 }
  0x53   : > { %p7324_p5 = scmp.ne.s32.totalorder %s7624_s17, %s7323_s15  ;;  %p7332_p10 = scmp.lt.s32.totalorder %s7323_s15, %s7323_s15 }
  0x55   : > { %p7326_p7 = pnand %p7324_p5, %p7634_p8  ;;  %p7333_p11 = por %p7332_p10, %p7331_p4 }
  0x57   : > { %p7327_p9 = pneg %p7326_p7 }
  0x59   : > { %p7334_p12 = pnand %p7333_p11, %p7327_p9 }
  0x5b   : > { %7337 = shalt.err (!%p7334_p12)
}
  0x5c   : > { %7149 = dma.hbm_to_vmem [thread:$0]  (!%p7618_p6), %s9160_s2, 64, %s7624_s17, [#allocation9]  }
  0x5d   : > { %s7526_s10 = smov [#allocation13]   ;;  %s7527_s18 = smov [#allocation14]  }
  0x5e   : > { %s282_s16 = sshll.u32 %s7526_s10, 4  ;;  %s296_s19 = sshll.u32 %s7527_s18, 4  ;;  %s283_s16 = int_to_ptr.vmem [resolvable:$true] %s282_s16  ;;  %s7701_s19 = int_to_ptr.vmem [resolvable:$true] %s296_s19 }
  0x5f   : > { %s7338_s22 = scalar_lea.hbm %s9146_s4, 64 }
  0x60   : > { %p7339_p13 = scmp.ne.s32.totalorder %s9146_s4, %s7338_s22  ;;  %p7345_p5 = scmp.lt.u32.totalorder %s7338_s22, %s9146_s4 }
  0x62   : > { %p7341_p0 = pnand %p7339_p13, %p7634_p8 }
  0x64   : > { %p7342_p2 = pneg %p7341_p0 }
  0x66   : > { %p7347_p7 = pnand %p7345_p5, %p7342_p2 }
  0x68   : > { %7350 = shalt.err (!%p7347_p7)
}
  0x69   : > { %s7351_s15 = scalar_lea.vmem %s283_s16, 64  ;;  %p7359_p11 = scmp.lt.s32.totalorder %s283_s16, %s283_s16 }
  0x6a   : > { %p7352_p9 = scmp.ne.s32.totalorder %s283_s16, %s7351_s15  ;;  %p7360_p12 = scmp.lt.s32.totalorder %s7351_s15, %s7351_s15 }
  0x6c   : > { %p7354_p4 = pnand %p7352_p9, %p7634_p8  ;;  %p7361_p1 = por %p7360_p12, %p7359_p11 }
  0x6e   : > { %p7355_p10 = pneg %p7354_p4 }
  0x70   : > { %p7362_p3 = pnand %p7361_p1, %p7355_p10 }
  0x72   : > { %7365 = shalt.err (!%p7362_p3)
}
  0x73   : > { %7155 = dma.hbm_to_vmem [thread:$0]  (!%p7618_p6), %s9146_s4, 64, %s283_s16, [#allocation12]  }
  0x74   : > { %s7366_s20 = scalar_lea.hbm %s9148_s6, 16 }
  0x75   : > { %p7367_p13 = scmp.ne.s32.totalorder %s9148_s6, %s7366_s20  ;;  %p7373_p1 = scmp.lt.u32.totalorder %s7366_s20, %s9148_s6 }
  0x77   : > { %p7369_p0 = pnand %p7367_p13, %p7634_p8 }
  0x79   : > { %p7370_p2 = pneg %p7369_p0 }
  0x7b   : > { %p7375_p3 = pnand %p7373_p1, %p7370_p2 }
  0x7d   : > { %7378 = shalt.err (!%p7375_p3)
}
  0x7e   : > { %s7379_s16 = scalar_lea.vmem %s7701_s19, 16  ;;  %s7386_s26 = scalar_lea.vmem %s7701_s19, 32 }
  0x7f   : > { %p7380_p5 = scmp.ne.s32.totalorder %s7701_s19, %s7379_s16  ;;  %p7387_p4 = scmp.lt.s32.totalorder %s7701_s19, %s7701_s19 }
  0x80   : > { %p7388_p10 = scmp.lt.s32.totalorder %s7386_s26, %s7379_s16 }
  0x81   : > { %p7382_p7 = pnand %p7380_p5, %p7634_p8 }
  0x82   : > { %p7389_p11 = por %p7388_p10, %p7387_p4 }
  0x83   : > { %p7383_p9 = pneg %p7382_p7 }
  0x85   : > { %p7390_p12 = pnand %p7389_p11, %p7383_p9 }
  0x87   : > { %7393 = shalt.err (!%p7390_p12)
}
  0x88   : > { %7158 = dma.hbm_to_vmem [thread:$0]  (!%p7618_p6), %s9148_s6, 16, %s7701_s19, [#allocation15]  }
  0x89   : > { %s7394_s10 = scalar_lea.hbm %s9149_s7, 16 }
  0x8a   : > { %p7395_p13 = scmp.ne.s32.totalorder %s9149_s7, %s7394_s10  ;;  %p7401_p1 = scmp.lt.u32.totalorder %s7394_s10, %s9149_s7 }
  0x8c   : > { %p7397_p0 = pnand %p7395_p13, %p7634_p8 }
  0x8e   : > { %p7398_p2 = pneg %p7397_p0 }
  0x90   : > { %p7403_p3 = pnand %p7401_p1, %p7398_p2 }
  0x92   : > { %7406 = shalt.err (!%p7403_p3)
}
  0x93   : > { %s7528_s24 = smov [#allocation16]   ;;  %s5337_s23 = sadd.s32 4294967294, %s7519_s30  }
  0x94   : > { %7161 = dma.hbm_to_smem (!%p7618_p6), %s9149_s7, 16, %s7528_s24, [#allocation7]  }
  0x95   : > { %s7763_s13 = sadd.s32 1, %s7519_s30   ;;  %s35_s16 = sadd.s32 1, %s7515_s29 }
  0x96   : > { %s32_s26 = ssub.s32 %s7519_s30, %s7763_s13  ;;  %p42_p8 = scmp.ne.s32.totalorder %s7515_s29, %s7511_s28 }
  0x97   : > { %p33_p5 = scmp.eq.s32.totalorder %s32_s26, 0  ;;  %p43_p7 = scmp.eq.s32.totalorder %s7519_s30, 0 }
  0x98   : > { %p48_p9 = scmp.ne.s32.totalorder %s7511_s28, %s7507_s27  ;;  %p219_p4 = scmp.eq.s32.totalorder %s7602_s11, 1 }
  0x99   : > { %s7775_s17 = scalar_select %p33_p5, %s7515_s29, %s35_s16  }
  0x9a   : > { %p44_p10 = por %p43_p7, %p42_p8  ;;  %p9161_p11 = scmp.eq.s32.totalorder %s7602_s11, 0 }
  0x9b   : > { %p7783_p6 = por %p219_p4, %p42_p8  ;;  %p225_p13 = scmp.eq.s32.totalorder %s5337_s23, 1 }
  0x9c   : > { %p7779_p12 = por %p9161_p11, %p48_p9  ;;  %p7176_p0 = scmp.lt.s32.totalorder %s7519_s30, 2 }
  0x9d   : > { %s9163_s9 = scalar_select %p7783_p6, 1, 0 }
  0x9e   : > { %s316_s14 = sand.u32 1, %s7515_s29   ;;  %p7789_p2 = por %p225_p13, %p48_p9 }
  0x9f   : > { %s7111_s18 = smul.u32 72, %s316_s14  ;;  %p7793_p1 = pnand %p7176_p0, %p44_p10 }
  0xa0   : > { %s9164_s10 = scalar_select %p7789_p2, 1, 0 }
  0xa1   : > { %s7177_s21 = smul.u32 1152, %s7519_s30  ;;  %s320_s25 = scalar_lea.vmem [#allocation4], %s7111_s18 }
  0xa2   : > { %s328_s23 = sshll.u32 %s320_s25, 4  ;;  %s7805_s16 = scalar_lea.sflag [#allocation5], %s316_s14  ;;  %s7803_s23 = int_to_ptr.vmem [resolvable:$true] %s328_s23 }
  0xa3   : > { %s7801_s19 = scalar_lea.hbm %s9142_s0, %s7177_s21  ;;  %p7409_p8 = pneg %p7793_p1 }
  0xa4   : > { %s7407_s26 = scalar_lea.hbm %s7801_s19, 1152  ;;  %s7412_s24 = scalar_lea.hbm %s9142_s0, 2304 }
  0xa5   : > { %p7408_p3 = scmp.ne.s32.totalorder %s7801_s19, %s7407_s26  ;;  %p7413_p9 = scmp.lt.u32.totalorder %s7801_s19, %s9142_s0 }
  0xa6   : > { %p7414_p4 = scmp.lt.u32.totalorder %s7412_s24, %s7407_s26  ;;  %p7416_p11 = scmp.lt.u32.totalorder %s7407_s26, %s7801_s19 }
  0xa7   : > { %p7410_p5 = pnand %p7409_p8, %p7408_p3 }
  0xa8   : > { %p7415_p10 = por %p7414_p4, %p7413_p9 }
  0xa9   : > { %p7411_p7 = pneg %p7410_p5 }
  0xaa   : > { %p7417_p13 = por %p7416_p11, %p7415_p10 }
  0xac   : > { %p7418_p0 = pnand %p7417_p13, %p7411_p7 }
  0xae   : > { %7421 = shalt.err (!%p7418_p0)
}
  0xaf   : > { %s7422_s14 = scalar_lea.vmem %s7803_s23, 1152  ;;  %s7529_s18 = smov [#allocation4]  }
  0xb0   : > { %p7423_p3 = scmp.ne.s32.totalorder %s7803_s23, %s7422_s14  ;;  %s7427_s25 = sshll.u32 %s7529_s18, 4  ;;  %s7428_s25 = int_to_ptr.vmem [resolvable:$false] %s7427_s25 }
  0xb1   : > { %s7429_s1 = scalar_lea.vmem %s7428_s25, 2304  ;;  %p7430_p6 = scmp.lt.s32.totalorder %s7803_s23, %s7428_s25 }
  0xb2   : > { %p7425_p5 = pnand %p7423_p3, %p7409_p8  ;;  %p7431_p9 = scmp.lt.s32.totalorder %s7429_s1, %s7422_s14 }
  0xb4   : > { %p7426_p2 = pneg %p7425_p5  ;;  %p7432_p4 = por %p7431_p9, %p7430_p6 }
  0xb6   : > { %p7433_p10 = pnand %p7432_p4, %p7426_p2 }
  0xb8   : > { %7436 = shalt.err (!%p7433_p10)
}
  0xb9   : > { %s7530_s2 = smov 128   ;;  %s7531_s26 = smov 8  }
  0xba   : > { %7165 = dma.hbm_to_vmem [thread:$0]  (!%p7793_p1), %s7801_s19, 1152, %s7803_s23, %s7805_s16, %s7530_s2, %s7530_s2, %s7531_s26  }
  0xbb   : > { %p9166_p8 = scmp.ne.s32.totalorder %s9156_s12, 0 }
  0xbc   : > { %s7836_s21 = sand.u32 (!%p9166_p8), 1, %s7511_s28  }
  0xbd   : > { %340 = sbr.rel (%p9166_p8) target bundleno = 1457 (0x5b1), region = 52  ;;  %s343_s24 = scalar_lea.sflag (!%p9166_p8), [#allocation5], %s7836_s21 }
  0xbe   : > { %s7113_s22 = smul.u32 (!%p9166_p8), 72, %s7836_s21 }
  0xc0   : > { %s7840_s14 = scalar_lea.vmem (!%p9166_p8), [#allocation4], %s7113_s22 }
  0xc4   : > { %7482 = dma.done.wait (%p7779_p12), %s343_s24, 1152  }
  0xc5   : > { %7484 = vsyncadd (%p7779_p12), %s343_s24, 4294966144  ;;  %p9167_p6 = scmp.eq.s32.totalorder %s7602_s11, 0 }
  0xc7   : > { %7486 = dma.done.wait (%p9167_p6), [#allocation9], 24640   ;;  %p9168_p2 = pmov %p9167_p6 }
  0xc9   : > { %7488 = vsyncadd (%p9168_p2), [#allocation9], 4294942656  ;;  %p9169_p1 = pmov %p9168_p2 }
  0xcb   : > { %7490 = dma.done.wait (%p9169_p1), [#allocation12], 98368   ;;  %p9170_p7 = pmov %p9169_p1 }
  0xcc   : > { %p9171_p11 = pmov %p9169_p1 }
  0xcd   : > { %7492 = vsyncadd (%p9170_p7), [#allocation12], 4294868928 }
  0xce   : > { %7494 = dma.done.wait (%p9171_p11), [#allocation15], 16   ;;  %p9172_p13 = pmov %p9169_p1 }
  0xcf   : > { %p9173_p12 = pmov %p9169_p1 }
  0xd0   : > { %7496 = vsyncadd (%p9172_p13), [#allocation15], 4294967280 }
  0xd1   : > { %7498 = dma.done.wait (%p9173_p12), [#allocation7], 16   ;;  %p9174_p0 = pmov %p9169_p1 }
  0xd3   : > { %7500 = vsyncadd (%p9174_p0), [#allocation7], 4294967280 }
  0xd4   : > { %375 = sfence }
  0xd5   : > { %v484_v0 = vld [vmem:[#allocation8 + $0x208] sm:$0xff]  ;;  %v486_v2 = vld [vmem:[#allocation8 + $0x218] sm:$0xff]  ;;  %v483_v5 = vld [vmem:[#allocation8 + $0x200] sm:$0xff]  ;;  %v7532_v7 = vmov 0.0   ;;  %s1294_s12 = sld [smem:[#allocation16]]  ;;  %vm1413_vm1 = vcmask 1040384  }
  0xd6   : > { %v488_v1 = vld [vmem:[#allocation8 + $0x228] sm:$0xff]  ;;  %v490_v4 = vld [vmem:[#allocation8 + $0x238] sm:$0xff]  ;;  %v487_v6 = vld [vmem:[#allocation8 + $0x220] sm:$0xff]  ;;  %611 = vmatprep.mubr.f32.mxu0 %v7532_v7  ;;  %712 = vmatprep.mubr.f32.mxu1 %v7532_v7  ;;  %s5354_s22 = sld [smem:[#allocation16 + $0x1]]  ;;  %s7114_s1 = smul.u32 48, %s7836_s21 }
  0xd7   : > { %v5791_v3 = vpack.c.bf16 %v488_v1, %v484_v0  ;;  %v5823_v8 = vpack.c.bf16 %v490_v4, %v486_v2  ;;  %v5793_v9 = vpack.c.bf16 %v487_v6, %v483_v5  ;;  %v485_v10 = vld [vmem:[#allocation8 + $0x210] sm:$0xff]  ;;  %v492_v12 = vld [vmem:[#allocation8 + $0x248] sm:$0xff]  ;;  %v494_v15 = vld [vmem:[#allocation8 + $0x258] sm:$0xff]  ;;  %s5490_s26 = smul.u32 768, %s7602_s11  ;;  %s5190_s11 = scalar_lea.sflag [#allocation6], %s7836_s21 }
  0xd8   : > { %v489_v11 = vld [vmem:[#allocation8 + $0x230] sm:$0xff]  ;;  %v496_v14 = vld [vmem:[#allocation8 + $0x268] sm:$0xff]  ;;  %v498_v16 = vld [vmem:[#allocation8 + $0x278] sm:$0xff]  ;;  %s9076_s2 = scalar_lea.vmem [#allocation17], %s7114_s1  ;;  %p9177_p5 = scmp.ne.s32.totalorder %s9163_s9, 0 }
  0xd9   : > { %5792 = vmatprep.subr.bf16.mxu0 %v5791_v3  ;;  %v5825_v13 = vpack.c.bf16 %v489_v11, %v485_v10  ;;  %5824 = vmatprep.subr.bf16.mxu1 %v5823_v8  ;;  %v5795_v17 = vpack.c.bf16 %v496_v14, %v492_v12  ;;  %v5827_v18 = vpack.c.bf16 %v498_v16, %v494_v15  ;;  %v491_v19 = vld [vmem:[#allocation8 + $0x240] sm:$0xff]  ;;  %v493_v21 = vld [vmem:[#allocation8 + $0x250] sm:$0xff]  ;;  %v500_v24 = vld [vmem:[#allocation8 + $0x288] sm:$0xff]  ;;  %s5204_s24 = sshll.u32 %s9076_s2, 4  ;;  %s7533_s20 = smov [#allocation17]   ;;  %s9096_s24 = int_to_ptr.vmem [resolvable:$true] %s5204_s24 }
  0xda   : > { %5794 = vmatpush1.bf16.msra.mxu0 %v5793_v9  ;;  %v495_v20 = vld [vmem:[#allocation8 + $0x260] sm:$0xff]  ;;  %v497_v23 = vld [vmem:[#allocation8 + $0x270] sm:$0xff]  ;;  %v504_v25 = vld [vmem:[#allocation8 + $0x2a8] sm:$0xff]  ;;  %s7437_s15 = scalar_lea.vmem %s9096_s24, 768  ;;  %s7441_s19 = sshll.u32 %s7533_s20, 4  ;;  %s7442_s19 = int_to_ptr.vmem [resolvable:$false] %s7441_s19 }
  0xdb   : > { %5826 = vmatpush1.bf16.msra.mxu1 %v5825_v13  ;;  %v5797_v22 = vpack.c.bf16 %v495_v20, %v491_v19  ;;  %5796 = vmatprep.subr.bf16.mxu0 %v5795_v17  ;;  %v5829_v26 = vpack.c.bf16 %v497_v23, %v493_v21  ;;  %v5799_v27 = vpack.c.bf16 %v504_v25, %v500_v24  ;;  %v502_v28 = vld [vmem:[#allocation8 + $0x298] sm:$0xff]  ;;  %v499_v30 = vld [vmem:[#allocation8 + $0x280] sm:$0xff]  ;;  %v501_v33 = vld [vmem:[#allocation8 + $0x290] sm:$0xff]  ;;  %p7438_p3 = scmp.ne.s32.totalorder %s9096_s24, %s7437_s15  ;;  %s7443_s23 = scalar_lea.vmem %s7442_s19, 1536 }
  0xdc   : > { %5828 = vmatprep.subr.bf16.mxu1 %v5827_v18  ;;  %v506_v29 = vld [vmem:[#allocation8 + $0x2b8] sm:$0xff]  ;;  %v503_v32 = vld [vmem:[#allocation8 + $0x2a0] sm:$0xff]  ;;  %v505_v34 = vld [vmem:[#allocation8 + $0x2b0] sm:$0xff]  ;;  %p7444_p10 = scmp.lt.s32.totalorder %s9096_s24, %s7442_s19  ;;  %p7445_p8 = scmp.lt.s32.totalorder %s7443_s23, %s7437_s15 }
  0xdd   : > { %v5831_v31 = vpack.c.bf16 %v506_v29, %v502_v28  ;;  %v5801_v35 = vpack.c.bf16 %v503_v32, %v499_v30  ;;  %v508_v36 = vld [vmem:[#allocation8 + $0x2c8] sm:$0xff]  ;;  %v510_v38 = vld [vmem:[#allocation8 + $0x2d8] sm:$0xff]  ;;  %v5833_v39 = vpack.c.bf16 %v505_v34, %v501_v33  ;;  %v507_v42 = vld [vmem:[#allocation8 + $0x2c0] sm:$0xff]  ;;  %p7439_p9 = pnand %p7438_p3, %p9177_p5 }
  0xde   : > { %5798 = vmatpush1.bf16.msra.mxu0 %v5797_v22  ;;  %v512_v37 = vld [vmem:[#allocation8 + $0x2e8] sm:$0xff]  ;;  %v514_v41 = vld [vmem:[#allocation8 + $0x2f8] sm:$0xff]  ;;  %v511_v43 = vld [vmem:[#allocation8 + $0x2e0] sm:$0xff]  ;;  %p7446_p6 = por %p7445_p8, %p7444_p10 }
  0xdf   : > { %5830 = vmatpush1.bf16.msra.mxu1 %v5829_v26  ;;  %5800 = vmatprep.subr.bf16.mxu0 %v5799_v27  ;;  %v5803_v40 = vpack.c.bf16 %v512_v37, %v508_v36  ;;  %v5835_v44 = vpack.c.bf16 %v514_v41, %v510_v38  ;;  %v509_v45 = vld [vmem:[#allocation8 + $0x2d0] sm:$0xff]  ;;  %v516_v47 = vld [vmem:[#allocation8 + $0x308] sm:$0xff]  ;;  %v518_v49 = vld [vmem:[#allocation8 + $0x318] sm:$0xff]  ;;  %v5805_v51 = vpack.c.bf16 %v511_v43, %v507_v42  ;;  %p7440_p4 = pneg %p7439_p9 }
  0xe0   : > { %5832 = vmatprep.subr.bf16.mxu1 %v5831_v31  ;;  %v513_v46 = vld [vmem:[#allocation8 + $0x2f0] sm:$0xff]  ;;  %v520_v48 = vld [vmem:[#allocation8 + $0x328] sm:$0xff]  ;;  %v522_v50 = vld [vmem:[#allocation8 + $0x338] sm:$0xff] }
  0xe1   : > { %v5837_v52 = vpack.c.bf16 %v513_v46, %v509_v45  ;;  %v5807_v53 = vpack.c.bf16 %v520_v48, %v516_v47  ;;  %v515_v54 = vld [vmem:[#allocation8 + $0x300] sm:$0xff]  ;;  %v517_v56 = vld [vmem:[#allocation8 + $0x310] sm:$0xff]  ;;  %v5839_v57 = vpack.c.bf16 %v522_v50, %v518_v49  ;;  %v524_v59 = vld [vmem:[#allocation8 + $0x348] sm:$0xff]  ;;  %p7447_p2 = pnand %p7446_p6, %p7440_p4 }
  0xe2   : > { %5802 = vmatpush1.bf16.msra.mxu0 %v5801_v35  ;;  %v519_v55 = vld [vmem:[#allocation8 + $0x320] sm:$0xff]  ;;  %v521_v58 = vld [vmem:[#allocation8 + $0x330] sm:$0xff]  ;;  %v528_v60 = vld [vmem:[#allocation8 + $0x368] sm:$0xff] }
  0xe3   : > { %5834 = vmatpush1.bf16.msra.mxu1 %v5833_v39  ;;  %5804 = vmatprep.subr.bf16.mxu0 %v5803_v40  ;;  %v526_v61 = vld [vmem:[#allocation8 + $0x358] sm:$0xff]  ;;  %v5809_v63 = vpack.c.bf16 %v519_v55, %v515_v54  ;;  %v5841_v0 = vpack.c.bf16 %v521_v58, %v517_v56  ;;  %v5811_v1 = vpack.c.bf16 %v528_v60, %v524_v59  ;;  %v523_v2 = vld [vmem:[#allocation8 + $0x340] sm:$0xff]  ;;  %v525_v4 = vld [vmem:[#allocation8 + $0x350] sm:$0xff] }
  0xe4   : > { %5836 = vmatprep.subr.bf16.mxu1 %v5835_v44  ;;  %v530_v62 = vld [vmem:[#allocation8 + $0x378] sm:$0xff]  ;;  %v527_v3 = vld [vmem:[#allocation8 + $0x360] sm:$0xff]  ;;  %v529_v6 = vld [vmem:[#allocation8 + $0x370] sm:$0xff] }
  0xe5   : > { %v5843_v5 = vpack.c.bf16 %v530_v62, %v526_v61  ;;  %v532_v8 = vld [vmem:[#allocation8 + $0x388] sm:$0xff]  ;;  %v534_v10 = vld [vmem:[#allocation8 + $0x398] sm:$0xff]  ;;  %v5813_v12 = vpack.c.bf16 %v527_v3, %v523_v2  ;;  %v5845_v13 = vpack.c.bf16 %v529_v6, %v525_v4  ;;  %v531_v15 = vld [vmem:[#allocation8 + $0x380] sm:$0xff] }
  0xe6   : > { %5806 = vmatpush1.bf16.msra.mxu0 %v5805_v51  ;;  %v536_v9 = vld [vmem:[#allocation8 + $0x3a8] sm:$0xff]  ;;  %v538_v11 = vld [vmem:[#allocation8 + $0x3b8] sm:$0xff]  ;;  %v535_v16 = vld [vmem:[#allocation8 + $0x3a0] sm:$0xff] }
  0xe7   : > { %5838 = vmatpush1.bf16.msra.mxu1 %v5837_v52  ;;  %5808 = vmatprep.subr.bf16.mxu0 %v5807_v53  ;;  %v5815_v14 = vpack.c.bf16 %v536_v9, %v532_v8  ;;  %v533_v17 = vld [vmem:[#allocation8 + $0x390] sm:$0xff]  ;;  %v5847_v18 = vpack.c.bf16 %v538_v11, %v534_v10  ;;  %v540_v20 = vld [vmem:[#allocation8 + $0x3c8] sm:$0xff]  ;;  %v542_v22 = vld [vmem:[#allocation8 + $0x3d8] sm:$0xff]  ;;  %v5817_v24 = vpack.c.bf16 %v535_v16, %v531_v15 }
  0xe8   : > { %5840 = vmatprep.subr.bf16.mxu1 %v5839_v57  ;;  %v537_v19 = vld [vmem:[#allocation8 + $0x3b0] sm:$0xff]  ;;  %v544_v21 = vld [vmem:[#allocation8 + $0x3e8] sm:$0xff]  ;;  %v546_v23 = vld [vmem:[#allocation8 + $0x3f8] sm:$0xff] }
  0xe9   : > { %v5849_v25 = vpack.c.bf16 %v537_v19, %v533_v17  ;;  %v5819_v26 = vpack.c.bf16 %v544_v21, %v540_v20  ;;  %v539_v27 = vld [vmem:[#allocation8 + $0x3c0] sm:$0xff]  ;;  %v541_v29 = vld [vmem:[#allocation8 + $0x3d0] sm:$0xff]  ;;  %v5851_v30 = vpack.c.bf16 %v546_v23, %v542_v22  ;;  %v413_v32 = vld [vmem:[#allocation8 + $0x8] sm:$0xff] }
  0xea   : > { %5810 = vmatpush1.bf16.msra.mxu0 %v5809_v63  ;;  %v543_v28 = vld [vmem:[#allocation8 + $0x3e0] sm:$0xff]  ;;  %v545_v31 = vld [vmem:[#allocation8 + $0x3f0] sm:$0xff]  ;;  %v417_v33 = vld [vmem:[#allocation8 + $0x28] sm:$0xff] }
  0xeb   : > { %5842 = vmatpush1.bf16.msra.mxu1 %v5841_v0  ;;  %5812 = vmatprep.subr.bf16.mxu0 %v5811_v1  ;;  %v415_v34 = vld [vmem:[#allocation8 + $0x18] sm:$0xff]  ;;  %v5821_v36 = vpack.c.bf16 %v543_v28, %v539_v27  ;;  %v5853_v37 = vpack.c.bf16 %v545_v31, %v541_v29  ;;  %v5855_v38 = vpack.c.bf16 %v417_v33, %v413_v32  ;;  %v412_v39 = vld [vmem:[#allocation8] sm:$0xff]  ;;  %v414_v41 = vld [vmem:[#allocation8 + $0x10] sm:$0xff] }
  0xec   : > { %5844 = vmatprep.subr.bf16.mxu1 %v5843_v5  ;;  %v419_v35 = vld [vmem:[#allocation8 + $0x38] sm:$0xff]  ;;  %v416_v40 = vld [vmem:[#allocation8 + $0x20] sm:$0xff]  ;;  %v418_v43 = vld [vmem:[#allocation8 + $0x30] sm:$0xff] }
  0xed   : > { %v5887_v42 = vpack.c.bf16 %v419_v35, %v415_v34  ;;  %v421_v44 = vld [vmem:[#allocation8 + $0x48] sm:$0xff]  ;;  %v423_v46 = vld [vmem:[#allocation8 + $0x58] sm:$0xff]  ;;  %v5857_v49 = vpack.c.bf16 %v416_v40, %v412_v39  ;;  %v5889_v50 = vpack.c.bf16 %v418_v43, %v414_v41  ;;  %v420_v52 = vld [vmem:[#allocation8 + $0x40] sm:$0xff] }
  0xee   : > { %5814 = vmatpush1.bf16.msra.mxu0 %v5813_v12  ;;  %v425_v45 = vld [vmem:[#allocation8 + $0x68] sm:$0xff]  ;;  %v427_v47 = vld [vmem:[#allocation8 + $0x78] sm:$0xff]  ;;  %v424_v53 = vld [vmem:[#allocation8 + $0x60] sm:$0xff] }
  0xef   : > { %5846 = vmatpush1.bf16.msra.mxu1 %v5845_v13  ;;  %5816 = vmatprep.subr.bf16.mxu0 %v5815_v14  ;;  %v476_v48 = vld [vmem:[%s7840_s14 + $0x1] sm:$0xff]  ;;  %v5859_v51 = vpack.c.bf16 %v425_v45, %v421_v44  ;;  %v5891_v55 = vpack.c.bf16 %v427_v47, %v423_v46  ;;  %v429_v57 = vld [vmem:[#allocation8 + $0x88] sm:$0xff]  ;;  %v5861_v61 = vpack.c.bf16 %v424_v53, %v420_v52 }
  0xf0   : > { %5848 = vmatprep.subr.bf16.mxu1 %v5847_v18  ;;  %v422_v54 = vld [vmem:[#allocation8 + $0x50] sm:$0xff]  ;;  %v433_v58 = vld [vmem:[#allocation8 + $0xa8] sm:$0xff]  ;;  %v431_v59 = vld [vmem:[#allocation8 + $0x98] sm:$0xff] }
  0xf1   : > { %v426_v56 = vld [vmem:[#allocation8 + $0x70] sm:$0xff]  ;;  %v435_v60 = vld [vmem:[#allocation8 + $0xb8] sm:$0xff]  ;;  %v5863_v0 = vpack.c.bf16 %v433_v58, %v429_v57  ;;  %v428_v1 = vld [vmem:[#allocation8 + $0x80] sm:$0xff] }
  0xf2   : > { %5818 = vmatpush1.bf16.msra.mxu0 %v5817_v24  ;;  %v477_v62 = vld [vmem:[%s7840_s14 + $0x9] sm:$0xff]  ;;  %v5893_v63 = vpack.c.bf16 %v426_v56, %v422_v54  ;;  %v430_v3 = vld [vmem:[#allocation8 + $0x90] sm:$0xff]  ;;  %v5895_v4 = vpack.c.bf16 %v435_v60, %v431_v59 }
  0xf3   : > { %5850 = vmatpush1.bf16.msra.mxu1 %v5849_v25  ;;  %5820 = vmatprep.subr.bf16.mxu0 %v5819_v26  ;;  %v432_v2 = vld [vmem:[#allocation8 + $0xa0] sm:$0xff]  ;;  %v434_v5 = vld [vmem:[#allocation8 + $0xb0] sm:$0xff]  ;;  %v437_v6 = vld [vmem:[#allocation8 + $0xc8] sm:$0xff] }
  0xf4   : > { %5852 = vmatprep.subr.bf16.mxu1 %v5851_v30  ;;  %v441_v8 = vld [vmem:[#allocation8 + $0xe8] sm:$0xff]  ;;  %v439_v9 = vld [vmem:[#allocation8 + $0xd8] sm:$0xff]  ;;  %v5865_v11 = vpack.c.bf16 %v432_v2, %v428_v1  ;;  %v5897_v13 = vpack.c.bf16 %v434_v5, %v430_v3  ;;  %v436_v15 = vld [vmem:[#allocation8 + $0xc0] sm:$0xff] }
  0xf5   : > { %v443_v10 = vld [vmem:[#allocation8 + $0xf8] sm:$0xff]  ;;  %v5867_v14 = vpack.c.bf16 %v441_v8, %v437_v6  ;;  %v440_v16 = vld [vmem:[#allocation8 + $0xe0] sm:$0xff]  ;;  %v438_v17 = vld [vmem:[#allocation8 + $0xd0] sm:$0xff] }
  0xf6   : > { %5822 = vmatpush1.bf16.msra.mxu0 %v5821_v36  ;;  %v478_v12 = vld [vmem:[%s7840_s14 + $0x19] sm:$0xff]  ;;  %v5899_v18 = vpack.c.bf16 %v443_v10, %v439_v9  ;;  %v5869_v24 = vpack.c.bf16 %v440_v16, %v436_v15  ;;  %v479_v25 = vld [vmem:[%s7840_s14 + $0x21] sm:$0xff] }
  0xf7   : > { %5854 = vmatpush1.bf16.msra.mxu1 %v5853_v37  ;;  %5856 = vmatprep.subr.bf16.mxu0 %v5855_v38  ;;  %v442_v19 = vld [vmem:[#allocation8 + $0xf0] sm:$0xff]  ;;  %v445_v20 = vld [vmem:[#allocation8 + $0x108] sm:$0xff]  ;;  %v447_v22 = vld [vmem:[#allocation8 + $0x118] sm:$0xff] }
  0xf8   : > { %5888 = vmatprep.subr.bf16.mxu1 %v5887_v42  ;;  %v449_v21 = vld [vmem:[#allocation8 + $0x128] sm:$0xff]  ;;  %v451_v23 = vld [vmem:[#allocation8 + $0x138] sm:$0xff]  ;;  %v5901_v26 = vpack.c.bf16 %v442_v19, %v438_v17  ;;  %v444_v28 = vld [vmem:[#allocation8 + $0x100] sm:$0xff] }
  0xf9   : > { %612 = vmatmul.mubr.f32.vlgmr.msra.gmra.mrb[0].mxu0 %v476_v48  ;;  %v5871_v27 = vpack.c.bf16 %v449_v21, %v445_v20  ;;  %v448_v29 = vld [vmem:[#allocation8 + $0x120] sm:$0xff]  ;;  %v446_v30 = vld [vmem:[#allocation8 + $0x110] sm:$0xff]  ;;  %v5903_v31 = vpack.c.bf16 %v451_v23, %v447_v22  ;;  %v453_v33 = vld [vmem:[#allocation8 + $0x148] sm:$0xff] }
  0xfa   : > { %713 = vmatmul.mubr.f32.vlgmr.msra.gmra.mrb[0].mxu1 %v476_v48  ;;  %5858 = vmatpush1.bf16.msra.mxu0 %v5857_v49  ;;  %v450_v32 = vld [vmem:[#allocation8 + $0x130] sm:$0xff]  ;;  %v457_v34 = vld [vmem:[#allocation8 + $0x168] sm:$0xff]  ;;  %v455_v35 = vld [vmem:[#allocation8 + $0x158] sm:$0xff]  ;;  %v5873_v37 = vpack.c.bf16 %v448_v29, %v444_v28 }
  0xfb   : > { %5890 = vmatpush1.bf16.msra.mxu1 %v5889_v50  ;;  %5860 = vmatprep.subr.bf16.mxu0 %v5859_v51  ;;  %v459_v36 = vld [vmem:[#allocation8 + $0x178] sm:$0xff]  ;;  %v480_v38 = vld [vmem:[%s7840_s14 + $0x31] sm:$0xff]  ;;  %v5905_v39 = vpack.c.bf16 %v450_v32, %v446_v30  ;;  %v5875_v40 = vpack.c.bf16 %v457_v34, %v453_v33 }
  0xfc   : > { %5892 = vmatprep.subr.bf16.mxu1 %v5891_v55  ;;  %617 = vmatprep.mubr.f32.mxu0 %v7532_v7  ;;  %v452_v41 = vld [vmem:[#allocation8 + $0x140] sm:$0xff]  ;;  %v454_v43 = vld [vmem:[#allocation8 + $0x150] sm:$0xff]  ;;  %v5907_v44 = vpack.c.bf16 %v459_v36, %v455_v35  ;;  %v461_v46 = vld [vmem:[#allocation8 + $0x188] sm:$0xff] }
  0xfd   : > { %718 = vmatprep.mubr.f32.mxu1 %v7532_v7  ;;  %618 = vmatmul.mubr.f32.gmra.mrb[2].mxu0 %v477_v62  ;;  %v456_v42 = vld [vmem:[#allocation8 + $0x160] sm:$0xff]  ;;  %v458_v45 = vld [vmem:[#allocation8 + $0x170] sm:$0xff]  ;;  %v465_v47 = vld [vmem:[#allocation8 + $0x1a8] sm:$0xff] }
  0xfe   : > { %5862 = vmatpush1.bf16.msra.mxu0 %v5861_v61  ;;  %719 = vmatmul.mubr.f32.gmra.mrb[2].mxu1 %v477_v62  ;;  %v463_v48 = vld [vmem:[#allocation8 + $0x198] sm:$0xff]  ;;  %v5877_v50 = vpack.c.bf16 %v456_v42, %v452_v41  ;;  %v5909_v52 = vpack.c.bf16 %v458_v45, %v454_v43  ;;  %v5879_v53 = vpack.c.bf16 %v465_v47, %v461_v46  ;;  %v460_v54 = vld [vmem:[#allocation8 + $0x180] sm:$0xff]  ;;  %v462_v56 = vld [vmem:[#allocation8 + $0x190] sm:$0xff] }
  0xff   : > { %5894 = vmatpush1.bf16.msra.mxu1 %v5893_v63  ;;  %5864 = vmatprep.subr.bf16.mxu0 %v5863_v0  ;;  %v467_v49 = vld [vmem:[#allocation8 + $0x1b8] sm:$0xff]  ;;  %v464_v55 = vld [vmem:[#allocation8 + $0x1a0] sm:$0xff]  ;;  %v466_v58 = vld [vmem:[#allocation8 + $0x1b0] sm:$0xff] }
 0x100   : > { %5896 = vmatprep.subr.bf16.mxu1 %v5895_v4  ;;  %623 = vmatprep.mubr.f32.mxu0 %v7532_v7  ;;  %v481_v51 = vld [vmem:[%s7840_s14 + $0x39] sm:$0xff]  ;;  %v5911_v57 = vpack.c.bf16 %v467_v49, %v463_v48  ;;  %v5881_v63 = vpack.c.bf16 %v464_v55, %v460_v54  ;;  %v5913_v0 = vpack.c.bf16 %v466_v58, %v462_v56  ;;  %v468_v2 = vld [vmem:[#allocation8 + $0x1c0] sm:$0xff] }
 0x101   : > { %724 = vmatprep.mubr.f32.mxu1 %v7532_v7  ;;  %624 = vmatmul.mubr.f32.gmra.mrb[4].mxu0 %v478_v12  ;;  %v469_v59 = vld [vmem:[#allocation8 + $0x1c8] sm:$0xff]  ;;  %v471_v61 = vld [vmem:[#allocation8 + $0x1d8] sm:$0xff]  ;;  %v472_v3 = vld [vmem:[#allocation8 + $0x1e0] sm:$0xff] }
 0x102   : > { %5866 = vmatpush1.bf16.msra.mxu0 %v5865_v11  ;;  %725 = vmatmul.mubr.f32.gmra.mrb[4].mxu1 %v478_v12  ;;  %v473_v60 = vld [vmem:[#allocation8 + $0x1e8] sm:$0xff]  ;;  %v475_v62 = vld [vmem:[#allocation8 + $0x1f8] sm:$0xff]  ;;  %v470_v4 = vld [vmem:[#allocation8 + $0x1d0] sm:$0xff]  ;;  %v5885_v12 = vpack.c.bf16 %v472_v3, %v468_v2 }
 0x103   : > { %5898 = vmatpush1.bf16.msra.mxu1 %v5897_v13  ;;  %5868 = vmatprep.subr.bf16.mxu0 %v5867_v14  ;;  %v5883_v1 = vpack.c.bf16 %v473_v60, %v469_v59  ;;  %v5915_v5 = vpack.c.bf16 %v475_v62, %v471_v61  ;;  %v474_v6 = vld [vmem:[#allocation8 + $0x1f0] sm:$0xff]  ;;  %v959_v8 = vld [vmem:[#allocation8 + $0x408] sm:$0xff]  ;;  %v961_v10 = vld [vmem:[#allocation8 + $0x418] sm:$0xff] }
 0x104   : > { %5900 = vmatprep.subr.bf16.mxu1 %v5899_v18  ;;  %629 = vmatprep.mubr.f32.mxu0 %v7532_v7  ;;  %v963_v9 = vld [vmem:[#allocation8 + $0x428] sm:$0xff]  ;;  %v965_v11 = vld [vmem:[#allocation8 + $0x438] sm:$0xff]  ;;  %v5917_v13 = vpack.c.bf16 %v474_v6, %v470_v4  ;;  %v958_v15 = vld [vmem:[#allocation8 + $0x400] sm:$0xff] }
 0x105   : > { %730 = vmatprep.mubr.f32.mxu1 %v7532_v7  ;;  %630 = vmatmul.mubr.f32.gmra.mrb[6].mxu0 %v479_v25  ;;  %v5919_v14 = vpack.c.bf16 %v963_v9, %v959_v8  ;;  %v962_v16 = vld [vmem:[#allocation8 + $0x420] sm:$0xff]  ;;  %v960_v17 = vld [vmem:[#allocation8 + $0x410] sm:$0xff]  ;;  %v5951_v18 = vpack.c.bf16 %v965_v11, %v961_v10  ;;  %v967_v20 = vld [vmem:[#allocation8 + $0x448] sm:$0xff] }
 0x106   : > { %5870 = vmatpush1.bf16.msra.mxu0 %v5869_v24  ;;  %731 = vmatmul.mubr.f32.gmra.mrb[6].mxu1 %v479_v25  ;;  %v964_v19 = vld [vmem:[#allocation8 + $0x430] sm:$0xff]  ;;  %v971_v21 = vld [vmem:[#allocation8 + $0x468] sm:$0xff]  ;;  %v969_v22 = vld [vmem:[#allocation8 + $0x458] sm:$0xff]  ;;  %v5921_v25 = vpack.c.bf16 %v962_v16, %v958_v15 }
 0x107   : > { %5902 = vmatpush1.bf16.msra.mxu1 %v5901_v26  ;;  %5872 = vmatprep.subr.bf16.mxu0 %v5871_v27  ;;  %v973_v23 = vld [vmem:[#allocation8 + $0x478] sm:$0xff]  ;;  %v5953_v26 = vpack.c.bf16 %v964_v19, %v960_v17  ;;  %v5923_v27 = vpack.c.bf16 %v971_v21, %v967_v20  ;;  %v966_v28 = vld [vmem:[#allocation8 + $0x440] sm:$0xff]  ;;  %v968_v30 = vld [vmem:[#allocation8 + $0x450] sm:$0xff] }
 0x108   : > { %5904 = vmatprep.subr.bf16.mxu1 %v5903_v31  ;;  %635 = vmatprep.mubr.f32.mxu0 %v7532_v7  ;;  %v406_v24 = vld [vmem:[%s7840_s14] sm:$0xff]  ;;  %v970_v29 = vld [vmem:[#allocation8 + $0x460] sm:$0xff]  ;;  %v5955_v31 = vpack.c.bf16 %v973_v23, %v969_v22  ;;  %v975_v33 = vld [vmem:[#allocation8 + $0x488] sm:$0xff] }
 0x109   : > { %736 = vmatprep.mubr.f32.mxu1 %v7532_v7  ;;  %636 = vmatmul.mubr.f32.gmra.mrb[8].mxu0 %v480_v38  ;;  %v972_v32 = vld [vmem:[#allocation8 + $0x470] sm:$0xff]  ;;  %v979_v34 = vld [vmem:[#allocation8 + $0x4a8] sm:$0xff]  ;;  %v977_v35 = vld [vmem:[#allocation8 + $0x498] sm:$0xff] }
 0x10a   : > { %5874 = vmatpush1.bf16.msra.mxu0 %v5873_v37  ;;  %737 = vmatmul.mubr.f32.gmra.mrb[8].mxu1 %v480_v38  ;;  %v981_v36 = vld [vmem:[#allocation8 + $0x4b8] sm:$0xff]  ;;  %v5925_v37 = vpack.c.bf16 %v970_v29, %v966_v28  ;;  %v974_v41 = vld [vmem:[#allocation8 + $0x480] sm:$0xff]  ;;  %v976_v43 = vld [vmem:[#allocation8 + $0x490] sm:$0xff] }
 0x10b   : > { %5906 = vmatpush1.bf16.msra.mxu1 %v5905_v39  ;;  %5876 = vmatprep.subr.bf16.mxu0 %v5875_v40  ;;  %v407_v38 = vld [vmem:[%s7840_s14 + $0x8] sm:$0xff]  ;;  %v5957_v39 = vpack.c.bf16 %v972_v32, %v968_v30  ;;  %v5927_v40 = vpack.c.bf16 %v979_v34, %v975_v33  ;;  %v980_v45 = vld [vmem:[#allocation8 + $0x4b0] sm:$0xff]  ;;  %v983_v46 = vld [vmem:[#allocation8 + $0x4c8] sm:$0xff] }
 0x10c   : > { %5908 = vmatprep.subr.bf16.mxu1 %v5907_v44  ;;  %641 = vmatprep.mubr.f32.mxu0 %v7532_v7  ;;  %v978_v42 = vld [vmem:[#allocation8 + $0x4a0] sm:$0xff]  ;;  %v5959_v44 = vpack.c.bf16 %v981_v36, %v977_v35  ;;  %v987_v47 = vld [vmem:[#allocation8 + $0x4e8] sm:$0xff]  ;;  %v985_v48 = vld [vmem:[#allocation8 + $0x4d8] sm:$0xff] }
 0x10d   : > { %742 = vmatprep.mubr.f32.mxu1 %v7532_v7  ;;  %642 = vmatmul.mubr.f32.gmra.mrb[10].mxu0 %v481_v51  ;;  %v989_v49 = vld [vmem:[#allocation8 + $0x4f8] sm:$0xff]  ;;  %v982_v54 = vld [vmem:[#allocation8 + $0x4c0] sm:$0xff]  ;;  %v984_v56 = vld [vmem:[#allocation8 + $0x4d0] sm:$0xff] }
 0x10e   : > { %5878 = vmatpush1.bf16.msra.mxu0 %v5877_v50  ;;  %743 = vmatmul.mubr.f32.gmra.mrb[10].mxu1 %v481_v51  ;;  %v5929_v50 = vpack.c.bf16 %v978_v42, %v974_v41  ;;  %v408_v51 = vld [vmem:[%s7840_s14 + $0x18] sm:$0xff]  ;;  %v986_v55 = vld [vmem:[#allocation8 + $0x4e0] sm:$0xff]  ;;  %v993_v61 = vld [vmem:[#allocation8 + $0x518] sm:$0xff] }
 0x10f   : > { %5910 = vmatpush1.bf16.msra.mxu1 %v5909_v52  ;;  %5880 = vmatprep.subr.bf16.mxu0 %v5879_v53  ;;  %v5961_v52 = vpack.c.bf16 %v980_v45, %v976_v43  ;;  %v5931_v53 = vpack.c.bf16 %v987_v47, %v983_v46  ;;  %v988_v58 = vld [vmem:[#allocation8 + $0x4f0] sm:$0xff]  ;;  %v991_v59 = vld [vmem:[#allocation8 + $0x508] sm:$0xff]  ;;  %v997_v62 = vld [vmem:[#allocation8 + $0x538] sm:$0xff] }
 0x110   : > { %5912 = vmatprep.subr.bf16.mxu1 %v5911_v57  ;;  %813 = vmatprep.mubr.f32.mxu0 %v7532_v7  ;;  %v5963_v57 = vpack.c.bf16 %v989_v49, %v985_v48  ;;  %v995_v60 = vld [vmem:[#allocation8 + $0x528] sm:$0xff]  ;;  %v990_v3 = vld [vmem:[#allocation8 + $0x500] sm:$0xff]  ;;  %v5967_v6 = vpack.c.bf16 %v997_v62, %v993_v61  ;;  %v996_v8 = vld [vmem:[#allocation8 + $0x530] sm:$0xff] }
 0x111   : > { %914 = vmatprep.mubr.f32.mxu1 %v7532_v7  ;;  %v5935_v2 = vpack.c.bf16 %v995_v60, %v991_v59  ;;  %v994_v4 = vld [vmem:[#allocation8 + $0x520] sm:$0xff]  ;;  %v999_v9 = vld [vmem:[#allocation8 + $0x548] sm:$0xff]  ;;  %v1001_v11 = vld [vmem:[#allocation8 + $0x558] sm:$0xff] }
 0x112   : > { %5882 = vmatpush1.bf16.msra.mxu0 %v5881_v63  ;;  %v5933_v63 = vpack.c.bf16 %v986_v55, %v982_v54  ;;  %v1003_v10 = vld [vmem:[#allocation8 + $0x568] sm:$0xff]  ;;  %v998_v17 = vld [vmem:[#allocation8 + $0x540] sm:$0xff]  ;;  %v1000_v19 = vld [vmem:[#allocation8 + $0x550] sm:$0xff] }
 0x113   : > { %5914 = vmatpush1.bf16.msra.mxu1 %v5913_v0  ;;  %5884 = vmatprep.subr.bf16.mxu0 %v5883_v1  ;;  %v409_v0 = vld [vmem:[%s7840_s14 + $0x20] sm:$0xff]  ;;  %v5965_v1 = vpack.c.bf16 %v988_v58, %v984_v56  ;;  %v5939_v16 = vpack.c.bf16 %v1003_v10, %v999_v9  ;;  %v1007_v22 = vld [vmem:[#allocation8 + $0x588] sm:$0xff]  ;;  %v1006_v30 = vld [vmem:[#allocation8 + $0x580] sm:$0xff] }
 0x114   : > { %5916 = vmatprep.subr.bf16.mxu1 %v5915_v5  ;;  %v992_v5 = vld [vmem:[#allocation8 + $0x510] sm:$0xff]  ;;  %v1011_v23 = vld [vmem:[#allocation8 + $0x5a8] sm:$0xff]  ;;  %v1014_v42 = vld [vmem:[#allocation8 + $0x5c0] sm:$0xff] }
 0x115   : > { %v5969_v15 = vpack.c.bf16 %v996_v8, %v992_v5  ;;  %v1004_v21 = vld [vmem:[#allocation8 + $0x570] sm:$0xff]  ;;  %v5943_v29 = vpack.c.bf16 %v1011_v23, %v1007_v22  ;;  %v1015_v35 = vld [vmem:[#allocation8 + $0x5c8] sm:$0xff]  ;;  %v1018_v43 = vld [vmem:[#allocation8 + $0x5e0] sm:$0xff] }
 0x116   : > { %5886 = vmatpush1.bf16.msra.mxu0 %v5885_v12  ;;  %v1005_v12 = vld [vmem:[#allocation8 + $0x578] sm:$0xff]  ;;  %v5973_v28 = vpack.c.bf16 %v1004_v21, %v1000_v19  ;;  %v1008_v32 = vld [vmem:[#allocation8 + $0x590] sm:$0xff]  ;;  %v1019_v36 = vld [vmem:[#allocation8 + $0x5e8] sm:$0xff] }
 0x117   : > { %5918 = vmatpush1.bf16.msra.mxu1 %v5917_v13  ;;  %5920 = vmatprep.subr.bf16.mxu0 %v5919_v14  ;;  %v5937_v13 = vpack.c.bf16 %v994_v4, %v990_v3  ;;  %v410_v14 = vld [vmem:[%s7840_s14 + $0x30] sm:$0xff]  ;;  %v5971_v20 = vpack.c.bf16 %v1005_v12, %v1001_v11  ;;  %v1012_v34 = vld [vmem:[#allocation8 + $0x5b0] sm:$0xff]  ;;  %v5947_v41 = vpack.c.bf16 %v1019_v36, %v1015_v35 }
 0x118   : > { %5952 = vmatprep.subr.bf16.mxu1 %v5951_v18  ;;  %v1002_v18 = vld [vmem:[#allocation8 + $0x560] sm:$0xff]  ;;  %v1020_v46 = vld [vmem:[#allocation8 + $0x5f0] sm:$0xff] }
 0x119   : > { %814 = vmatmul.mubr.f32.vlgmr.msra.gmra.mrb[0].mxu0 %v406_v24  ;;  %v1949_v47 = vld [vmem:[#allocation11 + $0x808] sm:$0xff]  ;;  %v1951_v49 = vld [vmem:[#allocation11 + $0x818] sm:$0xff]  ;;  %v1948_v55 = vld [vmem:[#allocation11 + $0x800] sm:$0xff] }
 0x11a   : > { %915 = vmatmul.mubr.f32.vlgmr.msra.gmra.mrb[0].mxu1 %v406_v24  ;;  %5922 = vmatpush1.bf16.msra.mxu0 %v5921_v25  ;;  %v1009_v24 = vld [vmem:[#allocation8 + $0x598] sm:$0xff]  ;;  %v1953_v48 = vld [vmem:[#allocation11 + $0x828] sm:$0xff]  ;;  %v1952_v56 = vld [vmem:[#allocation11 + $0x820] sm:$0xff] }
 0x11b   : > { %5954 = vmatpush1.bf16.msra.mxu1 %v5953_v26  ;;  %5924 = vmatprep.subr.bf16.mxu0 %v5923_v27  ;;  %v1013_v25 = vld [vmem:[#allocation8 + $0x5b8] sm:$0xff]  ;;  %v5941_v26 = vpack.c.bf16 %v1002_v18, %v998_v17  ;;  %v411_v27 = vld [vmem:[%s7840_s14 + $0x38] sm:$0xff] }
 0x11c   : > { %5956 = vmatprep.subr.bf16.mxu1 %v5955_v31  ;;  %819 = vmatprep.mubr.f32.mxu0 %v7532_v7  ;;  %v1010_v31 = vld [vmem:[#allocation8 + $0x5a0] sm:$0xff]  ;;  %v5975_v33 = vpack.c.bf16 %v1013_v25, %v1009_v24  ;;  %v1954_v58 = vld [vmem:[#allocation11 + $0x830] sm:$0xff]  ;;  %v1957_v59 = vld [vmem:[#allocation11 + $0x848] sm:$0xff] }
 0x11d   : > { %920 = vmatprep.mubr.f32.mxu1 %v7532_v7  ;;  %820 = vmatmul.mubr.f32.gmra.mrb[2].mxu0 %v407_v38  ;;  %v1961_v60 = vld [vmem:[#allocation11 + $0x868] sm:$0xff]  ;;  %v1959_v62 = vld [vmem:[#allocation11 + $0x858] sm:$0xff]  ;;  %v1956_v3 = vld [vmem:[#allocation11 + $0x840] sm:$0xff] }
 0x11e   : > { %5926 = vmatpush1.bf16.msra.mxu0 %v5925_v37  ;;  %921 = vmatmul.mubr.f32.gmra.mrb[2].mxu1 %v407_v38  ;;  %v1017_v37 = vld [vmem:[#allocation8 + $0x5d8] sm:$0xff]  ;;  %v1960_v4 = vld [vmem:[#allocation11 + $0x860] sm:$0xff]  ;;  %v1965_v9 = vld [vmem:[#allocation11 + $0x888] sm:$0xff] }
 0x11f   : > { %5958 = vmatpush1.bf16.msra.mxu1 %v5957_v39  ;;  %5928 = vmatprep.subr.bf16.mxu0 %v5927_v40  ;;  %v1021_v38 = vld [vmem:[#allocation8 + $0x5f8] sm:$0xff]  ;;  %v5945_v39 = vpack.c.bf16 %v1010_v31, %v1006_v30  ;;  %v5977_v40 = vpack.c.bf16 %v1012_v34, %v1008_v32  ;;  %v1969_v10 = vld [vmem:[#allocation11 + $0x8a8] sm:$0xff]  ;;  %v1964_v17 = vld [vmem:[#allocation11 + $0x880] sm:$0xff] }
 0x120   : > { %5960 = vmatprep.subr.bf16.mxu1 %v5959_v44  ;;  %825 = vmatprep.mubr.f32.mxu0 %v7532_v7  ;;  %v1016_v44 = vld [vmem:[#allocation8 + $0x5d0] sm:$0xff]  ;;  %v5979_v45 = vpack.c.bf16 %v1021_v38, %v1017_v37  ;;  %v952_v11 = vld [vmem:[%s7840_s14 + $0xa] sm:$0xff] }
 0x121   : > { %926 = vmatprep.mubr.f32.mxu1 %v7532_v7  ;;  %826 = vmatmul.mubr.f32.gmra.mrb[4].mxu0 %v408_v51  ;;  %v951_v61 = vld [vmem:[%s7840_s14 + $0x2] sm:$0xff]  ;;  %v1968_v18 = vld [vmem:[#allocation11 + $0x8a0] sm:$0xff] }
 0x122   : > { %5930 = vmatpush1.bf16.msra.mxu0 %v5929_v50  ;;  %927 = vmatmul.mubr.f32.gmra.mrb[4].mxu1 %v408_v51  ;;  %v1955_v50 = vld [vmem:[#allocation11 + $0x838] sm:$0xff]  ;;  %v5949_v51 = vpack.c.bf16 %v1018_v43, %v1014_v42  ;;  %v1958_v5 = vld [vmem:[#allocation11 + $0x850] sm:$0xff]  ;;  %v1973_v22 = vld [vmem:[#allocation11 + $0x8c8] sm:$0xff] }
 0x123   : > { %5962 = vmatpush1.bf16.msra.mxu1 %v5961_v52  ;;  %5932 = vmatprep.subr.bf16.mxu0 %v5931_v53  ;;  %v5981_v52 = vpack.c.bf16 %v1020_v46, %v1016_v44  ;;  %v5983_v53 = vpack.c.bf16 %v1953_v48, %v1949_v47  ;;  %v6111_v54 = vpack.c.bf16 %v1955_v50, %v1951_v49  ;;  %v1962_v8 = vld [vmem:[#allocation11 + $0x870] sm:$0xff]  ;;  %v1967_v12 = vld [vmem:[#allocation11 + $0x898] sm:$0xff]  ;;  %v1977_v23 = vld [vmem:[#allocation11 + $0x8e8] sm:$0xff] }
 0x124   : > { %5964 = vmatprep.subr.bf16.mxu1 %v5963_v57  ;;  %831 = vmatprep.mubr.f32.mxu0 %v7532_v7  ;;  %v1950_v57 = vld [vmem:[#allocation11 + $0x810] sm:$0xff]  ;;  %v1975_v25 = vld [vmem:[#allocation11 + $0x8d8] sm:$0xff]  ;;  %v1972_v30 = vld [vmem:[#allocation11 + $0x8c0] sm:$0xff] }
 0x125   : > { %932 = vmatprep.mubr.f32.mxu1 %v7532_v7  ;;  %832 = vmatmul.mubr.f32.gmra.mrb[6].mxu0 %v409_v0  ;;  %v1966_v19 = vld [vmem:[#allocation11 + $0x890] sm:$0xff]  ;;  %v1976_v31 = vld [vmem:[#allocation11 + $0x8e0] sm:$0xff]  ;;  %v1981_v35 = vld [vmem:[#allocation11 + $0x908] sm:$0xff] }
 0x126   : > { %5934 = vmatpush1.bf16.msra.mxu0 %v5933_v63  ;;  %933 = vmatmul.mubr.f32.gmra.mrb[6].mxu1 %v409_v0  ;;  %v1963_v63 = vld [vmem:[#allocation11 + $0x878] sm:$0xff]  ;;  %v5985_v0 = vpack.c.bf16 %v1952_v56, %v1948_v55  ;;  %v1970_v21 = vld [vmem:[#allocation11 + $0x8b0] sm:$0xff]  ;;  %v1985_v36 = vld [vmem:[#allocation11 + $0x928] sm:$0xff] }
 0x127   : > { %5966 = vmatpush1.bf16.msra.mxu1 %v5965_v1  ;;  %5936 = vmatprep.subr.bf16.mxu0 %v5935_v2  ;;  %v6113_v1 = vpack.c.bf16 %v1954_v58, %v1950_v57  ;;  %v5987_v2 = vpack.c.bf16 %v1961_v60, %v1957_v59  ;;  %v953_v24 = vld [vmem:[%s7840_s14 + $0x1a] sm:$0xff]  ;;  %v954_v37 = vld [vmem:[%s7840_s14 + $0x22] sm:$0xff]  ;;  %v5999_v42 = vpack.c.bf16 %v1985_v36, %v1981_v35  ;;  %v955_v50 = vld [vmem:[%s7840_s14 + $0x32] sm:$0xff] }
 0x128   : > { %5968 = vmatprep.subr.bf16.mxu1 %v5967_v6  ;;  %837 = vmatprep.mubr.f32.mxu0 %v7532_v7  ;;  %v6115_v6 = vpack.c.bf16 %v1963_v63, %v1959_v62  ;;  %v1974_v32 = vld [vmem:[#allocation11 + $0x8d0] sm:$0xff]  ;;  %v1983_v38 = vld [vmem:[#allocation11 + $0x918] sm:$0xff]  ;;  %v1980_v43 = vld [vmem:[#allocation11 + $0x900] sm:$0xff] }
 0x129   : > { %938 = vmatprep.mubr.f32.mxu1 %v7532_v7  ;;  %838 = vmatmul.mubr.f32.gmra.mrb[8].mxu0 %v410_v14  ;;  %v1978_v34 = vld [vmem:[#allocation11 + $0x8f0] sm:$0xff]  ;;  %v1984_v44 = vld [vmem:[#allocation11 + $0x920] sm:$0xff]  ;;  %v1989_v48 = vld [vmem:[#allocation11 + $0x948] sm:$0xff] }
 0x12a   : > { %5938 = vmatpush1.bf16.msra.mxu0 %v5937_v13  ;;  %939 = vmatmul.mubr.f32.gmra.mrb[8].mxu1 %v410_v14  ;;  %v1971_v13 = vld [vmem:[#allocation11 + $0x8b8] sm:$0xff]  ;;  %v5989_v14 = vpack.c.bf16 %v1960_v4, %v1956_v3  ;;  %v1986_v47 = vld [vmem:[#allocation11 + $0x930] sm:$0xff]  ;;  %v1993_v49 = vld [vmem:[#allocation11 + $0x968] sm:$0xff] }
 0x12b   : > { %5970 = vmatpush1.bf16.msra.mxu1 %v5969_v15  ;;  %5940 = vmatprep.subr.bf16.mxu0 %v5939_v16  ;;  %v6117_v15 = vpack.c.bf16 %v1962_v8, %v1958_v5  ;;  %v5991_v16 = vpack.c.bf16 %v1969_v10, %v1965_v9  ;;  %v6003_v55 = vpack.c.bf16 %v1993_v49, %v1989_v48  ;;  %v1988_v56 = vld [vmem:[#allocation11 + $0x940] sm:$0xff]  ;;  %v1990_v58 = vld [vmem:[#allocation11 + $0x950] sm:$0xff]  ;;  %v2001_v62 = vld [vmem:[#allocation11 + $0x9a8] sm:$0xff] }
 0x12c   : > { %5972 = vmatprep.subr.bf16.mxu1 %v5971_v20  ;;  %843 = vmatprep.mubr.f32.mxu0 %v7532_v7  ;;  %v6119_v20 = vpack.c.bf16 %v1971_v13, %v1967_v12  ;;  %v1992_v57 = vld [vmem:[#allocation11 + $0x960] sm:$0xff]  ;;  %v1994_v60 = vld [vmem:[#allocation11 + $0x970] sm:$0xff]  ;;  %v2009_v12 = vld [vmem:[#allocation11 + $0x9e8] sm:$0xff] }
 0x12d   : > { %944 = vmatprep.mubr.f32.mxu1 %v7532_v7  ;;  %844 = vmatmul.mubr.f32.gmra.mrb[10].mxu0 %v411_v27  ;;  %v956_v63 = vld [vmem:[%s7840_s14 + $0x3a] sm:$0xff]  ;;  %v6133_v3 = vpack.c.bf16 %v1994_v60, %v1990_v58  ;;  %v2007_v13 = vld [vmem:[#allocation11 + $0x9d8] sm:$0xff] }
 0x12e   : > { %5942 = vmatpush1.bf16.msra.mxu0 %v5941_v26  ;;  %945 = vmatmul.mubr.f32.gmra.mrb[10].mxu1 %v411_v27  ;;  %v1979_v26 = vld [vmem:[#allocation11 + $0x8f8] sm:$0xff]  ;;  %v5993_v27 = vpack.c.bf16 %v1968_v18, %v1964_v17  ;;  %v1996_v5 = vld [vmem:[#allocation11 + $0x980] sm:$0xff]  ;;  %v1998_v8 = vld [vmem:[#allocation11 + $0x990] sm:$0xff] }
 0x12f   : > { %5974 = vmatpush1.bf16.msra.mxu1 %v5973_v28  ;;  %5944 = vmatprep.subr.bf16.mxu0 %v5943_v29  ;;  %v6121_v28 = vpack.c.bf16 %v1970_v21, %v1966_v19  ;;  %v5995_v29 = vpack.c.bf16 %v1977_v23, %v1973_v22  ;;  %v2002_v10 = vld [vmem:[#allocation11 + $0x9b0] sm:$0xff]  ;;  %v2004_v18 = vld [vmem:[#allocation11 + $0x9c0] sm:$0xff]  ;;  %v2013_v23 = vld [vmem:[#allocation11 + $0xa08] sm:$0xff] }
 0x130   : > { %5976 = vmatprep.subr.bf16.mxu1 %v5975_v33  ;;  %1086 = vmatprep.mubr.f32.mxu0 %v7532_v7  ;;  %v6123_v33 = vpack.c.bf16 %v1979_v26, %v1975_v25  ;;  %v2008_v19 = vld [vmem:[#allocation11 + $0x9e0] sm:$0xff]  ;;  %v2010_v22 = vld [vmem:[#allocation11 + $0x9f0] sm:$0xff]  ;;  %v2015_v25 = vld [vmem:[#allocation11 + $0xa18] sm:$0xff] }
 0x131   : > { %1187 = vmatprep.mubr.f32.mxu1 %v7532_v7  ;;  %v2019_v26 = vld [vmem:[#allocation11 + $0xa38] sm:$0xff]  ;;  %v2021_v35 = vld [vmem:[#allocation11 + $0xa48] sm:$0xff]  ;;  %v2030_v58 = vld [vmem:[#allocation11 + $0xa90] sm:$0xff] }
 0x132   : > { %5946 = vmatpush1.bf16.msra.mxu0 %v5945_v39  ;;  %v1987_v39 = vld [vmem:[#allocation11 + $0x938] sm:$0xff]  ;;  %v2025_v36 = vld [vmem:[#allocation11 + $0xa68] sm:$0xff] }
 0x133   : > { %5978 = vmatpush1.bf16.msra.mxu1 %v5977_v40  ;;  %5948 = vmatprep.subr.bf16.mxu0 %v5947_v41  ;;  %v5997_v40 = vpack.c.bf16 %v1976_v31, %v1972_v30  ;;  %v6125_v41 = vpack.c.bf16 %v1978_v34, %v1974_v32  ;;  %v6127_v46 = vpack.c.bf16 %v1987_v39, %v1983_v38  ;;  %v2012_v30 = vld [vmem:[#allocation11 + $0xa00] sm:$0xff]  ;;  %v2014_v32 = vld [vmem:[#allocation11 + $0xa10] sm:$0xff]  ;;  %v2027_v38 = vld [vmem:[#allocation11 + $0xa78] sm:$0xff] }
 0x134   : > { %5980 = vmatprep.subr.bf16.mxu1 %v5979_v45  ;;  %v1982_v45 = vld [vmem:[#allocation11 + $0x910] sm:$0xff]  ;;  %v2016_v31 = vld [vmem:[#allocation11 + $0xa20] sm:$0xff]  ;;  %v2029_v49 = vld [vmem:[#allocation11 + $0xa88] sm:$0xff] }
 0x135   : > { %v2018_v34 = vld [vmem:[#allocation11 + $0xa30] sm:$0xff]  ;;  %v6017_v39 = vpack.c.bf16 %v2016_v31, %v2012_v30 }
 0x136   : > { %5950 = vmatpush1.bf16.msra.mxu0 %v5949_v51  ;;  %v1991_v51 = vld [vmem:[#allocation11 + $0x958] sm:$0xff] }
 0x137   : > { %5982 = vmatpush1.bf16.msra.mxu1 %v5981_v52  ;;  %5984 = vmatprep.subr.bf16.mxu0 %v5983_v53  ;;  %v1995_v52 = vld [vmem:[#allocation11 + $0x978] sm:$0xff]  ;;  %v6001_v53 = vpack.c.bf16 %v1984_v44, %v1980_v43  ;;  %v2024_v43 = vld [vmem:[#allocation11 + $0xa60] sm:$0xff] }
 0x138   : > { %6112 = vmatprep.subr.bf16.mxu1 %v6111_v54  ;;  %v6129_v54 = vpack.c.bf16 %v1986_v47, %v1982_v45  ;;  %v6131_v59 = vpack.c.bf16 %v1995_v52, %v1991_v51  ;;  %v2022_v45 = vld [vmem:[#allocation11 + $0xa50] sm:$0xff]  ;;  %v2031_v51 = vld [vmem:[#allocation11 + $0xa98] sm:$0xff] }
 0x139   : > { %1087 = vmatmul.mubr.f32.vlgmr.msra.gmra.mrb[0].mxu0 %v951_v61 }
 0x13a   : > { %1188 = vmatmul.mubr.f32.vlgmr.msra.gmra.mrb[0].mxu1 %v951_v61  ;;  %1092 = vmatprep.mubr.f32.mxu0 %v7532_v7  ;;  %v1997_v61 = vld [vmem:[#allocation11 + $0x988] sm:$0xff] }
 0x13b   : > { %1193 = vmatprep.mubr.f32.mxu1 %v7532_v7  ;;  %5986 = vmatpush1.bf16.msra.mxu0 %v5985_v0  ;;  %v1999_v0 = vld [vmem:[#allocation11 + $0x998] sm:$0xff]  ;;  %v6007_v4 = vpack.c.bf16 %v2001_v62, %v1997_v61  ;;  %v2037_v61 = vld [vmem:[#allocation11 + $0xac8] sm:$0xff] }
 0x13c   : > { %6114 = vmatpush1.bf16.msra.mxu1 %v6113_v1  ;;  %5988 = vmatprep.subr.bf16.mxu0 %v5987_v2  ;;  %v2003_v1 = vld [vmem:[#allocation11 + $0x9b8] sm:$0xff]  ;;  %v6005_v2 = vpack.c.bf16 %v1992_v57, %v1988_v56  ;;  %v2041_v62 = vld [vmem:[#allocation11 + $0xae8] sm:$0xff] }
 0x13d   : > { %1093 = vmatmul.mubr.f32.gmra.mrb[2].mxu0 %v952_v11  ;;  %6116 = vmatprep.subr.bf16.mxu1 %v6115_v6  ;;  %v2000_v6 = vld [vmem:[#allocation11 + $0x9a0] sm:$0xff]  ;;  %v6135_v9 = vpack.c.bf16 %v2003_v1, %v1999_v0  ;;  %v6027_v0 = vpack.c.bf16 %v2041_v62, %v2037_v61  ;;  %v2043_v1 = vld [vmem:[#allocation11 + $0xaf8] sm:$0xff] }
 0x13e   : > { %1194 = vmatmul.mubr.f32.gmra.mrb[2].mxu1 %v952_v11  ;;  %1098 = vmatprep.mubr.f32.mxu0 %v7532_v7  ;;  %v2005_v11 = vld [vmem:[#allocation11 + $0x9c8] sm:$0xff]  ;;  %v2079_v61 = vld [vmem:[#allocation11 + $0xc18] sm:$0xff] }
 0x13f   : > { %1199 = vmatprep.mubr.f32.mxu1 %v7532_v7  ;;  %5990 = vmatpush1.bf16.msra.mxu0 %v5989_v14  ;;  %v2011_v14 = vld [vmem:[#allocation11 + $0x9f8] sm:$0xff]  ;;  %v6011_v17 = vpack.c.bf16 %v2009_v12, %v2005_v11  ;;  %v2045_v12 = vld [vmem:[#allocation11 + $0xb08] sm:$0xff]  ;;  %v7976_v11 = vld [vmem:[#allocation11 + $0xc00] sm:$0xff] }
 0x140   : > { %6118 = vmatpush1.bf16.msra.mxu1 %v6117_v15  ;;  %5992 = vmatprep.subr.bf16.mxu0 %v5991_v16  ;;  %v6009_v15 = vpack.c.bf16 %v2000_v6, %v1996_v5  ;;  %v6137_v16 = vpack.c.bf16 %v2002_v10, %v1998_v8  ;;  %v6139_v21 = vpack.c.bf16 %v2011_v14, %v2007_v13  ;;  %v2038_v8 = vld [vmem:[#allocation11 + $0xad0] sm:$0xff]  ;;  %v2049_v13 = vld [vmem:[#allocation11 + $0xb28] sm:$0xff]  ;;  %v2047_v14 = vld [vmem:[#allocation11 + $0xb18] sm:$0xff] }
 0x141   : > { %1099 = vmatmul.mubr.f32.gmra.mrb[4].mxu0 %v953_v24  ;;  %6120 = vmatprep.subr.bf16.mxu1 %v6119_v20  ;;  %v2006_v20 = vld [vmem:[#allocation11 + $0x9d0] sm:$0xff] }
 0x142   : > { %1200 = vmatmul.mubr.f32.gmra.mrb[4].mxu1 %v953_v24  ;;  %1104 = vmatprep.mubr.f32.mxu0 %v7532_v7  ;;  %v2017_v24 = vld [vmem:[#allocation11 + $0xa28] sm:$0xff] }
 0x143   : > { %1205 = vmatprep.mubr.f32.mxu1 %v7532_v7  ;;  %5994 = vmatpush1.bf16.msra.mxu0 %v5993_v27  ;;  %v6013_v27 = vpack.c.bf16 %v2008_v19, %v2004_v18  ;;  %v2048_v18 = vld [vmem:[#allocation11 + $0xb20] sm:$0xff] }
 0x144   : > { %6122 = vmatpush1.bf16.msra.mxu1 %v6121_v28  ;;  %5996 = vmatprep.subr.bf16.mxu0 %v5995_v29  ;;  %v6141_v28 = vpack.c.bf16 %v2010_v22, %v2006_v20  ;;  %v6015_v29 = vpack.c.bf16 %v2017_v24, %v2013_v23  ;;  %v2050_v22 = vld [vmem:[#allocation11 + $0xb30] sm:$0xff]  ;;  %v2053_v24 = vld [vmem:[#allocation11 + $0xb48] sm:$0xff] }
 0x145   : > { %1105 = vmatmul.mubr.f32.gmra.mrb[6].mxu0 %v954_v37  ;;  %6124 = vmatprep.subr.bf16.mxu1 %v6123_v33  ;;  %v6143_v33 = vpack.c.bf16 %v2019_v26, %v2015_v25  ;;  %v2057_v25 = vld [vmem:[#allocation11 + $0xb68] sm:$0xff]  ;;  %v2055_v26 = vld [vmem:[#allocation11 + $0xb58] sm:$0xff] }
 0x146   : > { %1206 = vmatmul.mubr.f32.gmra.mrb[6].mxu1 %v954_v37  ;;  %1110 = vmatprep.mubr.f32.mxu0 %v7532_v7  ;;  %v2023_v37 = vld [vmem:[#allocation11 + $0xa58] sm:$0xff] }
 0x147   : > { %1211 = vmatprep.mubr.f32.mxu1 %v7532_v7  ;;  %5998 = vmatpush1.bf16.msra.mxu0 %v5997_v40  ;;  %v6145_v40 = vpack.c.bf16 %v2018_v34, %v2014_v32  ;;  %v6147_v44 = vpack.c.bf16 %v2027_v38, %v2023_v37  ;;  %v2054_v32 = vld [vmem:[#allocation11 + $0xb50] sm:$0xff]  ;;  %v2063_v37 = vld [vmem:[#allocation11 + $0xb98] sm:$0xff] }
 0x148   : > { %6126 = vmatpush1.bf16.msra.mxu1 %v6125_v41  ;;  %6000 = vmatprep.subr.bf16.mxu0 %v5999_v42  ;;  %v6019_v41 = vpack.c.bf16 %v2025_v36, %v2021_v35  ;;  %v2020_v42 = vld [vmem:[#allocation11 + $0xa40] sm:$0xff]  ;;  %v2061_v35 = vld [vmem:[#allocation11 + $0xb88] sm:$0xff] }
 0x149   : > { %1111 = vmatmul.mubr.f32.gmra.mrb[8].mxu0 %v955_v50  ;;  %6128 = vmatprep.subr.bf16.mxu1 %v6127_v46  ;;  %v2026_v46 = vld [vmem:[#allocation11 + $0xa70] sm:$0xff]  ;;  %v6021_v47 = vpack.c.bf16 %v2024_v43, %v2020_v42  ;;  %v2065_v36 = vld [vmem:[#allocation11 + $0xba8] sm:$0xff] }
 0x14a   : > { %1212 = vmatmul.mubr.f32.gmra.mrb[8].mxu1 %v955_v50  ;;  %1116 = vmatprep.mubr.f32.mxu0 %v7532_v7  ;;  %v6149_v48 = vpack.c.bf16 %v2026_v46, %v2022_v45  ;;  %v2033_v50 = vld [vmem:[#allocation11 + $0xaa8] sm:$0xff]  ;;  %v6039_v38 = vpack.c.bf16 %v2065_v36, %v2061_v35  ;;  %v2066_v45 = vld [vmem:[#allocation11 + $0xbb0] sm:$0xff] }
 0x14b   : > { %1217 = vmatprep.mubr.f32.mxu1 %v7532_v7  ;;  %6002 = vmatpush1.bf16.msra.mxu0 %v6001_v53  ;;  %v6023_v52 = vpack.c.bf16 %v2033_v50, %v2029_v49  ;;  %v2035_v53 = vld [vmem:[#allocation11 + $0xab8] sm:$0xff] }
 0x14c   : > { %6130 = vmatpush1.bf16.msra.mxu1 %v6129_v54  ;;  %6004 = vmatprep.subr.bf16.mxu0 %v6003_v55  ;;  %v2028_v54 = vld [vmem:[#allocation11 + $0xa80] sm:$0xff]  ;;  %v6151_v56 = vpack.c.bf16 %v2035_v53, %v2031_v51  ;;  %v2071_v49 = vld [vmem:[#allocation11 + $0xbd8] sm:$0xff] }
 0x14d   : > { %1117 = vmatmul.mubr.f32.gmra.mrb[10].mxu0 %v956_v63  ;;  %6132 = vmatprep.subr.bf16.mxu1 %v6131_v59  ;;  %v2032_v55 = vld [vmem:[#allocation11 + $0xaa0] sm:$0xff]  ;;  %v2034_v59 = vld [vmem:[#allocation11 + $0xab0] sm:$0xff]  ;;  %v2075_v51 = vld [vmem:[#allocation11 + $0xbf8] sm:$0xff] }
 0x14e   : > { %1218 = vmatmul.mubr.f32.gmra.mrb[10].mxu1 %v956_v63  ;;  %v6025_v57 = vpack.c.bf16 %v2032_v55, %v2028_v54  ;;  %v6153_v60 = vpack.c.bf16 %v2034_v59, %v2030_v58  ;;  %v2039_v63 = vld [vmem:[#allocation11 + $0xad8] sm:$0xff]  ;;  %v2072_v53 = vld [vmem:[#allocation11 + $0xbe0] sm:$0xff]  ;;  %v6171_v54 = vpack.c.bf16 %v2075_v51, %v2071_v49  ;;  %v2077_v59 = vld [vmem:[#allocation11 + $0xc08] sm:$0xff] }
 0x14f   : > { %6006 = vmatpush1.bf16.msra.mxu0 %v6005_v2  ;;  %v2036_v2 = vld [vmem:[#allocation11 + $0xac0] sm:$0xff]  ;;  %v6155_v5 = vpack.c.bf16 %v2043_v1, %v2039_v63  ;;  %v2083_v63 = vld [vmem:[#allocation11 + $0xc38] sm:$0xff] }
 0x150   : > { %6134 = vmatpush1.bf16.msra.mxu1 %v6133_v3  ;;  %6008 = vmatprep.subr.bf16.mxu0 %v6007_v4  ;;  %v2040_v3 = vld [vmem:[#allocation11 + $0xae0] sm:$0xff]  ;;  %v1250_v4 = vlaneseq }
 0x151   : > { %6136 = vmatprep.subr.bf16.mxu1 %v6135_v9  ;;  %v6029_v6 = vpack.c.bf16 %v2040_v3, %v2036_v2  ;;  %v2042_v9 = vld [vmem:[#allocation11 + $0xaf0] sm:$0xff]  ;;  %v1248_v3 = vld [vmem:[#allocation10] sm:$0xf] }
 0x152   : > { %v6157_v10 = vpack.c.bf16 %v2042_v9, %v2038_v8  ;;  %vm7917_vm0 = vcmp.lt.s32.totalorder %v1250_v4, 512  ;;  %v7958_v1 = vshrl.u32 %v1250_v4, 7 }
 0x153   : > { %6010 = vmatpush1.bf16.msra.mxu0 %v6009_v15  ;;  %1372 = vst.msk [vmem:[#allocation2] ss:$8 sm:$0xf] %vm7917_vm0, %v7532_v7  ;;  %1375 = vst.msk [vmem:[#allocation2 + $0x60] ss:$8 sm:$0xf] %vm7917_vm0, %v7532_v7  ;;  %v6031_v15 = vpack.c.bf16 %v2049_v13, %v2045_v12 }
 0x154   : > { %6138 = vmatpush1.bf16.msra.mxu1 %v6137_v16  ;;  %6012 = vmatprep.subr.bf16.mxu0 %v6011_v17  ;;  %1378 = vst.msk [vmem:[#allocation2 + $0xc0] ss:$8 sm:$0xf] %vm7917_vm0, %v7532_v7  ;;  %1381 = vst.msk [vmem:[#allocation2 + $0x41] ss:$8 sm:$0xf] %vm7917_vm0, %v7532_v7 }
 0x155   : > { %6140 = vmatprep.subr.bf16.mxu1 %v6139_v21  ;;  %1384 = vst.msk [vmem:[#allocation2 + $0xa1] ss:$8 sm:$0xf] %vm7917_vm0, %v7532_v7  ;;  %1387 = vst.msk [vmem:[#allocation2 + $0x101] ss:$8 sm:$0xf] %vm7917_vm0, %v7532_v7 }
 0x156   : > { %3950 = vst.msk [vmem:[#allocation3] ss:$8 sm:$0xf] %vm7917_vm0, %v7532_v7  ;;  %3953 = vst.msk [vmem:[#allocation3 + $0x60] ss:$8 sm:$0xf] %vm7917_vm0, %v7532_v7 }
 0x157   : > { %6014 = vmatpush1.bf16.msra.mxu0 %v6013_v27  ;;  %3956 = vst.msk [vmem:[#allocation3 + $0xc0] ss:$8 sm:$0xf] %vm7917_vm0, %v7532_v7  ;;  %3959 = vst.msk [vmem:[#allocation3 + $0x41] ss:$8 sm:$0xf] %vm7917_vm0, %v7532_v7  ;;  %v6035_v27 = vpack.c.bf16 %v2057_v25, %v2053_v24 }
 0x158   : > { %6142 = vmatpush1.bf16.msra.mxu1 %v6141_v28  ;;  %6016 = vmatprep.subr.bf16.mxu0 %v6015_v29  ;;  %3962 = vst.msk [vmem:[#allocation3 + $0xa1] ss:$8 sm:$0xf] %vm7917_vm0, %v7532_v7  ;;  %3965 = vst.msk [vmem:[#allocation3 + $0x101] ss:$8 sm:$0xf] %vm7917_vm0, %v7532_v7 }
 0x159   : > { %6144 = vmatprep.subr.bf16.mxu1 %v6143_v33  ;;  %v2051_v16 = vld [vmem:[#allocation11 + $0xb38] sm:$0xff]  ;;  %v2044_v17 = vld [vmem:[#allocation11 + $0xb00] sm:$0xff]  ;;  %v2046_v21 = vld [vmem:[#allocation11 + $0xb10] sm:$0xff]  ;;  %v1252_v2 = vsub.s32 0, %v7958_v1  ;;  %v1264_v8 = vsub.s32 3, %v7958_v1 }
 0x15a   : > { %v6159_v19 = vpack.c.bf16 %v2051_v16, %v2047_v14  ;;  %v6033_v20 = vpack.c.bf16 %v2048_v18, %v2044_v17  ;;  %v6161_v23 = vpack.c.bf16 %v2050_v22, %v2046_v21  ;;  %v2059_v28 = vld [vmem:[#allocation11 + $0xb78] sm:$0xff]  ;;  %v2052_v7 = vld [vmem:[#allocation11 + $0xb40] sm:$0xff]  ;;  %v2058_v33 = vld [vmem:[#allocation11 + $0xb70] sm:$0xff]  ;;  %v7988_v17 = vstv %s1294_s12 }
 0x15b   : > { %6018 = vmatpush1.bf16.msra.mxu0 %v6017_v39  ;;  %v2056_v29 = vld [vmem:[#allocation11 + $0xb60] sm:$0xff]  ;;  %v6163_v30 = vpack.c.bf16 %v2059_v28, %v2055_v26  ;;  %v6165_v34 = vpack.c.bf16 %v2058_v33, %v2054_v32  ;;  %v2067_v39 = vld [vmem:[#allocation11 + $0xbb8] sm:$0xff]  ;;  %v7966_v9 = vrot.slane %v1248_v3, %v1252_v2  ;;  %v7980_v12 = vrot.slane %v1248_v3, %v1264_v8  ;;  %v7984_v14 = vld [vmem:[#allocation11 + $0xc10] sm:$0xff] }
 0x15c   : > { %6146 = vmatpush1.bf16.msra.mxu1 %v6145_v40  ;;  %6020 = vmatprep.subr.bf16.mxu0 %v6019_v41  ;;  %v6037_v31 = vpack.c.bf16 %v2056_v29, %v2052_v7  ;;  %v2060_v40 = vld [vmem:[#allocation11 + $0xb80] sm:$0xff]  ;;  %v6167_v42 = vpack.c.bf16 %v2067_v39, %v2063_v37  ;;  %v7990_v18 = vld [vmem:[#allocation11 + $0xc48] sm:$0xff] }
 0x15d   : > { %6148 = vmatprep.subr.bf16.mxu1 %v6147_v44  ;;  %v2064_v41 = vld [vmem:[#allocation11 + $0xba0] sm:$0xff]  ;;  %v2062_v44 = vld [vmem:[#allocation11 + $0xb90] sm:$0xff] }
 0x15e   : > { %v6041_v43 = vpack.c.bf16 %v2064_v41, %v2060_v40  ;;  %v6169_v46 = vpack.c.bf16 %v2066_v45, %v2062_v44  ;;  %v7982_v13 = vld [vmem:[#allocation11 + $0xc20] sm:$0xff]  ;;  %v8012_v44 = vld [vmem:[#allocation11 + $0xc78] sm:$0xff] }
 0x15f   : > { %6022 = vmatpush1.bf16.msra.mxu0 %v6021_v47  ;;  %v2069_v47 = vld [vmem:[#allocation11 + $0xbc8] sm:$0xff]  ;;  %v6049_v26 = vpack.c.bf16 %v7982_v13, %v7976_v11 }
 0x160   : > { %6150 = vmatpush1.bf16.msra.mxu1 %v6149_v48  ;;  %6024 = vmatprep.subr.bf16.mxu0 %v6023_v52  ;;  %v2073_v48 = vld [vmem:[#allocation11 + $0xbe8] sm:$0xff]  ;;  %v2068_v52 = vld [vmem:[#allocation11 + $0xbc0] sm:$0xff] }
 0x161   : > { %6152 = vmatprep.subr.bf16.mxu1 %v6151_v56  ;;  %v6043_v50 = vpack.c.bf16 %v2073_v48, %v2069_v47  ;;  %v6045_v55 = vpack.c.bf16 %v2072_v53, %v2068_v52  ;;  %v2070_v56 = vld [vmem:[#allocation11 + $0xbd0] sm:$0xff] }
 0x163   : > { %6026 = vmatpush1.bf16.msra.mxu0 %v6025_v57  ;;  %v2074_v57 = vld [vmem:[#allocation11 + $0xbf0] sm:$0xff] }
 0x164   : > { %6154 = vmatpush1.bf16.msra.mxu1 %v6153_v60  ;;  %6028 = vmatprep.subr.bf16.mxu0 %v6027_v0  ;;  %v6173_v58 = vpack.c.bf16 %v2074_v57, %v2070_v56  ;;  %v2081_v60 = vld [vmem:[#allocation11 + $0xc28] sm:$0xff]  ;;  %v6175_v0 = vpack.c.bf16 %v2083_v63, %v2079_v61 }
 0x165   : > { %6156 = vmatprep.subr.bf16.mxu1 %v6155_v5  ;;  %v6047_v62 = vpack.c.bf16 %v2081_v60, %v2077_v59  ;;  %v1260_v5 = vsub.s32 2, %v7958_v1 }
 0x167   : > { %6030 = vmatpush1.bf16.msra.mxu0 %v6029_v6  ;;  %v1256_v6 = vsub.s32 1, %v7958_v1  ;;  %v8452_v1 = vld [vmem:[%s9147_s5 + $0x190] sm:$0xff] }
 0x168   : > { %6158 = vmatpush1.bf16.msra.mxu1 %v6157_v10  ;;  %6032 = vmatprep.subr.bf16.mxu0 %v6031_v15  ;;  %v7970_v10 = vrot.slane %v1248_v3, %v1260_v5  ;;  %v7986_v15 = vld [vmem:[#allocation11 + $0xc30] sm:$0xff] }
 0x169   : > { %6160 = vmatprep.subr.bf16.mxu1 %v6159_v19  ;;  %v7974_v4 = vrot.slane %v1248_v3, %v1256_v6  ;;  %v7992_v19 = vld [vmem:[#allocation11 + $0xc68] sm:$0xff] }
 0x16a   : > { %v6051_v29 = vpack.c.bf16 %v7992_v19, %v7990_v18 }
 0x16b   : > { %6034 = vmatpush1.bf16.msra.mxu0 %v6033_v20 }
 0x16c   : > { %6162 = vmatpush1.bf16.msra.mxu1 %v6161_v23  ;;  %6036 = vmatprep.subr.bf16.mxu0 %v6035_v27  ;;  %v6177_v27 = vpack.c.bf16 %v7986_v15, %v7984_v14 }
 0x16d   : > { %6164 = vmatprep.subr.bf16.mxu1 %v6163_v30 }
 0x16f   : > { %6038 = vmatpush1.bf16.msra.mxu0 %v6037_v31 }
 0x170   : > { %6166 = vmatpush1.bf16.msra.mxu1 %v6165_v34  ;;  %6040 = vmatprep.subr.bf16.mxu0 %v6039_v38 }
 0x171   : > { %6168 = vmatprep.subr.bf16.mxu1 %v6167_v42 }
 0x173   : > { %6042 = vmatpush1.bf16.msra.mxu0 %v6041_v43  ;;  %v8010_v43 = vld [vmem:[#allocation11 + $0xc58] sm:$0xff] }
 0x174   : > { %6170 = vmatpush1.bf16.msra.mxu1 %v6169_v46  ;;  %6044 = vmatprep.subr.bf16.mxu0 %v6043_v50  ;;  %v6179_v57 = vpack.c.bf16 %v8012_v44, %v8010_v43  ;;  %v2100_v43 = vld [vmem:[#allocation11 + $0xcc0] sm:$0xff] }
 0x175   : > { %6172 = vmatprep.subr.bf16.mxu1 %v6171_v54  ;;  %v2104_v44 = vld [vmem:[#allocation11 + $0xce0] sm:$0xff] }
 0x177   : > { %6046 = vmatpush1.bf16.msra.mxu0 %v6045_v55 }
 0x178   : > { %6174 = vmatpush1.bf16.msra.mxu1 %v6173_v58  ;;  %6048 = vmatprep.subr.bf16.mxu0 %v6047_v62 }
 0x179   : > { %6176 = vmatprep.subr.bf16.mxu1 %v6175_v0 }
 0x20c   : > { %v1088_v16 = vpop.f32.mrb[0].mxu0 }
 0x20d   : > { %v1270_v20 = vadd.f32 %v7966_v9, %v1088_v16  ;;  %v1189_v21 = vpop.f32.mrb[0].mxu1  ;;  %v1090_v22 = vpop.f32.mrb[1].mxu0 }
 0x20e   : > { %v1272_v23 = vadd.f32 %v7970_v10, %v1189_v21  ;;  %v1271_v24 = vadd.f32 %v7974_v4, %v1090_v22  ;;  %v1191_v25 = vpop.f32.mrb[1].mxu1 }
 0x20f   : > { %vm1295_vm2 = vcmp.ge.f32.partialorder %v1270_v20, 0.0  ;;  %v1320_v28 = vmul.f32 %v7988_v17, %v1270_v20  ;;  %v1273_v7 = vadd.f32 %v7980_v12, %v1191_v25 }
 0x210   : > { %vm1297_vm3 = vcmp.ge.f32.partialorder %v1272_v23, 0.0  ;;  %v1322_v30 = vmul.f32 %v7988_v17, %v1272_v23  ;;  %vm1296_vm4 = vcmp.ge.f32.partialorder %v1271_v24, 0.0  ;;  %v1321_v31 = vmul.f32 %v7988_v17, %v1271_v24  ;;  %v1094_v32 = vpop.f32.mrb[2].mxu0 }
 0x211   : > { %v1344_v33 = vsel %vm1295_vm2, %v1270_v20, %v1320_v28  ;;  %vm1298_vm5 = vcmp.ge.f32.partialorder %v1273_v7, 0.0  ;;  %v1323_v34 = vmul.f32 %v7988_v17, %v1273_v7  ;;  %v1274_v35 = vadd.f32 %v7966_v9, %v1094_v32  ;;  %v1195_v36 = vpop.f32.mrb[2].mxu1  ;;  %v1096_v37 = vpop.f32.mrb[3].mxu0 }
 0x212   : > { %v1414_v38 = vrot.slane %v1344_v33, 7  ;;  %v1346_v39 = vsel %vm1297_vm3, %v1272_v23, %v1322_v30  ;;  %v1345_v40 = vsel %vm1296_vm4, %v1271_v24, %v1321_v31  ;;  %v1276_v41 = vadd.f32 %v7970_v10, %v1195_v36  ;;  %v1197_v42 = vpop.f32.mrb[3].mxu1 }
 0x213   : > { %v1416_v45 = vrot.slane %v1346_v39, 7  ;;  %v1415_v46 = vrot.slane %v1345_v40, 7  ;;  %v1347_v47 = vsel %vm1298_vm5, %v1273_v7, %v1323_v34  ;;  %vm1299_vm6 = vcmp.ge.f32.partialorder %v1274_v35, 0.0 }
 0x214   : > { %1486 = vst [vmem:[#allocation2] sm:$0xfe] %v1414_v38  ;;  %v1417_v48 = vrot.slane %v1347_v47, 7  ;;  %v1324_v49 = vmul.f32 %v7988_v17, %v1274_v35  ;;  %vm1301_vm7 = vcmp.ge.f32.partialorder %v1276_v41, 0.0  ;;  %v1326_v50 = vmul.f32 %v7988_v17, %v1276_v41  ;;  %v1100_v51 = vpop.f32.mrb[4].mxu0 }
 0x215   : > { %1488 = vst [vmem:[#allocation2 + $0x10] sm:$0xfe] %v1416_v45  ;;  %1487 = vst [vmem:[#allocation2 + $0x8] sm:$0xfe] %v1415_v46  ;;  %v1275_v52 = vadd.f32 %v7974_v4, %v1096_v37  ;;  %v1277_v53 = vadd.f32 %v7980_v12, %v1197_v42  ;;  %v1278_v54 = vadd.f32 %v7966_v9, %v1100_v51  ;;  %v1102_v55 = vpop.f32.mrb[5].mxu0  ;;  %v1201_v56 = vpop.f32.mrb[4].mxu1 }
 0x216   : > { %1489 = vst [vmem:[#allocation2 + $0x18] sm:$0xfe] %v1417_v48  ;;  %v1348_v58 = vsel %vm1299_vm6, %v1274_v35, %v1324_v49  ;;  %v1350_v59 = vsel %vm1301_vm7, %v1276_v41, %v1326_v50  ;;  %v1279_v60 = vadd.f32 %v7974_v4, %v1102_v55  ;;  %v1280_v61 = vadd.f32 %v7970_v10, %v1201_v56  ;;  %v1203_v62 = vpop.f32.mrb[5].mxu1 }
 0x217   : > { %v1418_v63 = vrot.slane %v1348_v58, 7  ;;  %v1422_v0 = vrot.slane %v1350_v59, 7  ;;  %vm1300_vm8 = vcmp.ge.f32.partialorder %v1275_v52, 0.0  ;;  %v1325_v3 = vmul.f32 %v7988_v17, %v1275_v52 }
 0x218   : > { %vm1302_vm9 = vcmp.ge.f32.partialorder %v1277_v53, 0.0  ;;  %v1327_v16 = vmul.f32 %v7988_v17, %v1277_v53  ;;  %vm1303_vm10 = vcmp.ge.f32.partialorder %v1278_v54, 0.0  ;;  %v1328_v20 = vmul.f32 %v7988_v17, %v1278_v54  ;;  %v1106_v21 = vpop.f32.mrb[6].mxu0 }
 0x219   : > { %v8028_v22 = vsel %vm1413_vm1, %v1414_v38, %v1418_v63  ;;  %1494 = vst [vmem:[#allocation2 + $0x40] sm:$0x1] %v1418_v63  ;;  %v1423_v23 = vsel %vm1413_vm1, %v1416_v45, %v1422_v0  ;;  %1496 = vst [vmem:[#allocation2 + $0x50] sm:$0x1] %v1422_v0  ;;  %v1349_v24 = vsel %vm1300_vm8, %v1275_v52, %v1325_v3  ;;  %vm1304_vm11 = vcmp.ge.f32.partialorder %v1279_v60, 0.0  ;;  %v1108_v25 = vpop.f32.mrb[7].mxu0 }
 0x21a   : > { %v1207_v28 = vpop.f32.mrb[6].mxu1  ;;  %1490 = vst [vmem:[#allocation2 + $0x20] sm:$0xff] %v8028_v22  ;;  %1492 = vst [vmem:[#allocation2 + $0x30] sm:$0xff] %v1423_v23  ;;  %v1420_v7 = vrot.slane %v1349_v24, 7  ;;  %v1351_v30 = vsel %vm1302_vm9, %v1277_v53, %v1327_v16  ;;  %v1352_v31 = vsel %vm1303_vm10, %v1278_v54, %v1328_v20  ;;  %v1329_v32 = vmul.f32 %v7988_v17, %v1279_v60 }
 0x21b   : > { %v1209_v33 = vpop.f32.mrb[7].mxu1  ;;  %v1424_v34 = vrot.slane %v1351_v30, 7  ;;  %v1426_v35 = vrot.slane %v1352_v31, 7  ;;  %vm1305_vm12 = vcmp.ge.f32.partialorder %v1280_v61, 0.0  ;;  %v1330_v36 = vmul.f32 %v7988_v17, %v1280_v61 }
 0x21c   : > { %v8036_v37 = vsel %vm1413_vm1, %v1415_v46, %v1420_v7  ;;  %1495 = vst [vmem:[#allocation2 + $0x48] sm:$0x1] %v1420_v7  ;;  %v1353_v38 = vsel %vm1304_vm11, %v1279_v60, %v1329_v32  ;;  %v1282_v39 = vadd.f32 %v7966_v9, %v1106_v21  ;;  %v1281_v40 = vadd.f32 %v7980_v12, %v1203_v62  ;;  %v1112_v41 = vpop.f32.mrb[8].mxu0 }
 0x21d   : > { %1491 = vst [vmem:[#allocation2 + $0x28] sm:$0xff] %v8036_v37  ;;  %v8043_v42 = vsel %vm1413_vm1, %v1417_v48, %v1424_v34  ;;  %1497 = vst [vmem:[#allocation2 + $0x58] sm:$0x1] %v1424_v34  ;;  %v1427_v45 = vrot.slane %v1353_v38, 7  ;;  %v1354_v47 = vsel %vm1305_vm12, %v1280_v61, %v1330_v36  ;;  %v1283_v46 = vadd.f32 %v7974_v4, %v1108_v25  ;;  %v1114_v49 = vpop.f32.mrb[9].mxu0  ;;  %v1213_v50 = vpop.f32.mrb[8].mxu1 }
 0x21e   : > { %1498 = vst [vmem:[#allocation2 + $0x60] sm:$0xfe] %v1426_v35  ;;  %1493 = vst [vmem:[#allocation2 + $0x38] sm:$0xff] %v8043_v42  ;;  %v1428_v51 = vrot.slane %v1354_v47, 7  ;;  %vm1307_vm13 = vcmp.ge.f32.partialorder %v1282_v39, 0.0  ;;  %v1332_v52 = vmul.f32 %v7988_v17, %v1282_v39  ;;  %vm1306_vm14 = vcmp.ge.f32.partialorder %v1281_v40, 0.0 }
 0x21f   : > { %v1215_v53 = vpop.f32.mrb[9].mxu1  ;;  %1499 = vst [vmem:[#allocation2 + $0x68] sm:$0xfe] %v1427_v45  ;;  %v1331_v48 = vmul.f32 %v7988_v17, %v1281_v40  ;;  %vm1308_vm15 = vcmp.ge.f32.partialorder %v1283_v46, 0.0  ;;  %v1333_v54 = vmul.f32 %v7988_v17, %v1283_v46  ;;  %v1284_v55 = vadd.f32 %v7970_v10, %v1207_v28 }
 0x220   : > { %1500 = vst [vmem:[#allocation2 + $0x70] sm:$0xfe] %v1428_v51  ;;  %v1356_v56 = vsel %vm1307_vm13, %v1282_v39, %v1332_v52  ;;  %v1285_v58 = vadd.f32 %v7980_v12, %v1209_v33  ;;  %v1286_v59 = vadd.f32 %v7966_v9, %v1112_v41  ;;  %v1287_v60 = vadd.f32 %v7974_v4, %v1114_v49  ;;  %v1118_v61 = vpop.f32.mrb[10].mxu0 }
 0x221   : > { %v1430_v62 = vrot.slane %v1356_v56, 7  ;;  %v1355_v63 = vsel %vm1306_vm14, %v1281_v40, %v1331_v48  ;;  %v1357_v0 = vsel %vm1308_vm15, %v1283_v46, %v1333_v54  ;;  %vm1309_vm0 = vcmp.ge.f32.partialorder %v1284_v55, 0.0  ;;  %v1120_v3 = vpop.f32.mrb[11].mxu0  ;;  %v1219_v16 = vpop.f32.mrb[10].mxu1 }
 0x222   : > { %v1429_v20 = vrot.slane %v1355_v63, 7  ;;  %v1432_v21 = vrot.slane %v1357_v0, 7  ;;  %v1334_v23 = vmul.f32 %v7988_v17, %v1284_v55  ;;  %vm1310_vm2 = vcmp.ge.f32.partialorder %v1285_v58, 0.0  ;;  %v1221_v24 = vpop.f32.mrb[11].mxu1 }
 0x223   : > { %v8056_v25 = vsel %vm1413_vm1, %v1426_v35, %v1430_v62  ;;  %1506 = vst [vmem:[#allocation2 + $0xa0] sm:$0x1] %v1430_v62  ;;  %v1335_v28 = vmul.f32 %v7988_v17, %v1285_v58  ;;  %vm1311_vm3 = vcmp.ge.f32.partialorder %v1286_v59, 0.0  ;;  %v1336_v7 = vmul.f32 %v7988_v17, %v1286_v59 }
 0x224   : > { %1502 = vst [vmem:[#allocation2 + $0x80] sm:$0xff] %v8056_v25  ;;  %1501 = vst [vmem:[#allocation2 + $0x78] sm:$0xfe] %v1429_v20  ;;  %v8062_v30 = vsel %vm1413_vm1, %v1427_v45, %v1432_v21  ;;  %v1358_v31 = vsel %vm1309_vm0, %v1284_v55, %v1334_v23  ;;  %vm1312_vm4 = vcmp.ge.f32.partialorder %v1287_v60, 0.0  ;;  %v1337_v32 = vmul.f32 %v7988_v17, %v1287_v60 }
 0x225   : > { %1507 = vst [vmem:[#allocation2 + $0xa8] sm:$0x1] %v1432_v21  ;;  %1503 = vst [vmem:[#allocation2 + $0x88] sm:$0xff] %v8062_v30  ;;  %v1434_v33 = vrot.slane %v1358_v31, 7  ;;  %v1359_v34 = vsel %vm1310_vm2, %v1285_v58, %v1335_v28  ;;  %v1360_v35 = vsel %vm1311_vm3, %v1286_v59, %v1336_v7  ;;  %v1288_v36 = vadd.f32 %v7970_v10, %v1213_v50  ;;  %v1803_v59 = vld [vmem:[#allocation2 + $0x8] sm:$0xfe] }
 0x226   : > { %vm1862_vm5 = vcmask 1046528   ;;  %v1436_v38 = vrot.slane %v1359_v34, 7  ;;  %v1438_v39 = vrot.slane %v1360_v35, 7  ;;  %v1361_v40 = vsel %vm1312_vm4, %v1287_v60, %v1337_v32  ;;  %v1811_v7 = vld [vmem:[#allocation2 + $0x68] sm:$0xfe]  ;;  %v2084_v34 = vld [vmem:[#allocation11 + $0xc40] sm:$0xff] }
 0x227   : > { %v1290_v41 = vadd.f32 %v7966_v9, %v1118_v61  ;;  %v1435_v45 = vsel %vm1413_vm1, %v1428_v51, %v1434_v33  ;;  %1508 = vst [vmem:[#allocation2 + $0xb0] sm:$0x1] %v1434_v33  ;;  %v1439_v47 = vrot.slane %v1361_v40, 7  ;;  %vm1313_vm6 = vcmp.ge.f32.partialorder %v1288_v36, 0.0  ;;  %v2088_v35 = vld [vmem:[#allocation11 + $0xc60] sm:$0xff] }
 0x228   : > { %v1338_v46 = vmul.f32 %v7988_v17, %v1288_v36  ;;  %1504 = vst [vmem:[#allocation2 + $0x90] sm:$0xff] %v1435_v45  ;;  %v8073_v49 = vsel %vm1413_vm1, %v1429_v20, %v1436_v38  ;;  %1509 = vst [vmem:[#allocation2 + $0xb8] sm:$0x1] %v1436_v38  ;;  %v1289_v52 = vadd.f32 %v7980_v12, %v1215_v53  ;;  %v1806_v20 = vld [vmem:[#allocation2 + $0x40] sm:$0x1]  ;;  %v1867_v28 = vrot.slane %v8036_v37, 1 }
 0x229   : > { %1510 = vst [vmem:[#allocation2 + $0xc0] sm:$0xfe] %v1438_v39  ;;  %vm1315_vm7 = vcmp.ge.f32.partialorder %v1290_v41, 0.0  ;;  %v1340_v50 = vmul.f32 %v7988_v17, %v1290_v41  ;;  %1505 = vst [vmem:[#allocation2 + $0x98] sm:$0xff] %v8073_v49  ;;  %v1291_v51 = vadd.f32 %v7974_v4, %v1120_v3  ;;  %v1292_v48 = vadd.f32 %v7970_v10, %v1219_v16  ;;  %v1802_v4 = vld [vmem:[#allocation2] sm:$0xfe] }
 0x22a   : > { %1511 = vst [vmem:[#allocation2 + $0xc8] sm:$0xfe] %v1439_v47  ;;  %v1362_v9 = vsel %vm1313_vm6, %v1288_v36, %v1338_v46  ;;  %v1293_v54 = vadd.f32 %v7980_v12, %v1221_v24  ;;  %vm1314_vm8 = vcmp.ge.f32.partialorder %v1289_v52, 0.0  ;;  %v1339_v58 = vmul.f32 %v7988_v17, %v1289_v52  ;;  %v1807_v16 = vld [vmem:[#allocation2 + $0x48] sm:$0x1]  ;;  %v2093_v37 = vld [vmem:[#allocation11 + $0xc88] sm:$0xff] }
 0x22b   : > { %v1440_v55 = vrot.slane %v1362_v9, 7  ;;  %v1364_v56 = vsel %vm1315_vm7, %v1290_v41, %v1340_v50  ;;  %vm1316_vm9 = vcmp.ge.f32.partialorder %v1291_v51, 0.0  ;;  %v1341_v53 = vmul.f32 %v7988_v17, %v1291_v51  ;;  %v2086_v41 = vld [vmem:[#allocation11 + $0xc50] sm:$0xff]  ;;  %v2095_v9 = vld [vmem:[#allocation11 + $0xc98] sm:$0xff] }
 0x22c   : > { %v1442_v60 = vrot.slane %v1364_v56, 7  ;;  %vm1317_vm10 = vcmp.ge.f32.partialorder %v1292_v48, 0.0  ;;  %v1363_v61 = vsel %vm1314_vm8, %v1289_v52, %v1339_v58  ;;  %v1342_v62 = vmul.f32 %v7988_v17, %v1292_v48  ;;  %v2090_v45 = vld [vmem:[#allocation11 + $0xc70] sm:$0xff]  ;;  %v2097_v52 = vld [vmem:[#allocation11 + $0xca8] sm:$0xff] }
 0x22d   : > { %1512 = vst [vmem:[#allocation2 + $0xd0] sm:$0xfe] %v1440_v55  ;;  %vm1318_vm11 = vcmp.ge.f32.partialorder %v1293_v54, 0.0  ;;  %v1343_v10 = vmul.f32 %v7988_v17, %v1293_v54  ;;  %v1441_v63 = vrot.slane %v1363_v61, 7  ;;  %v1365_v0 = vsel %vm1316_vm9, %v1291_v51, %v1341_v53  ;;  %v2099_v51 = vld [vmem:[#allocation11 + $0xcb8] sm:$0xff]  ;;  %v2096_v53 = vld [vmem:[#allocation11 + $0xca0] sm:$0xff] }
 0x22e   : > { %v8086_v12 = vsel %vm1413_vm1, %v1438_v39, %v1442_v60  ;;  %1518 = vst [vmem:[#allocation2 + $0x100] sm:$0x1] %v1442_v60  ;;  %v1866_v3 = vrot.slane %v1803_v59, 1  ;;  %v1444_v21 = vrot.slane %v1365_v0, 7  ;;  %v1366_v23 = vsel %vm1317_vm10, %v1292_v48, %v1342_v62  ;;  %v2092_v60 = vld [vmem:[#allocation11 + $0xc80] sm:$0xff] }
 0x22f   : > { %1514 = vst [vmem:[#allocation2 + $0xe0] sm:$0xff] %v8086_v12  ;;  %v1367_v24 = vsel %vm1318_vm11, %v1293_v54, %v1343_v10  ;;  %1513 = vst [vmem:[#allocation2 + $0xd8] sm:$0xfe] %v1441_v63  ;;  %v1446_v17 = vrot.slane %v1366_v23, 7  ;;  %v1863_v32 = vrot.slane %v1802_v4, 1  ;;  %v1864_v33 = vrot.slane %v8028_v22, 1 }
 0x230   : > { %v1448_v31 = vrot.slane %v1367_v24, 7  ;;  %v8093_v36 = vsel %vm1413_vm1, %v1439_v47, %v1444_v21  ;;  %1519 = vst [vmem:[#allocation2 + $0x108] sm:$0x1] %v1444_v21  ;;  %v1868_v38 = vsel %vm1862_vm5, %v1866_v3, %v1867_v28  ;;  %v1877_v39 = vrot.slane %v1807_v16, 1  ;;  %v1810_v54 = vld [vmem:[#allocation2 + $0x60] sm:$0xfe] }
 0x231   : > { %v1875_v40 = vrot.slane %v1806_v20, 1  ;;  %1515 = vst [vmem:[#allocation2 + $0xe8] sm:$0xff] %v8093_v36  ;;  %v8098_v46 = vsel %vm1413_vm1, %v1440_v55, %v1446_v17  ;;  %1520 = vst [vmem:[#allocation2 + $0x110] sm:$0x1] %v1446_v17  ;;  %2268 = vmatprep.mubr.f32.mxu0 %v1868_v38  ;;  %2470 = vmatprep.mubr.f32.mxu1 %v1868_v38  ;;  %v1865_v47 = vsel %vm1862_vm5, %v1863_v32, %v1864_v33  ;;  %v1815_v55 = vld [vmem:[#allocation2 + $0xa8] sm:$0x1] }
 0x232   : > { %v8101_v22 = vsel %vm1413_vm1, %v1441_v63, %v1448_v31  ;;  %1521 = vst [vmem:[#allocation2 + $0x118] sm:$0x1] %v1448_v31  ;;  %v1886_v50 = vrot.slane %v1811_v7, 1  ;;  %1516 = vst [vmem:[#allocation2 + $0xf0] sm:$0xff] %v8098_v46  ;;  %2269 = vmatmul.mubr.f32.vlgmr.msra.gmra.mrb[12].mxu0 %v1865_v47  ;;  %2471 = vmatmul.mubr.f32.vlgmr.msra.gmra.mrb[12].mxu1 %v1865_v47  ;;  %v1878_v48 = vsel %vm1862_vm5, %v1867_v28, %v1877_v39  ;;  %v2094_v10 = vld [vmem:[#allocation11 + $0xc90] sm:$0xff]  ;;  %v2101_v63 = vld [vmem:[#allocation11 + $0xcc8] sm:$0xff] }
 0x233   : > { %1517 = vst [vmem:[#allocation2 + $0xf8] sm:$0xff] %v8101_v22  ;;  %6050 = vmatpush1.bf16.msra.mxu0 %v6049_v26  ;;  %6178 = vmatpush1.bf16.msra.mxu1 %v6177_v27  ;;  %v6053_v56 = vpack.c.bf16 %v2088_v35, %v2084_v34  ;;  %v6181_v58 = vpack.c.bf16 %v2090_v45, %v2086_v41  ;;  %v1887_v59 = vrot.slane %v8062_v30, 1  ;;  %v2098_v4 = vld [vmem:[#allocation11 + $0xcb0] sm:$0xff]  ;;  %v1883_v14 = vrot.slane %v1810_v54, 1  ;;  %v2105_v26 = vld [vmem:[#allocation11 + $0xce8] sm:$0xff]  ;;  %v2103_v27 = vld [vmem:[#allocation11 + $0xcd8] sm:$0xff] }
 0x234   : > { %2274 = vmatprep.mubr.f32.mxu0 %v1878_v48  ;;  %2476 = vmatprep.mubr.f32.mxu1 %v1878_v48  ;;  %v6055_v61 = vpack.c.bf16 %v2097_v52, %v2093_v37  ;;  %v6183_v62 = vpack.c.bf16 %v2099_v51, %v2095_v9  ;;  %v1876_v11 = vsel %vm1862_vm5, %v1864_v33, %v1875_v40  ;;  %v1897_v15 = vrot.slane %v1815_v55, 1  ;;  %v2107_v30 = vld [vmem:[#allocation11 + $0xcf8] sm:$0xff]  ;;  %v1814_v0 = vld [vmem:[#allocation2 + $0xa0] sm:$0x1]  ;;  %v2102_v20 = vld [vmem:[#allocation11 + $0xcd0] sm:$0xff] }
 0x235   : > { %6052 = vmatprep.subr.bf16.mxu0 %v6051_v29  ;;  %6180 = vmatprep.subr.bf16.mxu1 %v6179_v57  ;;  %v1888_v13 = vsel %vm1862_vm5, %v1886_v50, %v1887_v59  ;;  %v1819_v3 = vld [vmem:[#allocation2 + $0xc8] sm:$0xfe]  ;;  %v1884_v18 = vrot.slane %v8056_v25, 1  ;;  %v6057_v19 = vpack.c.bf16 %v2096_v53, %v2092_v60  ;;  %v6185_v29 = vpack.c.bf16 %v2098_v4, %v2094_v10  ;;  %v2109_v23 = vld [vmem:[#allocation11 + $0xd08] sm:$0xff]  ;;  %v2108_v40 = vld [vmem:[#allocation11 + $0xd00] sm:$0xff] }
 0x236   : > { %2275 = vmatmul.mubr.f32.gmra.mrb[14].mxu0 %v1876_v11  ;;  %2477 = vmatmul.mubr.f32.gmra.mrb[14].mxu1 %v1876_v11  ;;  %v6059_v57 = vpack.c.bf16 %v2105_v26, %v2101_v63  ;;  %v6187_v16 = vpack.c.bf16 %v2107_v30, %v2103_v27  ;;  %v2106_v21 = vld [vmem:[#allocation11 + $0xcf0] sm:$0xff]  ;;  %v1898_v28 = vsel %vm1862_vm5, %v1887_v59, %v1897_v15  ;;  %v1895_v7 = vrot.slane %v1814_v0, 1  ;;  %v2113_v25 = vld [vmem:[#allocation11 + $0xd28] sm:$0xff]  ;;  %v2111_v31 = vld [vmem:[#allocation11 + $0xd18] sm:$0xff] }
 0x237   : > { %6054 = vmatpush1.bf16.msra.mxu0 %v6053_v56  ;;  %6182 = vmatpush1.bf16.msra.mxu1 %v6181_v58  ;;  %v1885_v24 = vsel %vm1862_vm5, %v1883_v14, %v1884_v18  ;;  %v1906_v17 = vrot.slane %v1819_v3, 1  ;;  %v2115_v32 = vld [vmem:[#allocation11 + $0xd38] sm:$0xff]  ;;  %v1818_v33 = vld [vmem:[#allocation2 + $0xc0] sm:$0xfe]  ;;  %v1823_v34 = vld [vmem:[#allocation2 + $0x108] sm:$0x1]  ;;  %v6061_v35 = vpack.c.bf16 %v2104_v44, %v2100_v43  ;;  %v6189_v38 = vpack.c.bf16 %v2106_v21, %v2102_v20 }
 0x238   : > { %2280 = vmatprep.mubr.f32.mxu0 %v1888_v13  ;;  %6056 = vmatprep.subr.bf16.mxu0 %v6055_v61  ;;  %v1907_v39 = vrot.slane %v8093_v36, 1  ;;  %v6063_v41 = vpack.c.bf16 %v2113_v25, %v2109_v23  ;;  %v6191_v45 = vpack.c.bf16 %v2115_v32, %v2111_v31  ;;  %v2112_v37 = vld [vmem:[#allocation11 + $0xd20] sm:$0xff]  ;;  %v2110_v47 = vld [vmem:[#allocation11 + $0xd10] sm:$0xff]  ;;  %v1896_v52 = vsel %vm1862_vm5, %v1884_v18, %v1895_v7  ;;  %v2117_v54 = vld [vmem:[#allocation11 + $0xd48] sm:$0xff] }
 0x239   : > { %2482 = vmatprep.mubr.f32.mxu1 %v1888_v13  ;;  %6184 = vmatprep.subr.bf16.mxu1 %v6183_v62  ;;  %v2114_v50 = vld [vmem:[#allocation11 + $0xd30] sm:$0xff]  ;;  %v1903_v51 = vrot.slane %v1818_v33, 1  ;;  %v1917_v48 = vrot.slane %v1823_v34, 1  ;;  %v2121_v55 = vld [vmem:[#allocation11 + $0xd68] sm:$0xff]  ;;  %v2119_v36 = vld [vmem:[#allocation11 + $0xd58] sm:$0xff]  ;;  %v1904_v59 = vrot.slane %v8086_v12, 1  ;;  %v6065_v60 = vpack.c.bf16 %v2112_v37, %v2108_v40 }
 0x23a   : > { %2281 = vmatmul.mubr.f32.gmra.mrb[16].mxu0 %v1885_v24  ;;  %2483 = vmatmul.mubr.f32.gmra.mrb[16].mxu1 %v1885_v24  ;;  %v1908_v9 = vsel %vm1862_vm5, %v1906_v17, %v1907_v39  ;;  %v2123_v56 = vld [vmem:[#allocation11 + $0xd78] sm:$0xff]  ;;  %v1822_v58 = vld [vmem:[#allocation2 + $0x100] sm:$0x1]  ;;  %v6193_v53 = vpack.c.bf16 %v2114_v50, %v2110_v47  ;;  %v2116_v61 = vld [vmem:[#allocation11 + $0xd40] sm:$0xff]  ;;  %v6067_v10 = vpack.c.bf16 %v2121_v55, %v2117_v54  ;;  %v1873_v21 = vrot.slane %v8043_v42, 1 }
 0x23b   : > { %6058 = vmatpush1.bf16.msra.mxu0 %v6057_v19  ;;  %6186 = vmatpush1.bf16.msra.mxu1 %v6185_v29  ;;  %v2120_v62 = vld [vmem:[#allocation11 + $0xd60] sm:$0xff]  ;;  %v2118_v4 = vld [vmem:[#allocation11 + $0xd50] sm:$0xff]  ;;  %v1905_v13 = vsel %vm1862_vm5, %v1903_v51, %v1904_v59  ;;  %v1918_v14 = vsel %vm1862_vm5, %v1907_v39, %v1917_v48  ;;  %v6195_v15 = vpack.c.bf16 %v2123_v56, %v2119_v36  ;;  %v1915_v26 = vrot.slane %v1822_v58, 1  ;;  %v2125_v27 = vld [vmem:[#allocation11 + $0xd88] sm:$0xff] }
 0x23c   : > { %2286 = vmatprep.mubr.f32.mxu0 %v1898_v28  ;;  %2488 = vmatprep.mubr.f32.mxu1 %v1898_v28  ;;  %v2122_v63 = vld [vmem:[#allocation11 + $0xd70] sm:$0xff]  ;;  %v1805_v11 = vld [vmem:[#allocation2 + $0x18] sm:$0xfe]  ;;  %v2127_v30 = vld [vmem:[#allocation11 + $0xd98] sm:$0xff]  ;;  %v6069_v3 = vpack.c.bf16 %v2120_v62, %v2116_v61  ;;  %vm3060_vm12 = vcmask 1045504  }
 0x23d   : > { %6060 = vmatprep.subr.bf16.mxu0 %v6059_v57  ;;  %6188 = vmatprep.subr.bf16.mxu1 %v6187_v16  ;;  %v2129_v12 = vld [vmem:[#allocation11 + $0xda8] sm:$0xff]  ;;  %v2131_v0 = vld [vmem:[#allocation11 + $0xdb8] sm:$0xff]  ;;  %v6197_v18 = vpack.c.bf16 %v2122_v63, %v2118_v4  ;;  %v1872_v19 = vrot.slane %v1805_v11, 1  ;;  %v2124_v29 = vld [vmem:[#allocation11 + $0xd80] sm:$0xff]  ;;  %v1916_v20 = vsel %vm1862_vm5, %v1904_v59, %v1915_v26 }
 0x23e   : > { %2287 = vmatmul.mubr.f32.gmra.mrb[18].mxu0 %v1896_v52  ;;  %2489 = vmatmul.mubr.f32.gmra.mrb[18].mxu1 %v1896_v52  ;;  %v2128_v43 = vld [vmem:[#allocation11 + $0xda0] sm:$0xff]  ;;  %v2126_v44 = vld [vmem:[#allocation11 + $0xd90] sm:$0xff]  ;;  %v2133_v16 = vld [vmem:[#allocation11 + $0xdc8] sm:$0xff]  ;;  %v6071_v23 = vpack.c.bf16 %v2129_v12, %v2125_v27  ;;  %v6199_v24 = vpack.c.bf16 %v2131_v0, %v2127_v30 }
 0x23f   : > { %6062 = vmatpush1.bf16.msra.mxu0 %v6061_v35  ;;  %6190 = vmatpush1.bf16.msra.mxu1 %v6189_v38  ;;  %v2130_v57 = vld [vmem:[#allocation11 + $0xdb0] sm:$0xff]  ;;  %v2137_v28 = vld [vmem:[#allocation11 + $0xde8] sm:$0xff]  ;;  %v2135_v7 = vld [vmem:[#allocation11 + $0xdd8] sm:$0xff]  ;;  %v1874_v25 = vsel %vm1862_vm5, %v1872_v19, %v1873_v21  ;;  %v6073_v31 = vpack.c.bf16 %v2128_v43, %v2124_v29 }
 0x240   : > { %2292 = vmatprep.mubr.f32.mxu0 %v1908_v9  ;;  %6064 = vmatprep.subr.bf16.mxu0 %v6063_v41  ;;  %v2139_v17 = vld [vmem:[#allocation11 + $0xdf8] sm:$0xff]  ;;  %v6201_v32 = vpack.c.bf16 %v2130_v57, %v2126_v44  ;;  %v2132_v33 = vld [vmem:[#allocation11 + $0xdc0] sm:$0xff]  ;;  %v6075_v35 = vpack.c.bf16 %v2137_v28, %v2133_v16  ;;  %v2134_v39 = vld [vmem:[#allocation11 + $0xdd0] sm:$0xff] }
 0x241   : > { %2494 = vmatprep.mubr.f32.mxu1 %v1908_v9  ;;  %6192 = vmatprep.subr.bf16.mxu1 %v6191_v45  ;;  %v2136_v34 = vld [vmem:[#allocation11 + $0xde0] sm:$0xff]  ;;  %v6203_v38 = vpack.c.bf16 %v2139_v17, %v2135_v7  ;;  %v2138_v40 = vld [vmem:[#allocation11 + $0xdf0] sm:$0xff]  ;;  %v2141_v41 = vld [vmem:[#allocation11 + $0xe08] sm:$0xff] }
 0x242   : > { %2293 = vmatmul.mubr.f32.gmra.mrb[20].mxu0 %v1905_v13  ;;  %2495 = vmatmul.mubr.f32.gmra.mrb[20].mxu1 %v1905_v13  ;;  %v2145_v45 = vld [vmem:[#allocation11 + $0xe28] sm:$0xff]  ;;  %v2143_v37 = vld [vmem:[#allocation11 + $0xe18] sm:$0xff]  ;;  %v6077_v50 = vpack.c.bf16 %v2136_v34, %v2132_v33  ;;  %v6205_v52 = vpack.c.bf16 %v2138_v40, %v2134_v39  ;;  %v2140_v9 = vld [vmem:[#allocation11 + $0xe00] sm:$0xff] }
 0x243   : > { %6066 = vmatpush1.bf16.msra.mxu0 %v6065_v60  ;;  %6194 = vmatpush1.bf16.msra.mxu1 %v6193_v53  ;;  %v2147_v47 = vld [vmem:[#allocation11 + $0xe38] sm:$0xff]  ;;  %v2144_v51 = vld [vmem:[#allocation11 + $0xe20] sm:$0xff]  ;;  %v6079_v48 = vpack.c.bf16 %v2145_v45, %v2141_v41  ;;  %v2142_v55 = vld [vmem:[#allocation11 + $0xe10] sm:$0xff] }
 0x244   : > { %2298 = vmatprep.mubr.f32.mxu0 %v1918_v14  ;;  %2500 = vmatprep.mubr.f32.mxu1 %v1918_v14  ;;  %v6207_v54 = vpack.c.bf16 %v2147_v47, %v2143_v37  ;;  %v2146_v36 = vld [vmem:[#allocation11 + $0xe30] sm:$0xff]  ;;  %v2149_v56 = vld [vmem:[#allocation11 + $0xe48] sm:$0xff]  ;;  %v2151_v59 = vld [vmem:[#allocation11 + $0xe58] sm:$0xff]  ;;  %v6081_v53 = vpack.c.bf16 %v2144_v51, %v2140_v9 }
 0x245   : > { %6068 = vmatprep.subr.bf16.mxu0 %v6067_v10  ;;  %6196 = vmatprep.subr.bf16.mxu1 %v6195_v15  ;;  %v2153_v58 = vld [vmem:[#allocation11 + $0xe68] sm:$0xff]  ;;  %v2155_v60 = vld [vmem:[#allocation11 + $0xe78] sm:$0xff]  ;;  %v6209_v61 = vpack.c.bf16 %v2146_v36, %v2142_v55  ;;  %v2148_v62 = vld [vmem:[#allocation11 + $0xe40] sm:$0xff] }
 0x246   : > { %2299 = vmatmul.mubr.f32.gmra.mrb[22].mxu0 %v1916_v20  ;;  %2501 = vmatmul.mubr.f32.gmra.mrb[22].mxu1 %v1916_v20  ;;  %v2152_v10 = vld [vmem:[#allocation11 + $0xe60] sm:$0xff]  ;;  %v6083_v4 = vpack.c.bf16 %v2153_v58, %v2149_v56  ;;  %v6211_v63 = vpack.c.bf16 %v2155_v60, %v2151_v59  ;;  %v2150_v11 = vld [vmem:[#allocation11 + $0xe50] sm:$0xff]  ;;  %v2157_v14 = vld [vmem:[#allocation11 + $0xe88] sm:$0xff] }
 0x247   : > { %6070 = vmatpush1.bf16.msra.mxu0 %v6069_v3  ;;  %6198 = vmatpush1.bf16.msra.mxu1 %v6197_v18  ;;  %v2154_v13 = vld [vmem:[#allocation11 + $0xe70] sm:$0xff]  ;;  %v2161_v15 = vld [vmem:[#allocation11 + $0xea8] sm:$0xff]  ;;  %v2159_v26 = vld [vmem:[#allocation11 + $0xe98] sm:$0xff]  ;;  %v6085_v12 = vpack.c.bf16 %v2152_v10, %v2148_v62 }
 0x248   : > { %2369 = vmatprep.mubr.f32.mxu0 %v1874_v25  ;;  %2571 = vmatprep.mubr.f32.mxu1 %v1874_v25  ;;  %v2163_v27 = vld [vmem:[#allocation11 + $0xeb8] sm:$0xff]  ;;  %v6213_v30 = vpack.c.bf16 %v2154_v13, %v2150_v11  ;;  %v2156_v0 = vld [vmem:[#allocation11 + $0xe80] sm:$0xff]  ;;  %v6087_v18 = vpack.c.bf16 %v2161_v15, %v2157_v14  ;;  %v2158_v29 = vld [vmem:[#allocation11 + $0xe90] sm:$0xff] }
 0x249   : > { %6072 = vmatprep.subr.bf16.mxu0 %v6071_v23  ;;  %6200 = vmatprep.subr.bf16.mxu1 %v6199_v24  ;;  %v2160_v3 = vld [vmem:[#allocation11 + $0xea0] sm:$0xff]  ;;  %v6215_v19 = vpack.c.bf16 %v2163_v27, %v2159_v26  ;;  %v2162_v43 = vld [vmem:[#allocation11 + $0xeb0] sm:$0xff]  ;;  %v2165_v44 = vld [vmem:[#allocation11 + $0xec8] sm:$0xff] }
 0x24a   : > { %v2169_v57 = vld [vmem:[#allocation11 + $0xee8] sm:$0xff]  ;;  %v2167_v16 = vld [vmem:[#allocation11 + $0xed8] sm:$0xff]  ;;  %v6089_v23 = vpack.c.bf16 %v2160_v3, %v2156_v0  ;;  %v6217_v24 = vpack.c.bf16 %v2162_v43, %v2158_v29  ;;  %v2164_v28 = vld [vmem:[#allocation11 + $0xec0] sm:$0xff] }
 0x24b   : > { %6074 = vmatpush1.bf16.msra.mxu0 %v6073_v31  ;;  %6202 = vmatpush1.bf16.msra.mxu1 %v6201_v32  ;;  %v2171_v20 = vld [vmem:[#allocation11 + $0xef8] sm:$0xff]  ;;  %v2168_v7 = vld [vmem:[#allocation11 + $0xee0] sm:$0xff]  ;;  %v6091_v17 = vpack.c.bf16 %v2169_v57, %v2165_v44  ;;  %v2166_v31 = vld [vmem:[#allocation11 + $0xed0] sm:$0xff] }
 0x24c   : > { %6076 = vmatprep.subr.bf16.mxu0 %v6075_v35  ;;  %6204 = vmatprep.subr.bf16.mxu1 %v6203_v38  ;;  %v6219_v25 = vpack.c.bf16 %v2171_v20, %v2167_v16  ;;  %v2170_v32 = vld [vmem:[#allocation11 + $0xef0] sm:$0xff]  ;;  %v2173_v33 = vld [vmem:[#allocation11 + $0xf08] sm:$0xff]  ;;  %v2175_v35 = vld [vmem:[#allocation11 + $0xf18] sm:$0xff]  ;;  %v6093_v39 = vpack.c.bf16 %v2168_v7, %v2164_v28 }
 0x24d   : > { %v2177_v34 = vld [vmem:[#allocation11 + $0xf28] sm:$0xff]  ;;  %v2179_v38 = vld [vmem:[#allocation11 + $0xf38] sm:$0xff]  ;;  %v6221_v40 = vpack.c.bf16 %v2170_v32, %v2166_v31  ;;  %v2172_v41 = vld [vmem:[#allocation11 + $0xf00] sm:$0xff] }
 0x24e   : > { %v2176_v45 = vld [vmem:[#allocation11 + $0xf20] sm:$0xff]  ;;  %v6095_v37 = vpack.c.bf16 %v2177_v34, %v2173_v33  ;;  %v6223_v47 = vpack.c.bf16 %v2179_v38, %v2175_v35  ;;  %v2181_v9 = vld [vmem:[#allocation11 + $0xf48] sm:$0xff]  ;;  %v1564_v42 = vld [vmem:[#allocation11 + $0x90] sm:$0xff] }
 0x24f   : > { %6078 = vmatpush1.bf16.msra.mxu0 %v6077_v50  ;;  %6206 = vmatpush1.bf16.msra.mxu1 %v6205_v52  ;;  %v2174_v50 = vld [vmem:[#allocation11 + $0xf10] sm:$0xff]  ;;  %v2185_v51 = vld [vmem:[#allocation11 + $0xf68] sm:$0xff]  ;;  %v6097_v55 = vpack.c.bf16 %v2176_v45, %v2172_v41  ;;  %v2180_v56 = vld [vmem:[#allocation11 + $0xf40] sm:$0xff] }
 0x250   : > { %6080 = vmatprep.subr.bf16.mxu0 %v6079_v48  ;;  %6208 = vmatprep.subr.bf16.mxu1 %v6207_v54  ;;  %v2178_v52 = vld [vmem:[#allocation11 + $0xf30] sm:$0xff]  ;;  %v2183_v48 = vld [vmem:[#allocation11 + $0xf58] sm:$0xff]  ;;  %v2184_v58 = vld [vmem:[#allocation11 + $0xf60] sm:$0xff]  ;;  %v6099_v59 = vpack.c.bf16 %v2185_v51, %v2181_v9 }
 0x251   : > { %v2187_v54 = vld [vmem:[#allocation11 + $0xf78] sm:$0xff]  ;;  %v6225_v36 = vpack.c.bf16 %v2178_v52, %v2174_v50  ;;  %v2189_v62 = vld [vmem:[#allocation11 + $0xf88] sm:$0xff]  ;;  %v6101_v11 = vpack.c.bf16 %v2184_v58, %v2180_v56  ;;  %v2188_v14 = vld [vmem:[#allocation11 + $0xf80] sm:$0xff] }
 0x252   : > { %v6227_v60 = vpack.c.bf16 %v2187_v54, %v2183_v48  ;;  %v2193_v10 = vld [vmem:[#allocation11 + $0xfa8] sm:$0xff]  ;;  %v2192_v15 = vld [vmem:[#allocation11 + $0xfa0] sm:$0xff]  ;;  %v1548_v45 = vld [vmem:[#allocation11 + $0x10] sm:$0xff] }
 0x253   : > { %6082 = vmatpush1.bf16.msra.mxu0 %v6081_v53  ;;  %6210 = vmatpush1.bf16.msra.mxu1 %v6209_v61  ;;  %v2182_v53 = vld [vmem:[#allocation11 + $0xf50] sm:$0xff]  ;;  %v6103_v26 = vpack.c.bf16 %v2193_v10, %v2189_v62  ;;  %v2197_v0 = vld [vmem:[#allocation11 + $0xfc8] sm:$0xff]  ;;  %v6105_v29 = vpack.c.bf16 %v2192_v15, %v2188_v14  ;;  %v2196_v44 = vld [vmem:[#allocation11 + $0xfc0] sm:$0xff] }
 0x254   : > { %6084 = vmatprep.subr.bf16.mxu0 %v6083_v4  ;;  %6212 = vmatprep.subr.bf16.mxu1 %v6211_v63  ;;  %v2186_v61 = vld [vmem:[#allocation11 + $0xf70] sm:$0xff]  ;;  %v2191_v4 = vld [vmem:[#allocation11 + $0xf98] sm:$0xff]  ;;  %v2201_v3 = vld [vmem:[#allocation11 + $0xfe8] sm:$0xff] }
 0x255   : > { %v2195_v63 = vld [vmem:[#allocation11 + $0xfb8] sm:$0xff]  ;;  %v6229_v13 = vpack.c.bf16 %v2186_v61, %v2182_v53  ;;  %v2200_v57 = vld [vmem:[#allocation11 + $0xfe0] sm:$0xff]  ;;  %v6107_v16 = vpack.c.bf16 %v2201_v3, %v2197_v0  ;;  %v1547_v28 = vld [vmem:[#allocation11 + $0x8] sm:$0xff]  ;;  %v1893_v3 = vrot.slane %v8073_v49, 1 }
 0x256   : > { %v6231_v27 = vpack.c.bf16 %v2195_v63, %v2191_v4  ;;  %v1551_v7 = vld [vmem:[#allocation11 + $0x28] sm:$0xff]  ;;  %v1528_v31 = vld [vmem:[#allocation2 + $0x30] sm:$0xff]  ;;  %v6109_v32 = vpack.c.bf16 %v2200_v57, %v2196_v44  ;;  %v1809_v34 = vld [vmem:[#allocation2 + $0x58] sm:$0x1] }
 0x257   : > { %6086 = vmatpush1.bf16.msra.mxu0 %v6085_v12  ;;  %6214 = vmatpush1.bf16.msra.mxu1 %v6213_v30  ;;  %v2190_v12 = vld [vmem:[#allocation11 + $0xf90] sm:$0xff]  ;;  %v1546_v35 = vld [vmem:[#allocation11] sm:$0xff]  ;;  %v1555_v50 = vld [vmem:[#allocation11 + $0x48] sm:$0xff]  ;;  %v1881_v9 = vrot.slane %v1809_v34, 1 }
 0x258   : > { %6088 = vmatprep.subr.bf16.mxu0 %v6087_v18  ;;  %6216 = vmatprep.subr.bf16.mxu1 %v6215_v19  ;;  %v2194_v30 = vld [vmem:[#allocation11 + $0xfb0] sm:$0xff]  ;;  %v2199_v18 = vld [vmem:[#allocation11 + $0xfd8] sm:$0xff]  ;;  %v1550_v41 = vld [vmem:[#allocation11 + $0x20] sm:$0xff] }
 0x259   : > { %v2203_v19 = vld [vmem:[#allocation11 + $0xff8] sm:$0xff]  ;;  %v6233_v43 = vpack.c.bf16 %v2194_v30, %v2190_v12  ;;  %v1559_v52 = vld [vmem:[#allocation11 + $0x68] sm:$0xff]  ;;  %v1554_v56 = vld [vmem:[#allocation11 + $0x40] sm:$0xff]  ;;  %v6241_v58 = vpack.c.bf16 %v1550_v41, %v1546_v35  ;;  %v1882_v15 = vsel %vm1862_vm5, %v1873_v21, %v1881_v9 }
 0x25a   : > { %v6235_v20 = vpack.c.bf16 %v2203_v19, %v2199_v18  ;;  %v1804_v38 = vld [vmem:[#allocation2 + $0x10] sm:$0xfe]  ;;  %v1808_v51 = vld [vmem:[#allocation2 + $0x50] sm:$0x1]  ;;  %v1556_v53 = vld [vmem:[#allocation11 + $0x50] sm:$0xff]  ;;  %v6243_v4 = vpack.c.bf16 %v1559_v52, %v1555_v50 }
 0x25b   : > { %6090 = vmatpush1.bf16.msra.mxu0 %v6089_v23  ;;  %6218 = vmatpush1.bf16.msra.mxu1 %v6217_v24  ;;  %v2198_v23 = vld [vmem:[#allocation11 + $0xfd0] sm:$0xff]  ;;  %v1557_v48 = vld [vmem:[#allocation11 + $0x58] sm:$0xff]  ;;  %v1879_v10 = vrot.slane %v1808_v51, 1  ;;  %v1817_v0 = vld [vmem:[#allocation2 + $0xb8] sm:$0x1] }
 0x25c   : > { %6092 = vmatprep.subr.bf16.mxu0 %v6091_v17  ;;  %6220 = vmatprep.subr.bf16.mxu1 %v6219_v25  ;;  %v2202_v24 = vld [vmem:[#allocation11 + $0xff0] sm:$0xff]  ;;  %v1549_v17 = vld [vmem:[#allocation11 + $0x18] sm:$0xff]  ;;  %v1566_v44 = vld [vmem:[#allocation11 + $0xa0] sm:$0xff] }
 0x25d   : > { %v1553_v25 = vld [vmem:[#allocation11 + $0x38] sm:$0xff]  ;;  %v6237_v33 = vpack.c.bf16 %v2202_v24, %v2198_v23  ;;  %v1560_v61 = vld [vmem:[#allocation11 + $0x70] sm:$0xff]  ;;  %v1571_v24 = vld [vmem:[#allocation11 + $0xc8] sm:$0xff] }
 0x25e   : > { %v1561_v54 = vld [vmem:[#allocation11 + $0x78] sm:$0xff]  ;;  %v6373_v19 = vpack.c.bf16 %v1560_v61, %v1556_v53  ;;  %v1568_v23 = vld [vmem:[#allocation11 + $0xb0] sm:$0xff]  ;;  %v1570_v35 = vld [vmem:[#allocation11 + $0xc0] sm:$0xff] }
 0x25f   : > { %6094 = vmatpush1.bf16.msra.mxu0 %v6093_v39  ;;  %6222 = vmatpush1.bf16.msra.mxu1 %v6221_v40  ;;  %v6239_v39 = vpack.c.bf16 %v1551_v7, %v1547_v28  ;;  %v6367_v40 = vpack.c.bf16 %v1553_v25, %v1549_v17  ;;  %v6371_v63 = vpack.c.bf16 %v1561_v54, %v1557_v48  ;;  %v1565_v14 = vld [vmem:[#allocation11 + $0x98] sm:$0xff]  ;;  %v1575_v28 = vld [vmem:[#allocation11 + $0xe8] sm:$0xff]  ;;  %v1901_v7 = vrot.slane %v1817_v0, 1  ;;  %v1582_v53 = vld [vmem:[#allocation11 + $0x120] sm:$0xff] }
 0x260   : > { %6096 = vmatprep.subr.bf16.mxu0 %v6095_v37  ;;  %6224 = vmatprep.subr.bf16.mxu1 %v6223_v47  ;;  %v1870_v37 = vrot.slane %v1528_v31, 1  ;;  %v1552_v47 = vld [vmem:[#allocation11 + $0x30] sm:$0xff]  ;;  %v1812_v12 = vld [vmem:[#allocation2 + $0x70] sm:$0xfe]  ;;  %v1816_v17 = vld [vmem:[#allocation2 + $0xb0] sm:$0x1]  ;;  %v6377_v34 = vpack.c.bf16 %v1568_v23, %v1564_v42 }
 0x261   : > { %v1569_v30 = vld [vmem:[#allocation11 + $0xb8] sm:$0xff]  ;;  %v1889_v57 = vrot.slane %v1812_v12, 1  ;;  %v1899_v41 = vrot.slane %v1816_v17, 1  ;;  %v1579_v50 = vld [vmem:[#allocation11 + $0x108] sm:$0xff]  ;;  %v1902_v9 = vsel %vm1862_vm5, %v1893_v3, %v1901_v7  ;;  %v1580_v61 = vld [vmem:[#allocation11 + $0x110] sm:$0xff] }
 0x262   : > { %v1880_v21 = vsel %vm1862_vm5, %v1870_v37, %v1879_v10  ;;  %v1573_v25 = vld [vmem:[#allocation11 + $0xd8] sm:$0xff]  ;;  %v1583_v52 = vld [vmem:[#allocation11 + $0x128] sm:$0xff]  ;;  %v1594_v7 = vld [vmem:[#allocation11 + $0x180] sm:$0xff] }
 0x263   : > { %6098 = vmatpush1.bf16.msra.mxu0 %v6097_v55  ;;  %6226 = vmatpush1.bf16.msra.mxu1 %v6225_v36  ;;  %v1869_v55 = vrot.slane %v1804_v38, 1  ;;  %v1813_v36 = vld [vmem:[#allocation2 + $0x78] sm:$0xfe]  ;;  %v1577_v31 = vld [vmem:[#allocation11 + $0xf8] sm:$0xff] }
 0x264   : > { %6100 = vmatprep.subr.bf16.mxu0 %v6099_v59  ;;  %6228 = vmatprep.subr.bf16.mxu1 %v6227_v60  ;;  %v6369_v59 = vpack.c.bf16 %v1552_v47, %v1548_v45  ;;  %v1558_v60 = vld [vmem:[#allocation11 + $0x60] sm:$0xff]  ;;  %v6251_v45 = vpack.c.bf16 %v1575_v28, %v1571_v24  ;;  %v1576_v47 = vld [vmem:[#allocation11 + $0xf0] sm:$0xff]  ;;  %v1581_v54 = vld [vmem:[#allocation11 + $0x118] sm:$0xff] }
 0x265   : > { %v1871_v62 = vsel %vm1862_vm5, %v1869_v55, %v1870_v37  ;;  %v6245_v18 = vpack.c.bf16 %v1558_v60, %v1554_v56  ;;  %v1574_v38 = vld [vmem:[#allocation11 + $0xe0] sm:$0xff]  ;;  %v6379_v37 = vpack.c.bf16 %v1577_v31, %v1573_v25  ;;  %v1585_v55 = vld [vmem:[#allocation11 + $0x138] sm:$0xff]  ;;  %v1913_v56 = vrot.slane %v8101_v22, 1  ;;  %v1596_v25 = vld [vmem:[#allocation11 + $0x190] sm:$0xff] }
 0x266   : > { %v1820_v48 = vld [vmem:[#allocation2 + $0xd0] sm:$0xfe] }
 0x267   : > { %6102 = vmatpush1.bf16.msra.mxu0 %v6101_v11  ;;  %6230 = vmatpush1.bf16.msra.mxu1 %v6229_v13  ;;  %v1563_v11 = vld [vmem:[#allocation11 + $0x88] sm:$0xff]  ;;  %v1578_v60 = vld [vmem:[#allocation11 + $0x100] sm:$0xff]  ;;  %v1909_v10 = vrot.slane %v1820_v48, 1  ;;  %v1593_v12 = vld [vmem:[#allocation11 + $0x178] sm:$0xff] }
 0x268   : > { %6104 = vmatprep.subr.bf16.mxu0 %v6103_v26  ;;  %6232 = vmatprep.subr.bf16.mxu1 %v6231_v27  ;;  %v1567_v13 = vld [vmem:[#allocation11 + $0xa8] sm:$0xff]  ;;  %v1892_v26 = vrot.slane %v1813_v36, 1  ;;  %v8140_v27 = vld [vmem:[#allocation2 + $0x90] sm:$0xff]  ;;  %v1825_v36 = vld [vmem:[#allocation2 + $0x118] sm:$0x1]  ;;  %v6257_v0 = vpack.c.bf16 %v1582_v53, %v1578_v60 }
 0x269   : > { %v1921_v22 = vrot.slane %v1825_v36, 1  ;;  %v1597_v23 = vld [vmem:[#allocation11 + $0x198] sm:$0xff]  ;;  %v1598_v17 = vld [vmem:[#allocation11 + $0x1a0] sm:$0xff]  ;;  %v1608_v48 = vld [vmem:[#allocation11 + $0x1f0] sm:$0xff] }
 0x26a   : > { %v1894_v49 = vsel %vm1862_vm5, %v1892_v26, %v1893_v3  ;;  %v1824_v26 = vld [vmem:[#allocation2 + $0x110] sm:$0x1]  ;;  %v1610_v60 = vld [vmem:[#allocation11 + $0x200] sm:$0xff] }
 0x26b   : > { %6106 = vmatpush1.bf16.msra.mxu0 %v6105_v29  ;;  %6234 = vmatpush1.bf16.msra.mxu1 %v6233_v43  ;;  %v6247_v29 = vpack.c.bf16 %v1567_v13, %v1563_v11  ;;  %v1562_v43 = vld [vmem:[#allocation11 + $0x80] sm:$0xff]  ;;  %v1584_v11 = vld [vmem:[#allocation11 + $0x130] sm:$0xff]  ;;  %v1587_v13 = vld [vmem:[#allocation11 + $0x148] sm:$0xff] }
 0x26c   : > { %6108 = vmatprep.subr.bf16.mxu0 %v6107_v16  ;;  %6236 = vmatprep.subr.bf16.mxu1 %v6235_v20  ;;  %v1890_v16 = vrot.slane %v8140_v27, 1  ;;  %v6375_v20 = vpack.c.bf16 %v1569_v30, %v1565_v14  ;;  %v1591_v14 = vld [vmem:[#allocation11 + $0x168] sm:$0xff]  ;;  %v1589_v27 = vld [vmem:[#allocation11 + $0x158] sm:$0xff]  ;;  %v1910_v30 = vrot.slane %v8098_v46, 1  ;;  %v6385_v3 = vpack.c.bf16 %v1584_v11, %v1580_v61  ;;  %v1614_v53 = vld [vmem:[#allocation11 + $0x220] sm:$0xff] }
 0x26d   : > { %v6387_v42 = vpack.c.bf16 %v1593_v12, %v1589_v27  ;;  %v1922_v46 = vsel %vm1862_vm5, %v1913_v56, %v1921_v22  ;;  %v1601_v24 = vld [vmem:[#allocation11 + $0x1b8] sm:$0xff]  ;;  %v1623_v11 = vld [vmem:[#allocation11 + $0x268] sm:$0xff]  ;;  %v1622_v27 = vld [vmem:[#allocation11 + $0x260] sm:$0xff] }
 0x26e   : > { %v1613_v36 = vld [vmem:[#allocation11 + $0x218] sm:$0xff] }
 0x26f   : > { %6110 = vmatpush1.bf16.msra.mxu0 %v6109_v32  ;;  %6238 = vmatpush1.bf16.msra.mxu1 %v6237_v33  ;;  %v1821_v32 = vld [vmem:[#allocation2 + $0xd8] sm:$0xfe]  ;;  %v6249_v33 = vpack.c.bf16 %v1566_v44, %v1562_v43  ;;  %v1919_v43 = vrot.slane %v1824_v26, 1  ;;  %v6259_v44 = vpack.c.bf16 %v1591_v14, %v1587_v13  ;;  %v1621_v13 = vld [vmem:[#allocation11 + $0x258] sm:$0xff] }
 0x270   : > { %6240 = vmatprep.subr.bf16.mxu0 %v6239_v39  ;;  %6368 = vmatprep.subr.bf16.mxu1 %v6367_v40  ;;  %v1572_v39 = vld [vmem:[#allocation11 + $0xd0] sm:$0xff]  ;;  %v1891_v40 = vsel %vm1862_vm5, %v1889_v57, %v1890_v16  ;;  %v1912_v51 = vrot.slane %v1821_v32, 1  ;;  %v1625_v14 = vld [vmem:[#allocation11 + $0x278] sm:$0xff]  ;;  %v1618_v26 = vld [vmem:[#allocation11 + $0x240] sm:$0xff] }
 0x271   : > { %v1592_v57 = vld [vmem:[#allocation11 + $0x170] sm:$0xff]  ;;  %v1920_v31 = vsel %vm1862_vm5, %v1910_v30, %v1919_v43  ;;  %v1633_v43 = vld [vmem:[#allocation11 + $0x2b8] sm:$0xff] }
 0x272   : > { %2370 = vmatmul.mubr.f32.vlgmr.msra.gmra.mrb[12].mxu0 %v1871_v62  ;;  %2572 = vmatmul.mubr.f32.vlgmr.msra.gmra.mrb[12].mxu1 %v1871_v62  ;;  %v1900_v62 = vsel %vm1862_vm5, %v1890_v16, %v1899_v41  ;;  %v1595_v16 = vld [vmem:[#allocation11 + $0x188] sm:$0xff]  ;;  %v1609_v41 = vld [vmem:[#allocation11 + $0x1f8] sm:$0xff] }
 0x273   : > { %2375 = vmatprep.mubr.f32.mxu0 %v1882_v15  ;;  %2577 = vmatprep.mubr.f32.mxu1 %v1882_v15  ;;  %v1914_v15 = vsel %vm1862_vm5, %v1912_v51, %v1913_v56  ;;  %v1604_v51 = vld [vmem:[#allocation11 + $0x1d0] sm:$0xff]  ;;  %v1617_v56 = vld [vmem:[#allocation11 + $0x238] sm:$0xff] }
 0x274   : > { %6242 = vmatpush1.bf16.msra.mxu0 %v6241_v58  ;;  %6370 = vmatpush1.bf16.msra.mxu1 %v6369_v59  ;;  %v6253_v58 = vpack.c.bf16 %v1574_v38, %v1570_v35  ;;  %v6381_v59 = vpack.c.bf16 %v1576_v47, %v1572_v39  ;;  %v1603_v35 = vld [vmem:[#allocation11 + $0x1c8] sm:$0xff]  ;;  %v1523_v39 = vld [vmem:[#allocation2 + $0x8] sm:$0xff]  ;;  %v1602_v47 = vld [vmem:[#allocation11 + $0x1c0] sm:$0xff] }
 0x275   : > { %6244 = vmatprep.subr.bf16.mxu0 %v6243_v4  ;;  %6372 = vmatprep.subr.bf16.mxu1 %v6371_v63  ;;  %v6255_v4 = vpack.c.bf16 %v1583_v52, %v1579_v50  ;;  %v6383_v63 = vpack.c.bf16 %v1585_v55, %v1581_v54  ;;  %v1607_v38 = vld [vmem:[#allocation11 + $0x1e8] sm:$0xff]  ;;  %v1606_v50 = vld [vmem:[#allocation11 + $0x1e0] sm:$0xff] }
 0x276   : > { %2376 = vmatmul.mubr.f32.gmra.mrb[14].mxu0 %v1880_v21  ;;  %2578 = vmatmul.mubr.f32.gmra.mrb[14].mxu1 %v1880_v21  ;;  %v1588_v21 = vld [vmem:[#allocation11 + $0x150] sm:$0xff]  ;;  %v6267_v52 = vpack.c.bf16 %v1607_v38, %v1603_v35  ;;  %v1611_v54 = vld [vmem:[#allocation11 + $0x208] sm:$0xff] }
 0x277   : > { %2381 = vmatprep.mubr.f32.mxu0 %v1894_v49  ;;  %2583 = vmatprep.mubr.f32.mxu1 %v1894_v49  ;;  %v6389_v49 = vpack.c.bf16 %v1592_v57, %v1588_v21  ;;  %v1615_v55 = vld [vmem:[#allocation11 + $0x228] sm:$0xff]  ;;  %v1626_v21 = vld [vmem:[#allocation11 + $0x280] sm:$0xff]  ;;  %v1636_v35 = vld [vmem:[#allocation11 + $0x2d0] sm:$0xff] }
 0x278   : > { %6246 = vmatpush1.bf16.msra.mxu0 %v6245_v18  ;;  %6374 = vmatpush1.bf16.msra.mxu1 %v6373_v19  ;;  %v1586_v18 = vld [vmem:[#allocation11 + $0x140] sm:$0xff]  ;;  %v6271_v61 = vpack.c.bf16 %v1615_v55, %v1611_v54  ;;  %v1640_v38 = vld [vmem:[#allocation11 + $0x2f0] sm:$0xff]  ;;  %v1651_v55 = vld [vmem:[#allocation11 + $0x348] sm:$0xff] }
 0x279   : > { %6248 = vmatprep.subr.bf16.mxu0 %v6247_v29  ;;  %6376 = vmatprep.subr.bf16.mxu1 %v6375_v20  ;;  %v1590_v19 = vld [vmem:[#allocation11 + $0x160] sm:$0xff]  ;;  %v1911_v29 = vsel %vm1862_vm5, %v1909_v10, %v1910_v30  ;;  %v1599_v20 = vld [vmem:[#allocation11 + $0x1a8] sm:$0xff]  ;;  %v1612_v10 = vld [vmem:[#allocation11 + $0x210] sm:$0xff]  ;;  %v6403_v30 = vpack.c.bf16 %v1625_v14, %v1621_v13 }
 0x27a   : > { %2382 = vmatmul.mubr.f32.gmra.mrb[16].mxu0 %v1891_v40  ;;  %2584 = vmatmul.mubr.f32.gmra.mrb[16].mxu1 %v1891_v40  ;;  %v6261_v28 = vpack.c.bf16 %v1590_v19, %v1586_v18  ;;  %v6263_v32 = vpack.c.bf16 %v1599_v20, %v1595_v16  ;;  %v1605_v40 = vld [vmem:[#allocation11 + $0x1d8] sm:$0xff]  ;;  %v1627_v18 = vld [vmem:[#allocation11 + $0x288] sm:$0xff]  ;;  %v1630_v57 = vld [vmem:[#allocation11 + $0x2a0] sm:$0xff] }
 0x27b   : > { %2387 = vmatprep.mubr.f32.mxu0 %v1902_v9  ;;  %2589 = vmatprep.mubr.f32.mxu1 %v1902_v9  ;;  %v6395_v9 = vpack.c.bf16 %v1609_v41, %v1605_v40  ;;  %v1631_v19 = vld [vmem:[#allocation11 + $0x2a8] sm:$0xff]  ;;  %v1628_v20 = vld [vmem:[#allocation11 + $0x290] sm:$0xff]  ;;  %v1645_v41 = vld [vmem:[#allocation11 + $0x318] sm:$0xff] }
 0x27c   : > { %6250 = vmatpush1.bf16.msra.mxu0 %v6249_v33  ;;  %6378 = vmatpush1.bf16.msra.mxu1 %v6377_v34  ;;  %v6391_v33 = vpack.c.bf16 %v1601_v24, %v1597_v23  ;;  %v1600_v34 = vld [vmem:[#allocation11 + $0x1b0] sm:$0xff]  ;;  %v6279_v16 = vpack.c.bf16 %v1631_v19, %v1627_v18  ;;  %v1635_v24 = vld [vmem:[#allocation11 + $0x2c8] sm:$0xff]  ;;  %v1661_v14 = vld [vmem:[#allocation11 + $0x398] sm:$0xff] }
 0x27d   : > { %6252 = vmatprep.subr.bf16.mxu0 %v6251_v45  ;;  %6380 = vmatprep.subr.bf16.mxu1 %v6379_v37  ;;  %v6265_v45 = vpack.c.bf16 %v1598_v17, %v1594_v7  ;;  %v6393_v37 = vpack.c.bf16 %v1600_v34, %v1596_v25  ;;  %v1632_v23 = vld [vmem:[#allocation11 + $0x2b0] sm:$0xff]  ;;  %v1641_v7 = vld [vmem:[#allocation11 + $0x2f8] sm:$0xff]  ;;  %v6281_v17 = vpack.c.bf16 %v1630_v57, %v1626_v21  ;;  %v1647_v40 = vld [vmem:[#allocation11 + $0x328] sm:$0xff] }
 0x27e   : > { %2388 = vmatmul.mubr.f32.gmra.mrb[18].mxu0 %v1900_v62  ;;  %2590 = vmatmul.mubr.f32.gmra.mrb[18].mxu1 %v1900_v62  ;;  %v6399_v62 = vpack.c.bf16 %v1617_v56, %v1613_v36  ;;  %v6409_v25 = vpack.c.bf16 %v1632_v23, %v1628_v20  ;;  %v1648_v54 = vld [vmem:[#allocation11 + $0x330] sm:$0xff]  ;;  %v1655_v36 = vld [vmem:[#allocation11 + $0x368] sm:$0xff]  ;;  %v1653_v56 = vld [vmem:[#allocation11 + $0x358] sm:$0xff] }
 0x27f   : > { %2393 = vmatprep.mubr.f32.mxu0 %v1914_v15  ;;  %2595 = vmatprep.mubr.f32.mxu1 %v1914_v15  ;;  %v6273_v15 = vpack.c.bf16 %v1614_v53, %v1610_v60  ;;  %v1650_v53 = vld [vmem:[#allocation11 + $0x340] sm:$0xff]  ;;  %v1663_v13 = vld [vmem:[#allocation11 + $0x3a8] sm:$0xff]  ;;  %v1664_v18 = vld [vmem:[#allocation11 + $0x3b0] sm:$0xff] }
 0x280   : > { %6254 = vmatpush1.bf16.msra.mxu0 %v6253_v58  ;;  %6382 = vmatpush1.bf16.msra.mxu1 %v6381_v59  ;;  %v6269_v58 = vpack.c.bf16 %v1606_v50, %v1602_v47  ;;  %v6397_v59 = vpack.c.bf16 %v1608_v48, %v1604_v51  ;;  %v6413_v47 = vpack.c.bf16 %v1640_v38, %v1636_v35  ;;  %v1642_v50 = vld [vmem:[#allocation11 + $0x300] sm:$0xff]  ;;  %v1644_v48 = vld [vmem:[#allocation11 + $0x310] sm:$0xff]  ;;  %v1667_v19 = vld [vmem:[#allocation11 + $0x3c8] sm:$0xff] }
 0x281   : > { %6256 = vmatprep.subr.bf16.mxu0 %v6255_v4  ;;  %6384 = vmatprep.subr.bf16.mxu1 %v6383_v63  ;;  %v1616_v4 = vld [vmem:[#allocation11 + $0x230] sm:$0xff]  ;;  %v1619_v63 = vld [vmem:[#allocation11 + $0x248] sm:$0xff]  ;;  %v6417_v60 = vpack.c.bf16 %v1648_v54, %v1644_v48  ;;  %v1666_v57 = vld [vmem:[#allocation11 + $0x3c0] sm:$0xff] }
 0x282   : > { %2394 = vmatmul.mubr.f32.gmra.mrb[20].mxu0 %v1911_v29  ;;  %2596 = vmatmul.mubr.f32.gmra.mrb[20].mxu1 %v1911_v29  ;;  %v6401_v22 = vpack.c.bf16 %v1616_v4, %v1612_v10  ;;  %v6275_v12 = vpack.c.bf16 %v1623_v11, %v1619_v63  ;;  %v1629_v29 = vld [vmem:[#allocation11 + $0x298] sm:$0xff]  ;;  %v1652_v4 = vld [vmem:[#allocation11 + $0x350] sm:$0xff]  ;;  %v1659_v11 = vld [vmem:[#allocation11 + $0x388] sm:$0xff] }
 0x283   : > { %2399 = vmatprep.mubr.f32.mxu0 %v1922_v46  ;;  %2601 = vmatprep.mubr.f32.mxu1 %v1922_v46  ;;  %v6407_v46 = vpack.c.bf16 %v1633_v43, %v1629_v29  ;;  %v1656_v63 = vld [vmem:[#allocation11 + $0x370] sm:$0xff]  ;;  %v1671_v29 = vld [vmem:[#allocation11 + $0x3e8] sm:$0xff]  ;;  %v1669_v43 = vld [vmem:[#allocation11 + $0x3d8] sm:$0xff] }
 0x284   : > { %6258 = vmatpush1.bf16.msra.mxu0 %v6257_v0  ;;  %6386 = vmatpush1.bf16.msra.mxu1 %v6385_v3  ;;  %v1620_v0 = vld [vmem:[#allocation11 + $0x250] sm:$0xff]  ;;  %v1678_v35 = vld [vmem:[#allocation11 + $0x420] sm:$0xff] }
 0x285   : > { %6260 = vmatprep.subr.bf16.mxu0 %v6259_v44  ;;  %6388 = vmatprep.subr.bf16.mxu1 %v6387_v42  ;;  %v1624_v3 = vld [vmem:[#allocation11 + $0x270] sm:$0xff]  ;;  %v6277_v44 = vpack.c.bf16 %v1622_v27, %v1618_v26  ;;  %v6421_v26 = vpack.c.bf16 %v1656_v63, %v1652_v4  ;;  %v1658_v27 = vld [vmem:[#allocation11 + $0x380] sm:$0xff] }
 0x286   : > { %2400 = vmatmul.mubr.f32.gmra.mrb[22].mxu0 %v1920_v31  ;;  %2602 = vmatmul.mubr.f32.gmra.mrb[22].mxu1 %v1920_v31  ;;  %v6405_v42 = vpack.c.bf16 %v1624_v3, %v1620_v0  ;;  %v1634_v31 = vld [vmem:[#allocation11 + $0x2c0] sm:$0xff]  ;;  %v1660_v3 = vld [vmem:[#allocation11 + $0x390] sm:$0xff] }
 0x287   : > { %2672 = vmatprep.mubr.f32.mxu0 %v1523_v39  ;;  %2874 = vmatprep.mubr.f32.mxu1 %v1523_v39  ;;  %v1643_v39 = vld [vmem:[#allocation11 + $0x308] sm:$0xff]  ;;  %v6425_v21 = vpack.c.bf16 %v1664_v18, %v1660_v3  ;;  %v1668_v23 = vld [vmem:[#allocation11 + $0x3d0] sm:$0xff]  ;;  %v1690_v4 = vld [vmem:[#allocation11 + $0x480] sm:$0xff] }
 0x288   : > { %6262 = vmatpush1.bf16.msra.mxu0 %v6261_v28  ;;  %6390 = vmatpush1.bf16.msra.mxu1 %v6389_v49  ;;  %v1639_v28 = vld [vmem:[#allocation11 + $0x2e8] sm:$0xff]  ;;  %v1637_v49 = vld [vmem:[#allocation11 + $0x2d8] sm:$0xff]  ;;  %v1676_v38 = vld [vmem:[#allocation11 + $0x410] sm:$0xff] }
 0x289   : > { %6264 = vmatprep.subr.bf16.mxu0 %v6263_v32  ;;  %6392 = vmatprep.subr.bf16.mxu1 %v6391_v33  ;;  %v1638_v32 = vld [vmem:[#allocation11 + $0x2e0] sm:$0xff]  ;;  %v6283_v33 = vpack.c.bf16 %v1639_v28, %v1635_v24  ;;  %v6411_v34 = vpack.c.bf16 %v1641_v7, %v1637_v49  ;;  %v1672_v24 = vld [vmem:[#allocation11 + $0x3f0] sm:$0xff]  ;;  %v1675_v28 = vld [vmem:[#allocation11 + $0x408] sm:$0xff] }
 0x28a   : > { %v1679_v49 = vld [vmem:[#allocation11 + $0x428] sm:$0xff]  ;;  %v1677_v7 = vld [vmem:[#allocation11 + $0x418] sm:$0xff]  ;;  %v1694_v63 = vld [vmem:[#allocation11 + $0x4a0] sm:$0xff] }
 0x28b   : > { %v1530_v3 = vld [vmem:[#allocation2 + $0x60] sm:$0xff] }
 0x28c   : > { %6266 = vmatpush1.bf16.msra.mxu0 %v6265_v45  ;;  %6394 = vmatpush1.bf16.msra.mxu1 %v6393_v37  ;;  %v1649_v45 = vld [vmem:[#allocation11 + $0x338] sm:$0xff]  ;;  %v6285_v37 = vpack.c.bf16 %v1638_v32, %v1634_v31  ;;  %v6429_v31 = vpack.c.bf16 %v1672_v24, %v1668_v23  ;;  %v6303_v32 = vpack.c.bf16 %v1679_v49, %v1675_v28 }
 0x28d   : > { %6268 = vmatprep.subr.bf16.mxu0 %v6267_v52  ;;  %6396 = vmatprep.subr.bf16.mxu1 %v6395_v9  ;;  %v1646_v52 = vld [vmem:[#allocation11 + $0x320] sm:$0xff]  ;;  %v6287_v9 = vpack.c.bf16 %v1647_v40, %v1643_v39  ;;  %v6415_v51 = vpack.c.bf16 %v1649_v45, %v1645_v41  ;;  %v1680_v39 = vld [vmem:[#allocation11 + $0x430] sm:$0xff]  ;;  %v1683_v40 = vld [vmem:[#allocation11 + $0x448] sm:$0xff] }
 0x28e   : > { %v1687_v41 = vld [vmem:[#allocation11 + $0x468] sm:$0xff]  ;;  %v1685_v45 = vld [vmem:[#allocation11 + $0x458] sm:$0xff] }
 0x28f   : > { %v6307_v48 = vpack.c.bf16 %v1687_v41, %v1683_v40  ;;  %v7232_v23 = vld [vmem:[#allocation2 + $0x88] sm:$0xff] }
 0x290   : > { %6270 = vmatpush1.bf16.msra.mxu0 %v6269_v58  ;;  %6398 = vmatpush1.bf16.msra.mxu1 %v6397_v59  ;;  %v1657_v58 = vld [vmem:[#allocation11 + $0x378] sm:$0xff]  ;;  %v6289_v59 = vpack.c.bf16 %v1646_v52, %v1642_v50  ;;  %v1522_v50 = vld [vmem:[#allocation2] sm:$0xff]  ;;  %v6433_v52 = vpack.c.bf16 %v1680_v39, %v1676_v38 }
 0x291   : > { %6272 = vmatprep.subr.bf16.mxu0 %v6271_v61  ;;  %6400 = vmatprep.subr.bf16.mxu1 %v6399_v62  ;;  %v1654_v61 = vld [vmem:[#allocation11 + $0x360] sm:$0xff]  ;;  %v6291_v62 = vpack.c.bf16 %v1655_v36, %v1651_v55  ;;  %v6419_v10 = vpack.c.bf16 %v1657_v58, %v1653_v56  ;;  %v1684_v55 = vld [vmem:[#allocation11 + $0x450] sm:$0xff]  ;;  %v1691_v56 = vld [vmem:[#allocation11 + $0x488] sm:$0xff] }
 0x292   : > { %v1688_v36 = vld [vmem:[#allocation11 + $0x470] sm:$0xff]  ;;  %v1695_v58 = vld [vmem:[#allocation11 + $0x4a8] sm:$0xff]  ;;  %v1717_v39 = vld [vmem:[#allocation11 + $0x558] sm:$0xff] }
 0x293   : > { %v1539_v28 = vld [vmem:[#allocation2 + $0xc8] sm:$0xff]  ;;  %v1719_v38 = vld [vmem:[#allocation11 + $0x568] sm:$0xff] }
 0x294   : > { %6274 = vmatpush1.bf16.msra.mxu0 %v6273_v15  ;;  %6402 = vmatpush1.bf16.msra.mxu1 %v6401_v22  ;;  %v1665_v15 = vld [vmem:[#allocation11 + $0x3b8] sm:$0xff]  ;;  %v6293_v22 = vpack.c.bf16 %v1654_v61, %v1650_v53 }
 0x295   : > { %6276 = vmatprep.subr.bf16.mxu0 %v6275_v12  ;;  %6404 = vmatprep.subr.bf16.mxu1 %v6403_v30  ;;  %v1662_v12 = vld [vmem:[#allocation11 + $0x3a0] sm:$0xff]  ;;  %v6295_v30 = vpack.c.bf16 %v1663_v13, %v1659_v11  ;;  %v6423_v0 = vpack.c.bf16 %v1665_v15, %v1661_v14  ;;  %v8155_v53 = vld [vmem:[#allocation2 + $0x28] sm:$0xff]  ;;  %v6311_v11 = vpack.c.bf16 %v1695_v58, %v1691_v56 }
 0x296   : > { %v1692_v14 = vld [vmem:[#allocation11 + $0x490] sm:$0xff]  ;;  %v1721_v40 = vld [vmem:[#allocation11 + $0x578] sm:$0xff] }
 0x297   : > { %v1696_v15 = vld [vmem:[#allocation11 + $0x4b0] sm:$0xff]  ;;  %v1729_v56 = vld [vmem:[#allocation11 + $0x5b8] sm:$0xff] }
 0x298   : > { %6278 = vmatpush1.bf16.msra.mxu0 %v6277_v44  ;;  %6406 = vmatpush1.bf16.msra.mxu1 %v6405_v42  ;;  %v1673_v44 = vld [vmem:[#allocation11 + $0x3f8] sm:$0xff]  ;;  %v6297_v42 = vpack.c.bf16 %v1662_v12, %v1658_v27  ;;  %v1703_v27 = vld [vmem:[#allocation11 + $0x4e8] sm:$0xff]  ;;  %v6441_v18 = vpack.c.bf16 %v1696_v15, %v1692_v14 }
 0x299   : > { %6280 = vmatprep.subr.bf16.mxu0 %v6279_v16  ;;  %6408 = vmatprep.subr.bf16.mxu1 %v6407_v46  ;;  %v1670_v16 = vld [vmem:[#allocation11 + $0x3e0] sm:$0xff]  ;;  %v6299_v46 = vpack.c.bf16 %v1671_v29, %v1667_v19  ;;  %v6427_v20 = vpack.c.bf16 %v1673_v44, %v1669_v43  ;;  %v1701_v12 = vld [vmem:[#allocation11 + $0x4d8] sm:$0xff]  ;;  %v1735_v14 = vld [vmem:[#allocation11 + $0x5e8] sm:$0xff] }
 0x29a   : > { %v1698_v19 = vld [vmem:[#allocation11 + $0x4c0] sm:$0xff]  ;;  %v7234_v58 = vld [vmem:[#allocation2 + $0xe8] sm:$0xff]  ;;  %v7235_v15 = vld [vmem:[#allocation2 + $0xe0] sm:$0xff] }
 0x29b   : > { %v1702_v29 = vld [vmem:[#allocation11 + $0x4e0] sm:$0xff] }
 0x29c   : > { %6282 = vmatpush1.bf16.msra.mxu0 %v6281_v17  ;;  %6410 = vmatpush1.bf16.msra.mxu1 %v6409_v25  ;;  %v1681_v17 = vld [vmem:[#allocation11 + $0x438] sm:$0xff]  ;;  %v6301_v25 = vpack.c.bf16 %v1670_v16, %v1666_v57  ;;  %v1707_v57 = vld [vmem:[#allocation11 + $0x508] sm:$0xff]  ;;  %v6317_v24 = vpack.c.bf16 %v1702_v29, %v1698_v19  ;;  %v1732_v19 = vld [vmem:[#allocation11 + $0x5d0] sm:$0xff] }
 0x29d   : > { %6284 = vmatprep.subr.bf16.mxu0 %v6283_v33  ;;  %6412 = vmatprep.subr.bf16.mxu1 %v6411_v34  ;;  %v6431_v33 = vpack.c.bf16 %v1681_v17, %v1677_v7  ;;  %v1674_v34 = vld [vmem:[#allocation11 + $0x400] sm:$0xff]  ;;  %v1711_v16 = vld [vmem:[#allocation11 + $0x528] sm:$0xff] }
 0x29e   : > { %v1706_v7 = vld [vmem:[#allocation11 + $0x500] sm:$0xff] }
 0x29f   : > { %v1710_v17 = vld [vmem:[#allocation11 + $0x520] sm:$0xff] }
 0x2a0   : > { %6286 = vmatpush1.bf16.msra.mxu0 %v6285_v37  ;;  %6414 = vmatpush1.bf16.msra.mxu1 %v6413_v47  ;;  %v1689_v37 = vld [vmem:[#allocation11 + $0x478] sm:$0xff]  ;;  %v6305_v47 = vpack.c.bf16 %v1678_v35, %v1674_v34  ;;  %v1715_v34 = vld [vmem:[#allocation11 + $0x548] sm:$0xff]  ;;  %v6321_v41 = vpack.c.bf16 %v1710_v17, %v1706_v7  ;;  %v1744_v7 = vld [vmem:[#allocation11 + $0x630] sm:$0xff] }
 0x2a1   : > { %6288 = vmatprep.subr.bf16.mxu0 %v6287_v9  ;;  %6416 = vmatprep.subr.bf16.mxu1 %v6415_v51  ;;  %v1682_v9 = vld [vmem:[#allocation11 + $0x440] sm:$0xff]  ;;  %v6435_v54 = vpack.c.bf16 %v1689_v37, %v1685_v45  ;;  %v7233_v35 = vld [vmem:[#allocation2 + $0x80] sm:$0xff] }
 0x2a2   : > { %v1686_v51 = vld [vmem:[#allocation11 + $0x460] sm:$0xff]  ;;  %v1538_v45 = vld [vmem:[#allocation2 + $0xc0] sm:$0xff] }
 0x2a3   : > { %v6309_v61 = vpack.c.bf16 %v1686_v51, %v1682_v9  ;;  %v6451_v9 = vpack.c.bf16 %v1721_v40, %v1717_v39  ;;  %v1716_v51 = vld [vmem:[#allocation11 + $0x550] sm:$0xff]  ;;  %v1747_v17 = vld [vmem:[#allocation11 + $0x648] sm:$0xff]  ;;  %v1750_v39 = vld [vmem:[#allocation11 + $0x660] sm:$0xff] }
 0x2a4   : > { %6290 = vmatpush1.bf16.msra.mxu0 %v6289_v59  ;;  %6418 = vmatpush1.bf16.msra.mxu1 %v6417_v60  ;;  %v1693_v59 = vld [vmem:[#allocation11 + $0x498] sm:$0xff]  ;;  %v1748_v40 = vld [vmem:[#allocation11 + $0x650] sm:$0xff] }
 0x2a5   : > { %6292 = vmatprep.subr.bf16.mxu0 %v6291_v62  ;;  %6420 = vmatprep.subr.bf16.mxu1 %v6419_v10  ;;  %v1697_v60 = vld [vmem:[#allocation11 + $0x4b8] sm:$0xff]  ;;  %v6437_v10 = vpack.c.bf16 %v1688_v36, %v1684_v55  ;;  %v1727_v55 = vld [vmem:[#allocation11 + $0x5a8] sm:$0xff] }
 0x2a6   : > { %v1531_v62 = vld [vmem:[#allocation2 + $0x68] sm:$0xff]  ;;  %v6439_v13 = vpack.c.bf16 %v1697_v60, %v1693_v59 }
 0x2a7   : > { %v1725_v36 = vld [vmem:[#allocation11 + $0x598] sm:$0xff] }
 0x2a8   : > { %6294 = vmatpush1.bf16.msra.mxu0 %v6293_v22  ;;  %6422 = vmatpush1.bf16.msra.mxu1 %v6421_v26  ;;  %v1699_v22 = vld [vmem:[#allocation11 + $0x4c8] sm:$0xff] }
 0x2a9   : > { %6296 = vmatprep.subr.bf16.mxu0 %v6295_v30  ;;  %6424 = vmatprep.subr.bf16.mxu1 %v6423_v0  ;;  %v7231_v26 = vld [vmem:[#allocation2 + $0x20] sm:$0xff]  ;;  %v1705_v30 = vld [vmem:[#allocation11 + $0x4f8] sm:$0xff]  ;;  %v6313_v0 = vpack.c.bf16 %v1694_v63, %v1690_v4  ;;  %v6315_v43 = vpack.c.bf16 %v1703_v27, %v1699_v22  ;;  %v6455_v63 = vpack.c.bf16 %v1729_v56, %v1725_v36  ;;  %v1525_v22 = vld [vmem:[#allocation2 + $0x18] sm:$0xff] }
 0x2aa   : > { %v6443_v44 = vpack.c.bf16 %v1705_v30, %v1701_v12  ;;  %v1737_v27 = vld [vmem:[#allocation11 + $0x5f8] sm:$0xff]  ;;  %v1756_v36 = vld [vmem:[#allocation11 + $0x690] sm:$0xff] }
 0x2ac   : > { %6298 = vmatpush1.bf16.msra.mxu0 %v6297_v42  ;;  %6426 = vmatpush1.bf16.msra.mxu1 %v6425_v21  ;;  %v1700_v42 = vld [vmem:[#allocation11 + $0x4d0] sm:$0xff] }
 0x2ad   : > { %6300 = vmatprep.subr.bf16.mxu0 %v6299_v46  ;;  %6428 = vmatprep.subr.bf16.mxu1 %v6427_v20  ;;  %v1704_v21 = vld [vmem:[#allocation11 + $0x4f0] sm:$0xff]  ;;  %v1709_v46 = vld [vmem:[#allocation11 + $0x518] sm:$0xff] }
 0x2ae   : > { %v1713_v20 = vld [vmem:[#allocation11 + $0x538] sm:$0xff]  ;;  %v6445_v49 = vpack.c.bf16 %v1704_v21, %v1700_v42  ;;  %v1743_v42 = vld [vmem:[#allocation11 + $0x628] sm:$0xff] }
 0x2af   : > { %v1741_v21 = vld [vmem:[#allocation11 + $0x618] sm:$0xff] }
 0x2b0   : > { %6302 = vmatpush1.bf16.msra.mxu0 %v6301_v25  ;;  %6430 = vmatpush1.bf16.msra.mxu1 %v6429_v31  ;;  %v6319_v25 = vpack.c.bf16 %v1711_v16, %v1707_v57  ;;  %v6447_v31 = vpack.c.bf16 %v1713_v20, %v1709_v46  ;;  %v1745_v57 = vld [vmem:[#allocation11 + $0x638] sm:$0xff] }
 0x2b1   : > { %6304 = vmatprep.subr.bf16.mxu0 %v6303_v32  ;;  %6432 = vmatprep.subr.bf16.mxu1 %v6431_v33  ;;  %v1708_v32 = vld [vmem:[#allocation11 + $0x510] sm:$0xff] }
 0x2b2   : > { %v1712_v33 = vld [vmem:[#allocation11 + $0x530] sm:$0xff] }
 0x2b3   : > { %2673 = vmatmul.mubr.f32.vlgmr.msra.gmra.mrb[12].mxu0 %v1522_v50  ;;  %2875 = vmatmul.mubr.f32.vlgmr.msra.gmra.mrb[12].mxu1 %v1522_v50  ;;  %v6449_v37 = vpack.c.bf16 %v1712_v33, %v1708_v32  ;;  %v1718_v50 = vld [vmem:[#allocation11 + $0x560] sm:$0xff]  ;;  %v1753_v32 = vld [vmem:[#allocation11 + $0x678] sm:$0xff] }
 0x2b4   : > { %2678 = vmatprep.mubr.f32.mxu0 %v8155_v53  ;;  %6306 = vmatpush1.bf16.msra.mxu0 %v6305_v47  ;;  %v1714_v47 = vld [vmem:[#allocation11 + $0x540] sm:$0xff] }
 0x2b5   : > { %2880 = vmatprep.mubr.f32.mxu1 %v8155_v53  ;;  %6434 = vmatpush1.bf16.msra.mxu1 %v6433_v52  ;;  %v6323_v52 = vpack.c.bf16 %v1719_v38, %v1715_v34  ;;  %v6325_v59 = vpack.c.bf16 %v1718_v50, %v1714_v47  ;;  %v1746_v38 = vld [vmem:[#allocation11 + $0x640] sm:$0xff]  ;;  %v1759_v47 = vld [vmem:[#allocation11 + $0x6a8] sm:$0xff]  ;;  %v1757_v50 = vld [vmem:[#allocation11 + $0x698] sm:$0xff] }
 0x2b6   : > { %6308 = vmatprep.subr.bf16.mxu0 %v6307_v48  ;;  %6436 = vmatprep.subr.bf16.mxu1 %v6435_v54  ;;  %v1720_v48 = vld [vmem:[#allocation11 + $0x570] sm:$0xff]  ;;  %v1723_v54 = vld [vmem:[#allocation11 + $0x588] sm:$0xff] }
 0x2b7   : > { %2679 = vmatmul.mubr.f32.gmra.mrb[14].mxu0 %v7231_v26  ;;  %2881 = vmatmul.mubr.f32.gmra.mrb[14].mxu1 %v7231_v26  ;;  %v6453_v60 = vpack.c.bf16 %v1720_v48, %v1716_v51  ;;  %v6327_v4 = vpack.c.bf16 %v1727_v55, %v1723_v54  ;;  %v1733_v26 = vld [vmem:[#allocation11 + $0x5d8] sm:$0xff]  ;;  %v1754_v54 = vld [vmem:[#allocation11 + $0x680] sm:$0xff] }
 0x2b8   : > { %2684 = vmatprep.mubr.f32.mxu0 %v1531_v62  ;;  %6310 = vmatpush1.bf16.msra.mxu0 %v6309_v61  ;;  %v1722_v61 = vld [vmem:[#allocation11 + $0x580] sm:$0xff]  ;;  %v6459_v29 = vpack.c.bf16 %v1737_v27, %v1733_v26  ;;  %v1771_v26 = vld [vmem:[#allocation11 + $0x708] sm:$0xff] }
 0x2b9   : > { %2886 = vmatprep.mubr.f32.mxu1 %v1531_v62  ;;  %6438 = vmatpush1.bf16.msra.mxu1 %v6437_v10  ;;  %v1726_v62 = vld [vmem:[#allocation11 + $0x5a0] sm:$0xff]  ;;  %v1724_v10 = vld [vmem:[#allocation11 + $0x590] sm:$0xff]  ;;  %v1775_v27 = vld [vmem:[#allocation11 + $0x728] sm:$0xff] }
 0x2ba   : > { %6312 = vmatprep.subr.bf16.mxu0 %v6311_v11  ;;  %6440 = vmatprep.subr.bf16.mxu1 %v6439_v13  ;;  %v1728_v11 = vld [vmem:[#allocation11 + $0x5b0] sm:$0xff]  ;;  %v1731_v13 = vld [vmem:[#allocation11 + $0x5c8] sm:$0xff]  ;;  %v6329_v12 = vpack.c.bf16 %v1726_v62, %v1722_v61  ;;  %v1758_v55 = vld [vmem:[#allocation11 + $0x6a0] sm:$0xff] }
 0x2bb   : > { %2685 = vmatmul.mubr.f32.gmra.mrb[16].mxu0 %v1530_v3  ;;  %2887 = vmatmul.mubr.f32.gmra.mrb[16].mxu1 %v1530_v3  ;;  %v6457_v30 = vpack.c.bf16 %v1728_v11, %v1724_v10  ;;  %v1730_v3 = vld [vmem:[#allocation11 + $0x5c0] sm:$0xff]  ;;  %v1765_v61 = vld [vmem:[#allocation11 + $0x6d8] sm:$0xff]  ;;  %v6345_v10 = vpack.c.bf16 %v1758_v55, %v1754_v54 }
 0x2bc   : > { %2690 = vmatprep.mubr.f32.mxu0 %v7232_v23  ;;  %6314 = vmatpush1.bf16.msra.mxu0 %v6313_v0  ;;  %v6331_v0 = vpack.c.bf16 %v1735_v14, %v1731_v13  ;;  %v1769_v62 = vld [vmem:[#allocation11 + $0x6f8] sm:$0xff]  ;;  %v1762_v11 = vld [vmem:[#allocation11 + $0x6c0] sm:$0xff]  ;;  %v1764_v14 = vld [vmem:[#allocation11 + $0x6d0] sm:$0xff] }
 0x2bd   : > { %2892 = vmatprep.mubr.f32.mxu1 %v7232_v23  ;;  %6442 = vmatpush1.bf16.msra.mxu1 %v6441_v18  ;;  %v1734_v18 = vld [vmem:[#allocation11 + $0x5e0] sm:$0xff] }
 0x2be   : > { %6316 = vmatprep.subr.bf16.mxu0 %v6315_v43  ;;  %6444 = vmatprep.subr.bf16.mxu1 %v6443_v44  ;;  %v1736_v43 = vld [vmem:[#allocation11 + $0x5f0] sm:$0xff]  ;;  %v1739_v44 = vld [vmem:[#allocation11 + $0x608] sm:$0xff]  ;;  %v6333_v16 = vpack.c.bf16 %v1734_v18, %v1730_v3  ;;  %v1738_v23 = vld [vmem:[#allocation11 + $0x600] sm:$0xff]  ;;  %v6351_v18 = vpack.c.bf16 %v1775_v27, %v1771_v26 }
 0x2bf   : > { %2691 = vmatmul.mubr.f32.gmra.mrb[18].mxu0 %v7233_v35  ;;  %2893 = vmatmul.mubr.f32.gmra.mrb[18].mxu1 %v7233_v35  ;;  %v6461_v46 = vpack.c.bf16 %v1736_v43, %v1732_v19  ;;  %v6335_v20 = vpack.c.bf16 %v1743_v42, %v1739_v44  ;;  %v1766_v13 = vld [vmem:[#allocation11 + $0x6e0] sm:$0xff]  ;;  %v1772_v43 = vld [vmem:[#allocation11 + $0x710] sm:$0xff] }
 0x2c0   : > { %2696 = vmatprep.mubr.f32.mxu0 %v1539_v28  ;;  %6318 = vmatpush1.bf16.msra.mxu0 %v6317_v24  ;;  %v1742_v24 = vld [vmem:[#allocation11 + $0x620] sm:$0xff]  ;;  %v1776_v42 = vld [vmem:[#allocation11 + $0x730] sm:$0xff] }
 0x2c1   : > { %2898 = vmatprep.mubr.f32.mxu1 %v1539_v28  ;;  %6446 = vmatpush1.bf16.msra.mxu1 %v6445_v49  ;;  %v1740_v28 = vld [vmem:[#allocation11 + $0x610] sm:$0xff]  ;;  %v6463_v49 = vpack.c.bf16 %v1745_v57, %v1741_v21  ;;  %v6337_v33 = vpack.c.bf16 %v1742_v24, %v1738_v23  ;;  %v1770_v19 = vld [vmem:[#allocation11 + $0x700] sm:$0xff]  ;;  %v1779_v21 = vld [vmem:[#allocation11 + $0x748] sm:$0xff]  ;;  %v6481_v23 = vpack.c.bf16 %v1776_v42, %v1772_v43 }
 0x2c2   : > { %6320 = vmatprep.subr.bf16.mxu0 %v6319_v25  ;;  %6448 = vmatprep.subr.bf16.mxu1 %v6447_v31  ;;  %v1751_v25 = vld [vmem:[#allocation11 + $0x668] sm:$0xff]  ;;  %v1749_v31 = vld [vmem:[#allocation11 + $0x658] sm:$0xff]  ;;  %v6465_v34 = vpack.c.bf16 %v1744_v7, %v1740_v28  ;;  %v1778_v28 = vld [vmem:[#allocation11 + $0x740] sm:$0xff] }
 0x2c3   : > { %2697 = vmatmul.mubr.f32.gmra.mrb[20].mxu0 %v1538_v45  ;;  %2899 = vmatmul.mubr.f32.gmra.mrb[20].mxu1 %v1538_v45  ;;  %v6339_v35 = vpack.c.bf16 %v1751_v25, %v1747_v17  ;;  %v1752_v45 = vld [vmem:[#allocation11 + $0x670] sm:$0xff]  ;;  %v1783_v57 = vld [vmem:[#allocation11 + $0x768] sm:$0xff]  ;;  %v3158_v42 = vld [vmem:[#allocation11 + $0x1060] sm:$0xff] }
 0x2c4   : > { %2702 = vmatprep.mubr.f32.mxu0 %v7234_v58  ;;  %6322 = vmatpush1.bf16.msra.mxu0 %v6321_v41  ;;  %v6467_v41 = vpack.c.bf16 %v1753_v32, %v1749_v31  ;;  %v6469_v51 = vpack.c.bf16 %v1752_v45, %v1748_v40  ;;  %v6355_v24 = vpack.c.bf16 %v1783_v57, %v1779_v21  ;;  %v1780_v7 = vld [vmem:[#allocation11 + $0x750] sm:$0xff]  ;;  %v1787_v31 = vld [vmem:[#allocation11 + $0x788] sm:$0xff]  ;;  %v1786_v40 = vld [vmem:[#allocation11 + $0x780] sm:$0xff] }
 0x2c5   : > { %2904 = vmatprep.mubr.f32.mxu1 %v7234_v58  ;;  %6450 = vmatpush1.bf16.msra.mxu1 %v6449_v37  ;;  %v1755_v37 = vld [vmem:[#allocation11 + $0x688] sm:$0xff]  ;;  %v1760_v58 = vld [vmem:[#allocation11 + $0x6b0] sm:$0xff] }
 0x2c6   : > { %6324 = vmatprep.subr.bf16.mxu0 %v6323_v52  ;;  %6452 = vmatprep.subr.bf16.mxu1 %v6451_v9  ;;  %v1761_v52 = vld [vmem:[#allocation11 + $0x6b8] sm:$0xff]  ;;  %v6341_v9 = vpack.c.bf16 %v1750_v39, %v1746_v38  ;;  %v6343_v48 = vpack.c.bf16 %v1759_v47, %v1755_v37  ;;  %v1784_v25 = vld [vmem:[#allocation11 + $0x770] sm:$0xff]  ;;  %v1791_v32 = vld [vmem:[#allocation11 + $0x7a8] sm:$0xff] }
 0x2c7   : > { %2703 = vmatmul.mubr.f32.gmra.mrb[22].mxu0 %v7235_v15  ;;  %2905 = vmatmul.mubr.f32.gmra.mrb[22].mxu1 %v7235_v15  ;;  %v6471_v56 = vpack.c.bf16 %v1761_v52, %v1757_v50  ;;  %v6475_v15 = vpack.c.bf16 %v1769_v62, %v1765_v61  ;;  %v6485_v38 = vpack.c.bf16 %v1784_v25, %v1780_v7  ;;  %v1788_v45 = vld [vmem:[#allocation11 + $0x790] sm:$0xff]  ;;  %v1795_v50 = vld [vmem:[#allocation11 + $0x7c8] sm:$0xff] }
 0x2c8   : > { %6326 = vmatpush1.bf16.msra.mxu0 %v6325_v59  ;;  %2773 = vmatprep.mubr.f32.mxu0 %v1525_v22  ;;  %v1763_v59 = vld [vmem:[#allocation11 + $0x6c8] sm:$0xff]  ;;  %v6359_v39 = vpack.c.bf16 %v1791_v32, %v1787_v31  ;;  %v1792_v47 = vld [vmem:[#allocation11 + $0x7b0] sm:$0xff]  ;;  %v3162_v31 = vld [vmem:[#allocation11 + $0x1080] sm:$0xff] }
 0x2c9   : > { %6454 = vmatpush1.bf16.msra.mxu1 %v6453_v60  ;;  %2975 = vmatprep.mubr.f32.mxu1 %v1525_v22  ;;  %v1767_v60 = vld [vmem:[#allocation11 + $0x6e8] sm:$0xff]  ;;  %v1768_v22 = vld [vmem:[#allocation11 + $0x6f0] sm:$0xff]  ;;  %v6489_v54 = vpack.c.bf16 %v1792_v47, %v1788_v45  ;;  %v3166_v32 = vld [vmem:[#allocation11 + $0x10a0] sm:$0xff] }
 0x2ca   : > { %6328 = vmatprep.subr.bf16.mxu0 %v6327_v4  ;;  %6456 = vmatprep.subr.bf16.mxu1 %v6455_v63  ;;  %v6473_v4 = vpack.c.bf16 %v1760_v58, %v1756_v36  ;;  %v6347_v63 = vpack.c.bf16 %v1767_v60, %v1763_v59  ;;  %v6477_v3 = vpack.c.bf16 %v1768_v22, %v1764_v14  ;;  %v1799_v52 = vld [vmem:[#allocation11 + $0x7e8] sm:$0xff]  ;;  %v1794_v36 = vld [vmem:[#allocation11 + $0x7c0] sm:$0xff]  ;;  %v1796_v58 = vld [vmem:[#allocation11 + $0x7d0] sm:$0xff] }
 0x2cb   : > { %v6363_v55 = vpack.c.bf16 %v1799_v52, %v1795_v50  ;;  %v1800_v60 = vld [vmem:[#allocation11 + $0x7f0] sm:$0xff]  ;;  %v3147_v61 = vld [vmem:[#allocation11 + $0x1008] sm:$0xff]  ;;  %v3150_v22 = vld [vmem:[#allocation11 + $0x1020] sm:$0xff]  ;;  %v6505_v47 = vpack.c.bf16 %v3166_v32, %v3162_v31 }
 0x2cc   : > { %6330 = vmatpush1.bf16.msra.mxu0 %v6329_v12  ;;  %v1773_v12 = vld [vmem:[#allocation11 + $0x718] sm:$0xff]  ;;  %v3151_v62 = vld [vmem:[#allocation11 + $0x1028] sm:$0xff]  ;;  %v3148_v26 = vld [vmem:[#allocation11 + $0x1010] sm:$0xff] }
 0x2cd   : > { %6458 = vmatpush1.bf16.msra.mxu1 %v6457_v30  ;;  %6332 = vmatprep.subr.bf16.mxu0 %v6331_v0  ;;  %v1777_v30 = vld [vmem:[#allocation11 + $0x738] sm:$0xff]  ;;  %v6349_v0 = vpack.c.bf16 %v1766_v13, %v1762_v11  ;;  %v6493_v11 = vpack.c.bf16 %v1800_v60, %v1796_v58  ;;  %v6495_v13 = vpack.c.bf16 %v3151_v62, %v3147_v61  ;;  %v3152_v27 = vld [vmem:[#allocation11 + $0x1030] sm:$0xff]  ;;  %v7238_v58 = vld [vmem:[#allocation2 + $0x98] sm:$0xff] }
 0x2ce   : > { %6460 = vmatprep.subr.bf16.mxu1 %v6459_v29  ;;  %v1774_v29 = vld [vmem:[#allocation11 + $0x720] sm:$0xff]  ;;  %v6479_v44 = vpack.c.bf16 %v1777_v30, %v1773_v12  ;;  %v3155_v12 = vld [vmem:[#allocation11 + $0x1048] sm:$0xff]  ;;  %v3156_v21 = vld [vmem:[#allocation11 + $0x1050] sm:$0xff] }
 0x2cf   : > { %v3159_v30 = vld [vmem:[#allocation11 + $0x1068] sm:$0xff]  ;;  %v3177_v45 = vld [vmem:[#allocation11 + $0x10f8] sm:$0xff]  ;;  %v3194_v32 = vld [vmem:[#allocation11 + $0x1180] sm:$0xff] }
 0x2d0   : > { %6334 = vmatpush1.bf16.msra.mxu0 %v6333_v16  ;;  %v1781_v16 = vld [vmem:[#allocation11 + $0x758] sm:$0xff]  ;;  %v6499_v43 = vpack.c.bf16 %v3159_v30, %v3155_v12  ;;  %v1541_v61 = vld [vmem:[#allocation2 + $0xd8] sm:$0xff] }
 0x2d1   : > { %6462 = vmatpush1.bf16.msra.mxu1 %v6461_v46  ;;  %6336 = vmatprep.subr.bf16.mxu0 %v6335_v20  ;;  %v1785_v46 = vld [vmem:[#allocation11 + $0x778] sm:$0xff]  ;;  %v6353_v20 = vpack.c.bf16 %v1774_v29, %v1770_v19  ;;  %v6625_v29 = vpack.c.bf16 %v3152_v27, %v3148_v26  ;;  %v3187_v26 = vld [vmem:[#allocation11 + $0x1148] sm:$0xff] }
 0x2d2   : > { %6464 = vmatprep.subr.bf16.mxu1 %v6463_v49  ;;  %v1782_v49 = vld [vmem:[#allocation11 + $0x760] sm:$0xff]  ;;  %v6483_v17 = vpack.c.bf16 %v1785_v46, %v1781_v16  ;;  %v3160_v16 = vld [vmem:[#allocation11 + $0x1070] sm:$0xff]  ;;  %v3163_v46 = vld [vmem:[#allocation11 + $0x1088] sm:$0xff] }
 0x2d3   : > { %v3185_v60 = vld [vmem:[#allocation11 + $0x1138] sm:$0xff]  ;;  %v3191_v27 = vld [vmem:[#allocation11 + $0x1168] sm:$0xff] }
 0x2d4   : > { %6338 = vmatpush1.bf16.msra.mxu0 %v6337_v33  ;;  %v1789_v33 = vld [vmem:[#allocation11 + $0x798] sm:$0xff] }
 0x2d5   : > { %6466 = vmatpush1.bf16.msra.mxu1 %v6465_v34  ;;  %6340 = vmatprep.subr.bf16.mxu0 %v6339_v35  ;;  %v1793_v34 = vld [vmem:[#allocation11 + $0x7b8] sm:$0xff]  ;;  %v6357_v35 = vpack.c.bf16 %v1782_v49, %v1778_v28  ;;  %v1533_v49 = vld [vmem:[#allocation2 + $0x78] sm:$0xff] }
 0x2d6   : > { %6468 = vmatprep.subr.bf16.mxu1 %v6467_v41  ;;  %v1790_v41 = vld [vmem:[#allocation11 + $0x7a0] sm:$0xff]  ;;  %v6487_v37 = vpack.c.bf16 %v1793_v34, %v1789_v33  ;;  %v3169_v28 = vld [vmem:[#allocation11 + $0x10b8] sm:$0xff]  ;;  %v3164_v33 = vld [vmem:[#allocation11 + $0x1090] sm:$0xff] }
 0x2d7   : > { %v7237_v34 = vld [vmem:[#allocation2 + $0x30] sm:$0xff] }
 0x2d8   : > { %6342 = vmatpush1.bf16.msra.mxu0 %v6341_v9  ;;  %v1797_v9 = vld [vmem:[#allocation11 + $0x7d8] sm:$0xff] }
 0x2d9   : > { %6470 = vmatpush1.bf16.msra.mxu1 %v6469_v51  ;;  %6344 = vmatprep.subr.bf16.mxu0 %v6343_v48  ;;  %v1801_v51 = vld [vmem:[#allocation11 + $0x7f8] sm:$0xff]  ;;  %v6361_v48 = vpack.c.bf16 %v1790_v41, %v1786_v40  ;;  %v3175_v40 = vld [vmem:[#allocation11 + $0x10e8] sm:$0xff] }
 0x2da   : > { %6472 = vmatprep.subr.bf16.mxu1 %v6471_v56  ;;  %v1798_v56 = vld [vmem:[#allocation11 + $0x7e0] sm:$0xff]  ;;  %v6491_v59 = vpack.c.bf16 %v1801_v51, %v1797_v9  ;;  %v3173_v41 = vld [vmem:[#allocation11 + $0x10d8] sm:$0xff] }
 0x2db   : > { %v3170_v9 = vld [vmem:[#allocation11 + $0x10c0] sm:$0xff]  ;;  %v3189_v12 = vld [vmem:[#allocation11 + $0x1158] sm:$0xff] }
 0x2dc   : > { %6346 = vmatpush1.bf16.msra.mxu0 %v6345_v10  ;;  %v3149_v10 = vld [vmem:[#allocation11 + $0x1018] sm:$0xff]  ;;  %v3174_v51 = vld [vmem:[#allocation11 + $0x10e0] sm:$0xff] }
 0x2dd   : > { %6474 = vmatpush1.bf16.msra.mxu1 %v6473_v4  ;;  %6348 = vmatprep.subr.bf16.mxu0 %v6347_v63  ;;  %v3153_v4 = vld [vmem:[#allocation11 + $0x1038] sm:$0xff]  ;;  %v6365_v63 = vpack.c.bf16 %v1798_v56, %v1794_v36  ;;  %v3179_v36 = vld [vmem:[#allocation11 + $0x1108] sm:$0xff]  ;;  %v6509_v62 = vpack.c.bf16 %v3174_v51, %v3170_v9  ;;  %v3202_v51 = vld [vmem:[#allocation11 + $0x11c0] sm:$0xff] }
 0x2de   : > { %6476 = vmatprep.subr.bf16.mxu1 %v6475_v15  ;;  %v6623_v14 = vpack.c.bf16 %v3153_v4, %v3149_v10  ;;  %v3146_v15 = vld [vmem:[#allocation11 + $0x1000] sm:$0xff]  ;;  %v3183_v56 = vld [vmem:[#allocation11 + $0x1128] sm:$0xff]  ;;  %v3193_v30 = vld [vmem:[#allocation11 + $0x1178] sm:$0xff] }
 0x2df   : > { %v6497_v19 = vpack.c.bf16 %v3150_v22, %v3146_v15  ;;  %v6511_v4 = vpack.c.bf16 %v3183_v56, %v3179_v36  ;;  %v3184_v22 = vld [vmem:[#allocation11 + $0x1130] sm:$0xff]  ;;  %v3211_v56 = vld [vmem:[#allocation11 + $0x1208] sm:$0xff] }
 0x2e0   : > { %6350 = vmatpush1.bf16.msra.mxu0 %v6349_v0  ;;  %v3157_v0 = vld [vmem:[#allocation11 + $0x1058] sm:$0xff]  ;;  %v3208_v36 = vld [vmem:[#allocation11 + $0x11f0] sm:$0xff] }
 0x2e1   : > { %6478 = vmatpush1.bf16.msra.mxu1 %v6477_v3  ;;  %6352 = vmatprep.subr.bf16.mxu0 %v6351_v18  ;;  %v3161_v3 = vld [vmem:[#allocation11 + $0x1078] sm:$0xff] }
 0x2e2   : > { %6480 = vmatprep.subr.bf16.mxu1 %v6479_v44  ;;  %v1524_v18 = vld [vmem:[#allocation2 + $0x10] sm:$0xff]  ;;  %v6627_v57 = vpack.c.bf16 %v3161_v3, %v3157_v0  ;;  %v3013_v0 = vld [vmem:[#allocation2 + $0x8] sm:$0xfc] }
 0x2e3   : > { %v3154_v44 = vld [vmem:[#allocation11 + $0x1040] sm:$0xff] }
 0x2e4   : > { %6354 = vmatpush1.bf16.msra.mxu0 %v6353_v20  ;;  %v3167_v20 = vld [vmem:[#allocation11 + $0x10a8] sm:$0xff]  ;;  %v6501_v7 = vpack.c.bf16 %v3158_v42, %v3154_v44  ;;  %v1540_v3 = vld [vmem:[#allocation2 + $0xd0] sm:$0xff]  ;;  %v3188_v42 = vld [vmem:[#allocation11 + $0x1150] sm:$0xff] }
 0x2e5   : > { %6482 = vmatpush1.bf16.msra.mxu1 %v6481_v23  ;;  %6356 = vmatprep.subr.bf16.mxu0 %v6355_v24  ;;  %v8159_v23 = vld [vmem:[#allocation2 + $0x38] sm:$0xff]  ;;  %v3165_v24 = vld [vmem:[#allocation11 + $0x1098] sm:$0xff]  ;;  %v6503_v25 = vpack.c.bf16 %v3167_v20, %v3163_v46 }
 0x2e6   : > { %6484 = vmatprep.subr.bf16.mxu1 %v6483_v17  ;;  %v6629_v17 = vpack.c.bf16 %v3160_v16, %v3156_v21  ;;  %v3190_v44 = vld [vmem:[#allocation11 + $0x1160] sm:$0xff]  ;;  %v6643_v21 = vpack.c.bf16 %v3193_v30, %v3189_v12  ;;  %v3192_v16 = vld [vmem:[#allocation11 + $0x1170] sm:$0xff]  ;;  %v3195_v46 = vld [vmem:[#allocation11 + $0x1188] sm:$0xff] }
 0x2e7   : > { %v3199_v20 = vld [vmem:[#allocation11 + $0x11a8] sm:$0xff] }
 0x2e8   : > { %6358 = vmatpush1.bf16.msra.mxu0 %v6357_v35  ;;  %v6631_v35 = vpack.c.bf16 %v3169_v28, %v3165_v24  ;;  %v7240_v24 = vld [vmem:[#allocation2 + $0xf8] sm:$0xff]  ;;  %v3197_v28 = vld [vmem:[#allocation11 + $0x1198] sm:$0xff]  ;;  %v6519_v31 = vpack.c.bf16 %v3199_v20, %v3195_v46 }
 0x2e9   : > { %6486 = vmatpush1.bf16.msra.mxu1 %v6485_v38  ;;  %6360 = vmatprep.subr.bf16.mxu0 %v6359_v39  ;;  %v3168_v38 = vld [vmem:[#allocation11 + $0x10b0] sm:$0xff]  ;;  %v3171_v39 = vld [vmem:[#allocation11 + $0x10c8] sm:$0xff] }
 0x2ea   : > { %6488 = vmatprep.subr.bf16.mxu1 %v6487_v37  ;;  %v1532_v37 = vld [vmem:[#allocation2 + $0x70] sm:$0xff]  ;;  %v6633_v50 = vpack.c.bf16 %v3168_v38, %v3164_v33  ;;  %v6507_v52 = vpack.c.bf16 %v3175_v40, %v3171_v39  ;;  %v3200_v40 = vld [vmem:[#allocation11 + $0x11b0] sm:$0xff] }
 0x2eb   : > { %v3198_v33 = vld [vmem:[#allocation11 + $0x11a0] sm:$0xff] }
 0x2ec   : > { %6362 = vmatpush1.bf16.msra.mxu0 %v6361_v48  ;;  %v3172_v48 = vld [vmem:[#allocation11 + $0x10d0] sm:$0xff] }
 0x2ed   : > { %6490 = vmatpush1.bf16.msra.mxu1 %v6489_v54  ;;  %6364 = vmatprep.subr.bf16.mxu0 %v6363_v55  ;;  %v6635_v54 = vpack.c.bf16 %v3177_v45, %v3173_v41  ;;  %v3176_v55 = vld [vmem:[#allocation11 + $0x10f0] sm:$0xff]  ;;  %v3203_v41 = vld [vmem:[#allocation11 + $0x11c8] sm:$0xff] }
 0x2ee   : > { %6492 = vmatprep.subr.bf16.mxu1 %v6491_v59  ;;  %v3181_v59 = vld [vmem:[#allocation11 + $0x1118] sm:$0xff]  ;;  %v6637_v10 = vpack.c.bf16 %v3176_v55, %v3172_v48  ;;  %v3207_v45 = vld [vmem:[#allocation11 + $0x11e8] sm:$0xff]  ;;  %v3206_v48 = vld [vmem:[#allocation11 + $0x11e0] sm:$0xff] }
 0x2ef   : > { %v6639_v15 = vpack.c.bf16 %v3185_v60, %v3181_v59  ;;  %v6523_v9 = vpack.c.bf16 %v3207_v45, %v3203_v41  ;;  %v3213_v59 = vld [vmem:[#allocation11 + $0x1218] sm:$0xff]  ;;  %v3238_v41 = vld [vmem:[#allocation11 + $0x12e0] sm:$0xff]  ;;  %v3236_v45 = vld [vmem:[#allocation11 + $0x12d0] sm:$0xff] }
 0x2f0   : > { %6366 = vmatpush1.bf16.msra.mxu0 %v6365_v63  ;;  %v3178_v63 = vld [vmem:[#allocation11 + $0x1100] sm:$0xff]  ;;  %v3217_v60 = vld [vmem:[#allocation11 + $0x1238] sm:$0xff] }
 0x2f1   : > { %6494 = vmatpush1.bf16.msra.mxu1 %v6493_v11  ;;  %6496 = vmatprep.subr.bf16.mxu0 %v6495_v13  ;;  %v3182_v11 = vld [vmem:[#allocation11 + $0x1120] sm:$0xff]  ;;  %v3180_v13 = vld [vmem:[#allocation11 + $0x1110] sm:$0xff] }
 0x2f2   : > { %6624 = vmatprep.subr.bf16.mxu1 %v6623_v14  ;;  %v7239_v14 = vld [vmem:[#allocation2 + $0x90] sm:$0xff] }
 0x2f3   : > { %2774 = vmatmul.mubr.f32.vlgmr.msra.gmra.mrb[12].mxu0 %v1524_v18 }
 0x2f4   : > { %2976 = vmatmul.mubr.f32.vlgmr.msra.gmra.mrb[12].mxu1 %v1524_v18  ;;  %2779 = vmatprep.mubr.f32.mxu0 %v8159_v23  ;;  %v6513_v18 = vpack.c.bf16 %v3182_v11, %v3178_v63  ;;  %v3214_v63 = vld [vmem:[#allocation11 + $0x1220] sm:$0xff]  ;;  %v3212_v11 = vld [vmem:[#allocation11 + $0x1210] sm:$0xff] }
 0x2f5   : > { %2981 = vmatprep.mubr.f32.mxu1 %v8159_v23  ;;  %6498 = vmatpush1.bf16.msra.mxu0 %v6497_v19  ;;  %v6641_v19 = vpack.c.bf16 %v3184_v22, %v3180_v13  ;;  %v6655_v13 = vpack.c.bf16 %v3217_v60, %v3213_v59  ;;  %v3223_v22 = vld [vmem:[#allocation11 + $0x1268] sm:$0xff]  ;;  %v3248_v60 = vld [vmem:[#allocation11 + $0x1330] sm:$0xff] }
 0x2f6   : > { %6626 = vmatpush1.bf16.msra.mxu1 %v6625_v29  ;;  %6500 = vmatprep.subr.bf16.mxu0 %v6499_v43  ;;  %v6515_v29 = vpack.c.bf16 %v3191_v27, %v3187_v26  ;;  %v3186_v43 = vld [vmem:[#allocation11 + $0x1140] sm:$0xff]  ;;  %v3221_v26 = vld [vmem:[#allocation11 + $0x1258] sm:$0xff] }
 0x2f7   : > { %2780 = vmatmul.mubr.f32.gmra.mrb[14].mxu0 %v7237_v34  ;;  %6628 = vmatprep.subr.bf16.mxu1 %v6627_v57  ;;  %v3064_v57 = vrot.slane %v3013_v0, 2  ;;  %v3225_v27 = vld [vmem:[#allocation11 + $0x1278] sm:$0xff] }
 0x2f8   : > { %2982 = vmatmul.mubr.f32.gmra.mrb[14].mxu1 %v7237_v34  ;;  %2785 = vmatprep.mubr.f32.mxu0 %v1533_v49  ;;  %v3196_v34 = vld [vmem:[#allocation11 + $0x1190] sm:$0xff] }
 0x2f9   : > { %2987 = vmatprep.mubr.f32.mxu1 %v1533_v49  ;;  %6502 = vmatpush1.bf16.msra.mxu0 %v6501_v7  ;;  %v3201_v49 = vld [vmem:[#allocation11 + $0x11b8] sm:$0xff]  ;;  %v6517_v7 = vpack.c.bf16 %v3190_v44, %v3186_v43  ;;  %v3224_v43 = vld [vmem:[#allocation11 + $0x1270] sm:$0xff]  ;;  %v3227_v44 = vld [vmem:[#allocation11 + $0x1288] sm:$0xff] }
 0x2fa   : > { %6630 = vmatpush1.bf16.msra.mxu1 %v6629_v17  ;;  %6504 = vmatprep.subr.bf16.mxu0 %v6503_v25  ;;  %v3065_v17 = vrot.slane %v8155_v53, 2  ;;  %v6645_v25 = vpack.c.bf16 %v3192_v16, %v3188_v42  ;;  %v6647_v39 = vpack.c.bf16 %v3201_v49, %v3197_v28  ;;  %v3231_v42 = vld [vmem:[#allocation11 + $0x12a8] sm:$0xff]  ;;  %v3230_v28 = vld [vmem:[#allocation11 + $0x12a0] sm:$0xff]  ;;  %v3228_v49 = vld [vmem:[#allocation11 + $0x1290] sm:$0xff] }
 0x2fb   : > { %2786 = vmatmul.mubr.f32.gmra.mrb[16].mxu0 %v1532_v37  ;;  %6632 = vmatprep.subr.bf16.mxu1 %v6631_v35  ;;  %v7241_v35 = vld [vmem:[#allocation2 + $0xf0] sm:$0xff]  ;;  %v6535_v20 = vpack.c.bf16 %v3231_v42, %v3227_v44  ;;  %v3260_v42 = vld [vmem:[#allocation11 + $0x1390] sm:$0xff] }
 0x2fc   : > { %2988 = vmatmul.mubr.f32.gmra.mrb[16].mxu1 %v1532_v37  ;;  %2791 = vmatprep.mubr.f32.mxu0 %v7238_v58  ;;  %v3066_v38 = vsel %vm3060_vm12, %v3064_v57, %v3065_v17  ;;  %v3205_v37 = vld [vmem:[#allocation11 + $0x11d8] sm:$0xff]  ;;  %v3262_v44 = vld [vmem:[#allocation11 + $0x13a0] sm:$0xff] }
 0x2fd   : > { %2993 = vmatprep.mubr.f32.mxu1 %v7238_v58  ;;  %6506 = vmatpush1.bf16.msra.mxu0 %v6505_v47  ;;  %v3209_v47 = vld [vmem:[#allocation11 + $0x11f8] sm:$0xff]  ;;  %v3215_v58 = vld [vmem:[#allocation11 + $0x1228] sm:$0xff] }
 0x2fe   : > { %6634 = vmatpush1.bf16.msra.mxu1 %v6633_v50  ;;  %6508 = vmatprep.subr.bf16.mxu0 %v6507_v52  ;;  %v6521_v50 = vpack.c.bf16 %v3198_v33, %v3194_v32  ;;  %v6649_v52 = vpack.c.bf16 %v3200_v40, %v3196_v34  ;;  %v6651_v55 = vpack.c.bf16 %v3209_v47, %v3205_v37  ;;  %v3233_v57 = vld [vmem:[#allocation11 + $0x12b8] sm:$0xff]  ;;  %v3239_v32 = vld [vmem:[#allocation11 + $0x12e8] sm:$0xff]  ;;  %v3234_v40 = vld [vmem:[#allocation11 + $0x12c0] sm:$0xff] }
 0x2ff   : > { %2792 = vmatmul.mubr.f32.gmra.mrb[18].mxu0 %v7239_v14  ;;  %6636 = vmatprep.subr.bf16.mxu1 %v6635_v54  ;;  %v3204_v54 = vld [vmem:[#allocation11 + $0x11d0] sm:$0xff]  ;;  %v3237_v33 = vld [vmem:[#allocation11 + $0x12d8] sm:$0xff] }
 0x300   : > { %2994 = vmatmul.mubr.f32.gmra.mrb[18].mxu1 %v7239_v14  ;;  %2797 = vmatprep.mubr.f32.mxu0 %v1541_v61  ;;  %v3216_v14 = vld [vmem:[#allocation11 + $0x1230] sm:$0xff]  ;;  %v3241_v34 = vld [vmem:[#allocation11 + $0x12f8] sm:$0xff] }
 0x301   : > { %2999 = vmatprep.mubr.f32.mxu1 %v1541_v61  ;;  %6510 = vmatpush1.bf16.msra.mxu0 %v6509_v62  ;;  %v6525_v61 = vpack.c.bf16 %v3206_v48, %v3202_v51  ;;  %v6653_v62 = vpack.c.bf16 %v3208_v36, %v3204_v54  ;;  %v6657_v30 = vpack.c.bf16 %v3216_v14, %v3212_v11  ;;  %v3240_v47 = vld [vmem:[#allocation11 + $0x12f0] sm:$0xff]  ;;  %v3249_v51 = vld [vmem:[#allocation11 + $0x1338] sm:$0xff]  ;;  %v3242_v36 = vld [vmem:[#allocation11 + $0x1300] sm:$0xff] }
 0x302   : > { %6638 = vmatpush1.bf16.msra.mxu1 %v6637_v10  ;;  %6512 = vmatprep.subr.bf16.mxu0 %v6511_v4  ;;  %v6527_v10 = vpack.c.bf16 %v3215_v58, %v3211_v56  ;;  %v3210_v4 = vld [vmem:[#allocation11 + $0x1200] sm:$0xff]  ;;  %v6667_v37 = vpack.c.bf16 %v3241_v34, %v3237_v33  ;;  %v6541_v48 = vpack.c.bf16 %v3238_v41, %v3234_v40  ;;  %v3244_v58 = vld [vmem:[#allocation11 + $0x1310] sm:$0xff]  ;;  %v3277_v40 = vld [vmem:[#allocation11 + $0x1418] sm:$0xff] }
 0x303   : > { %2798 = vmatmul.mubr.f32.gmra.mrb[20].mxu0 %v1540_v3  ;;  %6640 = vmatprep.subr.bf16.mxu1 %v6639_v15  ;;  %v3219_v15 = vld [vmem:[#allocation11 + $0x1248] sm:$0xff]  ;;  %v6529_v12 = vpack.c.bf16 %v3214_v63, %v3210_v4  ;;  %v6669_v54 = vpack.c.bf16 %v3240_v47, %v3236_v45  ;;  %v3246_v56 = vld [vmem:[#allocation11 + $0x1320] sm:$0xff]  ;;  %v3257_v4 = vld [vmem:[#allocation11 + $0x1378] sm:$0xff]  ;;  %v6673_v11 = vpack.c.bf16 %v3248_v60, %v3244_v58 }
 0x304   : > { %3000 = vmatmul.mubr.f32.gmra.mrb[20].mxu1 %v1540_v3  ;;  %2803 = vmatprep.mubr.f32.mxu0 %v7240_v24  ;;  %v6531_v0 = vpack.c.bf16 %v3223_v22, %v3219_v15  ;;  %v3218_v3 = vld [vmem:[#allocation11 + $0x1240] sm:$0xff]  ;;  %v6545_v63 = vpack.c.bf16 %v3246_v56, %v3242_v36  ;;  %v3252_v22 = vld [vmem:[#allocation11 + $0x1350] sm:$0xff]  ;;  %v3281_v41 = vld [vmem:[#allocation11 + $0x1438] sm:$0xff] }
 0x305   : > { %3005 = vmatprep.mubr.f32.mxu1 %v7240_v24  ;;  %6514 = vmatpush1.bf16.msra.mxu0 %v6513_v18  ;;  %v3222_v18 = vld [vmem:[#allocation11 + $0x1260] sm:$0xff]  ;;  %v3272_v34 = vld [vmem:[#allocation11 + $0x13f0] sm:$0xff]  ;;  %v3283_v58 = vld [vmem:[#allocation11 + $0x1448] sm:$0xff] }
 0x306   : > { %6642 = vmatpush1.bf16.msra.mxu1 %v6641_v19  ;;  %6516 = vmatprep.subr.bf16.mxu0 %v6515_v29  ;;  %v3220_v19 = vld [vmem:[#allocation11 + $0x1250] sm:$0xff]  ;;  %v6659_v29 = vpack.c.bf16 %v3225_v27, %v3221_v26  ;;  %v6533_v16 = vpack.c.bf16 %v3222_v18, %v3218_v3  ;;  %v3226_v24 = vld [vmem:[#allocation11 + $0x1280] sm:$0xff]  ;;  %v3265_v3 = vld [vmem:[#allocation11 + $0x13b8] sm:$0xff] }
 0x307   : > { %2804 = vmatmul.mubr.f32.gmra.mrb[22].mxu0 %v7241_v35  ;;  %6644 = vmatprep.subr.bf16.mxu1 %v6643_v21  ;;  %v3229_v21 = vld [vmem:[#allocation11 + $0x1298] sm:$0xff]  ;;  %v6661_v46 = vpack.c.bf16 %v3224_v43, %v3220_v19  ;;  %v3250_v14 = vld [vmem:[#allocation11 + $0x1340] sm:$0xff]  ;;  %v3256_v27 = vld [vmem:[#allocation11 + $0x1370] sm:$0xff] }
 0x308   : > { %3006 = vmatmul.mubr.f32.gmra.mrb[22].mxu1 %v7241_v35  ;;  %3466 = vmatprep.mubr.f32.mxu0 %v3066_v38  ;;  %v6537_v35 = vpack.c.bf16 %v3230_v28, %v3226_v24  ;;  %v3254_v15 = vld [vmem:[#allocation11 + $0x1360] sm:$0xff]  ;;  %v6677_v19 = vpack.c.bf16 %v3256_v27, %v3252_v22  ;;  %v3273_v24 = vld [vmem:[#allocation11 + $0x13f8] sm:$0xff]  ;;  %v3280_v56 = vld [vmem:[#allocation11 + $0x1430] sm:$0xff] }
 0x309   : > { %6518 = vmatpush1.bf16.msra.mxu0 %v6517_v7  ;;  %3668 = vmatprep.mubr.f32.mxu1 %v3066_v38  ;;  %v6663_v7 = vpack.c.bf16 %v3233_v57, %v3229_v21  ;;  %v6549_v18 = vpack.c.bf16 %v3254_v15, %v3250_v14  ;;  %v3258_v43 = vld [vmem:[#allocation11 + $0x1380] sm:$0xff]  ;;  %v3264_v57 = vld [vmem:[#allocation11 + $0x13b0] sm:$0xff] }
 0x30a   : > { %6646 = vmatpush1.bf16.msra.mxu1 %v6645_v25  ;;  %6520 = vmatprep.subr.bf16.mxu0 %v6519_v31  ;;  %v3232_v25 = vld [vmem:[#allocation11 + $0x12b0] sm:$0xff]  ;;  %v3235_v31 = vld [vmem:[#allocation11 + $0x12c8] sm:$0xff]  ;;  %v6553_v28 = vpack.c.bf16 %v3262_v44, %v3258_v43  ;;  %v3286_v27 = vld [vmem:[#allocation11 + $0x1460] sm:$0xff] }
 0x30b   : > { %6648 = vmatprep.subr.bf16.mxu1 %v6647_v39  ;;  %v6665_v38 = vpack.c.bf16 %v3232_v25, %v3228_v49  ;;  %v6539_v39 = vpack.c.bf16 %v3239_v32, %v3235_v31  ;;  %v6681_v49 = vpack.c.bf16 %v3264_v57, %v3260_v42  ;;  %v3266_v25 = vld [vmem:[#allocation11 + $0x13c0] sm:$0xff]  ;;  %v3268_v32 = vld [vmem:[#allocation11 + $0x13d0] sm:$0xff]  ;;  %v3293_v43 = vld [vmem:[#allocation11 + $0x1498] sm:$0xff] }
 0x30c   : > { %v3270_v31 = vld [vmem:[#allocation11 + $0x13e0] sm:$0xff]  ;;  %v6685_v47 = vpack.c.bf16 %v3272_v34, %v3268_v32  ;;  %v7242_v60 = vld [vmem:[#allocation2 + $0x20] sm:$0xff]  ;;  %v3297_v44 = vld [vmem:[#allocation11 + $0x14b8] sm:$0xff] }
 0x30d   : > { %6522 = vmatpush1.bf16.msra.mxu0 %v6521_v50  ;;  %v3243_v50 = vld [vmem:[#allocation11 + $0x1308] sm:$0xff]  ;;  %v6557_v45 = vpack.c.bf16 %v3270_v31, %v3266_v25  ;;  %v3025_v42 = vld [vmem:[#allocation2 + $0xa8] sm:$0x3]  ;;  %v6695_v31 = vpack.c.bf16 %v3297_v44, %v3293_v43 }
 0x30e   : > { %6650 = vmatpush1.bf16.msra.mxu1 %v6649_v52  ;;  %6524 = vmatprep.subr.bf16.mxu0 %v6523_v9  ;;  %v3247_v52 = vld [vmem:[#allocation11 + $0x1328] sm:$0xff]  ;;  %v3245_v9 = vld [vmem:[#allocation11 + $0x1318] sm:$0xff]  ;;  %v3095_v32 = vrot.slane %v3025_v42, 2 }
 0x30f   : > { %6652 = vmatprep.subr.bf16.mxu1 %v6651_v55  ;;  %v6543_v55 = vpack.c.bf16 %v3247_v52, %v3243_v50  ;;  %v6671_v59 = vpack.c.bf16 %v3249_v51, %v3245_v9  ;;  %v3016_v52 = vld [vmem:[#allocation2 + $0x40] sm:$0x3]  ;;  %v6687_v51 = vpack.c.bf16 %v3281_v41, %v3277_v40  ;;  %v3301_v40 = vld [vmem:[#allocation11 + $0x14d8] sm:$0xff] }
 0x310   : > { %v3073_v15 = vrot.slane %v3016_v52, 2  ;;  %v3299_v34 = vld [vmem:[#allocation11 + $0x14c8] sm:$0xff]  ;;  %v3305_v41 = vld [vmem:[#allocation11 + $0x14f8] sm:$0xff] }
 0x311   : > { %6526 = vmatpush1.bf16.msra.mxu0 %v6525_v61  ;;  %v3251_v61 = vld [vmem:[#allocation11 + $0x1348] sm:$0xff] }
 0x312   : > { %6654 = vmatpush1.bf16.msra.mxu1 %v6653_v62  ;;  %6528 = vmatprep.subr.bf16.mxu0 %v6527_v10  ;;  %v3255_v62 = vld [vmem:[#allocation11 + $0x1368] sm:$0xff]  ;;  %v3253_v10 = vld [vmem:[#allocation11 + $0x1358] sm:$0xff] }
 0x313   : > { %6656 = vmatprep.subr.bf16.mxu1 %v6655_v13  ;;  %v6547_v13 = vpack.c.bf16 %v3255_v62, %v3251_v61  ;;  %v6675_v26 = vpack.c.bf16 %v3257_v4, %v3253_v10  ;;  %v3062_v61 = vrot.slane %v7242_v60, 2  ;;  %v3285_v62 = vld [vmem:[#allocation11 + $0x1458] sm:$0xff]  ;;  %v3307_v60 = vld [vmem:[#allocation11 + $0x1508] sm:$0xff] }
 0x314   : > { %v3289_v10 = vld [vmem:[#allocation11 + $0x1478] sm:$0xff]  ;;  %v3315_v43 = vld [vmem:[#allocation11 + $0x1548] sm:$0xff] }
 0x315   : > { %6530 = vmatpush1.bf16.msra.mxu0 %v6529_v12  ;;  %v3259_v12 = vld [vmem:[#allocation11 + $0x1388] sm:$0xff]  ;;  %v3021_v4 = vld [vmem:[#allocation2 + $0x68] sm:$0xfc]  ;;  %v3074_v53 = vsel %vm3060_vm12, %v3062_v61, %v3073_v15 }
 0x316   : > { %6658 = vmatpush1.bf16.msra.mxu1 %v6657_v30  ;;  %6532 = vmatprep.subr.bf16.mxu0 %v6531_v0  ;;  %v3263_v30 = vld [vmem:[#allocation11 + $0x13a8] sm:$0xff]  ;;  %v3261_v0 = vld [vmem:[#allocation11 + $0x1398] sm:$0xff] }
 0x317   : > { %6660 = vmatprep.subr.bf16.mxu1 %v6659_v29  ;;  %v6551_v29 = vpack.c.bf16 %v3263_v30, %v3259_v12  ;;  %v6679_v21 = vpack.c.bf16 %v3265_v3, %v3261_v0  ;;  %v3284_v12 = vld [vmem:[#allocation11 + $0x1450] sm:$0xff]  ;;  %v6691_v0 = vpack.c.bf16 %v3289_v10, %v3285_v62  ;;  %v3084_v3 = vrot.slane %v3021_v4, 2  ;;  %v3309_v62 = vld [vmem:[#allocation11 + $0x1518] sm:$0xff]  ;;  %v3319_v44 = vld [vmem:[#allocation11 + $0x1568] sm:$0xff] }
 0x318   : > { %v3313_v10 = vld [vmem:[#allocation11 + $0x1538] sm:$0xff]  ;;  %v3033_v4 = vld [vmem:[#allocation2 + $0x108] sm:$0x3]  ;;  %v7246_v42 = vld [vmem:[#allocation2 + $0xe0] sm:$0xff] }
 0x319   : > { %6534 = vmatpush1.bf16.msra.mxu0 %v6533_v16  ;;  %v3267_v16 = vld [vmem:[#allocation11 + $0x13c8] sm:$0xff] }
 0x31a   : > { %6662 = vmatpush1.bf16.msra.mxu1 %v6661_v46  ;;  %6536 = vmatprep.subr.bf16.mxu0 %v6535_v20  ;;  %v3271_v46 = vld [vmem:[#allocation11 + $0x13e8] sm:$0xff]  ;;  %v3269_v20 = vld [vmem:[#allocation11 + $0x13d8] sm:$0xff] }
 0x31b   : > { %6664 = vmatprep.subr.bf16.mxu1 %v6663_v7  ;;  %v6555_v7 = vpack.c.bf16 %v3271_v46, %v3267_v16  ;;  %v6683_v33 = vpack.c.bf16 %v3273_v24, %v3269_v20  ;;  %v3024_v46 = vld [vmem:[#allocation2 + $0xa0] sm:$0x3] }
 0x31d   : > { %6538 = vmatpush1.bf16.msra.mxu0 %v6537_v35  ;;  %v3275_v35 = vld [vmem:[#allocation11 + $0x1408] sm:$0xff] }
 0x31e   : > { %6666 = vmatpush1.bf16.msra.mxu1 %v6665_v38  ;;  %6540 = vmatprep.subr.bf16.mxu0 %v6539_v39  ;;  %v3279_v38 = vld [vmem:[#allocation11 + $0x1428] sm:$0xff] }
 0x31f   : > { %6668 = vmatprep.subr.bf16.mxu1 %v6667_v37  ;;  %v3012_v39 = vld [vmem:[#allocation2] sm:$0xfc]  ;;  %v3017_v37 = vld [vmem:[#allocation2 + $0x48] sm:$0x3]  ;;  %v6559_v50 = vpack.c.bf16 %v3279_v38, %v3275_v35 }
 0x320   : > { %v3061_v9 = vrot.slane %v3012_v39, 2  ;;  %v3075_v36 = vrot.slane %v3017_v37, 2  ;;  %v3303_v35 = vld [vmem:[#allocation11 + $0x14e8] sm:$0xff] }
 0x321   : > { %6542 = vmatpush1.bf16.msra.mxu0 %v6541_v48  ;;  %v3274_v48 = vld [vmem:[#allocation11 + $0x1400] sm:$0xff]  ;;  %v7244_v38 = vld [vmem:[#allocation2 + $0x80] sm:$0xff] }
 0x322   : > { %6670 = vmatpush1.bf16.msra.mxu1 %v6669_v54  ;;  %6544 = vmatprep.subr.bf16.mxu0 %v6543_v55  ;;  %v3278_v54 = vld [vmem:[#allocation11 + $0x1420] sm:$0xff]  ;;  %v3276_v55 = vld [vmem:[#allocation11 + $0x1410] sm:$0xff]  ;;  %v3076_v30 = vsel %vm3060_vm12, %v3065_v17, %v3075_v36  ;;  %v3082_v39 = vrot.slane %v7244_v38, 2  ;;  %v3327_v38 = vld [vmem:[#allocation11 + $0x15a8] sm:$0xff] }
 0x323   : > { %6672 = vmatprep.subr.bf16.mxu1 %v6671_v59  ;;  %v3287_v59 = vld [vmem:[#allocation11 + $0x1468] sm:$0xff]  ;;  %v6689_v14 = vpack.c.bf16 %v3280_v56, %v3276_v55  ;;  %v3300_v55 = vld [vmem:[#allocation11 + $0x14d0] sm:$0xff]  ;;  %v6699_v56 = vpack.c.bf16 %v3305_v41, %v3301_v40  ;;  %v3329_v40 = vld [vmem:[#allocation11 + $0x15b8] sm:$0xff] }
 0x324   : > { %v6563_v22 = vpack.c.bf16 %v3287_v59, %v3283_v58  ;;  %v3304_v59 = vld [vmem:[#allocation11 + $0x14f0] sm:$0xff] }
 0x325   : > { %6546 = vmatpush1.bf16.msra.mxu0 %v6545_v63  ;;  %v6561_v63 = vpack.c.bf16 %v3278_v54, %v3274_v48  ;;  %v3298_v48 = vld [vmem:[#allocation11 + $0x14c0] sm:$0xff] }
 0x326   : > { %6674 = vmatpush1.bf16.msra.mxu1 %v6673_v11  ;;  %6548 = vmatprep.subr.bf16.mxu0 %v6547_v13  ;;  %v3020_v11 = vld [vmem:[#allocation2 + $0x60] sm:$0xfc]  ;;  %v3063_v13 = vsel %vm3060_vm12, %v3061_v9, %v3062_v61  ;;  %v3093_v9 = vrot.slane %v3024_v46, 2  ;;  %v3302_v54 = vld [vmem:[#allocation11 + $0x14e0] sm:$0xff] }
 0x327   : > { %6676 = vmatprep.subr.bf16.mxu1 %v6675_v26  ;;  %v3282_v26 = vld [vmem:[#allocation11 + $0x1440] sm:$0xff]  ;;  %v3081_v20 = vrot.slane %v3020_v11, 2  ;;  %v3311_v61 = vld [vmem:[#allocation11 + $0x1528] sm:$0xff] }
 0x328   : > { %v6565_v16 = vpack.c.bf16 %v3286_v27, %v3282_v26  ;;  %v3094_v15 = vsel %vm3060_vm12, %v3082_v39, %v3093_v9  ;;  %v6575_v27 = vpack.c.bf16 %v3311_v61, %v3307_v60  ;;  %v3015_v46 = vld [vmem:[#allocation2 + $0x18] sm:$0xfc] }
 0x329   : > { %6550 = vmatpush1.bf16.msra.mxu0 %v6549_v18  ;;  %v3288_v18 = vld [vmem:[#allocation11 + $0x1470] sm:$0xff]  ;;  %v3326_v9 = vld [vmem:[#allocation11 + $0x15a0] sm:$0xff] }
 0x32a   : > { %6678 = vmatpush1.bf16.msra.mxu1 %v6677_v19  ;;  %6552 = vmatprep.subr.bf16.mxu0 %v6551_v29  ;;  %v3291_v19 = vld [vmem:[#allocation11 + $0x1488] sm:$0xff]  ;;  %v6693_v17 = vpack.c.bf16 %v3288_v18, %v3284_v12  ;;  %v3306_v12 = vld [vmem:[#allocation11 + $0x1500] sm:$0xff]  ;;  %v6703_v18 = vpack.c.bf16 %v3313_v10, %v3309_v62 }
 0x32b   : > { %6680 = vmatprep.subr.bf16.mxu1 %v6679_v21  ;;  %v3295_v29 = vld [vmem:[#allocation11 + $0x14a8] sm:$0xff]  ;;  %v7243_v21 = vld [vmem:[#allocation2 + $0x88] sm:$0xff]  ;;  %v3330_v10 = vld [vmem:[#allocation11 + $0x15c0] sm:$0xff] }
 0x32c   : > { %v3085_v57 = vrot.slane %v7243_v21, 2  ;;  %v6567_v24 = vpack.c.bf16 %v3295_v29, %v3291_v19  ;;  %v3115_v19 = vrot.slane %v3033_v4, 2  ;;  %v3312_v29 = vld [vmem:[#allocation11 + $0x1530] sm:$0xff]  ;;  %v3102_v21 = vrot.slane %v7246_v42, 2  ;;  %v3334_v4 = vld [vmem:[#allocation11 + $0x15e0] sm:$0xff]  ;;  %v3349_v42 = vld [vmem:[#allocation11 + $0x1658] sm:$0xff] }
 0x32d   : > { %6554 = vmatpush1.bf16.msra.mxu0 %v6553_v28  ;;  %v3290_v28 = vld [vmem:[#allocation11 + $0x1480] sm:$0xff] }
 0x32e   : > { %6682 = vmatpush1.bf16.msra.mxu1 %v6681_v49  ;;  %6556 = vmatprep.subr.bf16.mxu0 %v6555_v7  ;;  %v3294_v49 = vld [vmem:[#allocation11 + $0x14a0] sm:$0xff]  ;;  %v3292_v7 = vld [vmem:[#allocation11 + $0x1490] sm:$0xff]  ;;  %v3086_v25 = vsel %vm3060_vm12, %v3084_v3, %v3085_v57  ;;  %v3096_v36 = vsel %vm3060_vm12, %v3085_v57, %v3095_v32  ;;  %v3317_v57 = vld [vmem:[#allocation11 + $0x1558] sm:$0xff] }
 0x32f   : > { %6684 = vmatprep.subr.bf16.mxu1 %v6683_v33  ;;  %v3296_v33 = vld [vmem:[#allocation11 + $0x14b0] sm:$0xff]  ;;  %v6569_v37 = vpack.c.bf16 %v3294_v49, %v3290_v28  ;;  %v6579_v28 = vpack.c.bf16 %v3319_v44, %v3315_v43  ;;  %v3314_v49 = vld [vmem:[#allocation11 + $0x1540] sm:$0xff]  ;;  %v3347_v43 = vld [vmem:[#allocation11 + $0x1648] sm:$0xff] }
 0x330   : > { %v6697_v52 = vpack.c.bf16 %v3296_v33, %v3292_v7  ;;  %v3318_v7 = vld [vmem:[#allocation11 + $0x1560] sm:$0xff]  ;;  %v3070_v33 = vrot.slane %v3015_v46, 2  ;;  %v3351_v44 = vld [vmem:[#allocation11 + $0x1668] sm:$0xff] }
 0x331   : > { %6558 = vmatpush1.bf16.msra.mxu0 %v6557_v45  ;;  %v3029_v45 = vld [vmem:[#allocation2 + $0xc8] sm:$0xfc]  ;;  %v6581_v41 = vpack.c.bf16 %v3318_v7, %v3314_v49  ;;  %v6595_v46 = vpack.c.bf16 %v3351_v44, %v3347_v43  ;;  %v3355_v49 = vld [vmem:[#allocation11 + $0x1688] sm:$0xff] }
 0x332   : > { %6686 = vmatpush1.bf16.msra.mxu1 %v6685_v47  ;;  %6560 = vmatprep.subr.bf16.mxu0 %v6559_v50  ;;  %v3028_v47 = vld [vmem:[#allocation2 + $0xc0] sm:$0xfc]  ;;  %v3083_v50 = vsel %vm3060_vm12, %v3081_v20, %v3082_v39  ;;  %v3104_v58 = vrot.slane %v3029_v45, 2  ;;  %v3325_v39 = vld [vmem:[#allocation11 + $0x1598] sm:$0xff]  ;;  %v3071_v45 = vrot.slane %v8159_v23, 2 }
 0x333   : > { %6688 = vmatprep.subr.bf16.mxu1 %v6687_v51  ;;  %v6571_v51 = vpack.c.bf16 %v3303_v35, %v3299_v34  ;;  %v3101_v26 = vrot.slane %v3028_v47, 2  ;;  %v3320_v34 = vld [vmem:[#allocation11 + $0x1570] sm:$0xff]  ;;  %v3323_v35 = vld [vmem:[#allocation11 + $0x1588] sm:$0xff] }
 0x334   : > { %3467 = vmatmul.mubr.f32.vlgmr.msra.gmra.mrb[12].mxu0 %v3063_v13  ;;  %v3359_v7 = vld [vmem:[#allocation11 + $0x16a8] sm:$0xff]  ;;  %v3380_v43 = vld [vmem:[#allocation11 + $0x1750] sm:$0xff] }
 0x335   : > { %3669 = vmatmul.mubr.f32.vlgmr.msra.gmra.mrb[12].mxu1 %v3063_v13  ;;  %3472 = vmatprep.mubr.f32.mxu0 %v3076_v30  ;;  %v6573_v13 = vpack.c.bf16 %v3302_v54, %v3298_v48  ;;  %v3072_v48 = vsel %vm3060_vm12, %v3070_v33, %v3071_v45  ;;  %v6711_v54 = vpack.c.bf16 %v3329_v40, %v3325_v39  ;;  %v3356_v39 = vld [vmem:[#allocation11 + $0x1690] sm:$0xff] }
 0x336   : > { %6562 = vmatpush1.bf16.msra.mxu0 %v6561_v63  ;;  %3674 = vmatprep.mubr.f32.mxu1 %v3076_v30  ;;  %v7245_v63 = vld [vmem:[#allocation2 + $0xe8] sm:$0xff]  ;;  %v3310_v30 = vld [vmem:[#allocation11 + $0x1520] sm:$0xff] }
 0x337   : > { %6690 = vmatpush1.bf16.msra.mxu1 %v6689_v14  ;;  %6564 = vmatprep.subr.bf16.mxu0 %v6563_v22  ;;  %v3105_v11 = vrot.slane %v7245_v63, 2  ;;  %v3032_v14 = vld [vmem:[#allocation2 + $0x100] sm:$0x3]  ;;  %v6701_v22 = vpack.c.bf16 %v3304_v59, %v3300_v55  ;;  %v3328_v55 = vld [vmem:[#allocation11 + $0x15b0] sm:$0xff]  ;;  %v3337_v59 = vld [vmem:[#allocation11 + $0x15f8] sm:$0xff] }
 0x338   : > { %3473 = vmatmul.mubr.f32.gmra.mrb[14].mxu0 %v3074_v53  ;;  %6692 = vmatprep.subr.bf16.mxu1 %v6691_v0  ;;  %v3308_v0 = vld [vmem:[#allocation11 + $0x1510] sm:$0xff] }
 0x339   : > { %3675 = vmatmul.mubr.f32.gmra.mrb[14].mxu1 %v3074_v53  ;;  %3478 = vmatprep.mubr.f32.mxu0 %v3086_v25  ;;  %v3106_v3 = vsel %vm3060_vm12, %v3104_v58, %v3105_v11  ;;  %v6577_v53 = vpack.c.bf16 %v3310_v30, %v3306_v12  ;;  %v6705_v20 = vpack.c.bf16 %v3312_v29, %v3308_v0  ;;  %v3333_v58 = vld [vmem:[#allocation11 + $0x15d8] sm:$0xff]  ;;  %v3332_v63 = vld [vmem:[#allocation11 + $0x15d0] sm:$0xff]  ;;  %v3338_v0 = vld [vmem:[#allocation11 + $0x1600] sm:$0xff] }
 0x33a   : > { %6566 = vmatpush1.bf16.msra.mxu0 %v6565_v16  ;;  %3680 = vmatprep.mubr.f32.mxu1 %v3086_v25  ;;  %v3321_v16 = vld [vmem:[#allocation11 + $0x1578] sm:$0xff]  ;;  %v3316_v25 = vld [vmem:[#allocation11 + $0x1550] sm:$0xff] }
 0x33b   : > { %6694 = vmatpush1.bf16.msra.mxu1 %v6693_v17  ;;  %6568 = vmatprep.subr.bf16.mxu0 %v6567_v24  ;;  %v3103_v17 = vsel %vm3060_vm12, %v3101_v26, %v3102_v21  ;;  %v3113_v24 = vrot.slane %v3032_v14, 2  ;;  %v6707_v32 = vpack.c.bf16 %v3321_v16, %v3317_v57  ;;  %v6709_v47 = vpack.c.bf16 %v3320_v34, %v3316_v25  ;;  %v3339_v14 = vld [vmem:[#allocation11 + $0x1608] sm:$0xff]  ;;  %v3345_v26 = vld [vmem:[#allocation11 + $0x1638] sm:$0xff]  ;;  %v3344_v29 = vld [vmem:[#allocation11 + $0x1630] sm:$0xff] }
 0x33c   : > { %3479 = vmatmul.mubr.f32.gmra.mrb[16].mxu0 %v3083_v50  ;;  %6696 = vmatprep.subr.bf16.mxu1 %v6695_v31  ;;  %v3116_v31 = vsel %vm3060_vm12, %v3105_v11, %v3115_v19  ;;  %v6715_v11 = vpack.c.bf16 %v3337_v59, %v3333_v58  ;;  %v3357_v25 = vld [vmem:[#allocation11 + $0x1698] sm:$0xff]  ;;  %v6599_v34 = vpack.c.bf16 %v3359_v7, %v3355_v49  ;;  %v3368_v58 = vld [vmem:[#allocation11 + $0x16f0] sm:$0xff]  ;;  %v3371_v59 = vld [vmem:[#allocation11 + $0x1708] sm:$0xff] }
 0x33d   : > { %3681 = vmatmul.mubr.f32.gmra.mrb[16].mxu1 %v3083_v50  ;;  %3484 = vmatprep.mubr.f32.mxu0 %v3096_v36  ;;  %v6583_v50 = vpack.c.bf16 %v3327_v38, %v3323_v35  ;;  %v3354_v35 = vld [vmem:[#allocation11 + $0x1680] sm:$0xff]  ;;  %v3388_v49 = vld [vmem:[#allocation11 + $0x1790] sm:$0xff] }
 0x33e   : > { %6570 = vmatpush1.bf16.msra.mxu0 %v6569_v37  ;;  %3686 = vmatprep.mubr.f32.mxu1 %v3096_v36  ;;  %v3114_v37 = vsel %vm3060_vm12, %v3102_v21, %v3113_v24  ;;  %v3331_v36 = vld [vmem:[#allocation11 + $0x15c8] sm:$0xff]  ;;  %v3353_v21 = vld [vmem:[#allocation11 + $0x1678] sm:$0xff]  ;;  %v3358_v38 = vld [vmem:[#allocation11 + $0x16a0] sm:$0xff] }
 0x33f   : > { %6698 = vmatpush1.bf16.msra.mxu1 %v6697_v52  ;;  %6572 = vmatprep.subr.bf16.mxu0 %v6571_v51  ;;  %v3322_v52 = vld [vmem:[#allocation11 + $0x1580] sm:$0xff]  ;;  %v3324_v51 = vld [vmem:[#allocation11 + $0x1590] sm:$0xff]  ;;  %v6723_v24 = vpack.c.bf16 %v3353_v21, %v3349_v42  ;;  %v3387_v21 = vld [vmem:[#allocation11 + $0x1788] sm:$0xff] }
 0x340   : > { %3485 = vmatmul.mubr.f32.gmra.mrb[18].mxu0 %v3094_v15  ;;  %6700 = vmatprep.subr.bf16.mxu1 %v6699_v56  ;;  %v3335_v56 = vld [vmem:[#allocation11 + $0x15e8] sm:$0xff]  ;;  %v6585_v60 = vpack.c.bf16 %v3326_v9, %v3322_v52  ;;  %v6713_v61 = vpack.c.bf16 %v3328_v55, %v3324_v51  ;;  %v3369_v52 = vld [vmem:[#allocation11 + $0x16f8] sm:$0xff]  ;;  %v6601_v9 = vpack.c.bf16 %v3358_v38, %v3354_v35  ;;  %v3366_v55 = vld [vmem:[#allocation11 + $0x16e0] sm:$0xff] }
 0x341   : > { %3687 = vmatmul.mubr.f32.gmra.mrb[18].mxu1 %v3094_v15  ;;  %3490 = vmatprep.mubr.f32.mxu0 %v3106_v3  ;;  %v6587_v62 = vpack.c.bf16 %v3335_v56, %v3331_v36  ;;  %v3343_v15 = vld [vmem:[#allocation11 + $0x1628] sm:$0xff]  ;;  %v3364_v36 = vld [vmem:[#allocation11 + $0x16d0] sm:$0xff] }
 0x342   : > { %6574 = vmatpush1.bf16.msra.mxu0 %v6573_v13  ;;  %3692 = vmatprep.mubr.f32.mxu1 %v3106_v3  ;;  %v3336_v13 = vld [vmem:[#allocation11 + $0x15f0] sm:$0xff]  ;;  %v6591_v30 = vpack.c.bf16 %v3343_v15, %v3339_v14  ;;  %v3342_v3 = vld [vmem:[#allocation11 + $0x1620] sm:$0xff] }
 0x343   : > { %6702 = vmatpush1.bf16.msra.mxu1 %v6701_v22  ;;  %6576 = vmatprep.subr.bf16.mxu0 %v6575_v27  ;;  %v3341_v22 = vld [vmem:[#allocation11 + $0x1618] sm:$0xff]  ;;  %v6589_v27 = vpack.c.bf16 %v3334_v4, %v3330_v10  ;;  %v6717_v12 = vpack.c.bf16 %v3336_v13, %v3332_v63  ;;  %v6593_v57 = vpack.c.bf16 %v3342_v3, %v3338_v0  ;;  %v3374_v13 = vld [vmem:[#allocation11 + $0x1720] sm:$0xff]  ;;  %v3372_v14 = vld [vmem:[#allocation11 + $0x1710] sm:$0xff] }
 0x344   : > { %3491 = vmatmul.mubr.f32.gmra.mrb[20].mxu0 %v3103_v17  ;;  %6704 = vmatprep.subr.bf16.mxu1 %v6703_v18  ;;  %v3340_v18 = vld [vmem:[#allocation11 + $0x1610] sm:$0xff]  ;;  %v6719_v19 = vpack.c.bf16 %v3345_v26, %v3341_v22  ;;  %v6733_v4 = vpack.c.bf16 %v3368_v58, %v3364_v36  ;;  %v3379_v26 = vld [vmem:[#allocation11 + $0x1748] sm:$0xff]  ;;  %v3018_v58 = vld [vmem:[#allocation2 + $0x50] sm:$0x3] }
 0x345   : > { %3693 = vmatmul.mubr.f32.gmra.mrb[20].mxu1 %v3103_v17  ;;  %3496 = vmatprep.mubr.f32.mxu0 %v3116_v31  ;;  %v6721_v16 = vpack.c.bf16 %v3344_v29, %v3340_v18  ;;  %v3350_v17 = vld [vmem:[#allocation11 + $0x1660] sm:$0xff]  ;;  %v3376_v22 = vld [vmem:[#allocation11 + $0x1730] sm:$0xff] }
 0x346   : > { %6578 = vmatpush1.bf16.msra.mxu0 %v6577_v53  ;;  %3698 = vmatprep.mubr.f32.mxu1 %v3116_v31  ;;  %v3346_v53 = vld [vmem:[#allocation11 + $0x1640] sm:$0xff]  ;;  %v3361_v31 = vld [vmem:[#allocation11 + $0x16b8] sm:$0xff]  ;;  %v6737_v3 = vpack.c.bf16 %v3376_v22, %v3372_v14  ;;  %v3384_v42 = vld [vmem:[#allocation11 + $0x1770] sm:$0xff] }
 0x347   : > { %6706 = vmatpush1.bf16.msra.mxu1 %v6705_v20  ;;  %6580 = vmatprep.subr.bf16.mxu0 %v6579_v28  ;;  %v3348_v20 = vld [vmem:[#allocation11 + $0x1650] sm:$0xff]  ;;  %v6727_v40 = vpack.c.bf16 %v3361_v31, %v3357_v25  ;;  %v3382_v29 = vld [vmem:[#allocation11 + $0x1760] sm:$0xff]  ;;  %v3395_v31 = vld [vmem:[#allocation11 + $0x17c8] sm:$0xff] }
 0x348   : > { %3497 = vmatmul.mubr.f32.gmra.mrb[22].mxu0 %v3114_v37  ;;  %6708 = vmatprep.subr.bf16.mxu1 %v6707_v32  ;;  %v3352_v28 = vld [vmem:[#allocation11 + $0x1670] sm:$0xff]  ;;  %v6597_v32 = vpack.c.bf16 %v3350_v17, %v3346_v53  ;;  %v6741_v17 = vpack.c.bf16 %v3384_v42, %v3380_v43  ;;  %v5373_v14 = vld [vmem:[%s9147_s5 + $0x290] sm:$0xff]  ;;  %v5358_v43 = vld [vmem:[%s9147_s5 + $0x218] sm:$0xff] }
 0x349   : > { %3699 = vmatmul.mubr.f32.gmra.mrb[22].mxu1 %v3114_v37  ;;  %3567 = vmatprep.mubr.f32.mxu0 %v3072_v48  ;;  %v6725_v33 = vpack.c.bf16 %v3352_v28, %v3348_v20  ;;  %v3363_v37 = vld [vmem:[#allocation11 + $0x16c8] sm:$0xff]  ;;  %v3390_v28 = vld [vmem:[#allocation11 + $0x17a0] sm:$0xff]  ;;  %v3392_v25 = vld [vmem:[#allocation11 + $0x17b0] sm:$0xff] }
 0x34a   : > { %6582 = vmatpush1.bf16.msra.mxu0 %v6581_v41  ;;  %3769 = vmatprep.mubr.f32.mxu1 %v3072_v48  ;;  %v3360_v41 = vld [vmem:[#allocation11 + $0x16b0] sm:$0xff]  ;;  %v6745_v38 = vpack.c.bf16 %v3392_v25, %v3388_v49 }
 0x34b   : > { %6710 = vmatpush1.bf16.msra.mxu1 %v6709_v47  ;;  %6584 = vmatprep.subr.bf16.mxu0 %v6583_v50  ;;  %v3367_v47 = vld [vmem:[#allocation11 + $0x16e8] sm:$0xff]  ;;  %v3365_v50 = vld [vmem:[#allocation11 + $0x16d8] sm:$0xff]  ;;  %v6729_v51 = vpack.c.bf16 %v3360_v41, %v3356_v39  ;;  %v3398_v41 = vld [vmem:[#allocation11 + $0x17e0] sm:$0xff] }
 0x34c   : > { %6712 = vmatprep.subr.bf16.mxu1 %v6711_v54  ;;  %v6603_v48 = vpack.c.bf16 %v3367_v47, %v3363_v37  ;;  %v3362_v54 = vld [vmem:[#allocation11 + $0x16c0] sm:$0xff]  ;;  %v6731_v56 = vpack.c.bf16 %v3369_v52, %v3365_v50  ;;  %v3396_v37 = vld [vmem:[#allocation11 + $0x17d0] sm:$0xff] }
 0x34d   : > { %v6605_v10 = vpack.c.bf16 %v3366_v55, %v3362_v54  ;;  %v3400_v50 = vld [vmem:[#allocation11 + $0x17f0] sm:$0xff]  ;;  %v3019_v55 = vld [vmem:[#allocation2 + $0x58] sm:$0x3] }
 0x34e   : > { %6586 = vmatpush1.bf16.msra.mxu0 %v6585_v60  ;;  %v3375_v60 = vld [vmem:[#allocation11 + $0x1728] sm:$0xff]  ;;  %v6749_v36 = vpack.c.bf16 %v3400_v50, %v3396_v37 }
 0x34f   : > { %6714 = vmatpush1.bf16.msra.mxu1 %v6713_v61  ;;  %6588 = vmatprep.subr.bf16.mxu0 %v6587_v62  ;;  %v3373_v61 = vld [vmem:[#allocation11 + $0x1718] sm:$0xff]  ;;  %v6607_v63 = vpack.c.bf16 %v3375_v60, %v3371_v59  ;;  %v5371_v52 = vld [vmem:[%s9147_s5 + $0x280] sm:$0xff]  ;;  %v7250_v37 = vld [vmem:[#allocation2 + $0xf8] sm:$0xff] }
 0x350   : > { %6716 = vmatprep.subr.bf16.mxu1 %v6715_v11  ;;  %v3377_v62 = vld [vmem:[#allocation11 + $0x1738] sm:$0xff]  ;;  %v3370_v11 = vld [vmem:[#allocation11 + $0x1700] sm:$0xff] }
 0x351   : > { %v6735_v15 = vpack.c.bf16 %v3377_v62, %v3373_v61  ;;  %v6609_v0 = vpack.c.bf16 %v3374_v13, %v3370_v11  ;;  %v7247_v60 = vld [vmem:[#allocation2 + $0x30] sm:$0xff]  ;;  %v3079_v11 = vrot.slane %v3019_v55, 2  ;;  %v5388_v13 = vld [vmem:[%s9147_s5 + $0x308] sm:$0xff] }
 0x352   : > { %6590 = vmatpush1.bf16.msra.mxu0 %v6589_v27  ;;  %v3383_v27 = vld [vmem:[#allocation11 + $0x1768] sm:$0xff]  ;;  %v3068_v61 = vrot.slane %v7247_v60, 2 }
 0x353   : > { %6718 = vmatpush1.bf16.msra.mxu1 %v6717_v12  ;;  %6592 = vmatprep.subr.bf16.mxu0 %v6591_v30  ;;  %v3381_v12 = vld [vmem:[#allocation11 + $0x1758] sm:$0xff]  ;;  %v6611_v18 = vpack.c.bf16 %v3383_v27, %v3379_v26  ;;  %v3023_v26 = vld [vmem:[#allocation2 + $0x78] sm:$0xfc]  ;;  %v5375_v60 = vld [vmem:[%s9147_s5 + $0x2a0] sm:$0xff] }
 0x354   : > { %6720 = vmatprep.subr.bf16.mxu1 %v6719_v19  ;;  %v3385_v30 = vld [vmem:[#allocation11 + $0x1778] sm:$0xff]  ;;  %v3378_v19 = vld [vmem:[#allocation11 + $0x1740] sm:$0xff]  ;;  %v3090_v42 = vrot.slane %v3023_v26, 2 }
 0x355   : > { %v6739_v44 = vpack.c.bf16 %v3385_v30, %v3381_v12  ;;  %v6613_v53 = vpack.c.bf16 %v3382_v29, %v3378_v19  ;;  %v5405_v27 = vld [vmem:[%s9147_s5 + $0x390] sm:$0xff]  ;;  %v5406_v12 = vld [vmem:[%s9147_s5 + $0x398] sm:$0xff] }
 0x356   : > { %6594 = vmatpush1.bf16.msra.mxu0 %v6593_v57  ;;  %v3391_v57 = vld [vmem:[#allocation11 + $0x17a8] sm:$0xff]  ;;  %v5357_v29 = vld [vmem:[%s9147_s5 + $0x210] sm:$0xff] }
 0x357   : > { %6722 = vmatpush1.bf16.msra.mxu1 %v6721_v16  ;;  %6596 = vmatprep.subr.bf16.mxu0 %v6595_v46  ;;  %v3389_v16 = vld [vmem:[#allocation11 + $0x1798] sm:$0xff]  ;;  %v6615_v20 = vpack.c.bf16 %v3391_v57, %v3387_v21  ;;  %v6787_v57 = vpack.c.bf16 %v5406_v12, %v5405_v27  ;;  %v6757_v23 = vpack.c.bf16 %v5358_v43, %v5357_v29  ;;  %v5378_v12 = vld [vmem:[%s9147_s5 + $0x2b8] sm:$0xff] }
 0x358   : > { %6724 = vmatprep.subr.bf16.mxu1 %v6723_v24  ;;  %v3393_v46 = vld [vmem:[#allocation11 + $0x17b8] sm:$0xff]  ;;  %v3386_v24 = vld [vmem:[#allocation11 + $0x1780] sm:$0xff] }
 0x359   : > { %v6743_v7 = vpack.c.bf16 %v3393_v46, %v3389_v16  ;;  %v6617_v35 = vpack.c.bf16 %v3390_v28, %v3386_v24  ;;  %v3022_v21 = vld [vmem:[#allocation2 + $0x70] sm:$0xfc]  ;;  %v5390_v46 = vld [vmem:[%s9147_s5 + $0x318] sm:$0xff] }
 0x35a   : > { %6598 = vmatpush1.bf16.msra.mxu0 %v6597_v32  ;;  %v3399_v32 = vld [vmem:[#allocation11 + $0x17e8] sm:$0xff]  ;;  %v5389_v16 = vld [vmem:[%s9147_s5 + $0x310] sm:$0xff]  ;;  %v3087_v24 = vrot.slane %v3022_v21, 2 }
 0x35b   : > { %6726 = vmatpush1.bf16.msra.mxu1 %v6725_v33  ;;  %6600 = vmatprep.subr.bf16.mxu0 %v6599_v34  ;;  %v3397_v33 = vld [vmem:[#allocation11 + $0x17d8] sm:$0xff]  ;;  %v6619_v39 = vpack.c.bf16 %v3399_v32, %v3395_v31 }
 0x35c   : > { %6728 = vmatprep.subr.bf16.mxu1 %v6727_v40  ;;  %v3401_v34 = vld [vmem:[#allocation11 + $0x17f8] sm:$0xff]  ;;  %v3394_v40 = vld [vmem:[#allocation11 + $0x17c0] sm:$0xff] }
 0x35d   : > { %v6747_v47 = vpack.c.bf16 %v3401_v34, %v3397_v33  ;;  %v6621_v54 = vpack.c.bf16 %v3398_v41, %v3394_v40  ;;  %v7249_v28 = vld [vmem:[#allocation2 + $0x90] sm:$0xff]  ;;  %v3031_v33 = vld [vmem:[#allocation2 + $0xd8] sm:$0xfc]  ;;  %v3035_v41 = vld [vmem:[#allocation2 + $0x118] sm:$0x3] }
 0x35e   : > { %6602 = vmatpush1.bf16.msra.mxu0 %v6601_v9  ;;  %v5372_v9 = vld [vmem:[%s9147_s5 + $0x288] sm:$0xff]  ;;  %v3088_v49 = vrot.slane %v7249_v28, 2  ;;  %v3026_v32 = vld [vmem:[#allocation2 + $0xb0] sm:$0x3]  ;;  %v3030_v40 = vld [vmem:[#allocation2 + $0xd0] sm:$0xfc] }
 0x35f   : > { %6730 = vmatpush1.bf16.msra.mxu1 %v6729_v51  ;;  %6604 = vmatprep.subr.bf16.mxu0 %v6603_v48  ;;  %v5403_v51 = vld [vmem:[%s9147_s5 + $0x380] sm:$0xff]  ;;  %v5404_v48 = vld [vmem:[%s9147_s5 + $0x388] sm:$0xff]  ;;  %v6751_v59 = vpack.c.bf16 %v5372_v9, %v5371_v52  ;;  %v3107_v52 = vrot.slane %v3030_v40, 2  ;;  %v5377_v27 = vld [vmem:[%s9147_s5 + $0x2b0] sm:$0xff] }
 0x360   : > { %6732 = vmatprep.subr.bf16.mxu1 %v6731_v56  ;;  %v3014_v56 = vld [vmem:[#allocation2 + $0x10] sm:$0xfc]  ;;  %v6783_v62 = vpack.c.bf16 %v5404_v48, %v5403_v51  ;;  %v3089_v34 = vsel %vm3060_vm12, %v3087_v24, %v3088_v49  ;;  %v3119_v51 = vrot.slane %v3035_v41, 2  ;;  %v3034_v48 = vld [vmem:[#allocation2 + $0x110] sm:$0x3]  ;;  %v5395_v28 = vld [vmem:[%s9147_s5 + $0x340] sm:$0xff] }
 0x361   : > { %v3067_v22 = vrot.slane %v3014_v56, 2  ;;  %v3117_v56 = vrot.slane %v3034_v48, 2  ;;  %v5397_v41 = vld [vmem:[%s9147_s5 + $0x350] sm:$0xff]  ;;  %v5416_v48 = vld [vmem:[%s9147_s5 + $0x3e8] sm:$0xff] }
 0x362   : > { %6606 = vmatpush1.bf16.msra.mxu0 %v6605_v10  ;;  %v5355_v10 = vld [vmem:[%s9147_s5 + $0x200] sm:$0xff] }
 0x363   : > { %6734 = vmatpush1.bf16.msra.mxu1 %v6733_v4  ;;  %6608 = vmatprep.subr.bf16.mxu0 %v6607_v63  ;;  %v5356_v4 = vld [vmem:[%s9147_s5 + $0x208] sm:$0xff]  ;;  %v5387_v63 = vld [vmem:[%s9147_s5 + $0x300] sm:$0xff] }
 0x364   : > { %6736 = vmatprep.subr.bf16.mxu1 %v6735_v15  ;;  %v5374_v15 = vld [vmem:[%s9147_s5 + $0x298] sm:$0xff]  ;;  %v6753_v30 = vpack.c.bf16 %v5356_v4, %v5355_v10  ;;  %v5408_v4 = vld [vmem:[%s9147_s5 + $0x3a8] sm:$0xff] }
 0x365   : > { %v6755_v19 = vpack.c.bf16 %v5374_v15, %v5373_v14  ;;  %v5391_v15 = vld [vmem:[%s9147_s5 + $0x320] sm:$0xff] }
 0x366   : > { %6610 = vmatpush1.bf16.msra.mxu0 %v6609_v0  ;;  %v3069_v0 = vsel %vm3060_vm12, %v3067_v22, %v3068_v61  ;;  %v5392_v22 = vld [vmem:[%s9147_s5 + $0x328] sm:$0xff] }
 0x367   : > { %6738 = vmatpush1.bf16.msra.mxu1 %v6737_v3  ;;  %6612 = vmatprep.subr.bf16.mxu0 %v6611_v18  ;;  %v3077_v3 = vrot.slane %v3018_v58, 2  ;;  %v6785_v18 = vpack.c.bf16 %v5388_v13, %v5387_v63  ;;  %v5359_v63 = vld [vmem:[%s9147_s5 + $0x220] sm:$0xff]  ;;  %v6793_v26 = vpack.c.bf16 %v5392_v22, %v5391_v15  ;;  %v5401_v22 = vld [vmem:[%s9147_s5 + $0x370] sm:$0xff] }
 0x368   : > { %6740 = vmatprep.subr.bf16.mxu1 %v6739_v44  ;;  %v3080_v44 = vsel %vm3060_vm12, %v3071_v45, %v3079_v11  ;;  %v5360_v11 = vld [vmem:[%s9147_s5 + $0x228] sm:$0xff] }
 0x369   : > { %v3078_v45 = vsel %vm3060_vm12, %v3068_v61, %v3077_v3  ;;  %v5376_v61 = vld [vmem:[%s9147_s5 + $0x2a8] sm:$0xff]  ;;  %v6761_v14 = vpack.c.bf16 %v5360_v11, %v5359_v63  ;;  %v5410_v3 = vld [vmem:[%s9147_s5 + $0x3b8] sm:$0xff]  ;;  %v5369_v11 = vld [vmem:[%s9147_s5 + $0x270] sm:$0xff] }
 0x36a   : > { %6614 = vmatpush1.bf16.msra.mxu0 %v6613_v53  ;;  %v3027_v53 = vld [vmem:[#allocation2 + $0xb8] sm:$0x3]  ;;  %v6759_v10 = vpack.c.bf16 %v5376_v61, %v5375_v60  ;;  %v5385_v61 = vld [vmem:[%s9147_s5 + $0x2f0] sm:$0xff] }
 0x36b   : > { %6742 = vmatpush1.bf16.msra.mxu1 %v6741_v17  ;;  %6616 = vmatprep.subr.bf16.mxu0 %v6615_v20  ;;  %v7248_v17 = vld [vmem:[#allocation2 + $0x98] sm:$0xff]  ;;  %v3099_v31 = vrot.slane %v3027_v53, 2 }
 0x36c   : > { %6744 = vmatprep.subr.bf16.mxu1 %v6743_v7  ;;  %v3091_v20 = vrot.slane %v7248_v17, 2  ;;  %v6789_v7 = vpack.c.bf16 %v5390_v46, %v5389_v16  ;;  %v5380_v16 = vld [vmem:[%s9147_s5 + $0x2c8] sm:$0xff]  ;;  %v5411_v46 = vld [vmem:[%s9147_s5 + $0x3c0] sm:$0xff]  ;;  %v5418_v63 = vld [vmem:[%s9147_s5 + $0x3f8] sm:$0xff] }
 0x36d   : > { %v5412_v17 = vld [vmem:[%s9147_s5 + $0x3c8] sm:$0xff] }
 0x36e   : > { %6618 = vmatpush1.bf16.msra.mxu0 %v6617_v35  ;;  %v3092_v25 = vsel %vm3060_vm12, %v3090_v42, %v3091_v20  ;;  %v3097_v35 = vrot.slane %v3026_v32, 2  ;;  %v5394_v42 = vld [vmem:[%s9147_s5 + $0x338] sm:$0xff]  ;;  %v5413_v32 = vld [vmem:[%s9147_s5 + $0x3d0] sm:$0xff] }
 0x36f   : > { %6746 = vmatpush1.bf16.msra.mxu1 %v6745_v38  ;;  %6620 = vmatprep.subr.bf16.mxu0 %v6619_v39  ;;  %v3100_v38 = vsel %vm3060_vm12, %v3091_v20, %v3099_v31  ;;  %v3110_v39 = vrot.slane %v3031_v33, 2  ;;  %v5363_v20 = vld [vmem:[%s9147_s5 + $0x240] sm:$0xff]  ;;  %v5382_v31 = vld [vmem:[%s9147_s5 + $0x2d8] sm:$0xff] }
 0x370   : > { %6748 = vmatprep.subr.bf16.mxu1 %v6747_v47  ;;  %v3111_v47 = vrot.slane %v7250_v37, 2  ;;  %v3098_v50 = vsel %vm3060_vm12, %v3088_v49, %v3097_v35  ;;  %v5396_v49 = vld [vmem:[%s9147_s5 + $0x348] sm:$0xff]  ;;  %v5365_v35 = vld [vmem:[%s9147_s5 + $0x250] sm:$0xff]  ;;  %v5398_v37 = vld [vmem:[%s9147_s5 + $0x358] sm:$0xff] }
 0x372   : > { %6622 = vmatpush1.bf16.msra.mxu0 %v6621_v54  ;;  %v3112_v9 = vsel %vm3060_vm12, %v3110_v39, %v3111_v47  ;;  %v7251_v54 = vld [vmem:[#allocation2 + $0xf0] sm:$0xff]  ;;  %v3120_v58 = vsel %vm3060_vm12, %v3111_v47, %v3119_v51  ;;  %v6805_v47 = vpack.c.bf16 %v5398_v37, %v5397_v41 }
 0x373   : > { %6750 = vmatpush1.bf16.msra.mxu1 %v6749_v36  ;;  %6752 = vmatprep.subr.bf16.mxu0 %v6751_v59  ;;  %v3108_v55 = vrot.slane %v7251_v54, 2  ;;  %v5367_v54 = vld [vmem:[%s9147_s5 + $0x260] sm:$0xff] }
 0x374   : > { %6784 = vmatprep.subr.bf16.mxu1 %v6783_v62  ;;  %v5407_v62 = vld [vmem:[%s9147_s5 + $0x3a0] sm:$0xff] }
 0x375   : > { %3568 = vmatmul.mubr.f32.vlgmr.msra.gmra.mrb[12].mxu0 %v3069_v0  ;;  %v3109_v36 = vsel %vm3060_vm12, %v3107_v52, %v3108_v55  ;;  %v3118_v59 = vsel %vm3060_vm12, %v3108_v55, %v3117_v56  ;;  %v6791_v13 = vpack.c.bf16 %v5408_v4, %v5407_v62  ;;  %v5384_v52 = vld [vmem:[%s9147_s5 + $0x2e8] sm:$0xff]  ;;  %v5386_v62 = vld [vmem:[%s9147_s5 + $0x2f8] sm:$0xff] }
 0x376   : > { %3770 = vmatmul.mubr.f32.vlgmr.msra.gmra.mrb[12].mxu1 %v3069_v0  ;;  %3573 = vmatprep.mubr.f32.mxu0 %v3080_v44  ;;  %v6763_v0 = vpack.c.bf16 %v5378_v12, %v5377_v27  ;;  %v5368_v55 = vld [vmem:[%s9147_s5 + $0x268] sm:$0xff]  ;;  %v6779_v4 = vpack.c.bf16 %v5386_v62, %v5385_v61  ;;  %v4139_v27 = vld [vmem:[%s9147_s5 + $0x80] sm:$0xff] }
 0x377   : > { %3775 = vmatprep.mubr.f32.mxu1 %v3080_v44  ;;  %6754 = vmatpush3.bf16.msra.mxu0 %v6753_v30  ;;  %v5409_v30 = vld [vmem:[%s9147_s5 + $0x3b0] sm:$0xff]  ;;  %v6777_v56 = vpack.c.bf16 %v5368_v55, %v5367_v54 }
 0x378   : > { %6786 = vmatpush3.bf16.msra.mxu1 %v6785_v18  ;;  %6756 = vmatprep.subr.bf16.mxu0 %v6755_v19  ;;  %v5361_v18 = vld [vmem:[%s9147_s5 + $0x230] sm:$0xff]  ;;  %v5362_v19 = vld [vmem:[%s9147_s5 + $0x238] sm:$0xff]  ;;  %v6795_v29 = vpack.c.bf16 %v5410_v3, %v5409_v30  ;;  %v4140_v30 = vld [vmem:[%s9147_s5 + $0x88] sm:$0xff] }
 0x379   : > { %3574 = vmatmul.mubr.f32.gmra.mrb[14].mxu0 %v3078_v45  ;;  %6788 = vmatprep.subr.bf16.mxu1 %v6787_v57  ;;  %v6765_v43 = vpack.c.bf16 %v5362_v19, %v5361_v18  ;;  %v5393_v44 = vld [vmem:[%s9147_s5 + $0x330] sm:$0xff]  ;;  %v5379_v57 = vld [vmem:[%s9147_s5 + $0x2c0] sm:$0xff]  ;;  %v4172_v3 = vld [vmem:[%s9147_s5 + $0x188] sm:$0xff]  ;;  %v6815_v18 = vpack.c.bf16 %v4140_v30, %v4139_v27 }
 0x37a   : > { %3776 = vmatmul.mubr.f32.gmra.mrb[14].mxu1 %v3078_v45  ;;  %3579 = vmatprep.mubr.f32.mxu0 %v3092_v25  ;;  %v6797_v21 = vpack.c.bf16 %v5394_v42, %v5393_v44  ;;  %v6767_v53 = vpack.c.bf16 %v5380_v16, %v5379_v57  ;;  %v6799_v45 = vpack.c.bf16 %v5412_v17, %v5411_v46  ;;  %v8421_v57 = vld [vmem:[%s9147_s5 + $0x8] sm:$0xff]  ;;  %v8440_v16 = vld [vmem:[%s9147_s5 + $0x90] sm:$0xff]  ;;  %v8445_v46 = vld [vmem:[%s9147_s5 + $0x98] sm:$0xff]  ;;  %v8447_v17 = vstv %s5354_s22  ;;  %s9094_s22 = scalar_lea.hbm %s9150_s8, %s5490_s26 }
 0x37b   : > { %3781 = vmatprep.mubr.f32.mxu1 %v3092_v25  ;;  %6758 = vmatpush3.bf16.msra.mxu0 %v6757_v23  ;;  %v5364_v23 = vld [vmem:[%s9147_s5 + $0x248] sm:$0xff]  ;;  %v5381_v25 = vld [vmem:[%s9147_s5 + $0x2d0] sm:$0xff] }
 0x37c   : > { %6790 = vmatpush3.bf16.msra.mxu1 %v6789_v7  ;;  %6760 = vmatprep.subr.bf16.mxu0 %v6759_v10  ;;  %v6769_v24 = vpack.c.bf16 %v5364_v23, %v5363_v20  ;;  %v6801_v7 = vpack.c.bf16 %v5396_v49, %v5395_v28  ;;  %v6771_v33 = vpack.c.bf16 %v5382_v31, %v5381_v25  ;;  %v5417_v10 = vld [vmem:[%s9147_s5 + $0x3f0] sm:$0xff] }
 0x37d   : > { %3580 = vmatmul.mubr.f32.gmra.mrb[16].mxu0 %v3089_v34  ;;  %6792 = vmatprep.subr.bf16.mxu1 %v6791_v13  ;;  %v5370_v13 = vld [vmem:[%s9147_s5 + $0x278] sm:$0xff]  ;;  %v6819_v31 = vpack.c.bf16 %v8445_v46, %v8440_v16  ;;  %v8480_v55 = vld [vmem:[%s9147_s5 + $0x10] sm:$0xff] }
 0x37e   : > { %3782 = vmatmul.mubr.f32.gmra.mrb[16].mxu1 %v3089_v34  ;;  %3585 = vmatprep.mubr.f32.mxu0 %v3100_v38  ;;  %v5414_v34 = vld [vmem:[%s9147_s5 + $0x3d8] sm:$0xff]  ;;  %v6781_v15 = vpack.c.bf16 %v5370_v13, %v5369_v11 }
 0x37f   : > { %3787 = vmatprep.mubr.f32.mxu1 %v3100_v38  ;;  %6762 = vmatpush3.bf16.msra.mxu0 %v6761_v14  ;;  %v5366_v38 = vld [vmem:[%s9147_s5 + $0x258] sm:$0xff]  ;;  %v6803_v39 = vpack.c.bf16 %v5414_v34, %v5413_v32  ;;  %v6811_v14 = vpack.c.bf16 %v5418_v63, %v5417_v10 }
 0x380   : > { %6794 = vmatpush3.bf16.msra.mxu1 %v6793_v26  ;;  %6764 = vmatprep.subr.bf16.mxu0 %v6763_v0  ;;  %v6773_v40 = vpack.c.bf16 %v5366_v38, %v5365_v35  ;;  %v5402_v26 = vld [vmem:[%s9147_s5 + $0x378] sm:$0xff]  ;;  %v4171_v0 = vld [vmem:[%s9147_s5 + $0x180] sm:$0xff] }
 0x381   : > { %3586 = vmatmul.mubr.f32.gmra.mrb[18].mxu0 %v3098_v50  ;;  %6796 = vmatprep.subr.bf16.mxu1 %v6795_v29  ;;  %v6813_v12 = vpack.c.bf16 %v5402_v26, %v5401_v22  ;;  %v6847_v19 = vpack.c.bf16 %v4172_v3, %v4171_v0  ;;  %v3830_v29 = vld [vmem:[#allocation13] sm:$0xf] }
 0x382   : > { %3788 = vmatmul.mubr.f32.gmra.mrb[18].mxu1 %v3098_v50  ;;  %3591 = vmatprep.mubr.f32.mxu0 %v3112_v9  ;;  %v5383_v50 = vld [vmem:[%s9147_s5 + $0x2e0] sm:$0xff]  ;;  %v8407_v44 = vrot.slane %v3830_v29, %v1260_v5  ;;  %v8411_v42 = vrot.slane %v3830_v29, %v1256_v6  ;;  %v8430_v5 = vrot.slane %v3830_v29, %v1264_v8  ;;  %v8435_v6 = vld [vmem:[%s9147_s5 + $0x108] sm:$0xff]  ;;  %v8457_v8 = vld [vmem:[%s9147_s5 + $0x198] sm:$0xff] }
 0x383   : > { %3793 = vmatprep.mubr.f32.mxu1 %v3112_v9  ;;  %6766 = vmatpush3.bf16.msra.mxu0 %v6765_v43  ;;  %v5415_v9 = vld [vmem:[%s9147_s5 + $0x3e0] sm:$0xff]  ;;  %v6775_v51 = vpack.c.bf16 %v5384_v52, %v5383_v50  ;;  %v8403_v43 = vrot.slane %v3830_v29, %v1252_v2  ;;  %v6851_v34 = vpack.c.bf16 %v8457_v8, %v8452_v1 }
 0x384   : > { %6798 = vmatpush3.bf16.msra.mxu1 %v6797_v21  ;;  %6768 = vmatprep.subr.bf16.mxu0 %v6767_v53  ;;  %v8416_v21 = vld [vmem:[%s9147_s5] sm:$0xff] }
 0x385   : > { %3592 = vmatmul.mubr.f32.gmra.mrb[20].mxu0 %v3109_v36  ;;  %6800 = vmatprep.subr.bf16.mxu1 %v6799_v45  ;;  %v8426_v2 = vld [vmem:[%s9147_s5 + $0x100] sm:$0xff] }
 0x386   : > { %3794 = vmatmul.mubr.f32.gmra.mrb[20].mxu1 %v3109_v36  ;;  %3597 = vmatprep.mubr.f32.mxu0 %v3120_v58  ;;  %v6807_v36 = vpack.c.bf16 %v5416_v48, %v5415_v9  ;;  %v6849_v25 = vpack.c.bf16 %v8435_v6, %v8426_v2  ;;  %v8654_v2 = vld [vmem:[%s9147_s5 + $0xb0] sm:$0xff]  ;;  %v8659_v6 = vld [vmem:[%s9147_s5 + $0xb8] sm:$0xff] }
 0x387   : > { %3799 = vmatprep.mubr.f32.mxu1 %v3120_v58  ;;  %6770 = vmatpush3.bf16.msra.mxu0 %v6769_v24  ;;  %v5399_v58 = vld [vmem:[%s9147_s5 + $0x360] sm:$0xff]  ;;  %v6817_v24 = vpack.c.bf16 %v8421_v57, %v8416_v21 }
 0x388   : > { %6802 = vmatpush3.bf16.msra.mxu1 %v6801_v7  ;;  %6772 = vmatprep.subr.bf16.mxu0 %v6771_v33 }
 0x389   : > { %3598 = vmatmul.mubr.f32.gmra.mrb[22].mxu0 %v3118_v59  ;;  %6804 = vmatprep.subr.bf16.mxu1 %v6803_v39 }
 0x38a   : > { %3800 = vmatmul.mubr.f32.gmra.mrb[22].mxu1 %v3118_v59  ;;  %v5400_v59 = vld [vmem:[%s9147_s5 + $0x368] sm:$0xff] }
 0x38b   : > { %6774 = vmatpush3.bf16.msra.mxu0 %v6773_v40  ;;  %v6809_v60 = vpack.c.bf16 %v5400_v59, %v5399_v58 }
 0x38c   : > { %6806 = vmatpush3.bf16.msra.mxu1 %v6805_v47  ;;  %6776 = vmatprep.subr.bf16.mxu0 %v6775_v51 }
 0x38d   : > { %6808 = vmatprep.subr.bf16.mxu1 %v6807_v36  ;;  %v8485_v36 = vld [vmem:[%s9147_s5 + $0x18] sm:$0xff] }
 0x38f   : > { %6778 = vmatpush3.bf16.msra.mxu0 %v6777_v56 }
 0x390   : > { %6810 = vmatpush3.bf16.msra.mxu1 %v6809_v60  ;;  %6780 = vmatprep.subr.bf16.mxu0 %v6779_v4 }
 0x391   : > { %6812 = vmatprep.subr.bf16.mxu1 %v6811_v14 }
 0x393   : > { %6782 = vmatpush3.bf16.msra.mxu0 %v6781_v15  ;;  %v6821_v15 = vpack.c.bf16 %v8485_v36, %v8480_v55  ;;  %v6827_v55 = vpack.c.bf16 %v8659_v6, %v8654_v2  ;;  %v4163_v6 = vld [vmem:[%s9147_s5 + $0x140] sm:$0xff] }
 0x394   : > { %6814 = vmatpush3.bf16.msra.mxu1 %v6813_v12  ;;  %6816 = vmatprep.subr.bf16.mxu0 %v6815_v18 }
 0x395   : > { %6848 = vmatprep.subr.bf16.mxu1 %v6847_v19 }
 0x448   : > { %v3569_v53 = vpop.f32.mrb[12].mxu0 }
 0x449   : > { %v3852_v20 = vadd.f32 %v8403_v43, %v3569_v53  ;;  %v3771_v23 = vpop.f32.mrb[12].mxu1  ;;  %v3571_v45 = vpop.f32.mrb[13].mxu0 }
 0x44a   : > { %v3854_v28 = vadd.f32 %v8407_v44, %v3771_v23  ;;  %v3853_v49 = vadd.f32 %v8411_v42, %v3571_v45  ;;  %v3773_v7 = vpop.f32.mrb[13].mxu1 }
 0x44b   : > { %vm3877_vm13 = vcmp.ge.f32.partialorder %v3852_v20, 0.0  ;;  %v3902_v32 = vmul.f32 %v8447_v17, %v3852_v20  ;;  %v3855_v33 = vadd.f32 %v8430_v5, %v3773_v7 }
 0x44c   : > { %vm3879_vm14 = vcmp.ge.f32.partialorder %v3854_v28, 0.0  ;;  %v3904_v35 = vmul.f32 %v8447_v17, %v3854_v28  ;;  %vm3878_vm15 = vcmp.ge.f32.partialorder %v3853_v49, 0.0  ;;  %v3903_v38 = vmul.f32 %v8447_v17, %v3853_v49  ;;  %v3575_v39 = vpop.f32.mrb[14].mxu0 }
 0x44d   : > { %v3926_v40 = vsel %vm3877_vm13, %v3852_v20, %v3902_v32  ;;  %vm3880_vm0 = vcmp.ge.f32.partialorder %v3855_v33, 0.0  ;;  %v3905_v41 = vmul.f32 %v8447_v17, %v3855_v33  ;;  %v3856_v37 = vadd.f32 %v8403_v43, %v3575_v39  ;;  %v3777_v47 = vpop.f32.mrb[14].mxu1  ;;  %v3577_v50 = vpop.f32.mrb[15].mxu0 }
 0x44e   : > { %v3991_v52 = vrot.slane %v3926_v40, 7  ;;  %v3928_v9 = vsel %vm3879_vm14, %v3854_v28, %v3904_v35  ;;  %v3927_v51 = vsel %vm3878_vm15, %v3853_v49, %v3903_v38  ;;  %v3858_v48 = vadd.f32 %v8407_v44, %v3777_v47  ;;  %v3779_v54 = vpop.f32.mrb[15].mxu1 }
 0x44f   : > { %v3993_v56 = vrot.slane %v3928_v9, 7  ;;  %v3992_v58 = vrot.slane %v3927_v51, 7  ;;  %v3929_v59 = vsel %vm3880_vm0, %v3855_v33, %v3905_v41  ;;  %vm3881_vm2 = vcmp.ge.f32.partialorder %v3856_v37, 0.0 }
 0x450   : > { %4063 = vst [vmem:[#allocation3] sm:$0xfe] %v3991_v52  ;;  %v3994_v60 = vrot.slane %v3929_v59, 7  ;;  %v3906_v61 = vmul.f32 %v8447_v17, %v3856_v37  ;;  %vm3883_vm3 = vcmp.ge.f32.partialorder %v3858_v48, 0.0  ;;  %v3908_v62 = vmul.f32 %v8447_v17, %v3858_v48  ;;  %v3581_v10 = vpop.f32.mrb[16].mxu0 }
 0x451   : > { %4065 = vst [vmem:[#allocation3 + $0x10] sm:$0xfe] %v3993_v56  ;;  %4064 = vst [vmem:[#allocation3 + $0x8] sm:$0xfe] %v3992_v58  ;;  %v3857_v4 = vadd.f32 %v8411_v42, %v3577_v50  ;;  %v3859_v63 = vadd.f32 %v8430_v5, %v3779_v54  ;;  %v3860_v11 = vadd.f32 %v8403_v43, %v3581_v10  ;;  %v3783_v13 = vpop.f32.mrb[16].mxu1  ;;  %v3583_v14 = vpop.f32.mrb[17].mxu0 }
 0x452   : > { %4066 = vst [vmem:[#allocation3 + $0x18] sm:$0xfe] %v3994_v60  ;;  %v3930_v22 = vsel %vm3881_vm2, %v3856_v37, %v3906_v61  ;;  %v3932_v26 = vsel %vm3883_vm3, %v3858_v48, %v3908_v62  ;;  %v3862_v27 = vadd.f32 %v8407_v44, %v3783_v13  ;;  %v3861_v12 = vadd.f32 %v8411_v42, %v3583_v14  ;;  %v3785_v30 = vpop.f32.mrb[17].mxu1 }
 0x453   : > { %v3995_v0 = vrot.slane %v3930_v22, 7  ;;  %v3999_v3 = vrot.slane %v3932_v26, 7  ;;  %vm3882_vm4 = vcmp.ge.f32.partialorder %v3857_v4, 0.0  ;;  %v3907_v18 = vmul.f32 %v8447_v17, %v3857_v4 }
 0x454   : > { %vm3884_vm6 = vcmp.ge.f32.partialorder %v3859_v63, 0.0  ;;  %v3909_v19 = vmul.f32 %v8447_v17, %v3859_v63  ;;  %vm3885_vm7 = vcmp.ge.f32.partialorder %v3860_v11, 0.0  ;;  %v3910_v29 = vmul.f32 %v8447_v17, %v3860_v11  ;;  %v3587_v53 = vpop.f32.mrb[18].mxu0 }
 0x455   : > { %v8501_v20 = vsel %vm1413_vm1, %v3991_v52, %v3995_v0  ;;  %4071 = vst [vmem:[#allocation3 + $0x40] sm:$0x1] %v3995_v0  ;;  %v8504_v23 = vsel %vm1413_vm1, %v3993_v56, %v3999_v3  ;;  %4073 = vst [vmem:[#allocation3 + $0x50] sm:$0x1] %v3999_v3  ;;  %v3931_v45 = vsel %vm3882_vm4, %v3857_v4, %v3907_v18  ;;  %vm3887_vm8 = vcmp.ge.f32.partialorder %v3862_v27, 0.0  ;;  %v3789_v28 = vpop.f32.mrb[18].mxu1 }
 0x456   : > { %v3589_v49 = vpop.f32.mrb[19].mxu0  ;;  %4067 = vst [vmem:[#allocation3 + $0x20] sm:$0xff] %v8501_v20  ;;  %4069 = vst [vmem:[#allocation3 + $0x30] sm:$0xff] %v8504_v23  ;;  %v3997_v7 = vrot.slane %v3931_v45, 7  ;;  %v3933_v32 = vsel %vm3884_vm6, %v3859_v63, %v3909_v19  ;;  %v3934_v33 = vsel %vm3885_vm7, %v3860_v11, %v3910_v29  ;;  %v3912_v35 = vmul.f32 %v8447_v17, %v3862_v27  ;;  %v3791_v38 = vpop.f32.mrb[19].mxu1 }
 0x457   : > { %v4001_v39 = vrot.slane %v3933_v32, 7  ;;  %v4003_v40 = vrot.slane %v3934_v33, 7  ;;  %vm3886_vm9 = vcmp.ge.f32.partialorder %v3861_v12, 0.0  ;;  %v3911_v41 = vmul.f32 %v8447_v17, %v3861_v12 }
 0x458   : > { %v8512_v37 = vsel %vm1413_vm1, %v3992_v58, %v3997_v7  ;;  %4072 = vst [vmem:[#allocation3 + $0x48] sm:$0x1] %v3997_v7  ;;  %v3936_v47 = vsel %vm3887_vm8, %v3862_v27, %v3912_v35  ;;  %v3863_v50 = vadd.f32 %v8430_v5, %v3785_v30  ;;  %v3864_v52 = vadd.f32 %v8403_v43, %v3587_v53  ;;  %v3593_v9 = vpop.f32.mrb[20].mxu0 }
 0x459   : > { %v8518_v51 = vsel %vm1413_vm1, %v3994_v60, %v4001_v39  ;;  %4074 = vst [vmem:[#allocation3 + $0x58] sm:$0x1] %v4001_v39  ;;  %4075 = vst [vmem:[#allocation3 + $0x60] sm:$0xfe] %v4003_v40  ;;  %v4005_v48 = vrot.slane %v3936_v47, 7  ;;  %v3935_v54 = vsel %vm3886_vm9, %v3861_v12, %v3911_v41  ;;  %v3866_v56 = vadd.f32 %v8407_v44, %v3789_v28  ;;  %v3795_v59 = vpop.f32.mrb[20].mxu1 }
 0x45a   : > { %v3595_v58 = vpop.f32.mrb[21].mxu0  ;;  %v4004_v61 = vrot.slane %v3935_v54, 7  ;;  %vm3888_vm10 = vcmp.ge.f32.partialorder %v3863_v50, 0.0  ;;  %v3913_v62 = vmul.f32 %v8447_v17, %v3863_v50  ;;  %vm3889_vm11 = vcmp.ge.f32.partialorder %v3864_v52, 0.0  ;;  %v3797_v10 = vpop.f32.mrb[21].mxu1 }
 0x45b   : > { %4077 = vst [vmem:[#allocation3 + $0x70] sm:$0xfe] %v4005_v48  ;;  %v3914_v4 = vmul.f32 %v8447_v17, %v3864_v52  ;;  %vm3891_vm13 = vcmp.ge.f32.partialorder %v3866_v56, 0.0  ;;  %v3916_v60 = vmul.f32 %v8447_v17, %v3866_v56  ;;  %v3865_v63 = vadd.f32 %v8411_v42, %v3589_v49 }
 0x45c   : > { %4076 = vst [vmem:[#allocation3 + $0x68] sm:$0xfe] %v4004_v61  ;;  %v3937_v11 = vsel %vm3888_vm10, %v3863_v50, %v3913_v62  ;;  %v3867_v13 = vadd.f32 %v8430_v5, %v3791_v38  ;;  %v3868_v14 = vadd.f32 %v8403_v43, %v3593_v9  ;;  %v3870_v22 = vadd.f32 %v8407_v44, %v3795_v59  ;;  %v3599_v26 = vpop.f32.mrb[22].mxu0 }
 0x45d   : > { %v4006_v27 = vrot.slane %v3937_v11, 7  ;;  %v3938_v12 = vsel %vm3889_vm11, %v3864_v52, %v3914_v4  ;;  %v3940_v30 = vsel %vm3891_vm13, %v3866_v56, %v3916_v60  ;;  %vm3890_vm14 = vcmp.ge.f32.partialorder %v3865_v63, 0.0  ;;  %v3801_v0 = vpop.f32.mrb[22].mxu1  ;;  %v3601_v3 = vpop.f32.mrb[23].mxu0 }
 0x45e   : > { %v4007_v18 = vrot.slane %v3938_v12, 7  ;;  %v4011_v19 = vrot.slane %v3940_v30, 7  ;;  %v3915_v29 = vmul.f32 %v8447_v17, %v3865_v63  ;;  %vm3892_vm15 = vcmp.ge.f32.partialorder %v3867_v13, 0.0  ;;  %v3803_v53 = vpop.f32.mrb[23].mxu1 }
 0x45f   : > { %4078 = vst [vmem:[#allocation3 + $0x78] sm:$0xfe] %v4006_v27  ;;  %v3917_v45 = vmul.f32 %v8447_v17, %v3867_v13  ;;  %vm3893_vm0 = vcmp.ge.f32.partialorder %v3868_v14, 0.0  ;;  %v3918_v28 = vmul.f32 %v8447_v17, %v3868_v14  ;;  %vm3895_vm2 = vcmp.ge.f32.partialorder %v3870_v22, 0.0 }
 0x460   : > { %v8532_v49 = vsel %vm1413_vm1, %v4003_v40, %v4007_v18  ;;  %4083 = vst [vmem:[#allocation3 + $0xa0] sm:$0x1] %v4007_v18  ;;  %v8535_v7 = vsel %vm1413_vm1, %v4005_v48, %v4011_v19  ;;  %4085 = vst [vmem:[#allocation3 + $0xb0] sm:$0x1] %v4011_v19  ;;  %v3939_v32 = vsel %vm3890_vm14, %v3865_v63, %v3915_v29 }
 0x461   : > { %v3920_v33 = vmul.f32 %v8447_v17, %v3870_v22  ;;  %v4009_v35 = vrot.slane %v3939_v32, 7  ;;  %v3941_v38 = vsel %vm3892_vm15, %v3867_v13, %v3917_v45  ;;  %v3942_v39 = vsel %vm3893_vm0, %v3868_v14, %v3918_v28  ;;  %v4188_v13 = vld [vmem:[#allocation3 + $0x8] sm:$0xfe]  ;;  %v8558_v45 = vld [vmem:[#allocation3 + $0x40] sm:$0x1] }
 0x462   : > { %v3869_v41 = vadd.f32 %v8411_v42, %v3595_v58  ;;  %v4013_v47 = vrot.slane %v3941_v38, 7  ;;  %v4015_v50 = vrot.slane %v3942_v39, 7  ;;  %v3871_v40 = vadd.f32 %v8430_v5, %v3797_v10  ;;  %v8560_v28 = vld [vmem:[#allocation3 + $0x50] sm:$0x1]  ;;  %v4192_v38 = vld [vmem:[#allocation3 + $0x48] sm:$0x1] }
 0x463   : > { %v3944_v52 = vsel %vm3895_vm2, %v3870_v22, %v3920_v33  ;;  %v8542_v9 = vsel %vm1413_vm1, %v4004_v61, %v4009_v35  ;;  %4084 = vst [vmem:[#allocation3 + $0xa8] sm:$0x1] %v4009_v35  ;;  %v3872_v58 = vadd.f32 %v8403_v43, %v3599_v26  ;;  %v3874_v61 = vadd.f32 %v8407_v44, %v3801_v0  ;;  %v4190_v43 = vld [vmem:[#allocation3 + $0x18] sm:$0xfe]  ;;  %v4194_v39 = vld [vmem:[#allocation3 + $0x58] sm:$0x1] }
 0x464   : > { %v4017_v48 = vrot.slane %v3944_v52, 7  ;;  %vm3894_vm3 = vcmp.ge.f32.partialorder %v3869_v41, 0.0  ;;  %v3919_v54 = vmul.f32 %v8447_v17, %v3869_v41  ;;  %v8546_v56 = vsel %vm1413_vm1, %v4006_v27, %v4013_v47  ;;  %4086 = vst [vmem:[#allocation3 + $0xb8] sm:$0x1] %v4013_v47  ;;  %4087 = vst [vmem:[#allocation3 + $0xc0] sm:$0xfe] %v4015_v50 }
 0x465   : > { %vm3896_vm4 = vcmp.ge.f32.partialorder %v3871_v40, 0.0  ;;  %v3921_v59 = vmul.f32 %v8447_v17, %v3871_v40  ;;  %v3873_v10 = vadd.f32 %v8411_v42, %v3601_v3  ;;  %v3875_v4 = vadd.f32 %v8430_v5, %v3803_v53  ;;  %v4187_v5 = vld [vmem:[#allocation3] sm:$0xfe]  ;;  %v4189_v3 = vld [vmem:[#allocation3 + $0x10] sm:$0xfe] }
 0x466   : > { %4089 = vst [vmem:[#allocation3 + $0xd0] sm:$0xfe] %v4017_v48  ;;  %v3943_v62 = vsel %vm3894_vm3, %v3869_v41, %v3919_v54  ;;  %vm3897_vm6 = vcmp.ge.f32.partialorder %v3872_v58, 0.0  ;;  %v3922_v11 = vmul.f32 %v8447_v17, %v3872_v58  ;;  %vm3899_vm7 = vcmp.ge.f32.partialorder %v3874_v61, 0.0  ;;  %v8579_v54 = vld [vmem:[%s9147_s5 + $0x118] sm:$0xff] }
 0x467   : > { %v4016_v60 = vrot.slane %v3943_v62, 7  ;;  %v3945_v63 = vsel %vm3896_vm4, %v3871_v40, %v3921_v59  ;;  %v3924_v22 = vmul.f32 %v8447_v17, %v3874_v61  ;;  %vm3898_vm8 = vcmp.ge.f32.partialorder %v3873_v10, 0.0  ;;  %v4196_v59 = vld [vmem:[#allocation3 + $0x68] sm:$0xfe]  ;;  %v4199_v16 = vld [vmem:[#allocation3 + $0xa0] sm:$0x1] }
 0x468   : > { %v4018_v14 = vrot.slane %v3945_v63, 7  ;;  %v3946_v26 = vsel %vm3897_vm6, %v3872_v58, %v3922_v11  ;;  %v3923_v44 = vmul.f32 %v8447_v17, %v3873_v10  ;;  %vm3900_vm9 = vcmp.ge.f32.partialorder %v3875_v4, 0.0  ;;  %v8596_v63 = vld [vmem:[%s9147_s5 + $0xa8] sm:$0xff] }
 0x469   : > { %4088 = vst [vmem:[#allocation3 + $0xc8] sm:$0xfe] %v4016_v60  ;;  %v3925_v42 = vmul.f32 %v8447_v17, %v3875_v4  ;;  %v4019_v27 = vrot.slane %v3946_v26, 7  ;;  %v3948_v12 = vsel %vm3899_vm7, %v3874_v61, %v3924_v22  ;;  %v4250_v30 = vrot.slane %v4188_v13, 1  ;;  %v8603_v22 = vld [vmem:[%s9147_s5 + $0x1a0] sm:$0xff] }
 0x46a   : > { %4090 = vst [vmem:[#allocation3 + $0xd8] sm:$0xfe] %v4018_v14  ;;  %v4251_v0 = vrot.slane %v8512_v37, 1  ;;  %v4023_v18 = vrot.slane %v3948_v12, 7  ;;  %v3947_v19 = vsel %vm3898_vm8, %v3873_v10, %v3923_v44  ;;  %v4256_v53 = vrot.slane %v4190_v43, 1  ;;  %v8608_v43 = vld [vmem:[%s9147_s5 + $0x1a8] sm:$0xff] }
 0x46b   : > { %v3949_v29 = vsel %vm3900_vm9, %v3875_v4, %v3925_v42  ;;  %v8563_v32 = vsel %vm1413_vm1, %v4015_v50, %v4019_v27  ;;  %4095 = vst [vmem:[#allocation3 + $0x100] sm:$0x1] %v4019_v27  ;;  %v4021_v17 = vrot.slane %v3947_v19, 7  ;;  %v4257_v47 = vrot.slane %v8518_v51, 1  ;;  %v8574_v50 = vld [vmem:[%s9147_s5 + $0x110] sm:$0xff]  ;;  %v8591_v4 = vld [vmem:[%s9147_s5 + $0xa0] sm:$0xff] }
 0x46c   : > { %v4025_v33 = vrot.slane %v3949_v29, 7  ;;  %v4252_v35 = vsel %vm1862_vm5, %v4250_v30, %v4251_v0  ;;  %v8567_v41 = vsel %vm1413_vm1, %v4017_v48, %v4023_v18  ;;  %4097 = vst [vmem:[#allocation3 + $0x110] sm:$0x1] %v4023_v18  ;;  %v4247_v52 = vrot.slane %v4187_v5, 1  ;;  %v4198_v10 = vld [vmem:[#allocation3 + $0x78] sm:$0xfe] }
 0x46d   : > { %4460 = vmatprep.mubr.f32.mxu0 %v4252_v35  ;;  %v4248_v40 = vrot.slane %v8501_v20, 1  ;;  %v8582_v48 = vsel %vm1413_vm1, %v4016_v60, %v4021_v17  ;;  %4096 = vst [vmem:[#allocation3 + $0x108] sm:$0x1] %v4021_v17  ;;  %v4253_v62 = vrot.slane %v4189_v3, 1  ;;  %v4254_v61 = vrot.slane %v8504_v23, 1  ;;  %v8620_v30 = vld [vmem:[%s9147_s5 + $0x20] sm:$0xff] }
 0x46e   : > { %v8585_v58 = vsel %vm1413_vm1, %v4018_v14, %v4025_v33  ;;  %4098 = vst [vmem:[#allocation3 + $0x118] sm:$0x1] %v4025_v33  ;;  %v4258_v60 = vsel %vm1862_vm5, %v4256_v53, %v4257_v47  ;;  %v4261_v13 = vrot.slane %v4192_v38, 1  ;;  %v4265_v14 = vrot.slane %v4194_v39, 1  ;;  %v8610_v26 = vld [vmem:[#allocation3 + $0x60] sm:$0xfe] }
 0x46f   : > { %v4249_v11 = vsel %vm1862_vm5, %v4247_v52, %v4248_v40  ;;  %4555 = vmatprep.mubr.f32.mxu1 %v4258_v60  ;;  %v4255_v44 = vsel %vm1862_vm5, %v4253_v62, %v4254_v61  ;;  %v4259_v42 = vrot.slane %v8558_v45, 1  ;;  %v4263_v5 = vrot.slane %v8560_v28, 1  ;;  %v8615_v12 = vld [vmem:[#allocation3 + $0x70] sm:$0xfe]  ;;  %v8625_v3 = vld [vmem:[%s9147_s5 + $0x28] sm:$0xff]  ;;  %v8636_v45 = vld [vmem:[%s9147_s5 + $0x120] sm:$0xff] }
 0x470   : > { %4461 = vmatmul.mubr.f32.vlgmr.msra.gmra.mrb[24].mxu0 %v4249_v11  ;;  %v4270_v27 = vrot.slane %v4196_v59, 1  ;;  %4556 = vmatmul.mubr.f32.vlgmr.msra.gmra.mrb[24].mxu1 %v4255_v44  ;;  %v4262_v18 = vsel %vm1862_vm5, %v4251_v0, %v4261_v13  ;;  %v4266_v19 = vsel %vm1862_vm5, %v4257_v47, %v4265_v14  ;;  %v4271_v29 = vrot.slane %v8542_v9, 1  ;;  %v4200_v28 = vld [vmem:[#allocation3 + $0xa8] sm:$0x1]  ;;  %v4202_v17 = vld [vmem:[#allocation3 + $0xb8] sm:$0x1] }
 0x471   : > { %6818 = vmatpush3.bf16.msra.mxu0 %v6817_v24  ;;  %v4276_v53 = vrot.slane %v4198_v10, 1  ;;  %6850 = vmatpush3.bf16.msra.mxu1 %v6849_v25  ;;  %v6853_v21 = vpack.c.bf16 %v8579_v54, %v8574_v50  ;;  %v4277_v57 = vrot.slane %v8546_v56, 1  ;;  %v6823_v24 = vpack.c.bf16 %v8596_v63, %v8591_v4  ;;  %v4160_v33 = vld [vmem:[%s9147_s5 + $0x128] sm:$0xff]  ;;  %v8671_v47 = vld [vmem:[%s9147_s5 + $0x1b0] sm:$0xff]  ;;  %v8676_v52 = vld [vmem:[%s9147_s5 + $0x1b8] sm:$0xff] }
 0x472   : > { %4465 = vmatprep.mubr.f32.mxu0 %v4262_v18  ;;  %v6855_v0 = vpack.c.bf16 %v8608_v43, %v8603_v22  ;;  %4560 = vmatprep.mubr.f32.mxu1 %v4266_v19  ;;  %v4260_v25 = vsel %vm1862_vm5, %v4248_v40, %v4259_v42  ;;  %v4264_v35 = vsel %vm1862_vm5, %v4254_v61, %v4263_v5  ;;  %v4267_v39 = vrot.slane %v8610_v26, 1  ;;  %v8686_v54 = vld [vmem:[%s9147_s5 + $0x30] sm:$0xff]  ;;  %v4204_v59 = vld [vmem:[#allocation3 + $0xc8] sm:$0xfe]  ;;  %v4130_v62 = vld [vmem:[%s9147_s5 + $0x38] sm:$0xff] }
 0x473   : > { %6820 = vmatprep.subr.bf16.mxu0 %v6819_v31  ;;  %v4272_v38 = vsel %vm1862_vm5, %v4270_v27, %v4271_v29  ;;  %6852 = vmatprep.subr.bf16.mxu1 %v6851_v34  ;;  %v4278_v46 = vsel %vm1862_vm5, %v4276_v53, %v4277_v57  ;;  %v4273_v31 = vrot.slane %v8615_v12, 1  ;;  %v4281_v40 = vrot.slane %v4200_v28, 1  ;;  %v4201_v34 = vld [vmem:[#allocation3 + $0xb0] sm:$0x1]  ;;  %v4206_v61 = vld [vmem:[#allocation3 + $0xd8] sm:$0xfe] }
 0x474   : > { %4466 = vmatmul.mubr.f32.gmra.mrb[26].mxu0 %v4260_v25  ;;  %v4285_v50 = vrot.slane %v4202_v17, 1  ;;  %4561 = vmatmul.mubr.f32.gmra.mrb[26].mxu1 %v4264_v35  ;;  %v4268_v1 = vrot.slane %v8532_v49, 1  ;;  %v6825_v8 = vpack.c.bf16 %v8625_v3, %v8620_v30  ;;  %v4274_v10 = vrot.slane %v8535_v7, 1  ;;  %v4162_v63 = vld [vmem:[%s9147_s5 + $0x138] sm:$0xff]  ;;  %v8712_v60 = vld [vmem:[%s9147_s5 + $0xc0] sm:$0xff]  ;;  %v4148_v43 = vld [vmem:[%s9147_s5 + $0xc8] sm:$0xff] }
 0x475   : > { %6822 = vmatpush3.bf16.msra.mxu0 %v6821_v15  ;;  %6854 = vmatpush3.bf16.msra.mxu1 %v6853_v21  ;;  %v6857_v4 = vpack.c.bf16 %v4160_v33, %v8636_v45  ;;  %v6859_v36 = vpack.c.bf16 %v8676_v52, %v8671_v47  ;;  %v4161_v15 = vld [vmem:[%s9147_s5 + $0x130] sm:$0xff]  ;;  %v4282_v13 = vsel %vm1862_vm5, %v4271_v29, %v4281_v40  ;;  %v4279_v14 = vrot.slane %v4199_v16, 1  ;;  %v4179_v26 = vld [vmem:[%s9147_s5 + $0x1c0] sm:$0xff]  ;;  %v4180_v44 = vld [vmem:[%s9147_s5 + $0x1c8] sm:$0xff] }
 0x476   : > { %4470 = vmatprep.mubr.f32.mxu0 %v4272_v38  ;;  %4565 = vmatprep.mubr.f32.mxu1 %v4278_v46  ;;  %v4269_v11 = vsel %vm1862_vm5, %v4267_v39, %v4268_v1  ;;  %v4290_v22 = vrot.slane %v4204_v59, 1  ;;  %v4275_v42 = vsel %vm1862_vm5, %v4273_v31, %v4274_v10  ;;  %v4286_v5 = vsel %vm1862_vm5, %v4277_v57, %v4285_v50  ;;  %v4203_v30 = vld [vmem:[#allocation3 + $0xc0] sm:$0xfe]  ;;  %v4208_v3 = vld [vmem:[#allocation3 + $0x108] sm:$0x1]  ;;  %v4149_v16 = vld [vmem:[%s9147_s5 + $0xd0] sm:$0xff] }
 0x477   : > { %6824 = vmatprep.subr.bf16.mxu0 %v6823_v24  ;;  %6856 = vmatprep.subr.bf16.mxu1 %v6855_v0  ;;  %v4283_v27 = vrot.slane %v4201_v34, 1  ;;  %v4296_v12 = vrot.slane %v4206_v61, 1  ;;  %v6829_v18 = vpack.c.bf16 %v4130_v62, %v8686_v54  ;;  %v4291_v19 = vrot.slane %v8582_v48, 1  ;;  %v4205_v29 = vld [vmem:[#allocation3 + $0xd0] sm:$0xfe]  ;;  %v4131_v57 = vld [vmem:[%s9147_s5 + $0x40] sm:$0xff] }
 0x478   : > { %4471 = vmatmul.mubr.f32.gmra.mrb[28].mxu0 %v4269_v11  ;;  %4566 = vmatmul.mubr.f32.gmra.mrb[28].mxu1 %v4275_v42  ;;  %v4210_v53 = vld [vmem:[#allocation3 + $0x118] sm:$0x1]  ;;  %v6861_v45 = vpack.c.bf16 %v4162_v63, %v4161_v15  ;;  %v4297_v28 = vrot.slane %v8585_v58, 1  ;;  %v6831_v17 = vpack.c.bf16 %v4148_v43, %v8712_v60  ;;  %v6863_v21 = vpack.c.bf16 %v4180_v44, %v4179_v26  ;;  %v4132_v24 = vld [vmem:[%s9147_s5 + $0x48] sm:$0xff]  ;;  %v4207_v31 = vld [vmem:[#allocation3 + $0x100] sm:$0x1] }
 0x479   : > { %6826 = vmatpush3.bf16.msra.mxu0 %v6825_v8  ;;  %6858 = vmatpush3.bf16.msra.mxu1 %v6857_v4  ;;  %v4280_v0 = vsel %vm1862_vm5, %v4268_v1, %v4279_v14  ;;  %v4292_v33 = vsel %vm1862_vm5, %v4290_v22, %v4291_v19  ;;  %v4287_v2 = vrot.slane %v4203_v30, 1  ;;  %v4164_v25 = vld [vmem:[%s9147_s5 + $0x148] sm:$0xff]  ;;  %v4301_v35 = vrot.slane %v4208_v3, 1  ;;  %v4150_v46 = vld [vmem:[%s9147_s5 + $0xd8] sm:$0xff]  ;;  %v4181_v54 = vld [vmem:[%s9147_s5 + $0x1d0] sm:$0xff] }
 0x47a   : > { %4475 = vmatprep.mubr.f32.mxu0 %v4282_v13  ;;  %4570 = vmatprep.mubr.f32.mxu1 %v4286_v5  ;;  %v4284_v38 = vsel %vm1862_vm5, %v4274_v10, %v4283_v27  ;;  %v4298_v39 = vsel %vm1862_vm5, %v4296_v12, %v4297_v28  ;;  %v4293_v47 = vrot.slane %v4205_v29, 1  ;;  %v4305_v52 = vrot.slane %v4210_v53, 1  ;;  %v4182_v59 = vld [vmem:[%s9147_s5 + $0x1d8] sm:$0xff]  ;;  %v4209_v1 = vld [vmem:[#allocation3 + $0x110] sm:$0x1]  ;;  %v4151_v22 = vld [vmem:[%s9147_s5 + $0xe0] sm:$0xff] }
 0x47b   : > { %6828 = vmatprep.subr.bf16.mxu0 %v6827_v55  ;;  %6860 = vmatprep.subr.bf16.mxu1 %v6859_v36  ;;  %v4288_v40 = vrot.slane %v8563_v32, 1  ;;  %v6833_v50 = vpack.c.bf16 %v4132_v24, %v4131_v57  ;;  %v4294_v8 = vrot.slane %v8567_v41, 1  ;;  %v6865_v34 = vpack.c.bf16 %v4164_v25, %v4163_v6  ;;  %v4133_v62 = vld [vmem:[%s9147_s5 + $0x50] sm:$0xff]  ;;  %v4134_v61 = vld [vmem:[%s9147_s5 + $0x58] sm:$0xff]  ;;  %v4152_v43 = vld [vmem:[%s9147_s5 + $0xe8] sm:$0xff] }
 0x47c   : > { %4476 = vmatmul.mubr.f32.gmra.mrb[30].mxu0 %v4280_v0  ;;  %4571 = vmatmul.mubr.f32.gmra.mrb[30].mxu1 %v4284_v38  ;;  %v4302_v4 = vsel %vm1862_vm5, %v4291_v19, %v4301_v35  ;;  %v6835_v55 = vpack.c.bf16 %v4150_v46, %v4149_v16  ;;  %v4299_v36 = vrot.slane %v4207_v31, 1  ;;  %v4165_v15 = vld [vmem:[%s9147_s5 + $0x150] sm:$0xff]  ;;  %v4166_v63 = vld [vmem:[%s9147_s5 + $0x158] sm:$0xff]  ;;  %v4306_v11 = vsel %vm1862_vm5, %v4297_v28, %v4305_v52  ;;  %v4183_v44 = vld [vmem:[%s9147_s5 + $0x1e0] sm:$0xff] }
 0x47d   : > { %6830 = vmatpush3.bf16.msra.mxu0 %v6829_v18  ;;  %6862 = vmatpush3.bf16.msra.mxu1 %v6861_v45  ;;  %v4289_v10 = vsel %vm1862_vm5, %v4287_v2, %v4288_v40  ;;  %v4295_v60 = vsel %vm1862_vm5, %v4293_v47, %v4294_v8  ;;  %v6867_v13 = vpack.c.bf16 %v4182_v59, %v4181_v54  ;;  %v4303_v14 = vrot.slane %v4209_v1, 1  ;;  %v4184_v42 = vld [vmem:[%s9147_s5 + $0x1e8] sm:$0xff]  ;;  %v4135_v27 = vld [vmem:[%s9147_s5 + $0x60] sm:$0xff]  ;;  %v4153_v29 = vld [vmem:[%s9147_s5 + $0xf0] sm:$0xff] }
 0x47e   : > { %4480 = vmatprep.mubr.f32.mxu0 %v4292_v33  ;;  %4575 = vmatprep.mubr.f32.mxu1 %v4298_v39  ;;  %v6837_v26 = vpack.c.bf16 %v4134_v61, %v4133_v62  ;;  %v6869_v5 = vpack.c.bf16 %v4166_v63, %v4165_v15  ;;  %v4136_v12 = vld [vmem:[%s9147_s5 + $0x68] sm:$0xff]  ;;  %v4167_v30 = vld [vmem:[%s9147_s5 + $0x160] sm:$0xff]  ;;  %v4300_v3 = vsel %vm1862_vm5, %v4288_v40, %v4299_v36  ;;  %v4154_v53 = vld [vmem:[%s9147_s5 + $0xf8] sm:$0xff]  ;;  %vm5182_vm1 = vcmask 523264  }
 0x47f   : > { %6832 = vmatprep.subr.bf16.mxu0 %v6831_v17  ;;  %6864 = vmatprep.subr.bf16.mxu1 %v6863_v21  ;;  %v6839_v18 = vpack.c.bf16 %v4152_v43, %v4151_v22  ;;  %v4168_v19 = vld [vmem:[%s9147_s5 + $0x168] sm:$0xff]  ;;  %v4304_v45 = vsel %vm1862_vm5, %v4294_v8, %v4303_v14  ;;  %v6871_v28 = vpack.c.bf16 %v4184_v42, %v4183_v44  ;;  %v4185_v17 = vld [vmem:[%s9147_s5 + $0x1f0] sm:$0xff]  ;;  %v4186_v21 = vld [vmem:[%s9147_s5 + $0x1f8] sm:$0xff] }
 0x480   : > { %4481 = vmatmul.mubr.f32.gmra.mrb[32].mxu0 %v4289_v10  ;;  %4576 = vmatmul.mubr.f32.gmra.mrb[32].mxu1 %v4295_v60  ;;  %v4100_v57 = vld [vmem:[#allocation3 + $0x8] sm:$0xff]  ;;  %v6841_v24 = vpack.c.bf16 %v4136_v12, %v4135_v27  ;;  %v4137_v0 = vld [vmem:[%s9147_s5 + $0x70] sm:$0xff]  ;;  %v4102_v33 = vld [vmem:[#allocation3 + $0x18] sm:$0xff]  ;;  %v6873_v2 = vpack.c.bf16 %v4168_v19, %v4167_v30  ;;  %v6843_v6 = vpack.c.bf16 %v4154_v53, %v4153_v29 }
 0x481   : > { %6834 = vmatpush3.bf16.msra.mxu0 %v6833_v50  ;;  %6866 = vmatpush3.bf16.msra.mxu1 %v6865_v34  ;;  %v4138_v25 = vld [vmem:[%s9147_s5 + $0x78] sm:$0xff]  ;;  %v4169_v35 = vld [vmem:[%s9147_s5 + $0x170] sm:$0xff]  ;;  %v6875_v38 = vpack.c.bf16 %v4186_v21, %v4185_v17  ;;  %v5435_v47 = vld [vmem:[%s9147_s5 + $0x480] sm:$0xff] }
 0x482   : > { %4485 = vmatprep.mubr.f32.mxu0 %v4302_v4  ;;  %4580 = vmatprep.mubr.f32.mxu1 %v4306_v11  ;;  %v4170_v39 = vld [vmem:[%s9147_s5 + $0x178] sm:$0xff]  ;;  %v5436_v52 = vld [vmem:[%s9147_s5 + $0x488] sm:$0xff]  ;;  %v5467_v16 = vld [vmem:[%s9147_s5 + $0x580] sm:$0xff]  ;;  %v6845_v31 = vpack.c.bf16 %v4138_v25, %v4137_v0 }
 0x483   : > { %6836 = vmatprep.subr.bf16.mxu0 %v6835_v55  ;;  %6868 = vmatprep.subr.bf16.mxu1 %v6867_v13  ;;  %v5468_v46 = vld [vmem:[%s9147_s5 + $0x588] sm:$0xff]  ;;  %v6877_v40 = vpack.c.bf16 %v4170_v39, %v4169_v35  ;;  %v6879_v50 = vpack.c.bf16 %v5436_v52, %v5435_v47  ;;  %v5419_v59 = vld [vmem:[%s9147_s5 + $0x400] sm:$0xff]  ;;  %v5437_v62 = vld [vmem:[%s9147_s5 + $0x490] sm:$0xff] }
 0x484   : > { %4486 = vmatmul.mubr.f32.gmra.mrb[34].mxu0 %v4300_v3  ;;  %4581 = vmatmul.mubr.f32.gmra.mrb[34].mxu1 %v4304_v45  ;;  %v6911_v54 = vpack.c.bf16 %v5468_v46, %v5467_v16  ;;  %v5420_v1 = vld [vmem:[%s9147_s5 + $0x408] sm:$0xff]  ;;  %v5451_v8 = vld [vmem:[%s9147_s5 + $0x500] sm:$0xff]  ;;  %v5438_v61 = vld [vmem:[%s9147_s5 + $0x498] sm:$0xff] }
 0x485   : > { %6838 = vmatpush3.bf16.msra.mxu0 %v6837_v26  ;;  %6870 = vmatpush3.bf16.msra.mxu1 %v6869_v5  ;;  %v5452_v34 = vld [vmem:[%s9147_s5 + $0x508] sm:$0xff]  ;;  %v5469_v10 = vld [vmem:[%s9147_s5 + $0x590] sm:$0xff]  ;;  %v5470_v4 = vld [vmem:[%s9147_s5 + $0x598] sm:$0xff]  ;;  %v6881_v55 = vpack.c.bf16 %v5420_v1, %v5419_v59  ;;  %v6883_v11 = vpack.c.bf16 %v5438_v61, %v5437_v62 }
 0x486   : > { %4650 = vmatprep.mubr.f32.mxu0 %v4100_v57  ;;  %4745 = vmatprep.mubr.f32.mxu1 %v4102_v33  ;;  %v5421_v36 = vld [vmem:[%s9147_s5 + $0x410] sm:$0xff]  ;;  %v5422_v15 = vld [vmem:[%s9147_s5 + $0x418] sm:$0xff]  ;;  %v4099_v63 = vld [vmem:[#allocation3] sm:$0xff]  ;;  %v6913_v60 = vpack.c.bf16 %v5452_v34, %v5451_v8  ;;  %v6915_v43 = vpack.c.bf16 %v5470_v4, %v5469_v10 }
 0x487   : > { %6840 = vmatprep.subr.bf16.mxu0 %v6839_v18  ;;  %6872 = vmatprep.subr.bf16.mxu1 %v6871_v28  ;;  %v5453_v13 = vld [vmem:[%s9147_s5 + $0x510] sm:$0xff]  ;;  %v5454_v14 = vld [vmem:[%s9147_s5 + $0x518] sm:$0xff]  ;;  %v5439_v26 = vld [vmem:[%s9147_s5 + $0x4a0] sm:$0xff]  ;;  %v6885_v27 = vpack.c.bf16 %v5422_v15, %v5421_v36 }
 0x488   : > { %v4101_v22 = vld [vmem:[#allocation3 + $0x10] sm:$0xff]  ;;  %v5440_v44 = vld [vmem:[%s9147_s5 + $0x4a8] sm:$0xff]  ;;  %v5471_v42 = vld [vmem:[%s9147_s5 + $0x5a0] sm:$0xff]  ;;  %v6917_v30 = vpack.c.bf16 %v5454_v14, %v5453_v13 }
 0x489   : > { %6842 = vmatpush3.bf16.msra.mxu0 %v6841_v24  ;;  %6874 = vmatpush3.bf16.msra.mxu1 %v6873_v2  ;;  %v5472_v5 = vld [vmem:[%s9147_s5 + $0x5a8] sm:$0xff]  ;;  %v5423_v12 = vld [vmem:[%s9147_s5 + $0x420] sm:$0xff]  ;;  %v6887_v3 = vpack.c.bf16 %v5440_v44, %v5439_v26  ;;  %v5441_v28 = vld [vmem:[%s9147_s5 + $0x4b0] sm:$0xff] }
 0x48a   : > { %6844 = vmatprep.subr.bf16.mxu0 %v6843_v6  ;;  %6876 = vmatprep.subr.bf16.mxu1 %v6875_v38  ;;  %v5424_v18 = vld [vmem:[%s9147_s5 + $0x428] sm:$0xff]  ;;  %v5455_v19 = vld [vmem:[%s9147_s5 + $0x520] sm:$0xff]  ;;  %v6919_v45 = vpack.c.bf16 %v5472_v5, %v5471_v42  ;;  %v5442_v17 = vld [vmem:[%s9147_s5 + $0x4b8] sm:$0xff] }
 0x48b   : > { %v5456_v29 = vld [vmem:[%s9147_s5 + $0x528] sm:$0xff]  ;;  %v4110_v21 = vld [vmem:[#allocation3 + $0x78] sm:$0xff]  ;;  %v5473_v57 = vld [vmem:[%s9147_s5 + $0x5b0] sm:$0xff]  ;;  %v6889_v24 = vpack.c.bf16 %v5424_v18, %v5423_v12  ;;  %v6891_v6 = vpack.c.bf16 %v5442_v17, %v5441_v28  ;;  %v4834_v28 = vrot.slane %v8518_v51, 2 }
 0x48c   : > { %v4108_v53 = vld [vmem:[#allocation3 + $0x68] sm:$0xff]  ;;  %v5425_v0 = vld [vmem:[%s9147_s5 + $0x430] sm:$0xff]  ;;  %v4107_v33 = vld [vmem:[#allocation3 + $0x60] sm:$0xff]  ;;  %v6921_v2 = vpack.c.bf16 %v5456_v29, %v5455_v19 }
 0x48d   : > { %6846 = vmatpush3.bf16.msra.mxu0 %v6845_v31  ;;  %6878 = vmatpush3.bf16.msra.mxu1 %v6877_v40  ;;  %v5457_v25 = vld [vmem:[%s9147_s5 + $0x530] sm:$0xff]  ;;  %v5458_v35 = vld [vmem:[%s9147_s5 + $0x538] sm:$0xff]  ;;  %v5443_v47 = vld [vmem:[%s9147_s5 + $0x4c0] sm:$0xff] }
 0x48e   : > { %6880 = vmatprep.subr.bf16.mxu0 %v6879_v50  ;;  %6912 = vmatprep.subr.bf16.mxu1 %v6911_v54  ;;  %v4109_v38 = vld [vmem:[#allocation3 + $0x70] sm:$0xff]  ;;  %v5444_v52 = vld [vmem:[%s9147_s5 + $0x4c8] sm:$0xff]  ;;  %v5475_v16 = vld [vmem:[%s9147_s5 + $0x5c0] sm:$0xff]  ;;  %v6925_v54 = vpack.c.bf16 %v5458_v35, %v5457_v25 }
 0x48f   : > { %v5476_v46 = vld [vmem:[%s9147_s5 + $0x5c8] sm:$0xff]  ;;  %v5427_v40 = vld [vmem:[%s9147_s5 + $0x440] sm:$0xff]  ;;  %v6895_v59 = vpack.c.bf16 %v5444_v52, %v5443_v47  ;;  %v5445_v34 = vld [vmem:[%s9147_s5 + $0x4d0] sm:$0xff] }
 0x490   : > { %4651 = vmatmul.mubr.f32.vlgmr.msra.gmra.mrb[36].mxu0 %v4099_v63  ;;  %4746 = vmatmul.mubr.f32.vlgmr.msra.gmra.mrb[36].mxu1 %v4101_v22  ;;  %v5428_v50 = vld [vmem:[%s9147_s5 + $0x448] sm:$0xff]  ;;  %v5459_v1 = vld [vmem:[%s9147_s5 + $0x540] sm:$0xff]  ;;  %v6927_v61 = vpack.c.bf16 %v5476_v46, %v5475_v16  ;;  %v5446_v10 = vld [vmem:[%s9147_s5 + $0x4d8] sm:$0xff] }
 0x491   : > { %4655 = vmatprep.mubr.f32.mxu0 %v8512_v37  ;;  %4750 = vmatprep.mubr.f32.mxu1 %v8518_v51  ;;  %v5460_v8 = vld [vmem:[%s9147_s5 + $0x548] sm:$0xff]  ;;  %v5477_v4 = vld [vmem:[%s9147_s5 + $0x5d0] sm:$0xff]  ;;  %v5478_v36 = vld [vmem:[%s9147_s5 + $0x5d8] sm:$0xff]  ;;  %v6897_v63 = vpack.c.bf16 %v5428_v50, %v5427_v40 }
 0x492   : > { %6882 = vmatpush3.bf16.msra.mxu0 %v6881_v55  ;;  %6914 = vmatpush3.bf16.msra.mxu1 %v6913_v60  ;;  %v4116_v62 = vld [vmem:[#allocation3 + $0xc8] sm:$0xff]  ;;  %v4118_v55 = vld [vmem:[#allocation3 + $0xd8] sm:$0xff]  ;;  %v5429_v60 = vld [vmem:[%s9147_s5 + $0x450] sm:$0xff]  ;;  %v6929_v22 = vpack.c.bf16 %v5460_v8, %v5459_v1  ;;  %v6931_v5 = vpack.c.bf16 %v5478_v36, %v5477_v4 }
 0x493   : > { %6884 = vmatprep.subr.bf16.mxu0 %v6883_v11  ;;  %6916 = vmatprep.subr.bf16.mxu1 %v6915_v43  ;;  %v4777_v15 = vld [vmem:[#allocation3 + $0x8] sm:$0xfc]  ;;  %v5430_v11 = vld [vmem:[%s9147_s5 + $0x458] sm:$0xff]  ;;  %v4115_v14 = vld [vmem:[#allocation3 + $0xc0] sm:$0xff]  ;;  %v6899_v43 = vpack.c.bf16 %v5446_v10, %v5445_v34 }
 0x494   : > { %4656 = vmatmul.mubr.f32.gmra.mrb[38].mxu0 %v8501_v20  ;;  %4751 = vmatmul.mubr.f32.gmra.mrb[38].mxu1 %v8504_v23  ;;  %v5474_v20 = vld [vmem:[%s9147_s5 + $0x5b8] sm:$0xff]  ;;  %v5461_v26 = vld [vmem:[%s9147_s5 + $0x550] sm:$0xff]  ;;  %v5447_v12 = vld [vmem:[%s9147_s5 + $0x4e0] sm:$0xff]  ;;  %v6901_v29 = vpack.c.bf16 %v5430_v11, %v5429_v60 }
 0x495   : > { %4660 = vmatprep.mubr.f32.mxu0 %v4108_v53  ;;  %4755 = vmatprep.mubr.f32.mxu1 %v4110_v21  ;;  %v5426_v23 = vld [vmem:[%s9147_s5 + $0x438] sm:$0xff]  ;;  %v6923_v39 = vpack.c.bf16 %v5474_v20, %v5473_v57  ;;  %v4117_v42 = vld [vmem:[#allocation3 + $0xd0] sm:$0xff]  ;;  %v5479_v18 = vld [vmem:[%s9147_s5 + $0x5e0] sm:$0xff]  ;;  %v4828_v53 = vrot.slane %v8512_v37, 2 }
 0x496   : > { %6886 = vmatpush3.bf16.msra.mxu0 %v6885_v27  ;;  %6918 = vmatpush3.bf16.msra.mxu1 %v6917_v30  ;;  %v6893_v31 = vpack.c.bf16 %v5426_v23, %v5425_v0  ;;  %v4779_v13 = vld [vmem:[#allocation3 + $0x18] sm:$0xfc]  ;;  %v4827_v27 = vrot.slane %v4777_v15, 2  ;;  %v5448_v30 = vld [vmem:[%s9147_s5 + $0x4e8] sm:$0xff]  ;;  %v5431_v21 = vld [vmem:[%s9147_s5 + $0x460] sm:$0xff] }
 0x497   : > { %6888 = vmatprep.subr.bf16.mxu0 %v6887_v3  ;;  %6920 = vmatprep.subr.bf16.mxu1 %v6919_v45  ;;  %v5462_v44 = vld [vmem:[%s9147_s5 + $0x558] sm:$0xff]  ;;  %v4833_v3 = vrot.slane %v4779_v13, 2  ;;  %v5480_v19 = vld [vmem:[%s9147_s5 + $0x5e8] sm:$0xff]  ;;  %v6903_v17 = vpack.c.bf16 %v5448_v30, %v5447_v12  ;;  %v5463_v20 = vld [vmem:[%s9147_s5 + $0x560] sm:$0xff] }
 0x498   : > { %4661 = vmatmul.mubr.f32.gmra.mrb[40].mxu0 %v4107_v33  ;;  %4756 = vmatmul.mubr.f32.gmra.mrb[40].mxu1 %v4109_v38  ;;  %v6933_v45 = vpack.c.bf16 %v5462_v44, %v5461_v26  ;;  %v5432_v57 = vld [vmem:[%s9147_s5 + $0x468] sm:$0xff]  ;;  %v6935_v0 = vpack.c.bf16 %v5480_v19, %v5479_v18  ;;  %v5449_v33 = vld [vmem:[%s9147_s5 + $0x4f0] sm:$0xff]  ;;  %v5482_v35 = vld [vmem:[%s9147_s5 + $0x5f8] sm:$0xff]  ;;  %v4848_v19 = vrot.slane %v8542_v9, 2 }
 0x499   : > { %4665 = vmatprep.mubr.f32.mxu0 %v8542_v9  ;;  %4760 = vmatprep.mubr.f32.mxu1 %v8546_v56  ;;  %v5464_v23 = vld [vmem:[%s9147_s5 + $0x568] sm:$0xff]  ;;  %v5481_v25 = vld [vmem:[%s9147_s5 + $0x5f0] sm:$0xff]  ;;  %v6905_v38 = vpack.c.bf16 %v5432_v57, %v5431_v21  ;;  %v5434_v16 = vld [vmem:[%s9147_s5 + $0x478] sm:$0xff]  ;;  %v4845_v9 = vrot.slane %v8532_v49, 2 }
 0x49a   : > { %6890 = vmatpush3.bf16.msra.mxu0 %v6889_v24  ;;  %6922 = vmatpush3.bf16.msra.mxu1 %v6921_v2  ;;  %v4829_v24 = vsel %vm3060_vm12, %v4827_v27, %v4828_v53  ;;  %v5450_v2 = vld [vmem:[%s9147_s5 + $0x4f8] sm:$0xff]  ;;  %v5433_v52 = vld [vmem:[%s9147_s5 + $0x470] sm:$0xff]  ;;  %v6939_v46 = vpack.c.bf16 %v5482_v35, %v5481_v25  ;;  %v4776_v50 = vld [vmem:[#allocation3] sm:$0xfc] }
 0x49b   : > { %6892 = vmatprep.subr.bf16.mxu0 %v6891_v6  ;;  %6924 = vmatprep.subr.bf16.mxu1 %v6923_v39  ;;  %v4835_v6 = vsel %vm3060_vm12, %v4833_v3, %v4834_v28  ;;  %v6937_v39 = vpack.c.bf16 %v5464_v23, %v5463_v20  ;;  %v6907_v47 = vpack.c.bf16 %v5450_v2, %v5449_v33  ;;  %v5466_v40 = vld [vmem:[%s9147_s5 + $0x578] sm:$0xff]  ;;  %v4781_v1 = vld [vmem:[#allocation3 + $0x48] sm:$0x3]  ;;  %v4780_v4 = vld [vmem:[#allocation3 + $0x40] sm:$0x3] }
 0x49c   : > { %4666 = vmatmul.mubr.f32.gmra.mrb[42].mxu0 %v8532_v49  ;;  %4761 = vmatmul.mubr.f32.gmra.mrb[42].mxu1 %v8535_v7  ;;  %v4783_v34 = vld [vmem:[#allocation3 + $0x58] sm:$0x3]  ;;  %v4838_v10 = vrot.slane %v4781_v1, 2  ;;  %v4785_v60 = vld [vmem:[#allocation3 + $0x68] sm:$0xfc]  ;;  %v7253_v11 = vld [vmem:[#allocation3 + $0x30] sm:$0xff] }
 0x49d   : > { %4670 = vmatprep.mubr.f32.mxu0 %v4116_v62  ;;  %4765 = vmatprep.mubr.f32.mxu1 %v4118_v55  ;;  %v4824_v62 = vrot.slane %v4776_v50, 2  ;;  %v7252_v55 = vld [vmem:[#allocation3 + $0x20] sm:$0xff]  ;;  %v4842_v15 = vrot.slane %v4783_v34, 2  ;;  %v4831_v13 = vrot.slane %v7253_v11, 2  ;;  %v4786_v3 = vld [vmem:[#allocation3 + $0x70] sm:$0xfc] }
 0x49e   : > { %6894 = vmatpush3.bf16.msra.mxu0 %v6893_v31  ;;  %6926 = vmatpush3.bf16.msra.mxu1 %v6925_v54  ;;  %v5465_v31 = vld [vmem:[%s9147_s5 + $0x570] sm:$0xff]  ;;  %v6909_v54 = vpack.c.bf16 %v5434_v16, %v5433_v52  ;;  %v4825_v36 = vrot.slane %v7252_v55, 2  ;;  %v4839_v44 = vsel %vm3060_vm12, %v4828_v53, %v4838_v10  ;;  %v4784_v27 = vld [vmem:[#allocation3 + $0x60] sm:$0xfc]  ;;  %v4789_v18 = vld [vmem:[#allocation3 + $0xa8] sm:$0x3] }
 0x49f   : > { %6896 = vmatprep.subr.bf16.mxu0 %v6895_v59  ;;  %6928 = vmatprep.subr.bf16.mxu1 %v6927_v61  ;;  %v4778_v59 = vld [vmem:[#allocation3 + $0x10] sm:$0xfc]  ;;  %v6941_v8 = vpack.c.bf16 %v5466_v40, %v5465_v31  ;;  %v4843_v12 = vsel %vm3060_vm12, %v4834_v28, %v4842_v15  ;;  %v4854_v53 = vrot.slane %v8546_v56, 2  ;;  %v4850_v51 = vrot.slane %v4786_v3, 2  ;;  %v4788_v28 = vld [vmem:[#allocation3 + $0xa0] sm:$0x3] }
 0x4a0   : > { %4671 = vmatmul.mubr.f32.gmra.mrb[44].mxu0 %v4115_v14  ;;  %4766 = vmatmul.mubr.f32.gmra.mrb[44].mxu1 %v4117_v42  ;;  %v4830_v61 = vrot.slane %v4778_v59, 2  ;;  %v4787_v14 = vld [vmem:[#allocation3 + $0x78] sm:$0xfc]  ;;  %v4858_v57 = vrot.slane %v4789_v18, 2  ;;  %v4793_v23 = vld [vmem:[#allocation3 + $0xc8] sm:$0xfc] }
 0x4a1   : > { %4675 = vmatprep.mubr.f32.mxu0 %v8582_v48  ;;  %4770 = vmatprep.mubr.f32.mxu1 %v8585_v58  ;;  %v4853_v30 = vrot.slane %v4787_v14, 2  ;;  %v4851_v56 = vrot.slane %v8535_v7, 2  ;;  %v4795_v33 = vld [vmem:[#allocation3 + $0xd8] sm:$0xfc]  ;;  %v4794_v16 = vld [vmem:[#allocation3 + $0xd0] sm:$0xfc] }
 0x4a2   : > { %6898 = vmatpush3.bf16.msra.mxu0 %v6897_v63  ;;  %6930 = vmatpush3.bf16.msra.mxu1 %v6929_v22  ;;  %v4782_v63 = vld [vmem:[#allocation3 + $0x50] sm:$0x3]  ;;  %v4826_v22 = vsel %vm3060_vm12, %v4824_v62, %v4825_v36  ;;  %v4832_v26 = vsel %vm3060_vm12, %v4830_v61, %v4831_v13  ;;  %v4859_v35 = vsel %vm3060_vm12, %v4848_v19, %v4858_v57  ;;  %v4873_v52 = vrot.slane %v4795_v33, 2  ;;  %v4799_v31 = vld [vmem:[#allocation3 + $0x118] sm:$0x3] }
 0x4a3   : > { %6900 = vmatprep.subr.bf16.mxu0 %v6899_v43  ;;  %6932 = vmatprep.subr.bf16.mxu1 %v6931_v5  ;;  %v4836_v43 = vrot.slane %v4780_v4, 2  ;;  %v4840_v42 = vrot.slane %v4782_v63, 2  ;;  %v4847_v5 = vrot.slane %v4785_v60, 2  ;;  %v4855_v20 = vsel %vm3060_vm12, %v4853_v30, %v4854_v53  ;;  %v4796_v62 = vld [vmem:[#allocation3 + $0x100] sm:$0x3] }
 0x4a4   : > { %4676 = vmatmul.mubr.f32.gmra.mrb[46].mxu0 %v8563_v32  ;;  %4771 = vmatmul.mubr.f32.gmra.mrb[46].mxu1 %v8567_v41  ;;  %v4852_v25 = vsel %vm3060_vm12, %v4850_v51, %v4851_v56  ;;  %v4868_v7 = vrot.slane %v8582_v48, 2  ;;  %v4874_v50 = vrot.slane %v8585_v58, 2  ;;  %v4865_v48 = vrot.slane %v8563_v32, 2  ;;  %v4798_v4 = vld [vmem:[#allocation3 + $0x110] sm:$0x3] }
 0x4a5   : > { %5037 = vmatprep.mubr.f32.mxu0 %v4829_v24  ;;  %5132 = vmatprep.mubr.f32.mxu1 %v4835_v6  ;;  %v4837_v37 = vsel %vm3060_vm12, %v4825_v36, %v4836_v43  ;;  %v4849_v21 = vsel %vm3060_vm12, %v4847_v5, %v4848_v19  ;;  %v4856_v6 = vrot.slane %v4788_v28, 2  ;;  %v4882_v10 = vrot.slane %v4799_v31, 2 }
 0x4a6   : > { %6902 = vmatpush3.bf16.msra.mxu0 %v6901_v29  ;;  %6934 = vmatpush3.bf16.msra.mxu1 %v6933_v45  ;;  %v4791_v29 = vld [vmem:[#allocation3 + $0xb8] sm:$0x3]  ;;  %v4844_v45 = vrot.slane %v4784_v27, 2  ;;  %v4875_v61 = vsel %vm3060_vm12, %v4873_v52, %v4874_v50  ;;  %v4871_v58 = vrot.slane %v8567_v41, 2  ;;  %v4876_v36 = vrot.slane %v4796_v62, 2 }
 0x4a7   : > { %6904 = vmatprep.subr.bf16.mxu0 %v6903_v17  ;;  %6936 = vmatprep.subr.bf16.mxu1 %v6935_v0  ;;  %v4841_v17 = vsel %vm3060_vm12, %v4831_v13, %v4840_v42  ;;  %v4862_v24 = vrot.slane %v4791_v29, 2  ;;  %v4790_v0 = vld [vmem:[#allocation3 + $0xb0] sm:$0x3]  ;;  %v4857_v40 = vsel %vm3060_vm12, %v4845_v9, %v4856_v6  ;;  %v4880_v60 = vrot.slane %v4798_v4, 2 }
 0x4a8   : > { %v4846_v2 = vsel %vm3060_vm12, %v4844_v45, %v4845_v9  ;;  %v4883_v11 = vsel %vm3060_vm12, %v4874_v50, %v4882_v10  ;;  %v4877_v32 = vsel %vm3060_vm12, %v4865_v48, %v4876_v36 }
 0x4a9   : > { %v4863_v49 = vsel %vm3060_vm12, %v4854_v53, %v4862_v24  ;;  %v4881_v13 = vsel %vm3060_vm12, %v4871_v58, %v4880_v60 }
 0x4aa   : > { %6906 = vmatpush3.bf16.msra.mxu0 %v6905_v38  ;;  %6938 = vmatpush3.bf16.msra.mxu1 %v6937_v39  ;;  %v4860_v38 = vrot.slane %v4790_v0, 2  ;;  %v4867_v39 = vrot.slane %v4793_v23, 2 }
 0x4ab   : > { %6908 = vmatprep.subr.bf16.mxu0 %v6907_v47  ;;  %6940 = vmatprep.subr.bf16.mxu1 %v6939_v46  ;;  %v4792_v47 = vld [vmem:[#allocation3 + $0xc0] sm:$0xfc]  ;;  %v4797_v46 = vld [vmem:[#allocation3 + $0x108] sm:$0x3] }
 0x4ac   : > { %v4861_v59 = vsel %vm3060_vm12, %v4851_v56, %v4860_v38  ;;  %v4869_v1 = vsel %vm3060_vm12, %v4867_v39, %v4868_v7  ;;  %v4878_v34 = vrot.slane %v4797_v46, 2 }
 0x4ae   : > { %6910 = vmatpush3.bf16.msra.mxu0 %v6909_v54  ;;  %6942 = vmatpush3.bf16.msra.mxu1 %v6941_v8  ;;  %v4864_v54 = vrot.slane %v4792_v47, 2  ;;  %v4870_v8 = vrot.slane %v4794_v16, 2  ;;  %v4879_v63 = vsel %vm3060_vm12, %v4868_v7, %v4878_v34 }
 0x4b0   : > { %v4866_v55 = vsel %vm3060_vm12, %v4864_v54, %v4865_v48  ;;  %v4872_v15 = vsel %vm3060_vm12, %v4870_v8, %v4871_v58 }
 0x4b1   : > { %5038 = vmatmul.mubr.f32.vlgmr.msra.gmra.mrb[48].mxu0 %v4826_v22  ;;  %5133 = vmatmul.mubr.f32.vlgmr.msra.gmra.mrb[48].mxu1 %v4832_v26 }
 0x4b2   : > { %5042 = vmatprep.mubr.f32.mxu0 %v4839_v44  ;;  %5137 = vmatprep.mubr.f32.mxu1 %v4843_v12 }
 0x4b5   : > { %5043 = vmatmul.mubr.f32.gmra.mrb[50].mxu0 %v4837_v37  ;;  %5138 = vmatmul.mubr.f32.gmra.mrb[50].mxu1 %v4841_v17 }
 0x4b6   : > { %5047 = vmatprep.mubr.f32.mxu0 %v4849_v21  ;;  %5142 = vmatprep.mubr.f32.mxu1 %v4855_v20 }
 0x4b9   : > { %5048 = vmatmul.mubr.f32.gmra.mrb[52].mxu0 %v4846_v2  ;;  %5143 = vmatmul.mubr.f32.gmra.mrb[52].mxu1 %v4852_v25 }
 0x4ba   : > { %5052 = vmatprep.mubr.f32.mxu0 %v4859_v35  ;;  %5147 = vmatprep.mubr.f32.mxu1 %v4863_v49 }
 0x4bd   : > { %5053 = vmatmul.mubr.f32.gmra.mrb[54].mxu0 %v4857_v40  ;;  %5148 = vmatmul.mubr.f32.gmra.mrb[54].mxu1 %v4861_v59 }
 0x4be   : > { %5057 = vmatprep.mubr.f32.mxu0 %v4869_v1  ;;  %5152 = vmatprep.mubr.f32.mxu1 %v4875_v61 }
 0x4c1   : > { %5058 = vmatmul.mubr.f32.gmra.mrb[56].mxu0 %v4866_v55  ;;  %5153 = vmatmul.mubr.f32.gmra.mrb[56].mxu1 %v4872_v15 }
 0x4c2   : > { %5062 = vmatprep.mubr.f32.mxu0 %v4879_v63  ;;  %5157 = vmatprep.mubr.f32.mxu1 %v4883_v11 }
 0x4c5   : > { %5063 = vmatmul.mubr.f32.gmra.mrb[58].mxu0 %v4877_v32  ;;  %5158 = vmatmul.mubr.f32.gmra.mrb[58].mxu1 %v4881_v13 }
 0x543   : > { %v5523_v41 = vpop.f32.mrb[24].mxu0  ;;  %v5573_v14 = vpop.f32.mrb[24].mxu1 }
 0x544   : > { %v5524_v22 = vpop.f32.mrb[25].mxu0  ;;  %v5574_v26 = vpop.f32.mrb[25].mxu1 }
 0x545   : > { %v5525_v43 = vadd.f32 %v5524_v22, %v5523_v41  ;;  %v5575_v44 = vadd.f32 %v5574_v26, %v5573_v14 }
 0x547   : > { %v5526_v42 = vpop.f32.mrb[26].mxu0  ;;  %v4558_v5 = vadd.f32 %v5575_v44, %v5525_v43  ;;  %v5576_v27 = vpop.f32.mrb[26].mxu1 }
 0x548   : > { %v5527_v12 = vpop.f32.mrb[27].mxu0  ;;  %v5577_v3 = vpop.f32.mrb[27].mxu1 }
 0x549   : > { %v5528_v30 = vadd.f32 %v5527_v12, %v5526_v42  ;;  %v5578_v18 = vadd.f32 %v5577_v3, %v5576_v27 }
 0x54b   : > { %v5529_v19 = vpop.f32.mrb[28].mxu0  ;;  %v4563_v29 = vadd.f32 %v5578_v18, %v5528_v30  ;;  %v5579_v37 = vpop.f32.mrb[28].mxu1 }
 0x54c   : > { %v5530_v53 = vpop.f32.mrb[29].mxu0  ;;  %v5580_v17 = vpop.f32.mrb[29].mxu1 }
 0x54d   : > { %v5531_v45 = vadd.f32 %v5530_v53, %v5529_v19  ;;  %v5581_v21 = vadd.f32 %v5580_v17, %v5579_v37 }
 0x54f   : > { %v5532_v51 = vpop.f32.mrb[30].mxu0  ;;  %v4568_v57 = vadd.f32 %v5581_v21, %v5531_v45  ;;  %v5582_v28 = vpop.f32.mrb[30].mxu1 }
 0x550   : > { %v5533_v20 = vpop.f32.mrb[31].mxu0  ;;  %v5583_v24 = vpop.f32.mrb[31].mxu1 }
 0x551   : > { %v5534_v9 = vadd.f32 %v5533_v20, %v5532_v51  ;;  %v5584_v0 = vadd.f32 %v5583_v24, %v5582_v28 }
 0x553   : > { %v5535_v23 = vpop.f32.mrb[32].mxu0  ;;  %v4573_v56 = vadd.f32 %v5584_v0, %v5534_v9  ;;  %v5585_v33 = vpop.f32.mrb[32].mxu1 }
 0x554   : > { %v5536_v2 = vpop.f32.mrb[33].mxu0  ;;  %v5586_v25 = vpop.f32.mrb[33].mxu1 }
 0x555   : > { %v5537_v6 = vadd.f32 %v5536_v2, %v5535_v23  ;;  %v5587_v35 = vadd.f32 %v5586_v25, %v5585_v33 }
 0x557   : > { %v5538_v38 = vpop.f32.mrb[34].mxu0  ;;  %v4578_v39 = vadd.f32 %v5587_v35, %v5537_v6  ;;  %v5588_v47 = vpop.f32.mrb[34].mxu1 }
 0x558   : > { %v5539_v49 = vpop.f32.mrb[35].mxu0  ;;  %v5589_v16 = vpop.f32.mrb[35].mxu1 }
 0x559   : > { %v5540_v52 = vadd.f32 %v5539_v49, %v5538_v38  ;;  %v5590_v46 = vadd.f32 %v5589_v16, %v5588_v47  ;;  %v5483_v47 = vld [vmem:[#allocation14] ss:$0 sm:$0xff] }
 0x55b   : > { %v4583_v7 = vadd.f32 %v5590_v46, %v5540_v52 }
 0x563   : > { %v5623_v31 = vpop.f32.mrb[36].mxu0  ;;  %v5673_v40 = vpop.f32.mrb[36].mxu1 }
 0x564   : > { %v5624_v50 = vpop.f32.mrb[37].mxu0  ;;  %v5674_v59 = vpop.f32.mrb[37].mxu1 }
 0x565   : > { %v5625_v54 = vadd.f32 %v5624_v50, %v5623_v31  ;;  %v5675_v1 = vadd.f32 %v5674_v59, %v5673_v40 }
 0x567   : > { %v4653_v8 = vadd.f32 %v5625_v54, %v4558_v5  ;;  %v5626_v34 = vpop.f32.mrb[38].mxu0  ;;  %v5676_v62 = vpop.f32.mrb[38].mxu1 }
 0x568   : > { %v5627_v61 = vpop.f32.mrb[39].mxu0  ;;  %v5677_v4 = vpop.f32.mrb[39].mxu1 }
 0x569   : > { %v4748_v48 = vadd.f32 %v5675_v1, %v4653_v8  ;;  %v5628_v10 = vadd.f32 %v5627_v61, %v5626_v34  ;;  %v5678_v58 = vadd.f32 %v5677_v4, %v5676_v62 }
 0x56b   : > { %v4658_v55 = vadd.f32 %v5628_v10, %v4563_v29  ;;  %v5629_v36 = vpop.f32.mrb[40].mxu0  ;;  %v5679_v15 = vpop.f32.mrb[40].mxu1 }
 0x56c   : > { %v5630_v63 = vpop.f32.mrb[41].mxu0  ;;  %v5680_v32 = vpop.f32.mrb[41].mxu1 }
 0x56d   : > { %v4753_v60 = vadd.f32 %v5678_v58, %v4658_v55  ;;  %v5631_v11 = vadd.f32 %v5630_v63, %v5629_v36  ;;  %v5681_v13 = vadd.f32 %v5680_v32, %v5679_v15 }
 0x56f   : > { %v4663_v41 = vadd.f32 %v5631_v11, %v4568_v57  ;;  %v5632_v14 = vpop.f32.mrb[42].mxu0  ;;  %v5682_v22 = vpop.f32.mrb[42].mxu1 }
 0x570   : > { %v5633_v43 = vpop.f32.mrb[43].mxu0  ;;  %v5683_v42 = vpop.f32.mrb[43].mxu1 }
 0x571   : > { %v4758_v26 = vadd.f32 %v5681_v13, %v4663_v41  ;;  %v5634_v44 = vadd.f32 %v5633_v43, %v5632_v14  ;;  %v5684_v5 = vadd.f32 %v5683_v42, %v5682_v22 }
 0x573   : > { %v4668_v27 = vadd.f32 %v5634_v44, %v4573_v56  ;;  %v5635_v12 = vpop.f32.mrb[44].mxu0  ;;  %v5685_v30 = vpop.f32.mrb[44].mxu1 }
 0x574   : > { %v5636_v3 = vpop.f32.mrb[45].mxu0  ;;  %v5686_v29 = vpop.f32.mrb[45].mxu1 }
 0x575   : > { %v4763_v18 = vadd.f32 %v5684_v5, %v4668_v27  ;;  %v5637_v19 = vadd.f32 %v5636_v3, %v5635_v12  ;;  %v5687_v37 = vadd.f32 %v5686_v29, %v5685_v30 }
 0x577   : > { %v4673_v53 = vadd.f32 %v5637_v19, %v4578_v39  ;;  %v5638_v45 = vpop.f32.mrb[46].mxu0  ;;  %v5688_v17 = vpop.f32.mrb[46].mxu1 }
 0x578   : > { %v5639_v21 = vpop.f32.mrb[47].mxu0  ;;  %v5689_v28 = vpop.f32.mrb[47].mxu1 }
 0x579   : > { %v4768_v51 = vadd.f32 %v5687_v37, %v4673_v53  ;;  %v5640_v57 = vadd.f32 %v5639_v21, %v5638_v45  ;;  %v5690_v20 = vadd.f32 %v5689_v28, %v5688_v17 }
 0x57b   : > { %v4678_v9 = vadd.f32 %v5640_v57, %v4583_v7 }
 0x57d   : > { %v9073_v24 = vadd.f32 %v5690_v20, %v4678_v9 }
 0x584   : > { %v5723_v0 = vpop.f32.mrb[48].mxu0  ;;  %v5773_v23 = vpop.f32.mrb[48].mxu1 }
 0x585   : > { %v5724_v56 = vpop.f32.mrb[49].mxu0  ;;  %v5774_v2 = vpop.f32.mrb[49].mxu1 }
 0x586   : > { %v5725_v33 = vadd.f32 %v5724_v56, %v5723_v0  ;;  %v5775_v6 = vadd.f32 %v5774_v2, %v5773_v23 }
 0x588   : > { %v5726_v25 = vpop.f32.mrb[50].mxu0  ;;  %v5135_v35 = vadd.f32 %v5775_v6, %v5725_v33  ;;  %v5776_v38 = vpop.f32.mrb[50].mxu1 }
 0x589   : > { %v5727_v39 = vpop.f32.mrb[51].mxu0  ;;  %v5777_v52 = vpop.f32.mrb[51].mxu1 }
 0x58a   : > { %v5728_v49 = vadd.f32 %v5727_v39, %v5726_v25  ;;  %v5163_v16 = vadd.f32 %v5135_v35, %v4748_v48  ;;  %v5778_v46 = vadd.f32 %v5777_v52, %v5776_v38 }
 0x58c   : > { %v5729_v7 = vpop.f32.mrb[52].mxu0  ;;  %v5176_v31 = vadd.f32 %v5483_v47, %v5163_v16  ;;  %v5140_v40 = vadd.f32 %v5778_v46, %v5728_v49  ;;  %v5779_v50 = vpop.f32.mrb[52].mxu1 }
 0x58d   : > { %v5730_v54 = vpop.f32.mrb[53].mxu0  ;;  %v5780_v1 = vpop.f32.mrb[53].mxu1 }
 0x58e   : > { %v5731_v59 = vadd.f32 %v5730_v54, %v5729_v7  ;;  %5183 = vst.msk [vmem:[%s9076_s2] sm:$0xff] %vm5182_vm1, %v5176_v31  ;;  %v5164_v8 = vadd.f32 %v5140_v40, %v4753_v60  ;;  %v5781_v34 = vadd.f32 %v5780_v1, %v5779_v50 }
 0x590   : > { %v5732_v62 = vpop.f32.mrb[54].mxu0  ;;  %v5177_v61 = vadd.f32 %v5483_v47, %v5164_v8  ;;  %v5145_v48 = vadd.f32 %v5781_v34, %v5731_v59  ;;  %v5782_v10 = vpop.f32.mrb[54].mxu1 }
 0x591   : > { %v5733_v4 = vpop.f32.mrb[55].mxu0  ;;  %v5783_v55 = vpop.f32.mrb[55].mxu1 }
 0x592   : > { %v5734_v58 = vadd.f32 %v5733_v4, %v5732_v62  ;;  %5184 = vst.msk [vmem:[%s9076_s2 + $0x8] sm:$0xff] %vm5182_vm1, %v5177_v61  ;;  %v5165_v36 = vadd.f32 %v5145_v48, %v4758_v26  ;;  %v5784_v15 = vadd.f32 %v5783_v55, %v5782_v10 }
 0x594   : > { %v5735_v63 = vpop.f32.mrb[56].mxu0  ;;  %v5178_v11 = vadd.f32 %v5483_v47, %v5165_v36  ;;  %v5150_v32 = vadd.f32 %v5784_v15, %v5734_v58  ;;  %v5785_v13 = vpop.f32.mrb[56].mxu1 }
 0x595   : > { %v5736_v41 = vpop.f32.mrb[57].mxu0  ;;  %v5786_v14 = vpop.f32.mrb[57].mxu1 }
 0x596   : > { %v5737_v60 = vadd.f32 %v5736_v41, %v5735_v63  ;;  %5185 = vst.msk [vmem:[%s9076_s2 + $0x10] sm:$0xff] %vm5182_vm1, %v5178_v11  ;;  %v5166_v22 = vadd.f32 %v5150_v32, %v4763_v18  ;;  %v5787_v43 = vadd.f32 %v5786_v14, %v5785_v13 }
 0x598   : > { %v5738_v44 = vpop.f32.mrb[58].mxu0  ;;  %v5179_v42 = vadd.f32 %v5483_v47, %v5166_v22  ;;  %v5155_v5 = vadd.f32 %v5787_v43, %v5737_v60  ;;  %v5788_v26 = vpop.f32.mrb[58].mxu1 }
 0x599   : > { %v5739_v27 = vpop.f32.mrb[59].mxu0  ;;  %v5789_v30 = vpop.f32.mrb[59].mxu1 }
 0x59a   : > { %v5740_v12 = vadd.f32 %v5739_v27, %v5738_v44  ;;  %5186 = vst.msk [vmem:[%s9076_s2 + $0x18] sm:$0xff] %vm5182_vm1, %v5179_v42  ;;  %v5167_v3 = vadd.f32 %v5155_v5, %v4768_v51  ;;  %v5790_v19 = vadd.f32 %v5789_v30, %v5788_v26 }
 0x59c   : > { %v5180_v29 = vadd.f32 %v5483_v47, %v5167_v3  ;;  %v5160_v37 = vadd.f32 %v5790_v19, %v5740_v12 }
 0x59e   : > { %5187 = vst.msk [vmem:[%s9076_s2 + $0x20] sm:$0xff] %vm5182_vm1, %v5180_v29  ;;  %v5168_v18 = vadd.f32 %v5160_v37, %v9073_v24 }
 0x5a0   : > { %v5181_v53 = vadd.f32 %v5483_v47, %v5168_v18 }
 0x5a2   : > { %5188 = vst.msk [vmem:[%s9076_s2 + $0x28] sm:$0xff] %vm5182_vm1, %v5181_v53 }
 0x5a3   : > { %7450 = shalt.err (!%p7447_p2)
}
 0x5a4   : > { %s7451_s16 = scalar_lea.hbm %s9094_s22, 768  ;;  %s7455_s1 = scalar_lea.hbm %s9150_s8, 1536 }
 0x5a5   : > { %p7452_p1 = scmp.ne.s32.totalorder %s9094_s22, %s7451_s16  ;;  %p7456_p13 = scmp.lt.u32.totalorder %s9094_s22, %s9150_s8 }
 0x5a6   : > { %p7457_p12 = scmp.lt.u32.totalorder %s7455_s1, %s7451_s16  ;;  %p7459_p3 = scmp.lt.u32.totalorder %s7451_s16, %s9094_s22 }
 0x5a7   : > { %p7453_p7 = pnand %p7452_p1, %p9177_p5 }
 0x5a8   : > { %p7458_p0 = por %p7457_p12, %p7456_p13 }
 0x5a9   : > { %p7454_p11 = pneg %p7453_p7 }
 0x5aa   : > { %p7460_p9 = por %p7459_p3, %p7458_p0 }
 0x5ac   : > { %p7461_p4 = pnand %p7460_p9, %p7454_p11 }
 0x5ae   : > { %7464 = shalt.err (!%p7461_p4)
}
 0x5af   : > { %s7534_s14 = smov 128   ;;  %s7535_s12 = smov 8  }
 0x5b0   : > { %7141 = dma.vmem_to_hbm [thread:$0]  (%p9177_p5), %s9096_s24, 768, %s9094_s22, %s5190_s11, %s7534_s14, %s7534_s14, %s7535_s12  }
 0x5b1 PF: > { %s5219_s15 = sand.u32 1, %s7507_s27   ;;  %p9178_p10 = scmp.ne.s32.totalorder %s9164_s10, 0 }
 0x5b2   : > { %p9179_p8 = scmp.ge.s32.totalorder %s7519_s30, 2  ;;  %s5220_s20 = scalar_lea.sflag [#allocation6], %s5219_s15 }
 0x5b4   : > { %p7167_p6 = pnand %p9179_p8, %p9178_p10 }
 0x5b6   : > { %7502 = dma.done.wait (!%p7167_p6), %s5220_s20, 768  }
 0x5b7   : > { %7504 = vsyncadd (!%p7167_p6), %s5220_s20, 4294966528  ;;  %p25_p2 = scmp.ge.s32.totalorder %s7763_s13, 4   ;;  %s9180_s27 = smov %s7511_s28 }
 0x5b8   : > { %s9181_s28 = smov %s7515_s29  ;;  %s9182_s29 = smov %s7775_s17 }
 0x5b9   : > { %s9183_s30 = smov %s7763_s13  ;;  %27 = sbr.rel (!%p25_p2) target bundleno = 12 (0xc), region = 138 }
 0x5c0   :  { %5225 = vsyncpa [#allocation5], 1 }
 0x5c1   :  { %5227 = vsyncpa [#allocation5 + $0x1], 1 }
 0x5c2   :  { %5228 = vsyncpa [#allocation9], 1 }
 0x5c3   :  { %5229 = vsyncpa [#allocation12], 1 }
 0x5c4   :  { %5230 = vsyncpa [#allocation15], 1 }
 0x5c5   :  { %5231 = vsyncpa [#allocation6], 1 }
 0x5c6   :  { %5233 = vsyncpa [#allocation6 + $0x1], 1 }
 0x5c7   :  { %5234 = vsyncpa [#allocation7], 1 }
 0x5c8   :  { %5236 = vsyncpa [#allocation7 + $0x1], 1 }

</bundles_post_ra>
